<compile_context>
chip_gen: v6e
topology: v6e:2x2x1
jax: 0.10.0
libtpu: 0.0.40
codegen_flags: <defaults>
</compile_context>

<pallas_src>
import jax
import jax.numpy as jnp
from jax.experimental import pallas as pl
from jax.experimental.pallas import tpu as pltpu


_COMPILER_PARAMS = pltpu.CompilerParams(
    dimension_semantics=("parallel",),        # batch-tile grid axis -> megacore
    vmem_limit_bytes=48 * 1024 * 1024,        # <= ~48 MiB also fits v7x (64 MiB/TC)
)


def _full_spec(arr):
    """Whole-array block (weights / per-channel params), constant block index."""
    zeros = (0,) * arr.ndim
    return pl.BlockSpec(arr.shape, lambda i: zeros)


# ---------------------------------------------------------------------------
# In-kernel helpers
# ---------------------------------------------------------------------------
def _pool2x2(act_ref):
    """2x2 / stride-2 max pool of an f32 VMEM act ref -> f32 value (nt,H/2,W/2,C).

    W-pair max via stride-2 sublane loads (native 32-bit path), H-pair max via a
    pure regrouping reshape on the value (no extra scratch).
    """
    nt, H, W, C = act_ref.shape
    wmax = jnp.maximum(act_ref[:, :, pl.ds(0, W // 2, stride=2), :],
                       act_ref[:, :, pl.ds(1, W // 2, stride=2), :])
    wmax = wmax.reshape(nt, H // 2, 2, W // 2, C)
    return jnp.maximum(wmax[:, :, 0], wmax[:, :, 1])


def _conv3x3_bn_relu(pad_ref, w_ref, scale_ref, shift_ref, act_ref):
    """3x3 conv (input already halo-padded in VMEM) + folded BN(eval) + ReLU.

    K-packed taps: per dy, the three dx-shifted slices are concatenated along
    the channel (lane) axis so the conv is 3 MXU matmuls with K = 3*Cin,
    accumulated in one register/VMEM chain and stored once to act_ref.
    """
    nt, Hp, Wp, Cin = pad_ref.shape
    H, W = Hp - 2, Wp - 2
    Cout = act_ref.shape[-1]
    rows = nt * H * W

    acc = None
    for dy in range(3):
        patch = jnp.concatenate(
            [pad_ref[:, dy:dy + H, dx:dx + W, :].astype(jnp.bfloat16)
             for dx in range(3)],
            axis=-1).reshape(rows, 3 * Cin)
        part = jnp.dot(patch, w_ref[dy], preferred_element_type=jnp.float32)
        acc = part if acc is None else acc + part

    act_ref[...] = jnp.maximum(
        acc * scale_ref[...] + shift_ref[...], 0.0).reshape(nt, H, W, Cout)


# ---------------------------------------------------------------------------
# Fused kernel: conv1 -> pool -> conv2 -> pool -> conv3 -> pool -> fc1 -> fc2@fc3
# ---------------------------------------------------------------------------
def _cnn_kernel(x_ref,
                w1_ref, s1_ref, t1_ref,
                w2_ref, s2_ref, t2_ref,
                w3_ref, s3_ref, t3_ref,
                wf1_ref, bf1_ref, wf23_ref, bf23_ref,
                o_ref,
                act1_ref, pad1_ref, act2_ref, pad2_ref, act3_ref):
    nt = x_ref.shape[0]

    # Zero the halo-padded scratches; interiors are fully overwritten below and
    # the 1-pixel borders stay zero (= Conv2d padding=1).  Re-zeroed every grid
    # step so correctness never depends on step ordering / megacore sharding.
    pad1_ref[...] = jnp.zeros(pad1_ref.shape, pad1_ref.dtype)
    pad2_ref[...] = jnp.zeros(pad2_ref.shape, pad2_ref.dtype)

    # conv1: input was im2col'd in the wrapper -> one K=27 GEMM (instead of nine
    # near-empty K=3 matmuls on a heavily lane-padded NHWC block).
    acc1 = jnp.dot(x_ref[...].reshape(nt * 1024, 27), w1_ref[...],
                   preferred_element_type=jnp.float32)
    act1_ref[...] = jnp.maximum(
        acc1 * s1_ref[...] + t1_ref[...], 0.0).reshape(nt, 32, 32, 32)
    pad1_ref[:, 1:17, 1:17, :] = _pool2x2(act1_ref)       # (nt,16,16,32) interior

    # conv2 (32 -> 64) and conv3 (64 -> 128), each + BN + ReLU + 2x2 pool.
    _conv3x3_bn_relu(pad1_ref, w2_ref, s2_ref, t2_ref, act2_ref)
    pad2_ref[:, 1:9, 1:9, :] = _pool2x2(act2_ref)          # (nt, 8, 8,64) interior

    _conv3x3_bn_relu(pad2_ref, w3_ref, s3_ref, t3_ref, act3_ref)
    pooled3 = _pool2x2(act3_ref)                            # (nt, 4, 4, 128) f32

    # fc1(2048 -> 256): the PyTorch NCHW-flatten permutation is folded into the
    # (16, 128, 256) weight, so we contract 16 K=128 blocks straight off the
    # NHWC features (no lane-width-2048 relayout of the activations).
    h = None
    for s in range(16):
        hh, ww = divmod(s, 4)
        part = jnp.dot(pooled3[:, hh, ww, :].astype(jnp.bfloat16), wf1_ref[s],
                       preferred_element_type=jnp.float32)
        h = part if h is None else h + part
    h = jnp.maximum(h + bf1_ref[...], 0.0)                  # (nt, 256) f32

    # fc2(256->2) @ fc3(2->10) folded into one (256, 10) GEMM (exact: no
    # activation between them in the reference model).
    out = jnp.dot(h.astype(jnp.bfloat16), wf23_ref[...],
                  preferred_element_type=jnp.float32) + bf23_ref[...]
    o_ref[...] = out.astype(o_ref.dtype)


# ---------------------------------------------------------------------------
# Wrapper: layout plumbing + the single pallas_call
# ---------------------------------------------------------------------------
def _im2col_3x3(x_nhwc):
    """(N, 32, 32, 3) bf16 -> (N, 1024, 27) bf16, K ordered (dy, dx, cin)."""
    xp = jnp.pad(x_nhwc, ((0, 0), (1, 1), (1, 1), (0, 0)))
    cols = jnp.concatenate(
        [xp[:, dy:dy + 32, dx:dx + 32, :] for dy in range(3) for dx in range(3)],
        axis=-1)
    return cols.reshape(x_nhwc.shape[0], 32 * 32, 27)


def cifar10_cnn2_forward(x_nchw, p, *, n_tile=8):
    N = x_nchw.shape[0]
    nt = min(N, n_tile)                      # batch tile (per-step VMEM budget)
    n_pad = ((N + nt - 1) // nt) * nt

    # NCHW (PyTorch) -> NHWC bf16, then im2col for the conv1 GEMM.
    x = jnp.transpose(x_nchw, (0, 2, 3, 1)).astype(jnp.bfloat16)
    if n_pad != N:
        x = jnp.pad(x, ((0, n_pad - N), (0, 0), (0, 0), (0, 0)))
    cols = _im2col_3x3(x)                                    # (n_pad, 1024, 27)

    logits = pl.pallas_call(
        _cnn_kernel,
        out_shape=jax.ShapeDtypeStruct((n_pad, 10), jnp.float32),
        grid=(n_pad // nt,),
        in_specs=[
            pl.BlockSpec((nt, 32 * 32, 27), lambda i: (i, 0, 0)),
            _full_spec(p["c1_w"]), _full_spec(p["c1_scale"]), _full_spec(p["c1_shift"]),
            _full_spec(p["c2_w"]), _full_spec(p["c2_scale"]), _full_spec(p["c2_shift"]),
            _full_spec(p["c3_w"]), _full_spec(p["c3_scale"]), _full_spec(p["c3_shift"]),
            _full_spec(p["fc1_w"]), _full_spec(p["fc1_b"]),
            _full_spec(p["fc23_w"]), _full_spec(p["fc23_b"]),
        ],
        out_specs=pl.BlockSpec((nt, 10), lambda i: (i, 0)),
        scratch_shapes=[
            pltpu.VMEM((nt, 32, 32, 32), jnp.float32),   # conv1 pre-pool act
            pltpu.VMEM((nt, 18, 18, 32), jnp.float32),   # pooled1 + halo (conv2 in)
            pltpu.VMEM((nt, 16, 16, 64), jnp.float32),   # conv2 pre-pool act
            pltpu.VMEM((nt, 10, 10, 64), jnp.float32),   # pooled2 + halo (conv3 in)
            pltpu.VMEM((nt, 8, 8, 128), jnp.float32),    # conv3 pre-pool act
        ],
        compiler_params=_COMPILER_PARAMS,
    )(cols,
      p["c1_w"], p["c1_scale"], p["c1_shift"],
      p["c2_w"], p["c2_scale"], p["c2_shift"],
      p["c3_w"], p["c3_scale"], p["c3_shift"],
      p["fc1_w"], p["fc1_b"], p["fc23_w"], p["fc23_b"])
    return logits[:N]


# ---------------------------------------------------------------------------
# Parameters (deterministic synthetic init, kernel-ready layouts)
# ---------------------------------------------------------------------------
def init_params(key):
    ks = iter(jax.random.split(key, 32))
    p = {}

    def nrm(shape, s):
        return s * jax.random.normal(next(ks), shape, jnp.float32)

    def conv_bn(name, cin, cout, packed_shape):
        w = nrm((3, 3, cin, cout), 1.0 / (9.0 * cin) ** 0.5)   # HWIO conv weight
        b = nrm((cout,), 0.05)                                  # conv bias
        gamma = 1.0 + nrm((cout,), 0.1)
        beta = nrm((cout,), 0.1)
        mean = nrm((cout,), 0.1)
        var = 1.0 + jax.random.uniform(next(ks), (cout,), jnp.float32)
        eps = 1e-5
        scale = gamma * jax.lax.rsqrt(var + eps)
        shift = beta + (b - mean) * scale   # conv bias folded into BN shift (eval)
        p[name + "_w"] = w.reshape(packed_shape).astype(jnp.bfloat16)
        p[name + "_scale"] = scale.reshape(1, cout)
        p[name + "_shift"] = shift.reshape(1, cout)

    conv_bn("c1", 3, 32, (27, 32))         # im2col GEMM weight: K index = (dy,dx,cin)
    conv_bn("c2", 32, 64, (3, 96, 64))     # per-dy K-packed:    K index = (dx,cin)
    conv_bn("c3", 64, 128, (3, 192, 128))

    # fc1: PyTorch NCHW-flatten order f = c*16 + h*4 + w; permute the rows once
    # so the kernel consumes NHWC features directly: layout (s=h*4+w, c, out).
    fc1_w = nrm((128 * 4 * 4, 256), 1.0 / (128 * 4 * 4) ** 0.5)
    fc1_b = nrm((1, 256), 0.05)
    p["fc1_w"] = (fc1_w.reshape(128, 4, 4, 256)
                  .transpose(1, 2, 0, 3)
                  .reshape(16, 128, 256)
                  .astype(jnp.bfloat16))
    p["fc1_b"] = fc1_b

    # fc2 (256->2) and fc3 (2->10): no activation between them -> exact fold.
    fc2_w = nrm((256, 2), 1.0 / 256 ** 0.5)
    fc2_b = nrm((1, 2), 0.05)
    fc3_w = nrm((2, 10), 1.0 / 2 ** 0.5)
    fc3_b = nrm((1, 10), 0.05)
    p["fc23_w"] = (fc2_w @ fc3_w).astype(jnp.bfloat16)
    p["fc23_b"] = fc2_b @ fc3_w + fc3_b
    return p


if __name__ == "__main__":
    key = jax.random.PRNGKey(0)
    pkey, xkey = jax.random.split(key)
    params = init_params(pkey)
    # CIFAR-10 sized input is required by the Linear(128*4*4, 256) layer.
    x = jax.random.normal(xkey, (2, 3, 32, 32), jnp.float32)
    out = jax.jit(cifar10_cnn2_forward)(x, params)
    out = jax.block_until_ready(out)
    assert out.shape == (2, 10) and bool(jnp.all(jnp.isfinite(out)))
    print("KERNEL_OK")
</pallas_src>

<mosaic_0001>
module attributes {stable_mosaic.version = 11 : i64} {
  func.func @_cnn_kernel(%arg0: i32, %arg1: memref<2x1024x27xbf16, #tpu.memory_space<vmem>>, %arg2: memref<27x32xbf16, #tpu.memory_space<vmem>>, %arg3: memref<1x32xf32, #tpu.memory_space<vmem>>, %arg4: memref<1x32xf32, #tpu.memory_space<vmem>>, %arg5: memref<3x96x64xbf16, #tpu.memory_space<vmem>>, %arg6: memref<1x64xf32, #tpu.memory_space<vmem>>, %arg7: memref<1x64xf32, #tpu.memory_space<vmem>>, %arg8: memref<3x192x128xbf16, #tpu.memory_space<vmem>>, %arg9: memref<1x128xf32, #tpu.memory_space<vmem>>, %arg10: memref<1x128xf32, #tpu.memory_space<vmem>>, %arg11: memref<16x128x256xbf16, #tpu.memory_space<vmem>>, %arg12: memref<1x256xf32, #tpu.memory_space<vmem>>, %arg13: memref<256x10xbf16, #tpu.memory_space<vmem>>, %arg14: memref<1x10xf32, #tpu.memory_space<vmem>>, %arg15: memref<2x10xf32, #tpu.memory_space<vmem>>, %arg16: memref<2x32x32x32xf32, #tpu.memory_space<vmem>>, %arg17: memref<2x18x18x32xf32, #tpu.memory_space<vmem>>, %arg18: memref<2x16x16x64xf32, #tpu.memory_space<vmem>>, %arg19: memref<2x10x10x64xf32, #tpu.memory_space<vmem>>, %arg20: memref<2x8x8x128xf32, #tpu.memory_space<vmem>>) attributes {dimension_semantics = [#tpu.dimension_semantics<parallel>], iteration_bounds = array<i64: 1>, scalar_prefetch = 0 : i64, scratch_operands = 5 : i64, tpu.core_type = #tpu.core_type<tc>, window_params = [{transform_indices = @transform_0, window_bounds = array<i64: 2, 1024, 27>}, {pipeline_mode = #tpu.pipeline_mode<synchronous>, transform_indices = @transform_1, window_bounds = array<i64: 27, 32>}, {pipeline_mode = #tpu.pipeline_mode<synchronous>, transform_indices = @transform_2, window_bounds = array<i64: 1, 32>}, {pipeline_mode = #tpu.pipeline_mode<synchronous>, transform_indices = @transform_3, window_bounds = array<i64: 1, 32>}, {pipeline_mode = #tpu.pipeline_mode<synchronous>, transform_indices = @transform_4, window_bounds = array<i64: 3, 96, 64>}, {pipeline_mode = #tpu.pipeline_mode<synchronous>, transform_indices = @transform_5, window_bounds = array<i64: 1, 64>}, {pipeline_mode = #tpu.pipeline_mode<synchronous>, transform_indices = @transform_6, window_bounds = array<i64: 1, 64>}, {pipeline_mode = #tpu.pipeline_mode<synchronous>, transform_indices = @transform_7, window_bounds = array<i64: 3, 192, 128>}, {pipeline_mode = #tpu.pipeline_mode<synchronous>, transform_indices = @transform_8, window_bounds = array<i64: 1, 128>}, {pipeline_mode = #tpu.pipeline_mode<synchronous>, transform_indices = @transform_9, window_bounds = array<i64: 1, 128>}, {pipeline_mode = #tpu.pipeline_mode<synchronous>, transform_indices = @transform_10, window_bounds = array<i64: 16, 128, 256>}, {pipeline_mode = #tpu.pipeline_mode<synchronous>, transform_indices = @transform_11, window_bounds = array<i64: 1, 256>}, {pipeline_mode = #tpu.pipeline_mode<synchronous>, transform_indices = @transform_12, window_bounds = array<i64: 256, 10>}, {pipeline_mode = #tpu.pipeline_mode<synchronous>, transform_indices = @transform_13, window_bounds = array<i64: 1, 10>}, {transform_indices = @transform_14, window_bounds = array<i64: 2, 10>}]} {
    %cst = arith.constant 0.000000e+00 : f32
    %0 = vector.broadcast %cst : f32 to vector<2x18x18x32xf32>
    %c0 = arith.constant 0 : index
    %c0_0 = arith.constant 0 : index
    %c0_1 = arith.constant 0 : index
    %c0_2 = arith.constant 0 : index
    %1 = vector.load %arg17[%c0, %c0_0, %c0_1, %c0_2] : memref<2x18x18x32xf32, #tpu.memory_space<vmem>>, vector<2x18x18x32xf32>
    tpu.vector_store %arg17[%c0, %c0_0, %c0_1, %c0_2], %0 {strides = array<i32>} : memref<2x18x18x32xf32, #tpu.memory_space<vmem>>, vector<2x18x18x32xf32>,
    %cst_3 = arith.constant 0.000000e+00 : f32
    %2 = vector.broadcast %cst_3 : f32 to vector<2x10x10x64xf32>
    %c0_4 = arith.constant 0 : index
    %c0_5 = arith.constant 0 : index
    %c0_6 = arith.constant 0 : index
    %c0_7 = arith.constant 0 : index
    %3 = vector.load %arg19[%c0_4, %c0_5, %c0_6, %c0_7] : memref<2x10x10x64xf32, #tpu.memory_space<vmem>>, vector<2x10x10x64xf32>
    tpu.vector_store %arg19[%c0_4, %c0_5, %c0_6, %c0_7], %2 {strides = array<i32>} : memref<2x10x10x64xf32, #tpu.memory_space<vmem>>, vector<2x10x10x64xf32>,
    %c0_8 = arith.constant 0 : index
    %c0_9 = arith.constant 0 : index
    %c0_10 = arith.constant 0 : index
    %4 = vector.load %arg1[%c0_8, %c0_9, %c0_10] : memref<2x1024x27xbf16, #tpu.memory_space<vmem>>, vector<2x1024x27xbf16>
    %5 = vector.shape_cast %4 : vector<2x1024x27xbf16> to vector<2048x27xbf16>
    %c0_11 = arith.constant 0 : index
    %c0_12 = arith.constant 0 : index
    %6 = vector.load %arg2[%c0_11, %c0_12] : memref<27x32xbf16, #tpu.memory_space<vmem>>, vector<27x32xbf16>
    %cst_13 = arith.constant dense<0.000000e+00> : vector<2048x32xf32>
    %7 = tpu.matmul %5, %6, %cst_13 {dimension_numbers = #tpu.dot_dimension_numbers<[1], [0], [0], [1], [0, 0, 1, 1], [], []>} : vector<2048x27xbf16>, vector<27x32xbf16>, vector<2048x32xf32> -> vector<2048x32xf32>
    %c0_14 = arith.constant 0 : index
    %c0_15 = arith.constant 0 : index
    %8 = vector.load %arg3[%c0_14, %c0_15] : memref<1x32xf32, #tpu.memory_space<vmem>>, vector<1x32xf32>
    %9 = vector.broadcast %8 : vector<1x32xf32> to vector<2048x32xf32>
    %10 = arith.mulf %7, %9 : vector<2048x32xf32>
    %c0_16 = arith.constant 0 : index
    %c0_17 = arith.constant 0 : index
    %11 = vector.load %arg4[%c0_16, %c0_17] : memref<1x32xf32, #tpu.memory_space<vmem>>, vector<1x32xf32>
    %12 = vector.broadcast %11 : vector<1x32xf32> to vector<2048x32xf32>
    %13 = arith.addf %10, %12 : vector<2048x32xf32>
    %cst_18 = arith.constant 0.000000e+00 : f32
    %14 = vector.broadcast %cst_18 : f32 to vector<2048x32xf32>
    %15 = arith.maximumf %13, %14 : vector<2048x32xf32>
    %16 = vector.shape_cast %15 : vector<2048x32xf32> to vector<2x32x32x32xf32>
    %c0_19 = arith.constant 0 : index
    %c0_20 = arith.constant 0 : index
    %c0_21 = arith.constant 0 : index
    %c0_22 = arith.constant 0 : index
    %17 = vector.load %arg16[%c0_19, %c0_20, %c0_21, %c0_22] : memref<2x32x32x32xf32, #tpu.memory_space<vmem>>, vector<2x32x32x32xf32>
    tpu.vector_store %arg16[%c0_19, %c0_20, %c0_21, %c0_22], %16 {strides = array<i32>} : memref<2x32x32x32xf32, #tpu.memory_space<vmem>>, vector<2x32x32x32xf32>,
    %c0_23 = arith.constant 0 : index
    %c0_24 = arith.constant 0 : index
    %c0_25 = arith.constant 0 : index
    %c0_26 = arith.constant 0 : index
    %18 = tpu.strided_load %arg16[%c0_23, %c0_24, %c0_25, %c0_26] {strides = array<i32: 1, 1, 2, 1>} : memref<2x32x32x32xf32, #tpu.memory_space<vmem>>, vector<2x32x16x32xf32>
    %c0_27 = arith.constant 0 : index
    %c0_28 = arith.constant 0 : index
    %c1 = arith.constant 1 : index
    %c0_29 = arith.constant 0 : index
    %19 = tpu.strided_load %arg16[%c0_27, %c0_28, %c1, %c0_29] {strides = array<i32: 1, 1, 2, 1>} : memref<2x32x32x32xf32, #tpu.memory_space<vmem>>, vector<2x32x16x32xf32>
    %20 = arith.maximumf %18, %19 : vector<2x32x16x32xf32>
    %21 = vector.shape_cast %20 : vector<2x32x16x32xf32> to vector<2x16x2x16x32xf32>
    %22 = vector.extract_strided_slice %21 {offsets = [0, 0, 0, 0, 0], sizes = [2, 16, 1, 16, 32], strides = [1, 1, 1, 1, 1]} : vector<2x16x2x16x32xf32> to vector<2x16x1x16x32xf32>
    %23 = vector.shape_cast %22 : vector<2x16x1x16x32xf32> to vector<2x16x16x32xf32>
    %24 = vector.extract_strided_slice %21 {offsets = [0, 0, 1, 0, 0], sizes = [2, 16, 1, 16, 32], strides = [1, 1, 1, 1, 1]} : vector<2x16x2x16x32xf32> to vector<2x16x1x16x32xf32>
    %25 = vector.shape_cast %24 : vector<2x16x1x16x32xf32> to vector<2x16x16x32xf32>
    %26 = arith.maximumf %23, %25 : vector<2x16x16x32xf32>
    %c0_30 = arith.constant 0 : index
    %c1_31 = arith.constant 1 : index
    %c1_32 = arith.constant 1 : index
    %c0_33 = arith.constant 0 : index
    %27 = vector.load %arg17[%c0_30, %c1_31, %c1_32, %c0_33] : memref<2x18x18x32xf32, #tpu.memory_space<vmem>>, vector<2x16x16x32xf32>
    tpu.vector_store %arg17[%c0_30, %c1_31, %c1_32, %c0_33], %26 {strides = array<i32>} : memref<2x18x18x32xf32, #tpu.memory_space<vmem>>, vector<2x16x16x32xf32>,
    %c0_34 = arith.constant 0 : index
    %c0_35 = arith.constant 0 : index
    %c0_36 = arith.constant 0 : index
    %c0_37 = arith.constant 0 : index
    %28 = vector.load %arg17[%c0_34, %c0_35, %c0_36, %c0_37] : memref<2x18x18x32xf32, #tpu.memory_space<vmem>>, vector<2x16x16x32xf32>
    %29 = arith.truncf %28 : vector<2x16x16x32xf32> to vector<2x16x16x32xbf16>
    %c0_38 = arith.constant 0 : index
    %c0_39 = arith.constant 0 : index
    %c1_40 = arith.constant 1 : index
    %c0_41 = arith.constant 0 : index
    %30 = vector.load %arg17[%c0_38, %c0_39, %c1_40, %c0_41] : memref<2x18x18x32xf32, #tpu.memory_space<vmem>>, vector<2x16x16x32xf32>
    %31 = arith.truncf %30 : vector<2x16x16x32xf32> to vector<2x16x16x32xbf16>
    %c0_42 = arith.constant 0 : index
    %c0_43 = arith.constant 0 : index
    %c2 = arith.constant 2 : index
    %c0_44 = arith.constant 0 : index
    %32 = vector.load %arg17[%c0_42, %c0_43, %c2, %c0_44] : memref<2x18x18x32xf32, #tpu.memory_space<vmem>>, vector<2x16x16x32xf32>
    %33 = arith.truncf %32 : vector<2x16x16x32xf32> to vector<2x16x16x32xbf16>
    %34 = tpu.concatenate %29, %31, %33 in 3 : vector<2x16x16x32xbf16>, vector<2x16x16x32xbf16>, vector<2x16x16x32xbf16> -> vector<2x16x16x96xbf16>
    %35 = vector.shape_cast %34 : vector<2x16x16x96xbf16> to vector<512x96xbf16>
    %c0_45 = arith.constant 0 : index
    %c0_46 = arith.constant 0 : index
    %c0_47 = arith.constant 0 : index
    %36 = vector.load %arg5[%c0_45, %c0_46, %c0_47] : memref<3x96x64xbf16, #tpu.memory_space<vmem>>, vector<1x96x64xbf16>
    %37 = vector.shape_cast %36 : vector<1x96x64xbf16> to vector<96x64xbf16>
    %cst_48 = arith.constant dense<0.000000e+00> : vector<512x64xf32>
    %38 = tpu.matmul %35, %37, %cst_48 {dimension_numbers = #tpu.dot_dimension_numbers<[1], [0], [0], [1], [0, 0, 1, 1], [], []>} : vector<512x96xbf16>, vector<96x64xbf16>, vector<512x64xf32> -> vector<512x64xf32>
    %c0_49 = arith.constant 0 : index
    %c1_50 = arith.constant 1 : index
    %c0_51 = arith.constant 0 : index
    %c0_52 = arith.constant 0 : index
    %39 = vector.load %arg17[%c0_49, %c1_50, %c0_51, %c0_52] : memref<2x18x18x32xf32, #tpu.memory_space<vmem>>, vector<2x16x16x32xf32>
    %40 = arith.truncf %39 : vector<2x16x16x32xf32> to vector<2x16x16x32xbf16>
    %c0_53 = arith.constant 0 : index
    %c1_54 = arith.constant 1 : index
    %c1_55 = arith.constant 1 : index
    %c0_56 = arith.constant 0 : index
    %41 = vector.load %arg17[%c0_53, %c1_54, %c1_55, %c0_56] : memref<2x18x18x32xf32, #tpu.memory_space<vmem>>, vector<2x16x16x32xf32>
    %42 = arith.truncf %41 : vector<2x16x16x32xf32> to vector<2x16x16x32xbf16>
    %c0_57 = arith.constant 0 : index
    %c1_58 = arith.constant 1 : index
    %c2_59 = arith.constant 2 : index
    %c0_60 = arith.constant 0 : index
    %43 = vector.load %arg17[%c0_57, %c1_58, %c2_59, %c0_60] : memref<2x18x18x32xf32, #tpu.memory_space<vmem>>, vector<2x16x16x32xf32>
    %44 = arith.truncf %43 : vector<2x16x16x32xf32> to vector<2x16x16x32xbf16>
    %45 = tpu.concatenate %40, %42, %44 in 3 : vector<2x16x16x32xbf16>, vector<2x16x16x32xbf16>, vector<2x16x16x32xbf16> -> vector<2x16x16x96xbf16>
    %46 = vector.shape_cast %45 : vector<2x16x16x96xbf16> to vector<512x96xbf16>
    %c1_61 = arith.constant 1 : index
    %c0_62 = arith.constant 0 : index
    %c0_63 = arith.constant 0 : index
    %47 = vector.load %arg5[%c1_61, %c0_62, %c0_63] : memref<3x96x64xbf16, #tpu.memory_space<vmem>>, vector<1x96x64xbf16>
    %48 = vector.shape_cast %47 : vector<1x96x64xbf16> to vector<96x64xbf16>
    %cst_64 = arith.constant dense<0.000000e+00> : vector<512x64xf32>
    %49 = tpu.matmul %46, %48, %cst_64 {dimension_numbers = #tpu.dot_dimension_numbers<[1], [0], [0], [1], [0, 0, 1, 1], [], []>} : vector<512x96xbf16>, vector<96x64xbf16>, vector<512x64xf32> -> vector<512x64xf32>
    %50 = arith.addf %38, %49 : vector<512x64xf32>
    %c0_65 = arith.constant 0 : index
    %c2_66 = arith.constant 2 : index
    %c0_67 = arith.constant 0 : index
    %c0_68 = arith.constant 0 : index
    %51 = vector.load %arg17[%c0_65, %c2_66, %c0_67, %c0_68] : memref<2x18x18x32xf32, #tpu.memory_space<vmem>>, vector<2x16x16x32xf32>
    %52 = arith.truncf %51 : vector<2x16x16x32xf32> to vector<2x16x16x32xbf16>
    %c0_69 = arith.constant 0 : index
    %c2_70 = arith.constant 2 : index
    %c1_71 = arith.constant 1 : index
    %c0_72 = arith.constant 0 : index
    %53 = vector.load %arg17[%c0_69, %c2_70, %c1_71, %c0_72] : memref<2x18x18x32xf32, #tpu.memory_space<vmem>>, vector<2x16x16x32xf32>
    %54 = arith.truncf %53 : vector<2x16x16x32xf32> to vector<2x16x16x32xbf16>
    %c0_73 = arith.constant 0 : index
    %c2_74 = arith.constant 2 : index
    %c2_75 = arith.constant 2 : index
    %c0_76 = arith.constant 0 : index
    %55 = vector.load %arg17[%c0_73, %c2_74, %c2_75, %c0_76] : memref<2x18x18x32xf32, #tpu.memory_space<vmem>>, vector<2x16x16x32xf32>
    %56 = arith.truncf %55 : vector<2x16x16x32xf32> to vector<2x16x16x32xbf16>
    %57 = tpu.concatenate %52, %54, %56 in 3 : vector<2x16x16x32xbf16>, vector<2x16x16x32xbf16>, vector<2x16x16x32xbf16> -> vector<2x16x16x96xbf16>
    %58 = vector.shape_cast %57 : vector<2x16x16x96xbf16> to vector<512x96xbf16>
    %c2_77 = arith.constant 2 : index
    %c0_78 = arith.constant 0 : index
    %c0_79 = arith.constant 0 : index
    %59 = vector.load %arg5[%c2_77, %c0_78, %c0_79] : memref<3x96x64xbf16, #tpu.memory_space<vmem>>, vector<1x96x64xbf16>
    %60 = vector.shape_cast %59 : vector<1x96x64xbf16> to vector<96x64xbf16>
    %cst_80 = arith.constant dense<0.000000e+00> : vector<512x64xf32>
    %61 = tpu.matmul %58, %60, %cst_80 {dimension_numbers = #tpu.dot_dimension_numbers<[1], [0], [0], [1], [0, 0, 1, 1], [], []>} : vector<512x96xbf16>, vector<96x64xbf16>, vector<512x64xf32> -> vector<512x64xf32>
    %62 = arith.addf %50, %61 : vector<512x64xf32>
    %c0_81 = arith.constant 0 : index
    %c0_82 = arith.constant 0 : index
    %63 = vector.load %arg6[%c0_81, %c0_82] : memref<1x64xf32, #tpu.memory_space<vmem>>, vector<1x64xf32>
    %64 = vector.broadcast %63 : vector<1x64xf32> to vector<512x64xf32>
    %65 = arith.mulf %62, %64 : vector<512x64xf32>
    %c0_83 = arith.constant 0 : index
    %c0_84 = arith.constant 0 : index
    %66 = vector.load %arg7[%c0_83, %c0_84] : memref<1x64xf32, #tpu.memory_space<vmem>>, vector<1x64xf32>
    %67 = vector.broadcast %66 : vector<1x64xf32> to vector<512x64xf32>
    %68 = arith.addf %65, %67 : vector<512x64xf32>
    %cst_85 = arith.constant 0.000000e+00 : f32
    %69 = vector.broadcast %cst_85 : f32 to vector<512x64xf32>
    %70 = arith.maximumf %68, %69 : vector<512x64xf32>
    %71 = vector.shape_cast %70 : vector<512x64xf32> to vector<2x16x16x64xf32>
    %c0_86 = arith.constant 0 : index
    %c0_87 = arith.constant 0 : index
    %c0_88 = arith.constant 0 : index
    %c0_89 = arith.constant 0 : index
    %72 = vector.load %arg18[%c0_86, %c0_87, %c0_88, %c0_89] : memref<2x16x16x64xf32, #tpu.memory_space<vmem>>, vector<2x16x16x64xf32>
    tpu.vector_store %arg18[%c0_86, %c0_87, %c0_88, %c0_89], %71 {strides = array<i32>} : memref<2x16x16x64xf32, #tpu.memory_space<vmem>>, vector<2x16x16x64xf32>,
    %c0_90 = arith.constant 0 : index
    %c0_91 = arith.constant 0 : index
    %c0_92 = arith.constant 0 : index
    %c0_93 = arith.constant 0 : index
    %73 = tpu.strided_load %arg18[%c0_90, %c0_91, %c0_92, %c0_93] {strides = array<i32: 1, 1, 2, 1>} : memref<2x16x16x64xf32, #tpu.memory_space<vmem>>, vector<2x16x8x64xf32>
    %c0_94 = arith.constant 0 : index
    %c0_95 = arith.constant 0 : index
    %c1_96 = arith.constant 1 : index
    %c0_97 = arith.constant 0 : index
    %74 = tpu.strided_load %arg18[%c0_94, %c0_95, %c1_96, %c0_97] {strides = array<i32: 1, 1, 2, 1>} : memref<2x16x16x64xf32, #tpu.memory_space<vmem>>, vector<2x16x8x64xf32>
    %75 = arith.maximumf %73, %74 : vector<2x16x8x64xf32>
    %76 = vector.shape_cast %75 : vector<2x16x8x64xf32> to vector<2x8x2x8x64xf32>
    %77 = vector.extract_strided_slice %76 {offsets = [0, 0, 0, 0, 0], sizes = [2, 8, 1, 8, 64], strides = [1, 1, 1, 1, 1]} : vector<2x8x2x8x64xf32> to vector<2x8x1x8x64xf32>
    %78 = vector.shape_cast %77 : vector<2x8x1x8x64xf32> to vector<2x8x8x64xf32>
    %79 = vector.extract_strided_slice %76 {offsets = [0, 0, 1, 0, 0], sizes = [2, 8, 1, 8, 64], strides = [1, 1, 1, 1, 1]} : vector<2x8x2x8x64xf32> to vector<2x8x1x8x64xf32>
    %80 = vector.shape_cast %79 : vector<2x8x1x8x64xf32> to vector<2x8x8x64xf32>
    %81 = arith.maximumf %78, %80 : vector<2x8x8x64xf32>
    %c0_98 = arith.constant 0 : index
    %c1_99 = arith.constant 1 : index
    %c1_100 = arith.constant 1 : index
    %c0_101 = arith.constant 0 : index
    %82 = vector.load %arg19[%c0_98, %c1_99, %c1_100, %c0_101] : memref<2x10x10x64xf32, #tpu.memory_space<vmem>>, vector<2x8x8x64xf32>
    tpu.vector_store %arg19[%c0_98, %c1_99, %c1_100, %c0_101], %81 {strides = array<i32>} : memref<2x10x10x64xf32, #tpu.memory_space<vmem>>, vector<2x8x8x64xf32>,
    %c0_102 = arith.constant 0 : index
    %c0_103 = arith.constant 0 : index
    %c0_104 = arith.constant 0 : index
    %c0_105 = arith.constant 0 : index
    %83 = vector.load %arg19[%c0_102, %c0_103, %c0_104, %c0_105] : memref<2x10x10x64xf32, #tpu.memory_space<vmem>>, vector<2x8x8x64xf32>
    %84 = arith.truncf %83 : vector<2x8x8x64xf32> to vector<2x8x8x64xbf16>
    %c0_106 = arith.constant 0 : index
    %c0_107 = arith.constant 0 : index
    %c1_108 = arith.constant 1 : index
    %c0_109 = arith.constant 0 : index
    %85 = vector.load %arg19[%c0_106, %c0_107, %c1_108, %c0_109] : memref<2x10x10x64xf32, #tpu.memory_space<vmem>>, vector<2x8x8x64xf32>
    %86 = arith.truncf %85 : vector<2x8x8x64xf32> to vector<2x8x8x64xbf16>
    %c0_110 = arith.constant 0 : index
    %c0_111 = arith.constant 0 : index
    %c2_112 = arith.constant 2 : index
    %c0_113 = arith.constant 0 : index
    %87 = vector.load %arg19[%c0_110, %c0_111, %c2_112, %c0_113] : memref<2x10x10x64xf32, #tpu.memory_space<vmem>>, vector<2x8x8x64xf32>
    %88 = arith.truncf %87 : vector<2x8x8x64xf32> to vector<2x8x8x64xbf16>
    %89 = tpu.concatenate %84, %86, %88 in 3 : vector<2x8x8x64xbf16>, vector<2x8x8x64xbf16>, vector<2x8x8x64xbf16> -> vector<2x8x8x192xbf16>
    %90 = vector.shape_cast %89 : vector<2x8x8x192xbf16> to vector<128x192xbf16>
    %c0_114 = arith.constant 0 : index
    %c0_115 = arith.constant 0 : index
    %c0_116 = arith.constant 0 : index
    %91 = vector.load %arg8[%c0_114, %c0_115, %c0_116] : memref<3x192x128xbf16, #tpu.memory_space<vmem>>, vector<1x192x128xbf16>
    %92 = vector.shape_cast %91 : vector<1x192x128xbf16> to vector<192x128xbf16>
    %cst_117 = arith.constant dense<0.000000e+00> : vector<128x128xf32>
    %93 = tpu.matmul %90, %92, %cst_117 {dimension_numbers = #tpu.dot_dimension_numbers<[1], [0], [0], [1], [0, 0, 1, 1], [], []>} : vector<128x192xbf16>, vector<192x128xbf16>, vector<128x128xf32> -> vector<128x128xf32>
    %c0_118 = arith.constant 0 : index
    %c1_119 = arith.constant 1 : index
    %c0_120 = arith.constant 0 : index
    %c0_121 = arith.constant 0 : index
    %94 = vector.load %arg19[%c0_118, %c1_119, %c0_120, %c0_121] : memref<2x10x10x64xf32, #tpu.memory_space<vmem>>, vector<2x8x8x64xf32>
    %95 = arith.truncf %94 : vector<2x8x8x64xf32> to vector<2x8x8x64xbf16>
    %c0_122 = arith.constant 0 : index
    %c1_123 = arith.constant 1 : index
    %c1_124 = arith.constant 1 : index
    %c0_125 = arith.constant 0 : index
    %96 = vector.load %arg19[%c0_122, %c1_123, %c1_124, %c0_125] : memref<2x10x10x64xf32, #tpu.memory_space<vmem>>, vector<2x8x8x64xf32>
    %97 = arith.truncf %96 : vector<2x8x8x64xf32> to vector<2x8x8x64xbf16>
    %c0_126 = arith.constant 0 : index
    %c1_127 = arith.constant 1 : index
    %c2_128 = arith.constant 2 : index
    %c0_129 = arith.constant 0 : index
    %98 = vector.load %arg19[%c0_126, %c1_127, %c2_128, %c0_129] : memref<2x10x10x64xf32, #tpu.memory_space<vmem>>, vector<2x8x8x64xf32>
    %99 = arith.truncf %98 : vector<2x8x8x64xf32> to vector<2x8x8x64xbf16>
    %100 = tpu.concatenate %95, %97, %99 in 3 : vector<2x8x8x64xbf16>, vector<2x8x8x64xbf16>, vector<2x8x8x64xbf16> -> vector<2x8x8x192xbf16>
    %101 = vector.shape_cast %100 : vector<2x8x8x192xbf16> to vector<128x192xbf16>
    %c1_130 = arith.constant 1 : index
    %c0_131 = arith.constant 0 : index
    %c0_132 = arith.constant 0 : index
    %102 = vector.load %arg8[%c1_130, %c0_131, %c0_132] : memref<3x192x128xbf16, #tpu.memory_space<vmem>>, vector<1x192x128xbf16>
    %103 = vector.shape_cast %102 : vector<1x192x128xbf16> to vector<192x128xbf16>
    %cst_133 = arith.constant dense<0.000000e+00> : vector<128x128xf32>
    %104 = tpu.matmul %101, %103, %cst_133 {dimension_numbers = #tpu.dot_dimension_numbers<[1], [0], [0], [1], [0, 0, 1, 1], [], []>} : vector<128x192xbf16>, vector<192x128xbf16>, vector<128x128xf32> -> vector<128x128xf32>
    %105 = arith.addf %93, %104 : vector<128x128xf32>
    %c0_134 = arith.constant 0 : index
    %c2_135 = arith.constant 2 : index
    %c0_136 = arith.constant 0 : index
    %c0_137 = arith.constant 0 : index
    %106 = vector.load %arg19[%c0_134, %c2_135, %c0_136, %c0_137] : memref<2x10x10x64xf32, #tpu.memory_space<vmem>>, vector<2x8x8x64xf32>
    %107 = arith.truncf %106 : vector<2x8x8x64xf32> to vector<2x8x8x64xbf16>
    %c0_138 = arith.constant 0 : index
    %c2_139 = arith.constant 2 : index
    %c1_140 = arith.constant 1 : index
    %c0_141 = arith.constant 0 : index
    %108 = vector.load %arg19[%c0_138, %c2_139, %c1_140, %c0_141] : memref<2x10x10x64xf32, #tpu.memory_space<vmem>>, vector<2x8x8x64xf32>
    %109 = arith.truncf %108 : vector<2x8x8x64xf32> to vector<2x8x8x64xbf16>
    %c0_142 = arith.constant 0 : index
    %c2_143 = arith.constant 2 : index
    %c2_144 = arith.constant 2 : index
    %c0_145 = arith.constant 0 : index
    %110 = vector.load %arg19[%c0_142, %c2_143, %c2_144, %c0_145] : memref<2x10x10x64xf32, #tpu.memory_space<vmem>>, vector<2x8x8x64xf32>
    %111 = arith.truncf %110 : vector<2x8x8x64xf32> to vector<2x8x8x64xbf16>
    %112 = tpu.concatenate %107, %109, %111 in 3 : vector<2x8x8x64xbf16>, vector<2x8x8x64xbf16>, vector<2x8x8x64xbf16> -> vector<2x8x8x192xbf16>
    %113 = vector.shape_cast %112 : vector<2x8x8x192xbf16> to vector<128x192xbf16>
    %c2_146 = arith.constant 2 : index
    %c0_147 = arith.constant 0 : index
    %c0_148 = arith.constant 0 : index
    %114 = vector.load %arg8[%c2_146, %c0_147, %c0_148] : memref<3x192x128xbf16, #tpu.memory_space<vmem>>, vector<1x192x128xbf16>
    %115 = vector.shape_cast %114 : vector<1x192x128xbf16> to vector<192x128xbf16>
    %cst_149 = arith.constant dense<0.000000e+00> : vector<128x128xf32>
    %116 = tpu.matmul %113, %115, %cst_149 {dimension_numbers = #tpu.dot_dimension_numbers<[1], [0], [0], [1], [0, 0, 1, 1], [], []>} : vector<128x192xbf16>, vector<192x128xbf16>, vector<128x128xf32> -> vector<128x128xf32>
    %117 = arith.addf %105, %116 : vector<128x128xf32>
    %c0_150 = arith.constant 0 : index
    %c0_151 = arith.constant 0 : index
    %118 = vector.load %arg9[%c0_150, %c0_151] : memref<1x128xf32, #tpu.memory_space<vmem>>, vector<1x128xf32>
    %119 = vector.broadcast %118 : vector<1x128xf32> to vector<128x128xf32>
    %120 = arith.mulf %117, %119 : vector<128x128xf32>
    %c0_152 = arith.constant 0 : index
    %c0_153 = arith.constant 0 : index
    %121 = vector.load %arg10[%c0_152, %c0_153] : memref<1x128xf32, #tpu.memory_space<vmem>>, vector<1x128xf32>
    %122 = vector.broadcast %121 : vector<1x128xf32> to vector<128x128xf32>
    %123 = arith.addf %120, %122 : vector<128x128xf32>
    %cst_154 = arith.constant 0.000000e+00 : f32
    %124 = vector.broadcast %cst_154 : f32 to vector<128x128xf32>
    %125 = arith.maximumf %123, %124 : vector<128x128xf32>
    %126 = vector.shape_cast %125 : vector<128x128xf32> to vector<2x8x8x128xf32>
    %c0_155 = arith.constant 0 : index
    %c0_156 = arith.constant 0 : index
    %c0_157 = arith.constant 0 : index
    %c0_158 = arith.constant 0 : index
    %127 = vector.load %arg20[%c0_155, %c0_156, %c0_157, %c0_158] : memref<2x8x8x128xf32, #tpu.memory_space<vmem>>, vector<2x8x8x128xf32>
    tpu.vector_store %arg20[%c0_155, %c0_156, %c0_157, %c0_158], %126 {strides = array<i32>} : memref<2x8x8x128xf32, #tpu.memory_space<vmem>>, vector<2x8x8x128xf32>,
    %c0_159 = arith.constant 0 : index
    %c0_160 = arith.constant 0 : index
    %c0_161 = arith.constant 0 : index
    %c0_162 = arith.constant 0 : index
    %128 = tpu.strided_load %arg20[%c0_159, %c0_160, %c0_161, %c0_162] {strides = array<i32: 1, 1, 2, 1>} : memref<2x8x8x128xf32, #tpu.memory_space<vmem>>, vector<2x8x4x128xf32>
    %c0_163 = arith.constant 0 : index
    %c0_164 = arith.constant 0 : index
    %c1_165 = arith.constant 1 : index
    %c0_166 = arith.constant 0 : index
    %129 = tpu.strided_load %arg20[%c0_163, %c0_164, %c1_165, %c0_166] {strides = array<i32: 1, 1, 2, 1>} : memref<2x8x8x128xf32, #tpu.memory_space<vmem>>, vector<2x8x4x128xf32>
    %130 = arith.maximumf %128, %129 : vector<2x8x4x128xf32>
    %131 = vector.shape_cast %130 : vector<2x8x4x128xf32> to vector<2x4x2x4x128xf32>
    %132 = vector.extract_strided_slice %131 {offsets = [0, 0, 0, 0, 0], sizes = [2, 4, 1, 4, 128], strides = [1, 1, 1, 1, 1]} : vector<2x4x2x4x128xf32> to vector<2x4x1x4x128xf32>
    %133 = vector.shape_cast %132 : vector<2x4x1x4x128xf32> to vector<2x4x4x128xf32>
    %134 = vector.extract_strided_slice %131 {offsets = [0, 0, 1, 0, 0], sizes = [2, 4, 1, 4, 128], strides = [1, 1, 1, 1, 1]} : vector<2x4x2x4x128xf32> to vector<2x4x1x4x128xf32>
    %135 = vector.shape_cast %134 : vector<2x4x1x4x128xf32> to vector<2x4x4x128xf32>
    %136 = arith.maximumf %133, %135 : vector<2x4x4x128xf32>
    %137 = vector.extract_strided_slice %136 {offsets = [0, 0, 0, 0], sizes = [2, 1, 1, 128], strides = [1, 1, 1, 1]} : vector<2x4x4x128xf32> to vector<2x1x1x128xf32>
    %138 = vector.shape_cast %137 : vector<2x1x1x128xf32> to vector<2x128xf32>
    %139 = arith.truncf %138 : vector<2x128xf32> to vector<2x128xbf16>
    %c0_167 = arith.constant 0 : index
    %c0_168 = arith.constant 0 : index
    %c0_169 = arith.constant 0 : index
    %140 = vector.load %arg11[%c0_167, %c0_168, %c0_169] : memref<16x128x256xbf16, #tpu.memory_space<vmem>>, vector<1x128x256xbf16>
    %141 = vector.shape_cast %140 : vector<1x128x256xbf16> to vector<128x256xbf16>
    %cst_170 = arith.constant dense<0.000000e+00> : vector<2x256xf32>
    %142 = tpu.matmul %139, %141, %cst_170 {dimension_numbers = #tpu.dot_dimension_numbers<[1], [0], [0], [1], [0, 0, 1, 1], [], []>} : vector<2x128xbf16>, vector<128x256xbf16>, vector<2x256xf32> -> vector<2x256xf32>
    %143 = vector.extract_strided_slice %136 {offsets = [0, 0, 1, 0], sizes = [2, 1, 1, 128], strides = [1, 1, 1, 1]} : vector<2x4x4x128xf32> to vector<2x1x1x128xf32>
    %144 = vector.shape_cast %143 : vector<2x1x1x128xf32> to vector<2x128xf32>
    %145 = arith.truncf %144 : vector<2x128xf32> to vector<2x128xbf16>
    %c1_171 = arith.constant 1 : index
    %c0_172 = arith.constant 0 : index
    %c0_173 = arith.constant 0 : index
    %146 = vector.load %arg11[%c1_171, %c0_172, %c0_173] : memref<16x128x256xbf16, #tpu.memory_space<vmem>>, vector<1x128x256xbf16>
    %147 = vector.shape_cast %146 : vector<1x128x256xbf16> to vector<128x256xbf16>
    %cst_174 = arith.constant dense<0.000000e+00> : vector<2x256xf32>
    %148 = tpu.matmul %145, %147, %cst_174 {dimension_numbers = #tpu.dot_dimension_numbers<[1], [0], [0], [1], [0, 0, 1, 1], [], []>} : vector<2x128xbf16>, vector<128x256xbf16>, vector<2x256xf32> -> vector<2x256xf32>
    %149 = arith.addf %142, %148 : vector<2x256xf32>
    %150 = vector.extract_strided_slice %136 {offsets = [0, 0, 2, 0], sizes = [2, 1, 1, 128], strides = [1, 1, 1, 1]} : vector<2x4x4x128xf32> to vector<2x1x1x128xf32>
    %151 = vector.shape_cast %150 : vector<2x1x1x128xf32> to vector<2x128xf32>
    %152 = arith.truncf %151 : vector<2x128xf32> to vector<2x128xbf16>
    %c2_175 = arith.constant 2 : index
    %c0_176 = arith.constant 0 : index
    %c0_177 = arith.constant 0 : index
    %153 = vector.load %arg11[%c2_175, %c0_176, %c0_177] : memref<16x128x256xbf16, #tpu.memory_space<vmem>>, vector<1x128x256xbf16>
    %154 = vector.shape_cast %153 : vector<1x128x256xbf16> to vector<128x256xbf16>
    %cst_178 = arith.constant dense<0.000000e+00> : vector<2x256xf32>
    %155 = tpu.matmul %152, %154, %cst_178 {dimension_numbers = #tpu.dot_dimension_numbers<[1], [0], [0], [1], [0, 0, 1, 1], [], []>} : vector<2x128xbf16>, vector<128x256xbf16>, vector<2x256xf32> -> vector<2x256xf32>
    %156 = arith.addf %149, %155 : vector<2x256xf32>
    %157 = vector.extract_strided_slice %136 {offsets = [0, 0, 3, 0], sizes = [2, 1, 1, 128], strides = [1, 1, 1, 1]} : vector<2x4x4x128xf32> to vector<2x1x1x128xf32>
    %158 = vector.shape_cast %157 : vector<2x1x1x128xf32> to vector<2x128xf32>
    %159 = arith.truncf %158 : vector<2x128xf32> to vector<2x128xbf16>
    %c3 = arith.constant 3 : index
    %c0_179 = arith.constant 0 : index
    %c0_180 = arith.constant 0 : index
    %160 = vector.load %arg11[%c3, %c0_179, %c0_180] : memref<16x128x256xbf16, #tpu.memory_space<vmem>>, vector<1x128x256xbf16>
    %161 = vector.shape_cast %160 : vector<1x128x256xbf16> to vector<128x256xbf16>
    %cst_181 = arith.constant dense<0.000000e+00> : vector<2x256xf32>
    %162 = tpu.matmul %159, %161, %cst_181 {dimension_numbers = #tpu.dot_dimension_numbers<[1], [0], [0], [1], [0, 0, 1, 1], [], []>} : vector<2x128xbf16>, vector<128x256xbf16>, vector<2x256xf32> -> vector<2x256xf32>
    %163 = arith.addf %156, %162 : vector<2x256xf32>
    %164 = vector.extract_strided_slice %136 {offsets = [0, 1, 0, 0], sizes = [2, 1, 1, 128], strides = [1, 1, 1, 1]} : vector<2x4x4x128xf32> to vector<2x1x1x128xf32>
    %165 = vector.shape_cast %164 : vector<2x1x1x128xf32> to vector<2x128xf32>
    %166 = arith.truncf %165 : vector<2x128xf32> to vector<2x128xbf16>
    %c4 = arith.constant 4 : index
    %c0_182 = arith.constant 0 : index
    %c0_183 = arith.constant 0 : index
    %167 = vector.load %arg11[%c4, %c0_182, %c0_183] : memref<16x128x256xbf16, #tpu.memory_space<vmem>>, vector<1x128x256xbf16>
    %168 = vector.shape_cast %167 : vector<1x128x256xbf16> to vector<128x256xbf16>
    %cst_184 = arith.constant dense<0.000000e+00> : vector<2x256xf32>
    %169 = tpu.matmul %166, %168, %cst_184 {dimension_numbers = #tpu.dot_dimension_numbers<[1], [0], [0], [1], [0, 0, 1, 1], [], []>} : vector<2x128xbf16>, vector<128x256xbf16>, vector<2x256xf32> -> vector<2x256xf32>
    %170 = arith.addf %163, %169 : vector<2x256xf32>
    %171 = vector.extract_strided_slice %136 {offsets = [0, 1, 1, 0], sizes = [2, 1, 1, 128], strides = [1, 1, 1, 1]} : vector<2x4x4x128xf32> to vector<2x1x1x128xf32>
    %172 = vector.shape_cast %171 : vector<2x1x1x128xf32> to vector<2x128xf32>
    %173 = arith.truncf %172 : vector<2x128xf32> to vector<2x128xbf16>
    %c5 = arith.constant 5 : index
    %c0_185 = arith.constant 0 : index
    %c0_186 = arith.constant 0 : index
    %174 = vector.load %arg11[%c5, %c0_185, %c0_186] : memref<16x128x256xbf16, #tpu.memory_space<vmem>>, vector<1x128x256xbf16>
    %175 = vector.shape_cast %174 : vector<1x128x256xbf16> to vector<128x256xbf16>
    %cst_187 = arith.constant dense<0.000000e+00> : vector<2x256xf32>
    %176 = tpu.matmul %173, %175, %cst_187 {dimension_numbers = #tpu.dot_dimension_numbers<[1], [0], [0], [1], [0, 0, 1, 1], [], []>} : vector<2x128xbf16>, vector<128x256xbf16>, vector<2x256xf32> -> vector<2x256xf32>
    %177 = arith.addf %170, %176 : vector<2x256xf32>
    %178 = vector.extract_strided_slice %136 {offsets = [0, 1, 2, 0], sizes = [2, 1, 1, 128], strides = [1, 1, 1, 1]} : vector<2x4x4x128xf32> to vector<2x1x1x128xf32>
    %179 = vector.shape_cast %178 : vector<2x1x1x128xf32> to vector<2x128xf32>
    %180 = arith.truncf %179 : vector<2x128xf32> to vector<2x128xbf16>
    %c6 = arith.constant 6 : index
    %c0_188 = arith.constant 0 : index
    %c0_189 = arith.constant 0 : index
    %181 = vector.load %arg11[%c6, %c0_188, %c0_189] : memref<16x128x256xbf16, #tpu.memory_space<vmem>>, vector<1x128x256xbf16>
    %182 = vector.shape_cast %181 : vector<1x128x256xbf16> to vector<128x256xbf16>
    %cst_190 = arith.constant dense<0.000000e+00> : vector<2x256xf32>
    %183 = tpu.matmul %180, %182, %cst_190 {dimension_numbers = #tpu.dot_dimension_numbers<[1], [0], [0], [1], [0, 0, 1, 1], [], []>} : vector<2x128xbf16>, vector<128x256xbf16>, vector<2x256xf32> -> vector<2x256xf32>
    %184 = arith.addf %177, %183 : vector<2x256xf32>
    %185 = vector.extract_strided_slice %136 {offsets = [0, 1, 3, 0], sizes = [2, 1, 1, 128], strides = [1, 1, 1, 1]} : vector<2x4x4x128xf32> to vector<2x1x1x128xf32>
    %186 = vector.shape_cast %185 : vector<2x1x1x128xf32> to vector<2x128xf32>
    %187 = arith.truncf %186 : vector<2x128xf32> to vector<2x128xbf16>
    %c7 = arith.constant 7 : index
    %c0_191 = arith.constant 0 : index
    %c0_192 = arith.constant 0 : index
    %188 = vector.load %arg11[%c7, %c0_191, %c0_192] : memref<16x128x256xbf16, #tpu.memory_space<vmem>>, vector<1x128x256xbf16>
    %189 = vector.shape_cast %188 : vector<1x128x256xbf16> to vector<128x256xbf16>
    %cst_193 = arith.constant dense<0.000000e+00> : vector<2x256xf32>
    %190 = tpu.matmul %187, %189, %cst_193 {dimension_numbers = #tpu.dot_dimension_numbers<[1], [0], [0], [1], [0, 0, 1, 1], [], []>} : vector<2x128xbf16>, vector<128x256xbf16>, vector<2x256xf32> -> vector<2x256xf32>
    %191 = arith.addf %184, %190 : vector<2x256xf32>
    %192 = vector.extract_strided_slice %136 {offsets = [0, 2, 0, 0], sizes = [2, 1, 1, 128], strides = [1, 1, 1, 1]} : vector<2x4x4x128xf32> to vector<2x1x1x128xf32>
    %193 = vector.shape_cast %192 : vector<2x1x1x128xf32> to vector<2x128xf32>
    %194 = arith.truncf %193 : vector<2x128xf32> to vector<2x128xbf16>
    %c8 = arith.constant 8 : index
    %c0_194 = arith.constant 0 : index
    %c0_195 = arith.constant 0 : index
    %195 = vector.load %arg11[%c8, %c0_194, %c0_195] : memref<16x128x256xbf16, #tpu.memory_space<vmem>>, vector<1x128x256xbf16>
    %196 = vector.shape_cast %195 : vector<1x128x256xbf16> to vector<128x256xbf16>
    %cst_196 = arith.constant dense<0.000000e+00> : vector<2x256xf32>
    %197 = tpu.matmul %194, %196, %cst_196 {dimension_numbers = #tpu.dot_dimension_numbers<[1], [0], [0], [1], [0, 0, 1, 1], [], []>} : vector<2x128xbf16>, vector<128x256xbf16>, vector<2x256xf32> -> vector<2x256xf32>
    %198 = arith.addf %191, %197 : vector<2x256xf32>
    %199 = vector.extract_strided_slice %136 {offsets = [0, 2, 1, 0], sizes = [2, 1, 1, 128], strides = [1, 1, 1, 1]} : vector<2x4x4x128xf32> to vector<2x1x1x128xf32>
    %200 = vector.shape_cast %199 : vector<2x1x1x128xf32> to vector<2x128xf32>
    %201 = arith.truncf %200 : vector<2x128xf32> to vector<2x128xbf16>
    %c9 = arith.constant 9 : index
    %c0_197 = arith.constant 0 : index
    %c0_198 = arith.constant 0 : index
    %202 = vector.load %arg11[%c9, %c0_197, %c0_198] : memref<16x128x256xbf16, #tpu.memory_space<vmem>>, vector<1x128x256xbf16>
    %203 = vector.shape_cast %202 : vector<1x128x256xbf16> to vector<128x256xbf16>
    %cst_199 = arith.constant dense<0.000000e+00> : vector<2x256xf32>
    %204 = tpu.matmul %201, %203, %cst_199 {dimension_numbers = #tpu.dot_dimension_numbers<[1], [0], [0], [1], [0, 0, 1, 1], [], []>} : vector<2x128xbf16>, vector<128x256xbf16>, vector<2x256xf32> -> vector<2x256xf32>
    %205 = arith.addf %198, %204 : vector<2x256xf32>
    %206 = vector.extract_strided_slice %136 {offsets = [0, 2, 2, 0], sizes = [2, 1, 1, 128], strides = [1, 1, 1, 1]} : vector<2x4x4x128xf32> to vector<2x1x1x128xf32>
    %207 = vector.shape_cast %206 : vector<2x1x1x128xf32> to vector<2x128xf32>
    %208 = arith.truncf %207 : vector<2x128xf32> to vector<2x128xbf16>
    %c10 = arith.constant 10 : index
    %c0_200 = arith.constant 0 : index
    %c0_201 = arith.constant 0 : index
    %209 = vector.load %arg11[%c10, %c0_200, %c0_201] : memref<16x128x256xbf16, #tpu.memory_space<vmem>>, vector<1x128x256xbf16>
    %210 = vector.shape_cast %209 : vector<1x128x256xbf16> to vector<128x256xbf16>
    %cst_202 = arith.constant dense<0.000000e+00> : vector<2x256xf32>
    %211 = tpu.matmul %208, %210, %cst_202 {dimension_numbers = #tpu.dot_dimension_numbers<[1], [0], [0], [1], [0, 0, 1, 1], [], []>} : vector<2x128xbf16>, vector<128x256xbf16>, vector<2x256xf32> -> vector<2x256xf32>
    %212 = arith.addf %205, %211 : vector<2x256xf32>
    %213 = vector.extract_strided_slice %136 {offsets = [0, 2, 3, 0], sizes = [2, 1, 1, 128], strides = [1, 1, 1, 1]} : vector<2x4x4x128xf32> to vector<2x1x1x128xf32>
    %214 = vector.shape_cast %213 : vector<2x1x1x128xf32> to vector<2x128xf32>
    %215 = arith.truncf %214 : vector<2x128xf32> to vector<2x128xbf16>
    %c11 = arith.constant 11 : index
    %c0_203 = arith.constant 0 : index
    %c0_204 = arith.constant 0 : index
    %216 = vector.load %arg11[%c11, %c0_203, %c0_204] : memref<16x128x256xbf16, #tpu.memory_space<vmem>>, vector<1x128x256xbf16>
    %217 = vector.shape_cast %216 : vector<1x128x256xbf16> to vector<128x256xbf16>
    %cst_205 = arith.constant dense<0.000000e+00> : vector<2x256xf32>
    %218 = tpu.matmul %215, %217, %cst_205 {dimension_numbers = #tpu.dot_dimension_numbers<[1], [0], [0], [1], [0, 0, 1, 1], [], []>} : vector<2x128xbf16>, vector<128x256xbf16>, vector<2x256xf32> -> vector<2x256xf32>
    %219 = arith.addf %212, %218 : vector<2x256xf32>
    %220 = vector.extract_strided_slice %136 {offsets = [0, 3, 0, 0], sizes = [2, 1, 1, 128], strides = [1, 1, 1, 1]} : vector<2x4x4x128xf32> to vector<2x1x1x128xf32>
    %221 = vector.shape_cast %220 : vector<2x1x1x128xf32> to vector<2x128xf32>
    %222 = arith.truncf %221 : vector<2x128xf32> to vector<2x128xbf16>
    %c12 = arith.constant 12 : index
    %c0_206 = arith.constant 0 : index
    %c0_207 = arith.constant 0 : index
    %223 = vector.load %arg11[%c12, %c0_206, %c0_207] : memref<16x128x256xbf16, #tpu.memory_space<vmem>>, vector<1x128x256xbf16>
    %224 = vector.shape_cast %223 : vector<1x128x256xbf16> to vector<128x256xbf16>
    %cst_208 = arith.constant dense<0.000000e+00> : vector<2x256xf32>
    %225 = tpu.matmul %222, %224, %cst_208 {dimension_numbers = #tpu.dot_dimension_numbers<[1], [0], [0], [1], [0, 0, 1, 1], [], []>} : vector<2x128xbf16>, vector<128x256xbf16>, vector<2x256xf32> -> vector<2x256xf32>
    %226 = arith.addf %219, %225 : vector<2x256xf32>
    %227 = vector.extract_strided_slice %136 {offsets = [0, 3, 1, 0], sizes = [2, 1, 1, 128], strides = [1, 1, 1, 1]} : vector<2x4x4x128xf32> to vector<2x1x1x128xf32>
    %228 = vector.shape_cast %227 : vector<2x1x1x128xf32> to vector<2x128xf32>
    %229 = arith.truncf %228 : vector<2x128xf32> to vector<2x128xbf16>
    %c13 = arith.constant 13 : index
    %c0_209 = arith.constant 0 : index
    %c0_210 = arith.constant 0 : index
    %230 = vector.load %arg11[%c13, %c0_209, %c0_210] : memref<16x128x256xbf16, #tpu.memory_space<vmem>>, vector<1x128x256xbf16>
    %231 = vector.shape_cast %230 : vector<1x128x256xbf16> to vector<128x256xbf16>
    %cst_211 = arith.constant dense<0.000000e+00> : vector<2x256xf32>
    %232 = tpu.matmul %229, %231, %cst_211 {dimension_numbers = #tpu.dot_dimension_numbers<[1], [0], [0], [1], [0, 0, 1, 1], [], []>} : vector<2x128xbf16>, vector<128x256xbf16>, vector<2x256xf32> -> vector<2x256xf32>
    %233 = arith.addf %226, %232 : vector<2x256xf32>
    %234 = vector.extract_strided_slice %136 {offsets = [0, 3, 2, 0], sizes = [2, 1, 1, 128], strides = [1, 1, 1, 1]} : vector<2x4x4x128xf32> to vector<2x1x1x128xf32>
    %235 = vector.shape_cast %234 : vector<2x1x1x128xf32> to vector<2x128xf32>
    %236 = arith.truncf %235 : vector<2x128xf32> to vector<2x128xbf16>
    %c14 = arith.constant 14 : index
    %c0_212 = arith.constant 0 : index
    %c0_213 = arith.constant 0 : index
    %237 = vector.load %arg11[%c14, %c0_212, %c0_213] : memref<16x128x256xbf16, #tpu.memory_space<vmem>>, vector<1x128x256xbf16>
    %238 = vector.shape_cast %237 : vector<1x128x256xbf16> to vector<128x256xbf16>
    %cst_214 = arith.constant dense<0.000000e+00> : vector<2x256xf32>
    %239 = tpu.matmul %236, %238, %cst_214 {dimension_numbers = #tpu.dot_dimension_numbers<[1], [0], [0], [1], [0, 0, 1, 1], [], []>} : vector<2x128xbf16>, vector<128x256xbf16>, vector<2x256xf32> -> vector<2x256xf32>
    %240 = arith.addf %233, %239 : vector<2x256xf32>
    %241 = vector.extract_strided_slice %136 {offsets = [0, 3, 3, 0], sizes = [2, 1, 1, 128], strides = [1, 1, 1, 1]} : vector<2x4x4x128xf32> to vector<2x1x1x128xf32>
    %242 = vector.shape_cast %241 : vector<2x1x1x128xf32> to vector<2x128xf32>
    %243 = arith.truncf %242 : vector<2x128xf32> to vector<2x128xbf16>
    %c15 = arith.constant 15 : index
    %c0_215 = arith.constant 0 : index
    %c0_216 = arith.constant 0 : index
    %244 = vector.load %arg11[%c15, %c0_215, %c0_216] : memref<16x128x256xbf16, #tpu.memory_space<vmem>>, vector<1x128x256xbf16>
    %245 = vector.shape_cast %244 : vector<1x128x256xbf16> to vector<128x256xbf16>
    %cst_217 = arith.constant dense<0.000000e+00> : vector<2x256xf32>
    %246 = tpu.matmul %243, %245, %cst_217 {dimension_numbers = #tpu.dot_dimension_numbers<[1], [0], [0], [1], [0, 0, 1, 1], [], []>} : vector<2x128xbf16>, vector<128x256xbf16>, vector<2x256xf32> -> vector<2x256xf32>
    %247 = arith.addf %240, %246 : vector<2x256xf32>
    %c0_218 = arith.constant 0 : index
    %c0_219 = arith.constant 0 : index
    %248 = vector.load %arg12[%c0_218, %c0_219] : memref<1x256xf32, #tpu.memory_space<vmem>>, vector<1x256xf32>
    %249 = vector.broadcast %248 : vector<1x256xf32> to vector<2x256xf32>
    %250 = arith.addf %247, %249 : vector<2x256xf32>
    %cst_220 = arith.constant 0.000000e+00 : f32
    %251 = vector.broadcast %cst_220 : f32 to vector<2x256xf32>
    %252 = arith.maximumf %250, %251 : vector<2x256xf32>
    %253 = arith.truncf %252 : vector<2x256xf32> to vector<2x256xbf16>
    %c0_221 = arith.constant 0 : index
    %c0_222 = arith.constant 0 : index
    %254 = vector.load %arg13[%c0_221, %c0_222] : memref<256x10xbf16, #tpu.memory_space<vmem>>, vector<256x10xbf16>
    %cst_223 = arith.constant dense<0.000000e+00> : vector<2x10xf32>
    %255 = tpu.matmul %253, %254, %cst_223 {dimension_numbers = #tpu.dot_dimension_numbers<[1], [0], [0], [1], [0, 0, 1, 1], [], []>} : vector<2x256xbf16>, vector<256x10xbf16>, vector<2x10xf32> -> vector<2x10xf32>
    %c0_224 = arith.constant 0 : index
    %c0_225 = arith.constant 0 : index
    %256 = vector.load %arg14[%c0_224, %c0_225] : memref<1x10xf32, #tpu.memory_space<vmem>>, vector<1x10xf32>
    %257 = vector.broadcast %256 : vector<1x10xf32> to vector<2x10xf32>
    %258 = arith.addf %255, %257 : vector<2x10xf32>
    %c0_226 = arith.constant 0 : index
    %c0_227 = arith.constant 0 : index
    %259 = vector.load %arg15[%c0_226, %c0_227] : memref<2x10xf32, #tpu.memory_space<vmem>>, vector<2x10xf32>
    tpu.vector_store %arg15[%c0_226, %c0_227], %258 {strides = array<i32>} : memref<2x10xf32, #tpu.memory_space<vmem>>, vector<2x10xf32>,
    return
  }
  func.func @transform_0(%arg0: i32) -> (i32, i32, i32) {
    %c0_i32 = arith.constant 0 : i32
    %c0_i32_0 = arith.constant 0 : i32
    %c0_i32_1 = arith.constant 0 : i32
    return %arg0, %c0_i32, %c0_i32_0 : i32, i32, i32
  }
  func.func @transform_1(%arg0: i32) -> (i32, i32) {
    %c0_i32 = arith.constant 0 : i32
    %c0_i32_0 = arith.constant 0 : i32
    %c0_i32_1 = arith.constant 0 : i32
    return %c0_i32, %c0_i32_0 : i32, i32
  }
  func.func @transform_2(%arg0: i32) -> (i32, i32) {
    %c0_i32 = arith.constant 0 : i32
    %c0_i32_0 = arith.constant 0 : i32
    %c0_i32_1 = arith.constant 0 : i32
    return %c0_i32, %c0_i32_0 : i32, i32
  }
  func.func @transform_3(%arg0: i32) -> (i32, i32) {
    %c0_i32 = arith.constant 0 : i32
    %c0_i32_0 = arith.constant 0 : i32
    %c0_i32_1 = arith.constant 0 : i32
    return %c0_i32, %c0_i32_0 : i32, i32
  }
  func.func @transform_4(%arg0: i32) -> (i32, i32, i32) {
    %c0_i32 = arith.constant 0 : i32
    %c0_i32_0 = arith.constant 0 : i32
    %c0_i32_1 = arith.constant 0 : i32
    %c0_i32_2 = arith.constant 0 : i32
    return %c0_i32, %c0_i32_0, %c0_i32_1 : i32, i32, i32
  }
  func.func @transform_5(%arg0: i32) -> (i32, i32) {
    %c0_i32 = arith.constant 0 : i32
    %c0_i32_0 = arith.constant 0 : i32
    %c0_i32_1 = arith.constant 0 : i32
    return %c0_i32, %c0_i32_0 : i32, i32
  }
  func.func @transform_6(%arg0: i32) -> (i32, i32) {
    %c0_i32 = arith.constant 0 : i32
    %c0_i32_0 = arith.constant 0 : i32
    %c0_i32_1 = arith.constant 0 : i32
    return %c0_i32, %c0_i32_0 : i32, i32
  }
  func.func @transform_7(%arg0: i32) -> (i32, i32, i32) {
    %c0_i32 = arith.constant 0 : i32
    %c0_i32_0 = arith.constant 0 : i32
    %c0_i32_1 = arith.constant 0 : i32
    %c0_i32_2 = arith.constant 0 : i32
    return %c0_i32, %c0_i32_0, %c0_i32_1 : i32, i32, i32
  }
  func.func @transform_8(%arg0: i32) -> (i32, i32) {
    %c0_i32 = arith.constant 0 : i32
    %c0_i32_0 = arith.constant 0 : i32
    %c0_i32_1 = arith.constant 0 : i32
    return %c0_i32, %c0_i32_0 : i32, i32
  }
  func.func @transform_9(%arg0: i32) -> (i32, i32) {
    %c0_i32 = arith.constant 0 : i32
    %c0_i32_0 = arith.constant 0 : i32
    %c0_i32_1 = arith.constant 0 : i32
    return %c0_i32, %c0_i32_0 : i32, i32
  }
  func.func @transform_10(%arg0: i32) -> (i32, i32, i32) {
    %c0_i32 = arith.constant 0 : i32
    %c0_i32_0 = arith.constant 0 : i32
    %c0_i32_1 = arith.constant 0 : i32
    %c0_i32_2 = arith.constant 0 : i32
    return %c0_i32, %c0_i32_0, %c0_i32_1 : i32, i32, i32
  }
  func.func @transform_11(%arg0: i32) -> (i32, i32) {
    %c0_i32 = arith.constant 0 : i32
    %c0_i32_0 = arith.constant 0 : i32
    %c0_i32_1 = arith.constant 0 : i32
    return %c0_i32, %c0_i32_0 : i32, i32
  }
  func.func @transform_12(%arg0: i32) -> (i32, i32) {
    %c0_i32 = arith.constant 0 : i32
    %c0_i32_0 = arith.constant 0 : i32
    %c0_i32_1 = arith.constant 0 : i32
    return %c0_i32, %c0_i32_0 : i32, i32
  }
  func.func @transform_13(%arg0: i32) -> (i32, i32) {
    %c0_i32 = arith.constant 0 : i32
    %c0_i32_0 = arith.constant 0 : i32
    %c0_i32_1 = arith.constant 0 : i32
    return %c0_i32, %c0_i32_0 : i32, i32
  }
  func.func @transform_14(%arg0: i32) -> (i32, i32) {
    %c0_i32 = arith.constant 0 : i32
    %c0_i32_0 = arith.constant 0 : i32
    return %arg0, %c0_i32 : i32, i32
  }
}

</mosaic_0001>

<bundles_post_ra>
// kernel: cifar10_cnn2_forward.1
= control target key start
LH: loop header
LB: loop body
LE: loop exit
PB: predicated region body
PF: predicated region fallthrough
CT: control target
= control target key end

     0   :  { %vm1497_vm0 = vcmask 1044480   ;;  %vm1498_vm1 = vcmask 1045504   ;;  %v14707_v1 = vmov 65535   ;;  %vm1112_vm2 = vcmask 220160   ;;  %s14709_s19 = smov 64   ;;  %s19435_s0 = inlined_call_operand.vmem [shape: bf16[2,1024,27], index: 0, kind: input, shape index: {}]   ;;  %s19436_s1 = inlined_call_operand.vmem [shape: bf16[27,32], index: 1, kind: input, shape index: {}]   ;;  %s19437_s2 = inlined_call_operand.vmem [shape: f32[1,32], index: 2, kind: input, shape index: {}]   ;;  %s19438_s3 = inlined_call_operand.vmem [shape: f32[1,32], index: 3, kind: input, shape index: {}]   ;;  %s19439_s4 = inlined_call_operand.vmem [shape: bf16[3,96,64], index: 4, kind: input, shape index: {}]   ;;  %s19440_s5 = inlined_call_operand.vmem [shape: f32[1,64], index: 5, kind: input, shape index: {}]   ;;  %s19441_s6 = inlined_call_operand.vmem [shape: f32[1,64], index: 6, kind: input, shape index: {}]   ;;  %s19442_s7 = inlined_call_operand.vmem [shape: bf16[3,192,128], index: 7, kind: input, shape index: {}]   ;;  %s19443_s8 = inlined_call_operand.vmem [shape: f32[1,128], index: 8, kind: input, shape index: {}]   ;;  %s19444_s9 = inlined_call_operand.vmem [shape: f32[1,128], index: 9, kind: input, shape index: {}]   ;;  %s19445_s10 = inlined_call_operand.vmem [shape: bf16[16,128,256], index: 10, kind: input, shape index: {}]   ;;  %s19446_s11 = inlined_call_operand.vmem [shape: f32[1,256], index: 11, kind: input, shape index: {}]   ;;  %s19447_s12 = inlined_call_operand.vmem [shape: bf16[256,10], index: 12, kind: input, shape index: {}]   ;;  %s19448_s13 = inlined_call_operand.vmem [shape: f32[1,10], index: 13, kind: input, shape index: {}]   ;;  %s19449_s14 = inlined_call_operand.hbm [shape: f32[2,10], index: 14, kind: output, shape index: {}]  }
   0x1   :  { %v14091_v0 = vld [vmem:[%s19436_s1 + $0x8] sm:$0x3f]   ;;  %v1499_v2 = vsel %vm1497_vm0, 4294967295, %v14707_v1  ;;  %v14093_v3 = vld [vmem:[%s19435_s0] sm:$0xff]   ;;  %v14095_v8 = vld [vmem:[%s19435_s0 + $0x10] sm:$0xff]   ;;  %vm49_vm3 = vcmask 261120  }
   0x2   :  { %v1500_v4 = vsel %vm1498_vm1, %v1499_v2, 0  ;;  %v14092_v6 = vld [vmem:[%s19436_s1] sm:$0xff]   ;;  %13601 = vmatprep.mubr.msk.bf16.mxu0 %vm1112_vm2, %v14093_v3  ;;  %v14094_v7 = vld [vmem:[%s19435_s0 + $0x8] sm:$0xff]   ;;  %v14096_v9 = vld [vmem:[%s19435_s0 + $0x18] sm:$0xff]   ;;  %vm52_vm4 = vcmask 254976   ;;  %v19450_v33 = vmov 0.0  }
   0x3   :  { %v1502_v5 = vand.u32 %v14091_v0, %v1500_v4  ;;  %v14097_v10 = vld [vmem:[%s19435_s0 + $0x20] sm:$0xff]   ;;  %v14098_v11 = vld [vmem:[%s19435_s0 + $0x28] sm:$0xff]   ;;  %v14099_v12 = vld [vmem:[%s19435_s0 + $0x30] sm:$0xff]   ;;  %54 = vst.msk [vmem:[#allocation3 + $0x18] sm:$0xff] %vm49_vm3, %v19450_v33  ;;  %vm159_vm5 = vcmask 523264   ;;  %s14710_s1 = smov 32  }
   0x4   :  { %v14100_v13 = vld [vmem:[%s19435_s0 + $0x38] sm:$0xff]   ;;  %v14101_v14 = vld [vmem:[%s19435_s0 + $0x40] sm:$0xff]   ;;  %v14102_v15 = vld [vmem:[%s19435_s0 + $0x48] sm:$0xff]   ;;  %55 = vst.msk [vmem:[#allocation3 + $0x20] sm:$0xff] %vm49_vm3, %v19450_v33 }
   0x5   :  { %13597 = vmatprep.subr.bf16.mxu0 %v1502_v5  ;;  %v14103_v16 = vld [vmem:[%s19435_s0 + $0x50] sm:$0xff]   ;;  %v14104_v17 = vld [vmem:[%s19435_s0 + $0x58] sm:$0xff]   ;;  %v14105_v18 = vld [vmem:[%s19435_s0 + $0x60] sm:$0xff]   ;;  %56 = vst.msk [vmem:[#allocation3 + $0x28] sm:$0x3] %vm52_vm4, %v19450_v33 }
   0x6   :  { %13598 = vmatpush3.bf16.msra.mxu0 %v1502_v5  ;;  %v14106_v19 = vld [vmem:[%s19435_s0 + $0x68] sm:$0xff]   ;;  %v14107_v20 = vld [vmem:[%s19435_s0 + $0x70] sm:$0xff]   ;;  %v14108_v21 = vld [vmem:[%s19435_s0 + $0x78] sm:$0xff]   ;;  %50 = vst.msk [vmem:[#allocation3] sm:$0xff] %vm49_vm3, %v19450_v33 }
   0x7   :  { %13599 = vmatprep.subr.bf16.mxu0 %v14092_v6  ;;  %v14109_v22 = vld [vmem:[%s19435_s0 + $0x80] sm:$0xff]   ;;  %v14110_v23 = vld [vmem:[%s19435_s0 + $0x88] sm:$0xff]   ;;  %v14111_v24 = vld [vmem:[%s19435_s0 + $0x90] sm:$0xff]   ;;  %51 = vst.msk [vmem:[#allocation3 + $0x8] sm:$0xff] %vm49_vm3, %v19450_v33 }
   0x8   :  { %v14112_v25 = vld [vmem:[%s19435_s0 + $0x98] sm:$0xff]   ;;  %v14113_v26 = vld [vmem:[%s19435_s0 + $0xa0] sm:$0xff]   ;;  %v14114_v27 = vld [vmem:[%s19435_s0 + $0xa8] sm:$0xff]   ;;  %53 = vst.msk [vmem:[#allocation3 + $0x10] sm:$0x3] %vm52_vm4, %v19450_v33 }
   0x9   :  { %v14115_v28 = vld [vmem:[%s19435_s0 + $0xb0] sm:$0xff]   ;;  %v14116_v29 = vld [vmem:[%s19435_s0 + $0xb8] sm:$0xff]   ;;  %v14117_v30 = vld [vmem:[%s19435_s0 + $0xc0] sm:$0xff]   ;;  %57 = vst.msk [vmem:[#allocation3 + $0x30] sm:$0xff] %vm49_vm3, %v19450_v33 }
   0xa   :  { %13600 = vmatpush3.bf16.msra.mxu0 %v14092_v6  ;;  %v14897_v31 = vld [vmem:[%s19435_s0 + $0xc8] sm:$0xff]   ;;  %v14902_v32 = vld [vmem:[%s19435_s0 + $0xd0] sm:$0xff]   ;;  %58 = vst.msk [vmem:[#allocation3 + $0x38] sm:$0xff] %vm49_vm3, %v19450_v33  ;;  %60 = vst.msk [vmem:[#allocation3 + $0x48] sm:$0xff] %vm49_vm3, %v19450_v33 }
   0xb   :  { %59 = vst.msk [vmem:[#allocation3 + $0x40] sm:$0x3] %vm52_vm4, %v19450_v33  ;;  %62 = vst.msk [vmem:[#allocation3 + $0x58] sm:$0x3] %vm52_vm4, %v19450_v33  ;;  %v14120_v34 = vld [vmem:[%s19435_s0 + $0xd8] sm:$0xff]   ;;  %v14121_v35 = vld [vmem:[%s19435_s0 + $0xe0] sm:$0xff]  }
   0xc   :  { %61 = vst.msk [vmem:[#allocation3 + $0x50] sm:$0xff] %vm49_vm3, %v19450_v33  ;;  %63 = vst.msk [vmem:[#allocation3 + $0x60] sm:$0xff] %vm49_vm3, %v19450_v33  ;;  %v14122_v36 = vld [vmem:[%s19435_s0 + $0xe8] sm:$0xff]   ;;  %v14123_v37 = vld [vmem:[%s19435_s0 + $0xf0] sm:$0xff]  }
   0xd   :  { %13602 = vmatmul.mubr.msk.bf16.vlgmr.msra.gmra.mxu0 %vm1112_vm2, %v14094_v7  ;;  %64 = vst.msk [vmem:[#allocation3 + $0x68] sm:$0xff] %vm49_vm3, %v19450_v33  ;;  %66 = vst.msk [vmem:[#allocation3 + $0x78] sm:$0xff] %vm49_vm3, %v19450_v33  ;;  %v14124_v38 = vld [vmem:[%s19435_s0 + $0xf8] sm:$0xff]   ;;  %v14125_v39 = vld [vmem:[%s19435_s0 + $0x100] sm:$0xff]  }
   0xe   :  { %13605 = vmatprep.mubr.msk.bf16.mxu0 %vm1112_vm2, %v14095_v8  ;;  %65 = vst.msk [vmem:[#allocation3 + $0x70] sm:$0x3] %vm52_vm4, %v19450_v33  ;;  %68 = vst.msk [vmem:[#allocation3 + $0x88] sm:$0x3] %vm52_vm4, %v19450_v33  ;;  %v14126_v40 = vld [vmem:[%s19435_s0 + $0x108] sm:$0xff]   ;;  %v14127_v41 = vld [vmem:[%s19435_s0 + $0x110] sm:$0xff]  }
   0xf   :  { %67 = vst.msk [vmem:[#allocation3 + $0x80] sm:$0xff] %vm49_vm3, %v19450_v33  ;;  %69 = vst.msk [vmem:[#allocation3 + $0x90] sm:$0xff] %vm49_vm3, %v19450_v33  ;;  %v14128_v42 = vld [vmem:[%s19435_s0 + $0x118] sm:$0xff]   ;;  %v14129_v43 = vld [vmem:[%s19435_s0 + $0x120] sm:$0xff]  }
  0x10   :  { %70 = vst.msk [vmem:[#allocation3 + $0x98] sm:$0xff] %vm49_vm3, %v19450_v33  ;;  %72 = vst.msk [vmem:[#allocation3 + $0xa8] sm:$0xff] %vm49_vm3, %v19450_v33  ;;  %v14130_v44 = vld [vmem:[%s19435_s0 + $0x128] sm:$0xff]   ;;  %v14131_v45 = vld [vmem:[%s19435_s0 + $0x130] sm:$0xff]  }
  0x11   :  { %71 = vst.msk [vmem:[#allocation3 + $0xa0] sm:$0x3] %vm52_vm4, %v19450_v33  ;;  %74 = vst.msk [vmem:[#allocation3 + $0xb8] sm:$0x3] %vm52_vm4, %v19450_v33  ;;  %v14132_v46 = vld [vmem:[%s19435_s0 + $0x138] sm:$0xff]   ;;  %v14133_v47 = vld [vmem:[%s19435_s0 + $0x140] sm:$0xff]  }
  0x12   :  { %73 = vst.msk [vmem:[#allocation3 + $0xb0] sm:$0xff] %vm49_vm3, %v19450_v33  ;;  %75 = vst.msk [vmem:[#allocation3 + $0xc0] sm:$0xff] %vm49_vm3, %v19450_v33  ;;  %v14134_v48 = vld [vmem:[%s19435_s0 + $0x148] sm:$0xff]   ;;  %v14135_v49 = vld [vmem:[%s19435_s0 + $0x150] sm:$0xff]  }
  0x13   :  { %76 = vst.msk [vmem:[#allocation3 + $0xc8] sm:$0xff] %vm49_vm3, %v19450_v33  ;;  %78 = vst.msk [vmem:[#allocation3 + $0xd8] sm:$0xff] %vm49_vm3, %v19450_v33  ;;  %v14136_v50 = vld [vmem:[%s19435_s0 + $0x158] sm:$0xff]   ;;  %v14137_v51 = vld [vmem:[%s19435_s0 + $0x160] sm:$0xff]  }
  0x14   :  { %77 = vst.msk [vmem:[#allocation3 + $0xd0] sm:$0x3] %vm52_vm4, %v19450_v33  ;;  %80 = vst.msk [vmem:[#allocation3 + $0xe8] sm:$0x3] %vm52_vm4, %v19450_v33  ;;  %v14138_v52 = vld [vmem:[%s19435_s0 + $0x168] sm:$0xff]   ;;  %v14139_v53 = vld [vmem:[%s19435_s0 + $0x170] sm:$0xff]  }
  0x15   :  { %13606 = vmatmul.mubr.msk.bf16.gmra.mxu0 %vm1112_vm2, %v14096_v9  ;;  %79 = vst.msk [vmem:[#allocation3 + $0xe0] sm:$0xff] %vm49_vm3, %v19450_v33  ;;  %81 = vst.msk [vmem:[#allocation3 + $0xf0] sm:$0xff] %vm49_vm3, %v19450_v33  ;;  %v14140_v54 = vld [vmem:[%s19435_s0 + $0x178] sm:$0xff]   ;;  %v14141_v55 = vld [vmem:[%s19435_s0 + $0x180] sm:$0xff]  }
  0x16   :  { %13609 = vmatprep.mubr.msk.bf16.mxu0 %vm1112_vm2, %v14097_v10  ;;  %82 = vst.msk [vmem:[#allocation3 + $0xf8] sm:$0xff] %vm49_vm3, %v19450_v33  ;;  %84 = vst.msk [vmem:[#allocation3 + $0x108] sm:$0xff] %vm49_vm3, %v19450_v33  ;;  %v14142_v56 = vld [vmem:[%s19435_s0 + $0x188] sm:$0xff]   ;;  %v14143_v57 = vld [vmem:[%s19435_s0 + $0x190] sm:$0xff]  }
  0x17   :  { %83 = vst.msk [vmem:[#allocation3 + $0x100] sm:$0x3] %vm52_vm4, %v19450_v33  ;;  %86 = vst.msk [vmem:[#allocation3 + $0x118] sm:$0x3] %vm52_vm4, %v19450_v33  ;;  %v15221_v58 = vld [vmem:[%s19437_s2] ss:$0 sm:$0xff] }
  0x18   :  { %85 = vst.msk [vmem:[#allocation3 + $0x110] sm:$0xff] %vm49_vm3, %v19450_v33  ;;  %87 = vst.msk [vmem:[#allocation3 + $0x120] sm:$0xff] %vm49_vm3, %v19450_v33  ;;  %v15226_v59 = vld [vmem:[%s19438_s3] ss:$0 sm:$0xff]  ;;  %v14144_v63 = vld [vmem:[%s19435_s0 + $0x198] sm:$0xff]  }
  0x19   :  { %88 = vst.msk [vmem:[#allocation3 + $0x128] sm:$0xff] %vm49_vm3, %v19450_v33  ;;  %90 = vst.msk [vmem:[#allocation3 + $0x138] sm:$0xff] %vm49_vm3, %v19450_v33  ;;  %v14145_v2 = vld [vmem:[%s19435_s0 + $0x1a0] sm:$0xff]  }
  0x1a   :  { %89 = vst.msk [vmem:[#allocation3 + $0x130] sm:$0x3] %vm52_vm4, %v19450_v33  ;;  %92 = vst.msk [vmem:[#allocation3 + $0x148] sm:$0x3] %vm52_vm4, %v19450_v33 }
  0x1b   :  { %91 = vst.msk [vmem:[#allocation3 + $0x140] sm:$0xff] %vm49_vm3, %v19450_v33  ;;  %93 = vst.msk [vmem:[#allocation3 + $0x150] sm:$0xff] %vm49_vm3, %v19450_v33 }
  0x1c   :  { %94 = vst.msk [vmem:[#allocation3 + $0x158] sm:$0xff] %vm49_vm3, %v19450_v33  ;;  %96 = vst.msk [vmem:[#allocation3 + $0x168] sm:$0xff] %vm49_vm3, %v19450_v33 }
  0x1d   :  { %13610 = vmatmul.mubr.msk.bf16.gmra.mxu0 %vm1112_vm2, %v14098_v11  ;;  %95 = vst.msk [vmem:[#allocation3 + $0x160] sm:$0x3] %vm52_vm4, %v19450_v33  ;;  %98 = vst.msk [vmem:[#allocation3 + $0x178] sm:$0x3] %vm52_vm4, %v19450_v33 }
  0x1e   :  { %13613 = vmatprep.mubr.msk.bf16.mxu0 %vm1112_vm2, %v14099_v12  ;;  %97 = vst.msk [vmem:[#allocation3 + $0x170] sm:$0xff] %vm49_vm3, %v19450_v33  ;;  %99 = vst.msk [vmem:[#allocation3 + $0x180] sm:$0xff] %vm49_vm3, %v19450_v33 }
  0x1f   :  { %100 = vst.msk [vmem:[#allocation3 + $0x188] sm:$0xff] %vm49_vm3, %v19450_v33  ;;  %102 = vst.msk [vmem:[#allocation3 + $0x198] sm:$0xff] %vm49_vm3, %v19450_v33 }
  0x20   :  { %101 = vst.msk [vmem:[#allocation3 + $0x190] sm:$0x3] %vm52_vm4, %v19450_v33  ;;  %104 = vst.msk [vmem:[#allocation3 + $0x1a8] sm:$0x3] %vm52_vm4, %v19450_v33 }
  0x21   :  { %103 = vst.msk [vmem:[#allocation3 + $0x1a0] sm:$0xff] %vm49_vm3, %v19450_v33  ;;  %105 = vst.msk [vmem:[#allocation3 + $0x1b0] sm:$0xff] %vm49_vm3, %v19450_v33 }
  0x22   :  { %106 = vst.msk [vmem:[#allocation3 + $0x1b8] sm:$0xff] %vm49_vm3, %v19450_v33  ;;  %108 = vst.msk [vmem:[#allocation3 + $0x1c8] sm:$0xff] %vm49_vm3, %v19450_v33 }
  0x23   :  { %107 = vst.msk [vmem:[#allocation3 + $0x1c0] sm:$0x3] %vm52_vm4, %v19450_v33  ;;  %110 = vst.msk [vmem:[#allocation3 + $0x1d8] sm:$0x3] %vm52_vm4, %v19450_v33 }
  0x24   :  { %109 = vst.msk [vmem:[#allocation3 + $0x1d0] sm:$0xff] %vm49_vm3, %v19450_v33  ;;  %111 = vst.msk [vmem:[#allocation3 + $0x1e0] sm:$0xff] %vm49_vm3, %v19450_v33 }
  0x25   :  { %13614 = vmatmul.mubr.msk.bf16.gmra.mxu0 %vm1112_vm2, %v14100_v13  ;;  %112 = vst.msk [vmem:[#allocation3 + $0x1e8] sm:$0xff] %vm49_vm3, %v19450_v33  ;;  %114 = vst.msk [vmem:[#allocation3 + $0x1f8] sm:$0xff] %vm49_vm3, %v19450_v33 }
  0x26   :  { %13617 = vmatprep.mubr.msk.bf16.mxu0 %vm1112_vm2, %v14101_v14  ;;  %113 = vst.msk [vmem:[#allocation3 + $0x1f0] sm:$0x3] %vm52_vm4, %v19450_v33  ;;  %116 = vst.msk [vmem:[#allocation3 + $0x208] sm:$0x3] %vm52_vm4, %v19450_v33 }
  0x27   :  { %115 = vst.msk [vmem:[#allocation3 + $0x200] sm:$0xff] %vm49_vm3, %v19450_v33  ;;  %117 = vst.msk [vmem:[#allocation3 + $0x210] sm:$0xff] %vm49_vm3, %v19450_v33 }
  0x28   :  { %118 = vst.msk [vmem:[#allocation3 + $0x218] sm:$0xff] %vm49_vm3, %v19450_v33  ;;  %120 = vst.msk [vmem:[#allocation3 + $0x228] sm:$0xff] %vm49_vm3, %v19450_v33 }
  0x29   :  { %119 = vst.msk [vmem:[#allocation3 + $0x220] sm:$0x3] %vm52_vm4, %v19450_v33  ;;  %122 = vst.msk [vmem:[#allocation3 + $0x238] sm:$0x3] %vm52_vm4, %v19450_v33 }
  0x2a   :  { %121 = vst.msk [vmem:[#allocation3 + $0x230] sm:$0xff] %vm49_vm3, %v19450_v33  ;;  %123 = vst.msk [vmem:[#allocation3 + $0x240] sm:$0xff] %vm49_vm3, %v19450_v33 }
  0x2b   :  { %124 = vst.msk [vmem:[#allocation3 + $0x248] sm:$0xff] %vm49_vm3, %v19450_v33  ;;  %126 = vst.msk [vmem:[#allocation3 + $0x258] sm:$0xff] %vm49_vm3, %v19450_v33 }
  0x2c   :  { %125 = vst.msk [vmem:[#allocation3 + $0x250] sm:$0x3] %vm52_vm4, %v19450_v33  ;;  %128 = vst.msk [vmem:[#allocation3 + $0x268] sm:$0x3] %vm52_vm4, %v19450_v33 }
  0x2d   :  { %13618 = vmatmul.mubr.msk.bf16.gmra.mxu0 %vm1112_vm2, %v14102_v15  ;;  %127 = vst.msk [vmem:[#allocation3 + $0x260] sm:$0xff] %vm49_vm3, %v19450_v33  ;;  %129 = vst.msk [vmem:[#allocation3 + $0x270] sm:$0xff] %vm49_vm3, %v19450_v33 }
  0x2e   :  { %13621 = vmatprep.mubr.msk.bf16.mxu0 %vm1112_vm2, %v14103_v16  ;;  %130 = vst.msk [vmem:[#allocation3 + $0x278] sm:$0xff] %vm49_vm3, %v19450_v33  ;;  %132 = vst.msk [vmem:[#allocation3 + $0x288] sm:$0xff] %vm49_vm3, %v19450_v33  ;;  %v14146_v16 = vld [vmem:[%s19435_s0 + $0x1a8] sm:$0xff]  }
  0x2f   :  { %131 = vst.msk [vmem:[#allocation3 + $0x280] sm:$0x3] %vm52_vm4, %v19450_v33  ;;  %134 = vst.msk [vmem:[#allocation3 + $0x298] sm:$0x3] %vm52_vm4, %v19450_v33 }
  0x30   :  { %133 = vst.msk [vmem:[#allocation3 + $0x290] sm:$0xff] %vm49_vm3, %v19450_v33  ;;  %135 = vst.msk [vmem:[#allocation3 + $0x2a0] sm:$0xff] %vm49_vm3, %v19450_v33 }
  0x31   :  { %136 = vst.msk [vmem:[#allocation3 + $0x2a8] sm:$0xff] %vm49_vm3, %v19450_v33  ;;  %138 = vst.msk [vmem:[#allocation3 + $0x2b8] sm:$0xff] %vm49_vm3, %v19450_v33 }
  0x32   :  { %137 = vst.msk [vmem:[#allocation3 + $0x2b0] sm:$0x3] %vm52_vm4, %v19450_v33  ;;  %140 = vst.msk [vmem:[#allocation3 + $0x2c8] sm:$0x3] %vm52_vm4, %v19450_v33 }
  0x33   :  { %139 = vst.msk [vmem:[#allocation3 + $0x2c0] sm:$0xff] %vm49_vm3, %v19450_v33  ;;  %141 = vst.msk [vmem:[#allocation3 + $0x2d0] sm:$0xff] %vm49_vm3, %v19450_v33 }
  0x34   :  { %142 = vst.msk [vmem:[#allocation3 + $0x2d8] sm:$0xff] %vm49_vm3, %v19450_v33  ;;  %144 = vst.msk [vmem:[#allocation3 + $0x2e8] sm:$0xff] %vm49_vm3, %v19450_v33 }
  0x35   :  { %13622 = vmatmul.mubr.msk.bf16.gmra.mxu0 %vm1112_vm2, %v14104_v17  ;;  %143 = vst.msk [vmem:[#allocation3 + $0x2e0] sm:$0x3] %vm52_vm4, %v19450_v33  ;;  %146 = vst.msk [vmem:[#allocation3 + $0x2f8] sm:$0x3] %vm52_vm4, %v19450_v33 }
  0x36   :  { %13625 = vmatprep.mubr.msk.bf16.mxu0 %vm1112_vm2, %v14105_v18  ;;  %145 = vst.msk [vmem:[#allocation3 + $0x2f0] sm:$0xff] %vm49_vm3, %v19450_v33  ;;  %147 = vst.msk [vmem:[#allocation3 + $0x300] sm:$0xff] %vm49_vm3, %v19450_v33 }
  0x37   :  { %148 = vst.msk [vmem:[#allocation3 + $0x308] sm:$0xff] %vm49_vm3, %v19450_v33  ;;  %150 = vst.msk [vmem:[#allocation3 + $0x318] sm:$0xff] %vm49_vm3, %v19450_v33 }
  0x38   :  { %149 = vst.msk [vmem:[#allocation3 + $0x310] sm:$0x3] %vm52_vm4, %v19450_v33  ;;  %152 = vst.msk [vmem:[#allocation3 + $0x328] sm:$0x3] %vm52_vm4, %v19450_v33 }
  0x39   :  { %151 = vst.msk [vmem:[#allocation3 + $0x320] sm:$0xff] %vm49_vm3, %v19450_v33  ;;  %153 = vst.msk [vmem:[#allocation3 + $0x330] sm:$0xff] %vm49_vm3, %v19450_v33 }
  0x3a   :  { %154 = vst.msk [vmem:[#allocation3 + $0x338] sm:$0xff] %vm49_vm3, %v19450_v33  ;;  %156 = vst.msk [vmem:[#allocation3 + $0x348] sm:$0xff] %vm49_vm3, %v19450_v33 }
  0x3b   :  { %155 = vst.msk [vmem:[#allocation3 + $0x340] sm:$0x3] %vm52_vm4, %v19450_v33  ;;  %158 = vst.msk [vmem:[#allocation3 + $0x358] sm:$0x3] %vm52_vm4, %v19450_v33 }
  0x3c   :  { %157 = vst.msk [vmem:[#allocation3 + $0x350] sm:$0xff] %vm49_vm3, %v19450_v33 }
  0x3d   :  { %13626 = vmatmul.mubr.msk.bf16.gmra.mxu0 %vm1112_vm2, %v14106_v19  ;;  %160 = vst.msk [vmem:[#allocation5] sm:$0xff] %vm159_vm5, %v19450_v33  ;;  %163 = vst.msk [vmem:[#allocation5 + $0x10] sm:$0xff] %vm159_vm5, %v19450_v33 }
  0x3e   :  { %13629 = vmatprep.mubr.msk.bf16.mxu0 %vm1112_vm2, %v14107_v20  ;;  %v14147_v20 = vld [vmem:[%s19435_s0 + $0x1b0] sm:$0xff]   ;;  %165 = vst.msk [vmem:[#allocation5 + $0x20] sm:$0xff] %vm159_vm5, %v19450_v33  ;;  %167 = vst.msk [vmem:[#allocation5 + $0x30] sm:$0xff] %vm159_vm5, %v19450_v33 }
  0x3f   :  { %169 = vst.msk [vmem:[#allocation5 + $0x40] sm:$0xff] %vm159_vm5, %v19450_v33  ;;  %171 = vst.msk [vmem:[#allocation5 + $0x50] sm:$0xff] %vm159_vm5, %v19450_v33 }
  0x40   :  { %173 = vst.msk [vmem:[#allocation5 + $0x60] sm:$0xff] %vm159_vm5, %v19450_v33  ;;  %175 = vst.msk [vmem:[#allocation5 + $0x70] sm:$0xff] %vm159_vm5, %v19450_v33 }
  0x41   :  { %177 = vst.msk [vmem:[#allocation5 + $0x80] sm:$0xff] %vm159_vm5, %v19450_v33  ;;  %179 = vst.msk [vmem:[#allocation5 + $0x90] sm:$0xff] %vm159_vm5, %v19450_v33 }
  0x42   :  { %181 = vst.msk [vmem:[#allocation5 + $0xa0] sm:$0xff] %vm159_vm5, %v19450_v33  ;;  %183 = vst.msk [vmem:[#allocation5 + $0xb0] sm:$0xff] %vm159_vm5, %v19450_v33 }
  0x43   :  { %185 = vst.msk [vmem:[#allocation5 + $0xc0] sm:$0xff] %vm159_vm5, %v19450_v33  ;;  %187 = vst.msk [vmem:[#allocation5 + $0xd0] sm:$0xff] %vm159_vm5, %v19450_v33 }
  0x44   :  { %189 = vst.msk [vmem:[#allocation5 + $0xe0] sm:$0xff] %vm159_vm5, %v19450_v33  ;;  %191 = vst.msk [vmem:[#allocation5 + $0xf0] sm:$0xff] %vm159_vm5, %v19450_v33 }
  0x45   :  { %13630 = vmatmul.mubr.msk.bf16.gmra.mxu0 %vm1112_vm2, %v14108_v21  ;;  %193 = vst.msk [vmem:[#allocation5 + $0x100] sm:$0xff] %vm159_vm5, %v19450_v33  ;;  %195 = vst.msk [vmem:[#allocation5 + $0x110] sm:$0xff] %vm159_vm5, %v19450_v33 }
  0x46   :  { %13633 = vmatprep.mubr.msk.bf16.mxu0 %vm1112_vm2, %v14109_v22  ;;  %197 = vst.msk [vmem:[#allocation5 + $0x120] sm:$0xff] %vm159_vm5, %v19450_v33  ;;  %199 = vst.msk [vmem:[#allocation5 + $0x130] sm:$0xff] %vm159_vm5, %v19450_v33 }
  0x4d   :  { %13634 = vmatmul.mubr.msk.bf16.gmra.mxu0 %vm1112_vm2, %v14110_v23 }
  0x4e   :  { %13637 = vmatprep.mubr.msk.bf16.mxu0 %vm1112_vm2, %v14111_v24 }
  0x55   :  { %13638 = vmatmul.mubr.msk.bf16.gmra.mxu0 %vm1112_vm2, %v14112_v25 }
  0x56   :  { %13641 = vmatprep.mubr.msk.bf16.mxu0 %vm1112_vm2, %v14113_v26 }
  0x5d   :  { %13642 = vmatmul.mubr.msk.bf16.gmra.mxu0 %vm1112_vm2, %v14114_v27 }
  0x5e   :  { %13645 = vmatprep.mubr.msk.bf16.mxu0 %vm1112_vm2, %v14115_v28 }
  0x65   :  { %13646 = vmatmul.mubr.msk.bf16.gmra.mxu0 %vm1112_vm2, %v14116_v29 }
  0x66   :  { %13649 = vmatprep.mubr.msk.bf16.mxu0 %vm1112_vm2, %v14117_v30 }
  0x6d   :  { %13650 = vmatmul.mubr.msk.bf16.gmra.mxu0 %vm1112_vm2, %v14897_v31 }
  0x6e   :  { %13653 = vmatprep.mubr.msk.bf16.mxu0 %vm1112_vm2, %v14902_v32 }
  0x75   :  { %13654 = vmatmul.mubr.msk.bf16.gmra.mxu0 %vm1112_vm2, %v14120_v34 }
  0x76   :  { %13657 = vmatprep.mubr.msk.bf16.mxu0 %vm1112_vm2, %v14121_v35 }
  0x7d   :  { %13658 = vmatmul.mubr.msk.bf16.gmra.mxu0 %vm1112_vm2, %v14122_v36 }
  0x7e   :  { %13661 = vmatprep.mubr.msk.bf16.mxu0 %vm1112_vm2, %v14123_v37 }
  0x85   :  { %13662 = vmatmul.mubr.msk.bf16.gmra.mxu0 %vm1112_vm2, %v14124_v38 }
  0x86   :  { %13665 = vmatprep.mubr.msk.bf16.mxu0 %vm1112_vm2, %v14125_v39  ;;  %v14148_v39 = vld [vmem:[%s19435_s0 + $0x1b8] sm:$0xff]  }
  0x8d   :  { %13666 = vmatmul.mubr.msk.bf16.gmra.mxu0 %vm1112_vm2, %v14126_v40  ;;  %v14149_v40 = vld [vmem:[%s19435_s0 + $0x1c0] sm:$0xff]  }
  0x8e   :  { %13669 = vmatprep.mubr.msk.bf16.mxu0 %vm1112_vm2, %v14127_v41 }
  0x95   :  { %13670 = vmatmul.mubr.msk.bf16.gmra.mxu0 %vm1112_vm2, %v14128_v42 }
  0x96   :  { %13673 = vmatprep.mubr.msk.bf16.mxu0 %vm1112_vm2, %v14129_v43 }
  0x9d   :  { %13674 = vmatmul.mubr.msk.bf16.gmra.mxu0 %vm1112_vm2, %v14130_v44 }
  0x9e   :  { %13677 = vmatprep.mubr.msk.bf16.mxu0 %vm1112_vm2, %v14131_v45 }
  0xa5   :  { %13678 = vmatmul.mubr.msk.bf16.gmra.mxu0 %vm1112_vm2, %v14132_v46 }
  0xa6   :  { %13681 = vmatprep.mubr.msk.bf16.mxu0 %vm1112_vm2, %v14133_v47 }
  0xad   :  { %13682 = vmatmul.mubr.msk.bf16.gmra.mxu0 %vm1112_vm2, %v14134_v48 }
  0xae   :  { %13685 = vmatprep.mubr.msk.bf16.mxu0 %vm1112_vm2, %v14135_v49 }
  0xb5   :  { %13686 = vmatmul.mubr.msk.bf16.gmra.mxu0 %vm1112_vm2, %v14136_v50 }
  0xb6   :  { %13689 = vmatprep.mubr.msk.bf16.mxu0 %vm1112_vm2, %v14137_v51 }
  0xbd   :  { %13690 = vmatmul.mubr.msk.bf16.gmra.mxu0 %vm1112_vm2, %v14138_v52  ;;  %v14181_v52 = vld [vmem:[%s19439_s4 + $0x58] sm:$0xff]  }
  0xbe   :  { %13693 = vmatprep.mubr.msk.bf16.mxu0 %vm1112_vm2, %v14139_v53  ;;  %13857 = vmatprep.subr.bf16.mxu1 %v14181_v52 }
  0xbf   :  { %13858 = vmatpush3.bf16.msra.mxu1 %v14181_v52 }
  0xc5   :  { %13694 = vmatmul.mubr.msk.bf16.gmra.mxu0 %vm1112_vm2, %v14140_v54 }
  0xc6   :  { %13697 = vmatprep.mubr.msk.bf16.mxu0 %vm1112_vm2, %v14141_v55 }
  0xcd   :  { %v13603_v60 = vpop.f32.mrf.mxu0  ;;  %13698 = vmatmul.mubr.msk.bf16.gmra.mxu0 %vm1112_vm2, %v14142_v56 }
  0xce   :  { %v2570_v61 = vmul.f32 %v13603_v60, %v15221_v58  ;;  %13701 = vmatprep.mubr.msk.bf16.mxu0 %vm1112_vm2, %v14143_v57 }
  0xcf   :  { %v1538_v62 = vpop.f32.mrf.mxu0 }
  0xd0   :  { %v2833_v0 = vadd.f32 %v15226_v59, %v2570_v61  ;;  %v2568_v1 = vmul.f32 %v15221_v58, %v1538_v62 }
  0xd1   :  { %v13604_v3 = vpop.f32.mrf.mxu0 }
  0xd2   :  { %v3089_v4 = vmax.f32 %v2833_v0, 0.0  ;;  %v2831_v5 = vadd.f32 %v15226_v59, %v2568_v1  ;;  %v2571_v6 = vmul.f32 %v13604_v3, %v15221_v58 }
  0xd3   :  { %v1541_v7 = vpop.f32.mrf.mxu0 }
  0xd4   :  { %3345 = vst.msk [vmem:[#allocation2 + $0x10] sm:$0xff] %vm49_vm3, %v3089_v4  ;;  %v3087_v8 = vmax.f32 %v2831_v5, 0.0  ;;  %v2834_v9 = vadd.f32 %v15226_v59, %v2571_v6  ;;  %v2569_v10 = vmul.f32 %v15221_v58, %v1541_v7  ;;  %v14151_v4 = vld [vmem:[%s19435_s0 + $0x1d0] sm:$0xff]  }
  0xd5   :  { %v13607_v11 = vpop.f32.mrf.mxu0  ;;  %13702 = vmatmul.mubr.msk.bf16.gmra.mxu0 %vm1112_vm2, %v14144_v63  ;;  %v14150_v63 = vld [vmem:[%s19435_s0 + $0x1c8] sm:$0xff]   ;;  %v14182_v5 = vld [vmem:[%s19439_s4 + $0x50] sm:$0xff]  }
  0xd6   :  { %3343 = vst.msk [vmem:[#allocation2] sm:$0xff] %vm49_vm3, %v3087_v8  ;;  %v3090_v12 = vmax.f32 %v2834_v9, 0.0  ;;  %v2832_v13 = vadd.f32 %v15226_v59, %v2569_v10  ;;  %v2574_v14 = vmul.f32 %v13607_v11, %v15221_v58  ;;  %13705 = vmatprep.mubr.msk.bf16.mxu0 %vm1112_vm2, %v14145_v2  ;;  %13859 = vmatprep.subr.bf16.mxu1 %v14182_v5 }
  0xd7   :  { %v1554_v15 = vpop.f32.mrf.mxu0  ;;  %13860 = vmatpush3.bf16.msra.mxu1 %v14182_v5 }
  0xd8   :  { %3346 = vst.msk [vmem:[#allocation2 + $0x18] sm:$0xff] %vm49_vm3, %v3090_v12  ;;  %v3088_v17 = vmax.f32 %v2832_v13, 0.0  ;;  %v2837_v18 = vadd.f32 %v15226_v59, %v2574_v14  ;;  %v2572_v19 = vmul.f32 %v15221_v58, %v1554_v15 }
  0xd9   :  { %v13608_v21 = vpop.f32.mrf.mxu0 }
  0xda   :  { %3344 = vst.msk [vmem:[#allocation2 + $0x8] sm:$0xff] %vm49_vm3, %v3088_v17  ;;  %v3093_v22 = vmax.f32 %v2837_v18, 0.0  ;;  %v2835_v23 = vadd.f32 %v15226_v59, %v2572_v19  ;;  %v2575_v24 = vmul.f32 %v13608_v21, %v15221_v58  ;;  %v14185_v19 = vld [vmem:[%s19439_s4 + $0x48] sm:$0xff]  }
  0xdb   :  { %v1557_v25 = vpop.f32.mrf.mxu0  ;;  %13861 = vmatprep.subr.bf16.mxu1 %v14185_v19 }
  0xdc   :  { %3349 = vst.msk [vmem:[#allocation2 + $0x30] sm:$0xff] %vm49_vm3, %v3093_v22  ;;  %v3091_v26 = vmax.f32 %v2835_v23, 0.0  ;;  %v2838_v27 = vadd.f32 %v15226_v59, %v2575_v24  ;;  %v2573_v28 = vmul.f32 %v15221_v58, %v1557_v25  ;;  %13862 = vmatpush3.bf16.msra.mxu1 %v14185_v19 }
  0xdd   :  { %v13611_v29 = vpop.f32.mrf.mxu0  ;;  %13706 = vmatmul.mubr.msk.bf16.gmra.mxu0 %vm1112_vm2, %v14146_v16 }
  0xde   :  { %3347 = vst.msk [vmem:[#allocation2 + $0x20] sm:$0xff] %vm49_vm3, %v3091_v26  ;;  %v3094_v30 = vmax.f32 %v2838_v27, 0.0  ;;  %v2836_v31 = vadd.f32 %v15226_v59, %v2573_v28  ;;  %v2578_v32 = vmul.f32 %v13611_v29, %v15221_v58  ;;  %13709 = vmatprep.mubr.msk.bf16.mxu0 %vm1112_vm2, %v14147_v20  ;;  %v14186_v29 = vld [vmem:[%s19439_s4 + $0x40] sm:$0xff]  }
  0xdf   :  { %v1570_v34 = vpop.f32.mrf.mxu0  ;;  %v3601_v41 = vld [vmem:[#allocation2 + $0x10] ss:$2 sm:$0xff]  ;;  %v3857_v45 = vld [vmem:[#allocation2 + $0x11] ss:$2 sm:$0xff]  ;;  %13863 = vmatprep.subr.bf16.mxu1 %v14186_v29 }
  0xe0   :  { %3350 = vst.msk [vmem:[#allocation2 + $0x38] sm:$0xff] %vm49_vm3, %v3094_v30  ;;  %v3092_v35 = vmax.f32 %v2836_v31, 0.0  ;;  %v2841_v36 = vadd.f32 %v15226_v59, %v2578_v32  ;;  %v2576_v37 = vmul.f32 %v15221_v58, %v1570_v34  ;;  %v4111_v57 = vmax.f32 %v3601_v41, %v3857_v45  ;;  %v14152_v31 = vld [vmem:[%s19435_s0 + $0x1d8] sm:$0xff]   ;;  %v14153_v32 = vld [vmem:[%s19435_s0 + $0x1e0] sm:$0xff]   ;;  %13864 = vmatpush3.bf16.msra.mxu1 %v14186_v29 }
  0xe1   :  { %v13612_v38 = vpop.f32.mrf.mxu0  ;;  %v3599_v47 = vld [vmem:[#allocation2] ss:$2 sm:$0xff]  ;;  %v3855_v48 = vld [vmem:[#allocation2 + $0x1] ss:$2 sm:$0xff] }
  0xe2   :  { %3348 = vst.msk [vmem:[#allocation2 + $0x28] sm:$0xff] %vm49_vm3, %v3092_v35  ;;  %v3097_v42 = vmax.f32 %v2841_v36, 0.0  ;;  %v2839_v43 = vadd.f32 %v15226_v59, %v2576_v37  ;;  %v2579_v44 = vmul.f32 %v13612_v38, %v15221_v58  ;;  %v4110_v6 = vmax.f32 %v3599_v47, %v3855_v48 }
  0xe3   :  { %v1573_v46 = vpop.f32.mrf.mxu0 }
  0xe4   :  { %3353 = vst.msk [vmem:[#allocation2 + $0x50] sm:$0xff] %vm49_vm3, %v3097_v42  ;;  %v3095_v49 = vmax.f32 %v2839_v43, 0.0  ;;  %v2842_v50 = vadd.f32 %v15226_v59, %v2579_v44  ;;  %v2577_v51 = vmul.f32 %v15221_v58, %v1573_v46  ;;  %v14189_v43 = vld [vmem:[%s19439_s4 + $0x38] sm:$0xff]  }
  0xe5   :  { %v13615_v53 = vpop.f32.mrf.mxu0  ;;  %13710 = vmatmul.mubr.msk.bf16.gmra.mxu0 %vm1112_vm2, %v14148_v39  ;;  %13865 = vmatprep.subr.bf16.mxu1 %v14189_v43 }
  0xe6   :  { %3351 = vst.msk [vmem:[#allocation2 + $0x40] sm:$0xff] %vm49_vm3, %v3095_v49  ;;  %v3098_v54 = vmax.f32 %v2842_v50, 0.0  ;;  %v2840_v55 = vadd.f32 %v15226_v59, %v2577_v51  ;;  %v2582_v56 = vmul.f32 %v13615_v53, %v15221_v58  ;;  %13713 = vmatprep.mubr.msk.bf16.mxu0 %vm1112_vm2, %v14149_v40  ;;  %13866 = vmatpush3.bf16.msra.mxu1 %v14189_v43 }
  0xe7   :  { %v3605_v60 = vld [vmem:[#allocation2 + $0x30] ss:$2 sm:$0xff]  ;;  %v3861_v61 = vld [vmem:[#allocation2 + $0x31] ss:$2 sm:$0xff]  ;;  %v1586_v62 = vpop.f32.mrf.mxu0 }
  0xe8   :  { %v4113_v0 = vmax.f32 %v3605_v60, %v3861_v61  ;;  %3354 = vst.msk [vmem:[#allocation2 + $0x58] sm:$0xff] %vm49_vm3, %v3098_v54  ;;  %v3096_v1 = vmax.f32 %v2840_v55, 0.0  ;;  %v2845_v2 = vadd.f32 %v15226_v59, %v2582_v56  ;;  %v2580_v3 = vmul.f32 %v15221_v58, %v1586_v62 }
  0xe9   :  { %v3603_v7 = vld [vmem:[#allocation2 + $0x20] ss:$2 sm:$0xff]  ;;  %v3859_v8 = vld [vmem:[#allocation2 + $0x21] ss:$2 sm:$0xff]  ;;  %v13616_v9 = vpop.f32.mrf.mxu0 }
  0xea   :  { %v4239_v10 = vmax.f32 %v4111_v57, %v4113_v0  ;;  %v4112_v11 = vmax.f32 %v3603_v7, %v3859_v8  ;;  %3352 = vst.msk [vmem:[#allocation2 + $0x48] sm:$0xff] %vm49_vm3, %v3096_v1  ;;  %v3101_v12 = vmax.f32 %v2845_v2, 0.0  ;;  %v2843_v13 = vadd.f32 %v15226_v59, %v2580_v3  ;;  %v14154_v57 = vld [vmem:[%s19435_s0 + $0x1e8] sm:$0xff]   ;;  %v14155_v1 = vld [vmem:[%s19435_s0 + $0x1f0] sm:$0xff]  }
  0xeb   :  { %v2583_v14 = vmul.f32 %v13616_v9, %v15221_v58  ;;  %v1589_v15 = vpop.f32.mrf.mxu0  ;;  %v14190_v2 = vld [vmem:[%s19439_s4 + $0x30] sm:$0xff]  }
  0xec   :  { %v4238_v16 = vmax.f32 %v4110_v6, %v4112_v11  ;;  %3357 = vst.msk [vmem:[#allocation2 + $0x70] sm:$0xff] %vm49_vm3, %v3101_v12  ;;  %v3099_v17 = vmax.f32 %v2843_v13, 0.0  ;;  %v2581_v18 = vmul.f32 %v15221_v58, %v1589_v15  ;;  %4304 = vst.msk [vmem:[#allocation3 + $0x21] sm:$0xff] %vm49_vm3, %v4239_v10  ;;  %13867 = vmatprep.subr.bf16.mxu1 %v14190_v2 }
  0xed   :  { %v2846_v20 = vadd.f32 %v15226_v59, %v2583_v14  ;;  %v13619_v21 = vpop.f32.mrf.mxu0  ;;  %13714 = vmatmul.mubr.msk.bf16.gmra.mxu0 %vm1112_vm2, %v14150_v63  ;;  %13868 = vmatpush3.bf16.msra.mxu1 %v14190_v2  ;;  %v14158_v2 = vld [vmem:[%s19435_s0 + $0x208] sm:$0xff]  }
  0xee   :  { %3355 = vst.msk [vmem:[#allocation2 + $0x60] sm:$0xff] %vm49_vm3, %v3099_v17  ;;  %v2844_v22 = vadd.f32 %v15226_v59, %v2581_v18  ;;  %v2586_v23 = vmul.f32 %v13619_v21, %v15221_v58  ;;  %13717 = vmatprep.mubr.msk.bf16.mxu0 %vm1112_vm2, %v14151_v4  ;;  %4303 = vst.msk [vmem:[#allocation3 + $0x19] sm:$0xff] %vm49_vm3, %v4238_v16 }
  0xef   :  { %v3102_v24 = vmax.f32 %v2846_v20, 0.0  ;;  %v1602_v25 = vpop.f32.mrf.mxu0  ;;  %v3609_v38 = vld [vmem:[#allocation2 + $0x50] ss:$2 sm:$0xff]  ;;  %v3865_v39 = vld [vmem:[#allocation2 + $0x51] ss:$2 sm:$0xff] }
  0xf0   :  { %v3100_v26 = vmax.f32 %v2844_v22, 0.0  ;;  %v2849_v27 = vadd.f32 %v15226_v59, %v2586_v23  ;;  %v2584_v28 = vmul.f32 %v15221_v58, %v1602_v25  ;;  %v4115_v3 = vmax.f32 %v3609_v38, %v3865_v39 }
  0xf1   :  { %3358 = vst.msk [vmem:[#allocation2 + $0x78] sm:$0xff] %vm49_vm3, %v3102_v24  ;;  %v13620_v30 = vpop.f32.mrf.mxu0  ;;  %v3607_v48 = vld [vmem:[#allocation2 + $0x40] ss:$2 sm:$0xff]  ;;  %v3863_v49 = vld [vmem:[#allocation2 + $0x41] ss:$2 sm:$0xff] }
  0xf2   :  { %3356 = vst.msk [vmem:[#allocation2 + $0x68] sm:$0xff] %vm49_vm3, %v3100_v26  ;;  %v3105_v34 = vmax.f32 %v2849_v27, 0.0  ;;  %v2847_v35 = vadd.f32 %v15226_v59, %v2584_v28  ;;  %v2587_v36 = vmul.f32 %v13620_v30, %v15221_v58  ;;  %v4114_v4 = vmax.f32 %v3607_v48, %v3863_v49  ;;  %v14156_v28 = vld [vmem:[%s19435_s0 + $0x1f8] sm:$0xff]  }
  0xf3   :  { %v1605_v37 = vpop.f32.mrf.mxu0  ;;  %v5212_v46 = vld [vmem:[#allocation3 + $0x22] sm:$0xff] }
  0xf4   :  { %3361 = vst.msk [vmem:[#allocation2 + $0x90] sm:$0xff] %vm49_vm3, %v3105_v34  ;;  %v3103_v40 = vmax.f32 %v2847_v35, 0.0  ;;  %v2850_v41 = vadd.f32 %v15226_v59, %v2587_v36  ;;  %v2585_v42 = vmul.f32 %v15221_v58, %v1605_v37  ;;  %v5116_v54 = vld [vmem:[#allocation3 + $0x21] sm:$0xff] }
  0xf5   :  { %v13623_v44 = vpop.f32.mrf.mxu0  ;;  %13718 = vmatmul.mubr.msk.bf16.gmra.mxu0 %vm1112_vm2, %v14152_v31  ;;  %v5211_v45 = vld [vmem:[#allocation3 + $0x1a] sm:$0xff] }
  0xf6   :  { %v5115_v47 = vld [vmem:[#allocation3 + $0x19] sm:$0xff]  ;;  %3359 = vst.msk [vmem:[#allocation2 + $0x80] sm:$0xff] %vm49_vm3, %v3103_v40  ;;  %v3106_v50 = vmax.f32 %v2850_v41, 0.0  ;;  %v2848_v51 = vadd.f32 %v15226_v59, %v2585_v42  ;;  %v2590_v52 = vmul.f32 %v13623_v44, %v15221_v58  ;;  %v5275_v53 = vpack.c.bf16 %v5212_v46, %v5211_v45  ;;  %13721 = vmatprep.mubr.msk.bf16.mxu0 %vm1112_vm2, %v14153_v32 }
  0xf7   :  { %v1618_v55 = vpop.f32.mrf.mxu0  ;;  %v5179_v56 = vpack.c.bf16 %v5116_v54, %v5115_v47  ;;  %v14157_v32 = vld [vmem:[%s19435_s0 + $0x200] sm:$0xff]  }
  0xf8   :  { %v3613_v60 = vld [vmem:[#allocation2 + $0x70] ss:$2 sm:$0xff]  ;;  %v3869_v61 = vld [vmem:[#allocation2 + $0x71] ss:$2 sm:$0xff]  ;;  %3362 = vst.msk [vmem:[#allocation2 + $0x98] sm:$0xff] %vm49_vm3, %v3106_v50  ;;  %v3104_v62 = vmax.f32 %v2848_v51, 0.0  ;;  %v2853_v63 = vadd.f32 %v15226_v59, %v2590_v52  ;;  %v2588_v0 = vmul.f32 %v15221_v58, %v1618_v55  ;;  %5435 = vrot.lane.b32.xlu1 %v5275_v53, %s14709_s19 }
  0xf9   :  { %v4117_v5 = vmax.f32 %v3613_v60, %v3869_v61  ;;  %v3611_v6 = vld [vmem:[#allocation2 + $0x60] ss:$2 sm:$0xff]  ;;  %v3867_v7 = vld [vmem:[#allocation2 + $0x61] ss:$2 sm:$0xff]  ;;  %5339 = vrot.lane.b32.xlu0 %v5179_v56, %s14710_s1  ;;  %v13624_v8 = vpop.f32.mrf.mxu0 }
  0xfa   :  { %v4116_v9 = vmax.f32 %v3611_v6, %v3867_v7  ;;  %3360 = vst.msk [vmem:[#allocation2 + $0x88] sm:$0xff] %vm49_vm3, %v3104_v62  ;;  %v3109_v10 = vmax.f32 %v2853_v63, 0.0  ;;  %v2851_v11 = vadd.f32 %v15226_v59, %v2588_v0  ;;  %v2591_v12 = vmul.f32 %v13624_v8, %v15221_v58  ;;  %v14159_v7 = vld [vmem:[%s19435_s0 + $0x210] sm:$0xff]  }
  0xfb   :  { %v4241_v13 = vmax.f32 %v4115_v3, %v4117_v5  ;;  %v1621_v14 = vpop.f32.mrf.mxu0 }
  0xfc   :  { %v4240_v15 = vmax.f32 %v4114_v4, %v4116_v9  ;;  %3365 = vst.msk [vmem:[#allocation2 + $0xb0] sm:$0xff] %vm49_vm3, %v3109_v10  ;;  %v3107_v16 = vmax.f32 %v2851_v11, 0.0  ;;  %v2854_v17 = vadd.f32 %v15226_v59, %v2591_v12  ;;  %v2589_v18 = vmul.f32 %v15221_v58, %v1621_v14 }
  0xfd   :  { %4306 = vst.msk [vmem:[#allocation3 + $0x39] sm:$0xff] %vm49_vm3, %v4241_v13  ;;  %v13627_v19 = vpop.f32.mrf.mxu0  ;;  %13722 = vmatmul.mubr.msk.bf16.gmra.mxu0 %vm1112_vm2, %v14154_v57 }
  0xfe   :  { %3363 = vst.msk [vmem:[#allocation2 + $0xa0] sm:$0xff] %vm49_vm3, %v3107_v16  ;;  %4305 = vst.msk [vmem:[#allocation3 + $0x31] sm:$0xff] %vm49_vm3, %v4240_v15  ;;  %v3110_v20 = vmax.f32 %v2854_v17, 0.0  ;;  %v2852_v21 = vadd.f32 %v15226_v59, %v2589_v18  ;;  %v2594_v22 = vmul.f32 %v13627_v19, %v15221_v58  ;;  %13725 = vmatprep.mubr.msk.bf16.mxu0 %vm1112_vm2, %v14155_v1 }
  0xff   :  { %v1634_v23 = vpop.f32.mrf.mxu0  ;;  %v3617_v35 = vld [vmem:[#allocation2 + $0x90] ss:$2 sm:$0xff]  ;;  %v3873_v36 = vld [vmem:[#allocation2 + $0x91] ss:$2 sm:$0xff] }
 0x100   :  { %3366 = vst.msk [vmem:[#allocation2 + $0xb8] sm:$0xff] %vm49_vm3, %v3110_v20  ;;  %v3108_v24 = vmax.f32 %v2852_v21, 0.0  ;;  %v2857_v25 = vadd.f32 %v15226_v59, %v2594_v22  ;;  %v2592_v26 = vmul.f32 %v15221_v58, %v1634_v23  ;;  %v4119_v51 = vmax.f32 %v3617_v35, %v3873_v36  ;;  %v14160_v23 = vld [vmem:[%s19435_s0 + $0x218] sm:$0xff]  }
 0x101   :  { %v13628_v27 = vpop.f32.mrf.mxu0  ;;  %v3615_v44 = vld [vmem:[#allocation2 + $0x80] ss:$2 sm:$0xff]  ;;  %v3871_v45 = vld [vmem:[#allocation2 + $0x81] ss:$2 sm:$0xff] }
 0x102   :  { %3364 = vst.msk [vmem:[#allocation2 + $0xa8] sm:$0xff] %vm49_vm3, %v3108_v24  ;;  %v3113_v29 = vmax.f32 %v2857_v25, 0.0  ;;  %v2855_v30 = vadd.f32 %v15226_v59, %v2592_v26  ;;  %v2595_v31 = vmul.f32 %v13628_v27, %v15221_v58  ;;  %v4118_v62 = vmax.f32 %v3615_v44, %v3871_v45  ;;  %v14161_v27 = vld [vmem:[%s19435_s0 + $0x220] sm:$0xff]  }
 0x103   :  { %v1637_v34 = vpop.f32.mrf.mxu0 }
 0x104   :  { %3369 = vst.msk [vmem:[#allocation2 + $0xd0] sm:$0xff] %vm49_vm3, %v3113_v29  ;;  %v3111_v37 = vmax.f32 %v2855_v30, 0.0  ;;  %v2858_v38 = vadd.f32 %v15226_v59, %v2595_v31  ;;  %v2593_v39 = vmul.f32 %v15221_v58, %v1637_v34  ;;  %v5214_v42 = vld [vmem:[#allocation3 + $0x3a] sm:$0xff] }
 0x105   :  { %v13631_v40 = vpop.f32.mrf.mxu0  ;;  %13726 = vmatmul.mubr.msk.bf16.gmra.mxu0 %vm1112_vm2, %v14156_v28  ;;  %v5213_v41 = vld [vmem:[#allocation3 + $0x32] sm:$0xff] }
 0x106   :  { %v5117_v43 = vld [vmem:[#allocation3 + $0x31] sm:$0xff]  ;;  %3367 = vst.msk [vmem:[#allocation2 + $0xc0] sm:$0xff] %vm49_vm3, %v3111_v37  ;;  %v3114_v46 = vmax.f32 %v2858_v38, 0.0  ;;  %v2856_v47 = vadd.f32 %v15226_v59, %v2593_v39  ;;  %v2598_v48 = vmul.f32 %v13631_v40, %v15221_v58  ;;  %v5276_v49 = vpack.c.bf16 %v5214_v42, %v5213_v41  ;;  %v5118_v50 = vld [vmem:[#allocation3 + $0x39] sm:$0xff]  ;;  %13729 = vmatprep.mubr.msk.bf16.mxu0 %vm1112_vm2, %v14157_v32 }
 0x107   :  { %v3621_v52 = vld [vmem:[#allocation2 + $0xb0] ss:$2 sm:$0xff]  ;;  %v3877_v53 = vld [vmem:[#allocation2 + $0xb1] ss:$2 sm:$0xff]  ;;  %v1650_v54 = vpop.f32.mrf.mxu0  ;;  %v5180_v55 = vpack.c.bf16 %v5118_v50, %v5117_v43 }
 0x108   :  { %v4121_v56 = vmax.f32 %v3621_v52, %v3877_v53  ;;  %3370 = vst.msk [vmem:[#allocation2 + $0xd8] sm:$0xff] %vm49_vm3, %v3114_v46  ;;  %v3112_v57 = vmax.f32 %v2856_v47, 0.0  ;;  %v2861_v60 = vadd.f32 %v15226_v59, %v2598_v48  ;;  %v2596_v61 = vmul.f32 %v15221_v58, %v1650_v54  ;;  %5437 = vrot.lane.b32.xlu1 %v5276_v49, %s14709_s19 }
 0x109   :  { %v3619_v63 = vld [vmem:[#allocation2 + $0xa0] ss:$2 sm:$0xff]  ;;  %v3875_v0 = vld [vmem:[#allocation2 + $0xa1] ss:$2 sm:$0xff]  ;;  %5341 = vrot.lane.b32.xlu0 %v5180_v55, %s14710_s1  ;;  %v13632_v1 = vpop.f32.mrf.mxu0 }
 0x10a   :  { %v4243_v3 = vmax.f32 %v4119_v51, %v4121_v56  ;;  %v4120_v4 = vmax.f32 %v3619_v63, %v3875_v0  ;;  %3368 = vst.msk [vmem:[#allocation2 + $0xc8] sm:$0xff] %vm49_vm3, %v3112_v57  ;;  %v3117_v5 = vmax.f32 %v2861_v60, 0.0  ;;  %v2859_v6 = vadd.f32 %v15226_v59, %v2596_v61 }
 0x10b   :  { %v2599_v8 = vmul.f32 %v13632_v1, %v15221_v58  ;;  %v1653_v9 = vpop.f32.mrf.mxu0 }
 0x10c   :  { %4308 = vst.msk [vmem:[#allocation3 + $0x51] sm:$0xff] %vm49_vm3, %v4243_v3  ;;  %v4242_v10 = vmax.f32 %v4118_v62, %v4120_v4  ;;  %3373 = vst.msk [vmem:[#allocation2 + $0xf0] sm:$0xff] %vm49_vm3, %v3117_v5  ;;  %v3115_v11 = vmax.f32 %v2859_v6, 0.0  ;;  %v2597_v12 = vmul.f32 %v15221_v58, %v1653_v9 }
 0x10d   :  { %v2862_v13 = vadd.f32 %v15226_v59, %v2599_v8  ;;  %v13635_v14 = vpop.f32.mrf.mxu0  ;;  %13730 = vmatmul.mubr.msk.bf16.gmra.mxu0 %vm1112_vm2, %v14158_v2 }
 0x10e   :  { %4307 = vst.msk [vmem:[#allocation3 + $0x49] sm:$0xff] %vm49_vm3, %v4242_v10  ;;  %3371 = vst.msk [vmem:[#allocation2 + $0xe0] sm:$0xff] %vm49_vm3, %v3115_v11  ;;  %v2860_v15 = vadd.f32 %v15226_v59, %v2597_v12  ;;  %v2602_v16 = vmul.f32 %v13635_v14, %v15221_v58  ;;  %13733 = vmatprep.mubr.msk.bf16.mxu0 %vm1112_vm2, %v14159_v7 }
 0x10f   :  { %v3118_v17 = vmax.f32 %v2862_v13, 0.0  ;;  %v1666_v18 = vpop.f32.mrf.mxu0 }
 0x110   :  { %v3116_v19 = vmax.f32 %v2860_v15, 0.0  ;;  %v2865_v20 = vadd.f32 %v15226_v59, %v2602_v16  ;;  %v2600_v21 = vmul.f32 %v15221_v58, %v1666_v18 }
 0x111   :  { %3374 = vst.msk [vmem:[#allocation2 + $0xf8] sm:$0xff] %vm49_vm3, %v3118_v17  ;;  %v13636_v22 = vpop.f32.mrf.mxu0 }
 0x112   :  { %3372 = vst.msk [vmem:[#allocation2 + $0xe8] sm:$0xff] %vm49_vm3, %v3116_v19  ;;  %v3121_v24 = vmax.f32 %v2865_v20, 0.0  ;;  %v2863_v25 = vadd.f32 %v15226_v59, %v2600_v21  ;;  %v2603_v26 = vmul.f32 %v13636_v22, %v15221_v58 }
 0x113   :  { %19 = vsyncpa [#allocation8], 0  ;;  %v1669_v28 = vpop.f32.mrf.mxu0  ;;  %v3625_v29 = vld [vmem:[#allocation2 + $0xd0] ss:$2 sm:$0xff]  ;;  %v3881_v34 = vld [vmem:[#allocation2 + $0xd1] ss:$2 sm:$0xff] }
 0x114   :  { %3377 = vst.msk [vmem:[#allocation2 + $0x110] sm:$0xff] %vm49_vm3, %v3121_v24  ;;  %v3119_v30 = vmax.f32 %v2863_v25, 0.0  ;;  %v2866_v31 = vadd.f32 %v15226_v59, %v2603_v26  ;;  %v2601_v32 = vmul.f32 %v15221_v58, %v1669_v28  ;;  %v5120_v37 = vld [vmem:[#allocation3 + $0x51] sm:$0xff]  ;;  %v3623_v38 = vld [vmem:[#allocation2 + $0xc0] ss:$2 sm:$0xff]  ;;  %v4123_v52 = vmax.f32 %v3625_v29, %v3881_v34  ;;  %s14712_s23 = smov [#allocation7]  }
 0x115   :  { %v13639_v35 = vpop.f32.mrf.mxu0  ;;  %13734 = vmatmul.mubr.msk.bf16.gmra.mxu0 %vm1112_vm2, %v14160_v23  ;;  %v5119_v36 = vld [vmem:[#allocation3 + $0x49] sm:$0xff]  ;;  %v5216_v51 = vld [vmem:[#allocation3 + $0x52] sm:$0xff]  ;;  %v15512_v21 = vld [vmem:[%s19437_s2] ss:$0 sm:$0xff]  ;;  %vm5708_vm6 = vcmask 785408   ;;  %vm161_vm7 = vcmask 517120  }
 0x116   :  { %v3879_v39 = vld [vmem:[#allocation2 + $0xc1] ss:$2 sm:$0xff]  ;;  %3375 = vst.msk [vmem:[#allocation2 + $0x100] sm:$0xff] %vm49_vm3, %v3119_v30  ;;  %v3122_v40 = vmax.f32 %v2866_v31, 0.0  ;;  %v2864_v41 = vadd.f32 %v15226_v59, %v2601_v32  ;;  %v2606_v42 = vmul.f32 %v13639_v35, %v15221_v58  ;;  %v5181_v43 = vpack.c.bf16 %v5120_v37, %v5119_v36  ;;  %13737 = vmatprep.mubr.msk.bf16.mxu0 %vm1112_vm2, %v14161_v27  ;;  %v14163_v2 = vld [vmem:[%s19435_s0 + $0x230] sm:$0xff]   ;;  %v14164_v18 = vld [vmem:[%s19435_s0 + $0x238] sm:$0xff]  }
 0x117   :  { %v5215_v44 = vld [vmem:[#allocation3 + $0x4a] sm:$0xff]  ;;  %v1682_v45 = vpop.f32.mrf.mxu0  ;;  %v4122_v53 = vmax.f32 %v3623_v38, %v3879_v39  ;;  %vm9735_vm8 = vcmask 1041409   ;;  %s12228_s24 = sshll.u32 %s14712_s23, 4  ;;  %vm12220_vm9 = vcmask 74752   ;;  %s12229_s24 = int_to_ptr.vmem [resolvable:$true] %s12228_s24 }
 0x118   :  { %v3629_v46 = vld [vmem:[#allocation2 + $0xf0] ss:$2 sm:$0xff]  ;;  %v3885_v47 = vld [vmem:[#allocation2 + $0xf1] ss:$2 sm:$0xff]  ;;  %3378 = vst.msk [vmem:[#allocation2 + $0x118] sm:$0xff] %vm49_vm3, %v3122_v40  ;;  %v3120_v48 = vmax.f32 %v2864_v41, 0.0  ;;  %v2869_v49 = vadd.f32 %v15226_v59, %v2606_v42  ;;  %v2604_v50 = vmul.f32 %v15221_v58, %v1682_v45  ;;  %5343 = vrot.lane.b32.xlu0 %v5181_v43, %s14710_s1  ;;  %v5277_v60 = vpack.c.bf16 %v5216_v51, %v5215_v44  ;;  %p14690_p1 = scmp.lt.s32.totalorder %s12229_s24, %s12229_s24 }
 0x119   :  { %v4125_v54 = vmax.f32 %v3629_v46, %v3885_v47  ;;  %v3627_v55 = vld [vmem:[#allocation2 + $0xe0] ss:$2 sm:$0xff]  ;;  %v3883_v56 = vld [vmem:[#allocation2 + $0xe1] ss:$2 sm:$0xff]  ;;  %v13640_v57 = vpop.f32.mrf.mxu0  ;;  %s14685_s25 = scalar_lea.vmem %s12229_s24, 32 }
 0x11a   :  { %v14162_v61 = vld [vmem:[%s19435_s0 + $0x228] sm:$0xff]   ;;  %v4124_v62 = vmax.f32 %v3627_v55, %v3883_v56  ;;  %3376 = vst.msk [vmem:[#allocation2 + $0x108] sm:$0xff] %vm49_vm3, %v3120_v48  ;;  %v3125_v63 = vmax.f32 %v2869_v49, 0.0  ;;  %v2867_v0 = vadd.f32 %v15226_v59, %v2604_v50  ;;  %v2607_v1 = vmul.f32 %v13640_v57, %v15221_v58  ;;  %p14686_p0 = scmp.ne.s32.totalorder %s12229_s24, %s14685_s25  ;;  %p14691_p2 = scmp.lt.s32.totalorder %s14685_s25, %s14685_s25 }
 0x11b   :  { %v4245_v3 = vmax.f32 %v4123_v52, %v4125_v54  ;;  %v1685_v4 = vpop.f32.mrf.mxu0  ;;  %v14166_v54 = vld [vmem:[%s19435_s0 + $0x248] sm:$0xff]  }
 0x11c   :  { %v4244_v5 = vmax.f32 %v4122_v53, %v4124_v62  ;;  %3381 = vst.msk [vmem:[#allocation2 + $0x130] sm:$0xff] %vm49_vm3, %v3125_v63  ;;  %v3123_v6 = vmax.f32 %v2867_v0, 0.0  ;;  %v2870_v7 = vadd.f32 %v15226_v59, %v2607_v1  ;;  %v2605_v8 = vmul.f32 %v15221_v58, %v1685_v4  ;;  %5439 = vrot.lane.b32.xlu0 %v5277_v60, %s14709_s19  ;;  %p14692_p3 = por %p14691_p2, %p14690_p1 }
 0x11d   :  { %4310 = vst.msk [vmem:[#allocation3 + $0x69] sm:$0xff] %vm49_vm3, %v4245_v3  ;;  %v13643_v9 = vpop.f32.mrf.mxu0  ;;  %13738 = vmatmul.mubr.msk.bf16.gmra.mxu0 %vm1112_vm2, %v14162_v61  ;;  %v14167_v61 = vld [vmem:[%s19435_s0 + $0x250] sm:$0xff]  }
 0x11e   :  { %4309 = vst.msk [vmem:[#allocation3 + $0x61] sm:$0xff] %vm49_vm3, %v4244_v5  ;;  %3379 = vst.msk [vmem:[#allocation2 + $0x120] sm:$0xff] %vm49_vm3, %v3123_v6  ;;  %v3126_v10 = vmax.f32 %v2870_v7, 0.0  ;;  %v2868_v11 = vadd.f32 %v15226_v59, %v2605_v8  ;;  %v2610_v12 = vmul.f32 %v13643_v9, %v15221_v58  ;;  %13741 = vmatprep.mubr.msk.bf16.mxu0 %vm1112_vm2, %v14163_v2  ;;  %p14693_p4 = pnand %p14692_p3, %p14686_p0 }
 0x11f   :  { %v1698_v13 = vpop.f32.mrf.mxu0  ;;  %v3633_v24 = vld [vmem:[#allocation2 + $0x110] ss:$2 sm:$0xff]  ;;  %v3889_v25 = vld [vmem:[#allocation2 + $0x111] ss:$2 sm:$0xff] }
 0x120   :  { %3382 = vst.msk [vmem:[#allocation2 + $0x138] sm:$0xff] %vm49_vm3, %v3126_v10  ;;  %v3124_v14 = vmax.f32 %v2868_v11, 0.0  ;;  %v2873_v15 = vadd.f32 %v15226_v59, %v2610_v12  ;;  %v2608_v16 = vmul.f32 %v15221_v58, %v1698_v13  ;;  %v14165_v58 = vld [vmem:[%s19435_s0 + $0x240] sm:$0xff]   ;;  %v4127_v40 = vmax.f32 %v3633_v24, %v3889_v25  ;;  %v14168_v13 = vld [vmem:[%s19435_s0 + $0x258] sm:$0xff]  }
 0x121   :  { %v13644_v17 = vpop.f32.mrf.mxu0  ;;  %v3631_v32 = vld [vmem:[#allocation2 + $0x100] ss:$2 sm:$0xff]  ;;  %v3887_v34 = vld [vmem:[#allocation2 + $0x101] ss:$2 sm:$0xff] }
 0x122   :  { %3380 = vst.msk [vmem:[#allocation2 + $0x128] sm:$0xff] %vm49_vm3, %v3124_v14  ;;  %v3129_v19 = vmax.f32 %v2873_v15, 0.0  ;;  %v2871_v20 = vadd.f32 %v15226_v59, %v2608_v16  ;;  %v2611_v22 = vmul.f32 %v15512_v21, %v13644_v17  ;;  %v15522_v59 = vld [vmem:[%s19438_s3] ss:$0 sm:$0xff]  ;;  %v4126_v49 = vmax.f32 %v3631_v32, %v3887_v34 }
 0x123   :  { %v1701_v23 = vpop.f32.mrf.mxu0  ;;  %v14169_v17 = vld [vmem:[%s19435_s0 + $0x260] sm:$0xff]  }
 0x124   :  { %3385 = vst.msk [vmem:[#allocation2 + $0x150] sm:$0xff] %vm49_vm3, %v3129_v19  ;;  %v3127_v26 = vmax.f32 %v2871_v20, 0.0  ;;  %v2874_v27 = vadd.f32 %v15522_v59, %v2611_v22  ;;  %v2609_v28 = vmul.f32 %v15512_v21, %v1701_v23  ;;  %v5122_v31 = vld [vmem:[#allocation3 + $0x69] sm:$0xff] }
 0x125   :  { %v13647_v29 = vpop.f32.mrf.mxu0  ;;  %13742 = vmatmul.mubr.msk.bf16.gmra.mxu0 %vm1112_vm2, %v14164_v18  ;;  %v5121_v30 = vld [vmem:[#allocation3 + $0x61] sm:$0xff]  ;;  %v5218_v48 = vld [vmem:[#allocation3 + $0x6a] sm:$0xff] }
 0x126   :  { %3383 = vst.msk [vmem:[#allocation2 + $0x140] sm:$0xff] %vm49_vm3, %v3127_v26  ;;  %v3130_v35 = vmax.f32 %v2874_v27, 0.0  ;;  %v2872_v36 = vadd.f32 %v15522_v59, %v2609_v28  ;;  %v2614_v37 = vmul.f32 %v15512_v21, %v13647_v29  ;;  %v5182_v38 = vpack.c.bf16 %v5122_v31, %v5121_v30  ;;  %13745 = vmatprep.mubr.msk.bf16.mxu0 %vm1112_vm2, %v14165_v58  ;;  %v5217_v39 = vld [vmem:[#allocation3 + $0x62] sm:$0xff] }
 0x127   :  { %v3637_v41 = vld [vmem:[#allocation2 + $0x130] ss:$2 sm:$0xff]  ;;  %v3893_v42 = vld [vmem:[#allocation2 + $0x131] ss:$2 sm:$0xff]  ;;  %v1714_v43 = vpop.f32.mrf.mxu0  ;;  %v5278_v53 = vpack.c.bf16 %v5218_v48, %v5217_v39 }
 0x128   :  { %v4129_v44 = vmax.f32 %v3637_v41, %v3893_v42  ;;  %3386 = vst.msk [vmem:[#allocation2 + $0x158] sm:$0xff] %vm49_vm3, %v3130_v35  ;;  %v3128_v45 = vmax.f32 %v2872_v36, 0.0  ;;  %v2877_v46 = vadd.f32 %v15522_v59, %v2614_v37  ;;  %v2612_v47 = vmul.f32 %v15512_v21, %v1714_v43  ;;  %5345 = vrot.lane.b32.xlu1 %v5182_v38, %s14710_s1 }
 0x129   :  { %v3635_v50 = vld [vmem:[#allocation2 + $0x120] ss:$2 sm:$0xff]  ;;  %v3891_v51 = vld [vmem:[#allocation2 + $0x121] ss:$2 sm:$0xff]  ;;  %v13648_v52 = vpop.f32.mrf.mxu0 }
 0x12a   :  { %v4247_v55 = vmax.f32 %v4127_v40, %v4129_v44  ;;  %v4128_v56 = vmax.f32 %v3635_v50, %v3891_v51  ;;  %3384 = vst.msk [vmem:[#allocation2 + $0x148] sm:$0xff] %vm49_vm3, %v3128_v45  ;;  %v3133_v57 = vmax.f32 %v2877_v46, 0.0  ;;  %v2875_v60 = vadd.f32 %v15522_v59, %v2612_v47 }
 0x12b   :  { %v2615_v62 = vmul.f32 %v15512_v21, %v13648_v52  ;;  %v1717_v63 = vpop.f32.mrf.mxu0 }
 0x12c   :  { %4312 = vst.msk [vmem:[#allocation3 + $0x81] sm:$0xff] %vm49_vm3, %v4247_v55  ;;  %v4246_v0 = vmax.f32 %v4126_v49, %v4128_v56  ;;  %3389 = vst.msk [vmem:[#allocation2 + $0x170] sm:$0xff] %vm49_vm3, %v3133_v57  ;;  %v3131_v1 = vmax.f32 %v2875_v60, 0.0  ;;  %v2613_v2 = vmul.f32 %v15512_v21, %v1717_v63  ;;  %5441 = vrot.lane.b32.xlu1 %v5278_v53, %s14709_s19  ;;  %v14170_v49 = vld [vmem:[%s19435_s0 + $0x268] sm:$0xff]  }
 0x12d   :  { %v2878_v3 = vadd.f32 %v15522_v59, %v2615_v62  ;;  %v13651_v4 = vpop.f32.mrf.mxu0  ;;  %13746 = vmatmul.mubr.msk.bf16.gmra.mxu0 %vm1112_vm2, %v14166_v54  ;;  %v14171_v54 = vld [vmem:[%s19435_s0 + $0x270] sm:$0xff]  }
 0x12e   :  { %4311 = vst.msk [vmem:[#allocation3 + $0x79] sm:$0xff] %vm49_vm3, %v4246_v0  ;;  %3387 = vst.msk [vmem:[#allocation2 + $0x160] sm:$0xff] %vm49_vm3, %v3131_v1  ;;  %v2876_v5 = vadd.f32 %v15522_v59, %v2613_v2  ;;  %v2618_v6 = vmul.f32 %v15512_v21, %v13651_v4  ;;  %13749 = vmatprep.mubr.msk.bf16.mxu0 %vm1112_vm2, %v14167_v61 }
 0x12f   :  { %v3134_v7 = vmax.f32 %v2878_v3, 0.0  ;;  %v1730_v8 = vpop.f32.mrf.mxu0  ;;  %v3641_v19 = vld [vmem:[#allocation2 + $0x150] ss:$2 sm:$0xff]  ;;  %v3897_v23 = vld [vmem:[#allocation2 + $0x151] ss:$2 sm:$0xff] }
 0x130   :  { %v3132_v9 = vmax.f32 %v2876_v5, 0.0  ;;  %v2881_v10 = vadd.f32 %v15522_v59, %v2618_v6  ;;  %v2616_v11 = vmul.f32 %v15512_v21, %v1730_v8  ;;  %v4131_v42 = vmax.f32 %v3641_v19, %v3897_v23  ;;  %v14172_v8 = vld [vmem:[%s19435_s0 + $0x278] sm:$0xff]  }
 0x131   :  { %3390 = vst.msk [vmem:[#allocation2 + $0x178] sm:$0xff] %vm49_vm3, %v3134_v7  ;;  %v13652_v12 = vpop.f32.mrf.mxu0  ;;  %v3639_v27 = vld [vmem:[#allocation2 + $0x140] ss:$2 sm:$0xff]  ;;  %v3895_v28 = vld [vmem:[#allocation2 + $0x141] ss:$2 sm:$0xff] }
 0x132   :  { %3388 = vst.msk [vmem:[#allocation2 + $0x168] sm:$0xff] %vm49_vm3, %v3132_v9  ;;  %v3137_v14 = vmax.f32 %v2881_v10, 0.0  ;;  %v2879_v15 = vadd.f32 %v15522_v59, %v2616_v11  ;;  %v2619_v16 = vmul.f32 %v15512_v21, %v13652_v12  ;;  %v4130_v43 = vmax.f32 %v3639_v27, %v3895_v28  ;;  %v14173_v12 = vld [vmem:[%s19435_s0 + $0x280] sm:$0xff]  }
 0x133   :  { %v1733_v18 = vpop.f32.mrf.mxu0  ;;  %v5124_v26 = vld [vmem:[#allocation3 + $0x81] sm:$0xff] }
 0x134   :  { %3393 = vst.msk [vmem:[#allocation2 + $0x190] sm:$0xff] %vm49_vm3, %v3137_v14  ;;  %v3135_v20 = vmax.f32 %v2879_v15, 0.0  ;;  %v2882_v22 = vadd.f32 %v15522_v59, %v2619_v16  ;;  %v2617_v58 = vmul.f32 %v15512_v21, %v1733_v18  ;;  %v5220_v41 = vld [vmem:[#allocation3 + $0x82] sm:$0xff] }
 0x135   :  { %v13655_v24 = vpop.f32.mrf.mxu0  ;;  %13750 = vmatmul.mubr.msk.bf16.gmra.mxu0 %vm1112_vm2, %v14168_v13  ;;  %v5123_v25 = vld [vmem:[#allocation3 + $0x79] sm:$0xff] }
 0x136   :  { %3391 = vst.msk [vmem:[#allocation2 + $0x180] sm:$0xff] %vm49_vm3, %v3135_v20  ;;  %v3138_v29 = vmax.f32 %v2882_v22, 0.0  ;;  %v2880_v30 = vadd.f32 %v15522_v59, %v2617_v58  ;;  %v2622_v31 = vmul.f32 %v15512_v21, %v13655_v24  ;;  %v5183_v32 = vpack.c.bf16 %v5124_v26, %v5123_v25  ;;  %13753 = vmatprep.mubr.msk.bf16.mxu0 %vm1112_vm2, %v14169_v17  ;;  %v5219_v34 = vld [vmem:[#allocation3 + $0x7a] sm:$0xff] }
 0x137   :  { %v1746_v35 = vpop.f32.mrf.mxu0  ;;  %v5279_v48 = vpack.c.bf16 %v5220_v41, %v5219_v34 }
 0x138   :  { %v3645_v36 = vld [vmem:[#allocation2 + $0x170] ss:$2 sm:$0xff]  ;;  %v3901_v37 = vld [vmem:[#allocation2 + $0x171] ss:$2 sm:$0xff]  ;;  %3394 = vst.msk [vmem:[#allocation2 + $0x198] sm:$0xff] %vm49_vm3, %v3138_v29  ;;  %v3136_v38 = vmax.f32 %v2880_v30, 0.0  ;;  %v2885_v39 = vadd.f32 %v15522_v59, %v2622_v31  ;;  %v2620_v40 = vmul.f32 %v15512_v21, %v1746_v35  ;;  %5347 = vrot.lane.b32.xlu0 %v5183_v32, %s14710_s1 }
 0x139   :  { %v4133_v44 = vmax.f32 %v3645_v36, %v3901_v37  ;;  %v3643_v45 = vld [vmem:[#allocation2 + $0x160] ss:$2 sm:$0xff]  ;;  %v3899_v46 = vld [vmem:[#allocation2 + $0x161] ss:$2 sm:$0xff]  ;;  %v13656_v47 = vpop.f32.mrf.mxu0 }
 0x13a   :  { %v4132_v50 = vmax.f32 %v3643_v45, %v3899_v46  ;;  %3392 = vst.msk [vmem:[#allocation2 + $0x188] sm:$0xff] %vm49_vm3, %v3136_v38  ;;  %v3141_v51 = vmax.f32 %v2885_v39, 0.0  ;;  %v2883_v52 = vadd.f32 %v15522_v59, %v2620_v40  ;;  %v2623_v53 = vmul.f32 %v15512_v21, %v13656_v47 }
 0x13b   :  { %v4249_v55 = vmax.f32 %v4131_v42, %v4133_v44  ;;  %v1749_v56 = vpop.f32.mrf.mxu0  ;;  %v14174_v44 = vld [vmem:[%s19435_s0 + $0x288] sm:$0xff]  }
 0x13c   :  { %v4248_v57 = vmax.f32 %v4130_v43, %v4132_v50  ;;  %3397 = vst.msk [vmem:[#allocation2 + $0x1b0] sm:$0xff] %vm49_vm3, %v3141_v51  ;;  %v3139_v60 = vmax.f32 %v2883_v52, 0.0  ;;  %v2886_v61 = vadd.f32 %v15522_v59, %v2623_v53  ;;  %v2621_v62 = vmul.f32 %v15512_v21, %v1749_v56  ;;  %5443 = vrot.lane.b32.xlu0 %v5279_v48, %s14709_s19 }
 0x13d   :  { %4314 = vst.msk [vmem:[#allocation3 + $0x99] sm:$0xff] %vm49_vm3, %v4249_v55  ;;  %v13659_v63 = vpop.f32.mrf.mxu0  ;;  %13754 = vmatmul.mubr.msk.bf16.gmra.mxu0 %vm1112_vm2, %v14170_v49  ;;  %v14175_v49 = vld [vmem:[%s19435_s0 + $0x290] sm:$0xff]  }
 0x13e   :  { %4313 = vst.msk [vmem:[#allocation3 + $0x91] sm:$0xff] %vm49_vm3, %v4248_v57  ;;  %3395 = vst.msk [vmem:[#allocation2 + $0x1a0] sm:$0xff] %vm49_vm3, %v3139_v60  ;;  %v3142_v0 = vmax.f32 %v2886_v61, 0.0  ;;  %v2884_v1 = vadd.f32 %v15522_v59, %v2621_v62  ;;  %v2626_v2 = vmul.f32 %v15512_v21, %v13659_v63  ;;  %13757 = vmatprep.mubr.msk.bf16.mxu0 %vm1112_vm2, %v14171_v54 }
 0x13f   :  { %v1762_v3 = vpop.f32.mrf.mxu0  ;;  %v3649_v14 = vld [vmem:[#allocation2 + $0x190] ss:$2 sm:$0xff]  ;;  %v3905_v15 = vld [vmem:[#allocation2 + $0x191] ss:$2 sm:$0xff] }
 0x140   :  { %3398 = vst.msk [vmem:[#allocation2 + $0x1b8] sm:$0xff] %vm49_vm3, %v3142_v0  ;;  %v3140_v4 = vmax.f32 %v2884_v1, 0.0  ;;  %v2889_v5 = vadd.f32 %v15522_v59, %v2626_v2  ;;  %v2624_v6 = vmul.f32 %v15512_v21, %v1762_v3  ;;  %v4135_v29 = vmax.f32 %v3649_v14, %v3905_v15  ;;  %v14176_v3 = vld [vmem:[%s19435_s0 + $0x298] sm:$0xff]  }
 0x141   :  { %v13660_v7 = vpop.f32.mrf.mxu0  ;;  %v3647_v58 = vld [vmem:[#allocation2 + $0x180] ss:$2 sm:$0xff]  ;;  %v3903_v23 = vld [vmem:[#allocation2 + $0x181] ss:$2 sm:$0xff] }
 0x142   :  { %3396 = vst.msk [vmem:[#allocation2 + $0x1a8] sm:$0xff] %vm49_vm3, %v3140_v4  ;;  %v3145_v9 = vmax.f32 %v2889_v5, 0.0  ;;  %v2887_v10 = vadd.f32 %v15522_v59, %v2624_v6  ;;  %v2627_v11 = vmul.f32 %v15512_v21, %v13660_v7  ;;  %v4134_v39 = vmax.f32 %v3647_v58, %v3903_v23  ;;  %v14177_v7 = vld [vmem:[%s19435_s0 + $0x2a0] sm:$0xff]  }
 0x143   :  { %v1765_v13 = vpop.f32.mrf.mxu0 }
 0x144   :  { %3401 = vst.msk [vmem:[#allocation2 + $0x1d0] sm:$0xff] %vm49_vm3, %v3145_v9  ;;  %v3143_v16 = vmax.f32 %v2887_v10, 0.0  ;;  %v2890_v17 = vadd.f32 %v15522_v59, %v2627_v11  ;;  %v2625_v18 = vmul.f32 %v15512_v21, %v1765_v13  ;;  %v5126_v22 = vld [vmem:[#allocation3 + $0x99] sm:$0xff] }
 0x145   :  { %v13663_v19 = vpop.f32.mrf.mxu0  ;;  %13758 = vmatmul.mubr.msk.bf16.gmra.mxu0 %vm1112_vm2, %v14172_v8  ;;  %v5125_v20 = vld [vmem:[#allocation3 + $0x91] sm:$0xff]  ;;  %v5222_v38 = vld [vmem:[#allocation3 + $0x9a] sm:$0xff] }
 0x146   :  { %3399 = vst.msk [vmem:[#allocation2 + $0x1c0] sm:$0xff] %vm49_vm3, %v3143_v16  ;;  %v3146_v24 = vmax.f32 %v2890_v17, 0.0  ;;  %v2888_v25 = vadd.f32 %v15522_v59, %v2625_v18  ;;  %v2630_v26 = vmul.f32 %v15512_v21, %v13663_v19  ;;  %v5184_v27 = vpack.c.bf16 %v5126_v22, %v5125_v20  ;;  %13761 = vmatprep.mubr.msk.bf16.mxu0 %vm1112_vm2, %v14173_v12  ;;  %v5221_v28 = vld [vmem:[#allocation3 + $0x92] sm:$0xff] }
 0x147   :  { %v3653_v30 = vld [vmem:[#allocation2 + $0x1b0] ss:$2 sm:$0xff]  ;;  %v3909_v31 = vld [vmem:[#allocation2 + $0x1b1] ss:$2 sm:$0xff]  ;;  %v1778_v32 = vpop.f32.mrf.mxu0  ;;  %v5280_v43 = vpack.c.bf16 %v5222_v38, %v5221_v28 }
 0x148   :  { %v4137_v34 = vmax.f32 %v3653_v30, %v3909_v31  ;;  %3402 = vst.msk [vmem:[#allocation2 + $0x1d8] sm:$0xff] %vm49_vm3, %v3146_v24  ;;  %v3144_v35 = vmax.f32 %v2888_v25, 0.0  ;;  %v2893_v36 = vadd.f32 %v15522_v59, %v2630_v26  ;;  %v2628_v37 = vmul.f32 %v15512_v21, %v1778_v32  ;;  %5349 = vrot.lane.b32.xlu1 %v5184_v27, %s14710_s1 }
 0x149   :  { %v3651_v40 = vld [vmem:[#allocation2 + $0x1a0] ss:$2 sm:$0xff]  ;;  %v3907_v41 = vld [vmem:[#allocation2 + $0x1a1] ss:$2 sm:$0xff]  ;;  %v13664_v42 = vpop.f32.mrf.mxu0 }
 0x14a   :  { %v4251_v45 = vmax.f32 %v4135_v29, %v4137_v34  ;;  %v4136_v46 = vmax.f32 %v3651_v40, %v3907_v41  ;;  %3400 = vst.msk [vmem:[#allocation2 + $0x1c8] sm:$0xff] %vm49_vm3, %v3144_v35  ;;  %v3149_v47 = vmax.f32 %v2893_v36, 0.0  ;;  %v2891_v48 = vadd.f32 %v15522_v59, %v2628_v37 }
 0x14b   :  { %v2631_v50 = vmul.f32 %v15512_v21, %v13664_v42  ;;  %v1781_v51 = vpop.f32.mrf.mxu0 }
 0x14c   :  { %4316 = vst.msk [vmem:[#allocation3 + $0xb1] sm:$0xff] %vm49_vm3, %v4251_v45  ;;  %v4250_v52 = vmax.f32 %v4134_v39, %v4136_v46  ;;  %3405 = vst.msk [vmem:[#allocation2 + $0x1f0] sm:$0xff] %vm49_vm3, %v3149_v47  ;;  %v3147_v53 = vmax.f32 %v2891_v48, 0.0  ;;  %v2629_v54 = vmul.f32 %v15512_v21, %v1781_v51  ;;  %5445 = vrot.lane.b32.xlu1 %v5280_v43, %s14709_s19  ;;  %v14178_v39 = vld [vmem:[%s19435_s0 + $0x2a8] sm:$0xff]  }
 0x14d   :  { %v2894_v55 = vadd.f32 %v15522_v59, %v2631_v50  ;;  %v13667_v56 = vpop.f32.mrf.mxu0  ;;  %13762 = vmatmul.mubr.msk.bf16.gmra.mxu0 %vm1112_vm2, %v14174_v44  ;;  %v14179_v44 = vld [vmem:[%s19435_s0 + $0x2b0] sm:$0xff]  }
 0x14e   :  { %4315 = vst.msk [vmem:[#allocation3 + $0xa9] sm:$0xff] %vm49_vm3, %v4250_v52  ;;  %3403 = vst.msk [vmem:[#allocation2 + $0x1e0] sm:$0xff] %vm49_vm3, %v3147_v53  ;;  %v2892_v57 = vadd.f32 %v15522_v59, %v2629_v54  ;;  %v2634_v60 = vmul.f32 %v15512_v21, %v13667_v56  ;;  %13765 = vmatprep.mubr.msk.bf16.mxu0 %vm1112_vm2, %v14175_v49 }
 0x14f   :  { %v3150_v61 = vmax.f32 %v2894_v55, 0.0  ;;  %v1794_v62 = vpop.f32.mrf.mxu0  ;;  %v3657_v9 = vld [vmem:[#allocation2 + $0x1d0] ss:$2 sm:$0xff]  ;;  %v3913_v13 = vld [vmem:[#allocation2 + $0x1d1] ss:$2 sm:$0xff] }
 0x150   :  { %v3148_v63 = vmax.f32 %v2892_v57, 0.0  ;;  %v2897_v0 = vadd.f32 %v15522_v59, %v2634_v60  ;;  %v2632_v1 = vmul.f32 %v15512_v21, %v1794_v62  ;;  %v4139_v31 = vmax.f32 %v3657_v9, %v3913_v13  ;;  %v14180_v62 = vld [vmem:[%s19435_s0 + $0x2b8] sm:$0xff]   ;;  %v5020_v13 = vld [vmem:[#allocation3 + $0x20] sm:$0xff] }
 0x151   :  { %3406 = vst.msk [vmem:[#allocation2 + $0x1f8] sm:$0xff] %vm49_vm3, %v3150_v61  ;;  %v13668_v2 = vpop.f32.mrf.mxu0  ;;  %v3655_v17 = vld [vmem:[#allocation2 + $0x1c0] ss:$2 sm:$0xff]  ;;  %v3911_v18 = vld [vmem:[#allocation2 + $0x1c1] ss:$2 sm:$0xff]  ;;  %v5019_v9 = vld [vmem:[#allocation3 + $0x18] sm:$0xff] }
 0x152   :  { %3404 = vst.msk [vmem:[#allocation2 + $0x1e8] sm:$0xff] %vm49_vm3, %v3148_v63  ;;  %v3153_v4 = vmax.f32 %v2897_v0, 0.0  ;;  %v2895_v5 = vadd.f32 %v15522_v59, %v2632_v1  ;;  %v2635_v6 = vmul.f32 %v15512_v21, %v13668_v2  ;;  %v4138_v32 = vmax.f32 %v3655_v17, %v3911_v18  ;;  %v14183_v2 = vld [vmem:[%s19435_s0 + $0x2c0] sm:$0xff]  }
 0x153   :  { %v1797_v8 = vpop.f32.mrf.mxu0  ;;  %v5128_v16 = vld [vmem:[#allocation3 + $0xb1] sm:$0xff] }
 0x154   :  { %3409 = vst.msk [vmem:[#allocation2 + $0x210] sm:$0xff] %vm49_vm3, %v3153_v4  ;;  %v3151_v10 = vmax.f32 %v2895_v5, 0.0  ;;  %v2898_v11 = vadd.f32 %v15522_v59, %v2635_v6  ;;  %v2633_v12 = vmul.f32 %v15512_v21, %v1797_v8  ;;  %v5224_v30 = vld [vmem:[#allocation3 + $0xb2] sm:$0xff] }
 0x155   :  { %v13671_v14 = vpop.f32.mrf.mxu0  ;;  %13766 = vmatmul.mubr.msk.bf16.gmra.mxu0 %vm1112_vm2, %v14176_v3  ;;  %v5127_v15 = vld [vmem:[#allocation3 + $0xa9] sm:$0xff] }
 0x156   :  { %3407 = vst.msk [vmem:[#allocation2 + $0x200] sm:$0xff] %vm49_vm3, %v3151_v10  ;;  %v3154_v19 = vmax.f32 %v2898_v11, 0.0  ;;  %v2896_v20 = vadd.f32 %v15522_v59, %v2633_v12  ;;  %v2638_v22 = vmul.f32 %v15512_v21, %v13671_v14  ;;  %v5185_v58 = vpack.c.bf16 %v5128_v16, %v5127_v15  ;;  %13769 = vmatprep.mubr.msk.bf16.mxu0 %vm1112_vm2, %v14177_v7  ;;  %v5223_v23 = vld [vmem:[#allocation3 + $0xaa] sm:$0xff] }
 0x157   :  { %v1810_v24 = vpop.f32.mrf.mxu0  ;;  %v5281_v38 = vpack.c.bf16 %v5224_v30, %v5223_v23 }
 0x158   :  { %v3661_v25 = vld [vmem:[#allocation2 + $0x1f0] ss:$2 sm:$0xff]  ;;  %v3917_v26 = vld [vmem:[#allocation2 + $0x1f1] ss:$2 sm:$0xff]  ;;  %3410 = vst.msk [vmem:[#allocation2 + $0x218] sm:$0xff] %vm49_vm3, %v3154_v19  ;;  %v3152_v27 = vmax.f32 %v2896_v20, 0.0  ;;  %v2901_v28 = vadd.f32 %v15522_v59, %v2638_v22  ;;  %v2636_v29 = vmul.f32 %v15512_v21, %v1810_v24  ;;  %5351 = vrot.lane.b32.xlu0 %v5185_v58, %s14710_s1 }
 0x159   :  { %v4141_v34 = vmax.f32 %v3661_v25, %v3917_v26  ;;  %v3659_v35 = vld [vmem:[#allocation2 + $0x1e0] ss:$2 sm:$0xff]  ;;  %v3915_v36 = vld [vmem:[#allocation2 + $0x1e1] ss:$2 sm:$0xff]  ;;  %v13672_v37 = vpop.f32.mrf.mxu0 }
 0x15a   :  { %v4140_v40 = vmax.f32 %v3659_v35, %v3915_v36  ;;  %3408 = vst.msk [vmem:[#allocation2 + $0x208] sm:$0xff] %vm49_vm3, %v3152_v27  ;;  %v3157_v41 = vmax.f32 %v2901_v28, 0.0  ;;  %v2899_v42 = vadd.f32 %v15522_v59, %v2636_v29  ;;  %v2639_v43 = vmul.f32 %v15512_v21, %v13672_v37  ;;  %v14184_v37 = vld [vmem:[%s19435_s0 + $0x2c8] sm:$0xff]  }
 0x15b   :  { %v4253_v45 = vmax.f32 %v4139_v31, %v4141_v34  ;;  %v1813_v46 = vpop.f32.mrf.mxu0  ;;  %v5083_v35 = vpack.c.bf16 %v5020_v13, %v5019_v9 }
 0x15c   :  { %v4252_v47 = vmax.f32 %v4138_v32, %v4140_v40  ;;  %3413 = vst.msk [vmem:[#allocation2 + $0x230] sm:$0xff] %vm49_vm3, %v3157_v41  ;;  %v3155_v48 = vmax.f32 %v2899_v42, 0.0  ;;  %v2902_v49 = vadd.f32 %v15522_v59, %v2639_v43  ;;  %v2637_v50 = vmul.f32 %v15512_v21, %v1813_v46  ;;  %5447 = vrot.lane.b32.xlu0 %v5281_v38, %s14709_s19  ;;  %v14187_v43 = vld [vmem:[%s19435_s0 + $0x2d0] sm:$0xff]  }
 0x15d   :  { %4318 = vst.msk [vmem:[#allocation3 + $0xc9] sm:$0xff] %vm49_vm3, %v4253_v45  ;;  %v13675_v51 = vpop.f32.mrf.mxu0  ;;  %13770 = vmatmul.mubr.msk.bf16.gmra.mxu0 %vm1112_vm2, %v14178_v39 }
 0x15e   :  { %4317 = vst.msk [vmem:[#allocation3 + $0xc1] sm:$0xff] %vm49_vm3, %v4252_v47  ;;  %3411 = vst.msk [vmem:[#allocation2 + $0x220] sm:$0xff] %vm49_vm3, %v3155_v48  ;;  %v3158_v52 = vmax.f32 %v2902_v49, 0.0  ;;  %v2900_v53 = vadd.f32 %v15522_v59, %v2637_v50  ;;  %v2642_v54 = vmul.f32 %v15512_v21, %v13675_v51  ;;  %13773 = vmatprep.mubr.msk.bf16.mxu0 %vm1112_vm2, %v14179_v44 }
 0x15f   :  { %v1826_v55 = vpop.f32.mrf.mxu0  ;;  %v3665_v4 = vld [vmem:[#allocation2 + $0x210] ss:$2 sm:$0xff]  ;;  %v3921_v5 = vld [vmem:[#allocation2 + $0x211] ss:$2 sm:$0xff] }
 0x160   :  { %3414 = vst.msk [vmem:[#allocation2 + $0x238] sm:$0xff] %vm49_vm3, %v3158_v52  ;;  %v3156_v56 = vmax.f32 %v2900_v53, 0.0  ;;  %v2905_v57 = vadd.f32 %v15522_v59, %v2642_v54  ;;  %v2640_v60 = vmul.f32 %v15512_v21, %v1826_v55  ;;  %v4143_v22 = vmax.f32 %v3665_v4, %v3921_v5  ;;  %v14191_v4 = vld [vmem:[%s19435_s0 + $0x2e0] sm:$0xff]  }
 0x161   :  { %v13676_v61 = vpop.f32.mrf.mxu0  ;;  %v3663_v14 = vld [vmem:[#allocation2 + $0x200] ss:$2 sm:$0xff]  ;;  %v3919_v15 = vld [vmem:[#allocation2 + $0x201] ss:$2 sm:$0xff] }
 0x162   :  { %3412 = vst.msk [vmem:[#allocation2 + $0x228] sm:$0xff] %vm49_vm3, %v3156_v56  ;;  %v3161_v63 = vmax.f32 %v2905_v57, 0.0  ;;  %v2903_v0 = vadd.f32 %v15522_v59, %v2640_v60  ;;  %v2643_v1 = vmul.f32 %v15512_v21, %v13676_v61  ;;  %v4142_v30 = vmax.f32 %v3663_v14, %v3919_v15 }
 0x163   :  { %v1829_v3 = vpop.f32.mrf.mxu0 }
 0x164   :  { %3417 = vst.msk [vmem:[#allocation2 + $0x250] sm:$0xff] %vm49_vm3, %v3161_v63  ;;  %v3159_v6 = vmax.f32 %v2903_v0, 0.0  ;;  %v2906_v7 = vadd.f32 %v15522_v59, %v2643_v1  ;;  %v2641_v8 = vmul.f32 %v15512_v21, %v1829_v3  ;;  %v5130_v12 = vld [vmem:[#allocation3 + $0xc9] sm:$0xff]  ;;  %v14188_v0 = vld [vmem:[%s19435_s0 + $0x2d8] sm:$0xff]  }
 0x165   :  { %v13679_v10 = vpop.f32.mrf.mxu0  ;;  %13774 = vmatmul.mubr.msk.bf16.gmra.mxu0 %vm1112_vm2, %v14180_v62  ;;  %v5129_v11 = vld [vmem:[#allocation3 + $0xc1] sm:$0xff]  ;;  %v5226_v29 = vld [vmem:[#allocation3 + $0xca] sm:$0xff] }
 0x166   :  { %3415 = vst.msk [vmem:[#allocation2 + $0x240] sm:$0xff] %vm49_vm3, %v3159_v6  ;;  %v3162_v16 = vmax.f32 %v2906_v7, 0.0  ;;  %v2904_v17 = vadd.f32 %v15522_v59, %v2641_v8  ;;  %v2646_v18 = vmul.f32 %v15512_v21, %v13679_v10  ;;  %v5186_v19 = vpack.c.bf16 %v5130_v12, %v5129_v11  ;;  %13777 = vmatprep.mubr.msk.bf16.mxu0 %vm1112_vm2, %v14183_v2  ;;  %v5225_v20 = vld [vmem:[#allocation3 + $0xc2] sm:$0xff]  ;;  %v5021_v10 = vld [vmem:[#allocation3 + $0x30] sm:$0xff]  ;;  %v5022_v11 = vld [vmem:[#allocation3 + $0x38] sm:$0xff] }
 0x167   :  { %v3669_v58 = vld [vmem:[#allocation2 + $0x230] ss:$2 sm:$0xff]  ;;  %v3925_v23 = vld [vmem:[#allocation2 + $0x231] ss:$2 sm:$0xff]  ;;  %v1842_v24 = vpop.f32.mrf.mxu0  ;;  %v5282_v36 = vpack.c.bf16 %v5226_v29, %v5225_v20  ;;  %v5084_v29 = vpack.c.bf16 %v5022_v11, %v5021_v10 }
 0x168   :  { %v4145_v25 = vmax.f32 %v3669_v58, %v3925_v23  ;;  %3418 = vst.msk [vmem:[#allocation2 + $0x258] sm:$0xff] %vm49_vm3, %v3162_v16  ;;  %v3160_v26 = vmax.f32 %v2904_v17, 0.0  ;;  %v2909_v27 = vadd.f32 %v15522_v59, %v2646_v18  ;;  %v2644_v28 = vmul.f32 %v15512_v21, %v1842_v24  ;;  %5353 = vrot.lane.b32.xlu1 %v5186_v19, %s14710_s1 }
 0x169   :  { %v3667_v31 = vld [vmem:[#allocation2 + $0x220] ss:$2 sm:$0xff]  ;;  %v3923_v32 = vld [vmem:[#allocation2 + $0x221] ss:$2 sm:$0xff]  ;;  %v13680_v34 = vpop.f32.mrf.mxu0 }
 0x16a   :  { %v4255_v38 = vmax.f32 %v4143_v22, %v4145_v25  ;;  %v4144_v39 = vmax.f32 %v3667_v31, %v3923_v32  ;;  %3416 = vst.msk [vmem:[#allocation2 + $0x248] sm:$0xff] %vm49_vm3, %v3160_v26  ;;  %v3165_v40 = vmax.f32 %v2909_v27, 0.0  ;;  %v2907_v41 = vadd.f32 %v15522_v59, %v2644_v28  ;;  %v5436_v42 = vpop.permute.xlu1 %5435 }
 0x16b   :  { %v2647_v44 = vmul.f32 %v15512_v21, %v13680_v34  ;;  %v5340_v45 = vpop.permute.xlu0 %5339  ;;  %v1845_v46 = vpop.f32.mrf.mxu0 }
 0x16c   :  { %4320 = vst.msk [vmem:[#allocation3 + $0xe1] sm:$0xff] %vm49_vm3, %v4255_v38  ;;  %v4254_v47 = vmax.f32 %v4142_v30, %v4144_v39  ;;  %3421 = vst.msk [vmem:[#allocation2 + $0x270] sm:$0xff] %vm49_vm3, %v3165_v40  ;;  %v3163_v48 = vmax.f32 %v2907_v41, 0.0  ;;  %v5501_v49 = vsel %vm49_vm3, %v5083_v35, %v5340_v45  ;;  %v2645_v50 = vmul.f32 %v15512_v21, %v1845_v46  ;;  %v14192_v39 = vld [vmem:[%s19435_s0 + $0x2e8] sm:$0xff]   ;;  %v14193_v45 = vld [vmem:[%s19435_s0 + $0x2f0] sm:$0xff]  }
 0x16d   :  { %5449 = vrot.lane.b32.xlu1 %v5282_v36, %s14709_s19  ;;  %v2910_v51 = vadd.f32 %v15522_v59, %v2647_v44  ;;  %v13683_v52 = vpop.f32.mrf.mxu0  ;;  %13778 = vmatmul.mubr.msk.bf16.gmra.mxu0 %vm1112_vm2, %v14184_v37  ;;  %v5596_v53 = vsel %vm159_vm5, %v5501_v49, %v5436_v42 }
 0x16e   :  { %4319 = vst.msk [vmem:[#allocation3 + $0xd9] sm:$0xff] %vm49_vm3, %v4254_v47  ;;  %3419 = vst.msk [vmem:[#allocation2 + $0x260] sm:$0xff] %vm49_vm3, %v3163_v48  ;;  %v2908_v54 = vadd.f32 %v15522_v59, %v2645_v50  ;;  %v2650_v55 = vmul.f32 %v15512_v21, %v13683_v52  ;;  %13869 = vmatprep.mubr.msk.bf16.mxu1 %vm5708_vm6, %v5596_v53  ;;  %13781 = vmatprep.mubr.msk.bf16.mxu0 %vm1112_vm2, %v14187_v43 }
 0x16f   :  { %v3166_v56 = vmax.f32 %v2910_v51, 0.0  ;;  %v1858_v57 = vpop.f32.mrf.mxu0  ;;  %v3673_v6 = vld [vmem:[#allocation2 + $0x250] ss:$2 sm:$0xff]  ;;  %v3929_v12 = vld [vmem:[#allocation2 + $0x251] ss:$2 sm:$0xff] }
 0x170   :  { %v3164_v60 = vmax.f32 %v2908_v54, 0.0  ;;  %v2913_v61 = vadd.f32 %v15522_v59, %v2650_v55  ;;  %v2648_v62 = vmul.f32 %v15512_v21, %v1858_v57  ;;  %v4147_v31 = vmax.f32 %v3673_v6, %v3929_v12  ;;  %v14195_v6 = vld [vmem:[%s19435_s0 + $0x300] sm:$0xff]  }
 0x171   :  { %3422 = vst.msk [vmem:[#allocation2 + $0x278] sm:$0xff] %vm49_vm3, %v3166_v56  ;;  %v13684_v63 = vpop.f32.mrf.mxu0  ;;  %v3671_v16 = vld [vmem:[#allocation2 + $0x240] ss:$2 sm:$0xff]  ;;  %v3927_v17 = vld [vmem:[#allocation2 + $0x241] ss:$2 sm:$0xff] }
 0x172   :  { %3420 = vst.msk [vmem:[#allocation2 + $0x268] sm:$0xff] %vm49_vm3, %v3164_v60  ;;  %v3169_v1 = vmax.f32 %v2913_v61, 0.0  ;;  %v2911_v2 = vadd.f32 %v15522_v59, %v2648_v62  ;;  %v2651_v3 = vmul.f32 %v15512_v21, %v13684_v63  ;;  %v4146_v32 = vmax.f32 %v3671_v16, %v3927_v17 }
 0x173   :  { %v1861_v5 = vpop.f32.mrf.mxu0  ;;  %v5132_v15 = vld [vmem:[#allocation3 + $0xe1] sm:$0xff] }
 0x174   :  { %3425 = vst.msk [vmem:[#allocation2 + $0x290] sm:$0xff] %vm49_vm3, %v3169_v1  ;;  %v3167_v7 = vmax.f32 %v2911_v2, 0.0  ;;  %v2914_v8 = vadd.f32 %v15522_v59, %v2651_v3  ;;  %v2649_v9 = vmul.f32 %v15512_v21, %v1861_v5  ;;  %v5228_v30 = vld [vmem:[#allocation3 + $0xe2] sm:$0xff]  ;;  %v14194_v2 = vld [vmem:[%s19435_s0 + $0x2f8] sm:$0xff]  }
 0x175   :  { %v13687_v13 = vpop.f32.mrf.mxu0  ;;  %13782 = vmatmul.mubr.msk.bf16.gmra.mxu0 %vm1112_vm2, %v14188_v0  ;;  %v5131_v14 = vld [vmem:[#allocation3 + $0xd9] sm:$0xff] }
 0x176   :  { %3423 = vst.msk [vmem:[#allocation2 + $0x280] sm:$0xff] %vm49_vm3, %v3167_v7  ;;  %v3170_v18 = vmax.f32 %v2914_v8, 0.0  ;;  %v2912_v19 = vadd.f32 %v15522_v59, %v2649_v9  ;;  %v2654_v20 = vmul.f32 %v15512_v21, %v13687_v13  ;;  %v5187_v22 = vpack.c.bf16 %v5132_v15, %v5131_v14  ;;  %13785 = vmatprep.mubr.msk.bf16.mxu0 %vm1112_vm2, %v14191_v4  ;;  %v5227_v58 = vld [vmem:[#allocation3 + $0xda] sm:$0xff] }
 0x177   :  { %v1874_v23 = vpop.f32.mrf.mxu0  ;;  %v5283_v38 = vpack.c.bf16 %v5228_v30, %v5227_v58 }
 0x178   :  { %v3677_v24 = vld [vmem:[#allocation2 + $0x270] ss:$2 sm:$0xff]  ;;  %v3933_v25 = vld [vmem:[#allocation2 + $0x271] ss:$2 sm:$0xff]  ;;  %3426 = vst.msk [vmem:[#allocation2 + $0x298] sm:$0xff] %vm49_vm3, %v3170_v18  ;;  %v3168_v26 = vmax.f32 %v2912_v19, 0.0  ;;  %v2917_v27 = vadd.f32 %v15522_v59, %v2654_v20  ;;  %v2652_v28 = vmul.f32 %v15512_v21, %v1874_v23  ;;  %5355 = vrot.lane.b32.xlu0 %v5187_v22, %s14710_s1 }
 0x179   :  { %v4149_v34 = vmax.f32 %v3677_v24, %v3933_v25  ;;  %v3675_v35 = vld [vmem:[#allocation2 + $0x260] ss:$2 sm:$0xff]  ;;  %v3931_v36 = vld [vmem:[#allocation2 + $0x261] ss:$2 sm:$0xff]  ;;  %v13688_v37 = vpop.f32.mrf.mxu0 }
 0x17a   :  { %v4148_v40 = vmax.f32 %v3675_v35, %v3931_v36  ;;  %3424 = vst.msk [vmem:[#allocation2 + $0x288] sm:$0xff] %vm49_vm3, %v3168_v26  ;;  %v3173_v41 = vmax.f32 %v2917_v27, 0.0  ;;  %v2915_v42 = vadd.f32 %v15522_v59, %v2652_v28  ;;  %v2655_v43 = vmul.f32 %v15512_v21, %v13688_v37  ;;  %v5438_v44 = vpop.permute.xlu1 %5437  ;;  %v5024_v35 = vld [vmem:[#allocation3 + $0x50] sm:$0xff]  ;;  %v14196_v37 = vld [vmem:[%s19435_s0 + $0x308] sm:$0xff]  }
 0x17b   :  { %v4257_v46 = vmax.f32 %v4147_v31, %v4149_v34  ;;  %v5342_v47 = vpop.permute.xlu0 %5341  ;;  %v1877_v48 = vpop.f32.mrf.mxu0  ;;  %v5023_v34 = vld [vmem:[#allocation3 + $0x48] sm:$0xff] }
 0x17c   :  { %v4256_v49 = vmax.f32 %v4146_v32, %v4148_v40  ;;  %3429 = vst.msk [vmem:[#allocation2 + $0x2b0] sm:$0xff] %vm49_vm3, %v3173_v41  ;;  %v3171_v50 = vmax.f32 %v2915_v42, 0.0  ;;  %v2918_v51 = vadd.f32 %v15522_v59, %v2655_v43  ;;  %v5504_v52 = vsel %vm49_vm3, %v5084_v29, %v5342_v47  ;;  %5451 = vrot.lane.b32.xlu0 %v5283_v38, %s14709_s19 }
 0x17d   :  { %4322 = vst.msk [vmem:[#allocation3 + $0xf9] sm:$0xff] %vm49_vm3, %v4257_v46  ;;  %v2653_v53 = vmul.f32 %v15512_v21, %v1877_v48  ;;  %v13691_v54 = vpop.f32.mrf.mxu0  ;;  %13786 = vmatmul.mubr.msk.bf16.gmra.mxu0 %vm1112_vm2, %v14192_v39  ;;  %v5598_v55 = vsel %vm159_vm5, %v5504_v52, %v5438_v44 }
 0x17e   :  { %4321 = vst.msk [vmem:[#allocation3 + $0xf1] sm:$0xff] %vm49_vm3, %v4256_v49  ;;  %3427 = vst.msk [vmem:[#allocation2 + $0x2a0] sm:$0xff] %vm49_vm3, %v3171_v50  ;;  %v3174_v56 = vmax.f32 %v2918_v51, 0.0  ;;  %v2658_v57 = vmul.f32 %v15512_v21, %v13691_v54  ;;  %13870 = vmatmul.mubr.msk.bf16.vlgmr.msra.gmra.mxu1 %vm5708_vm6, %v5598_v55  ;;  %13789 = vmatprep.mubr.msk.bf16.mxu0 %vm1112_vm2, %v14193_v45  ;;  %v14197_v45 = vld [vmem:[%s19435_s0 + $0x310] sm:$0xff]   ;;  %v5085_v51 = vpack.c.bf16 %v5024_v35, %v5023_v34  ;;  %v14200_v35 = vld [vmem:[%s19435_s0 + $0x328] sm:$0xff]  }
 0x17f   :  { %v2916_v60 = vadd.f32 %v15522_v59, %v2653_v53  ;;  %v1890_v61 = vpop.f32.mrf.mxu0  ;;  %v3681_v8 = vld [vmem:[#allocation2 + $0x290] ss:$2 sm:$0xff]  ;;  %v3937_v9 = vld [vmem:[#allocation2 + $0x291] ss:$2 sm:$0xff] }
 0x180   :  { %3430 = vst.msk [vmem:[#allocation2 + $0x2b8] sm:$0xff] %vm49_vm3, %v3174_v56  ;;  %v2921_v62 = vadd.f32 %v15522_v59, %v2658_v57  ;;  %v2656_v63 = vmul.f32 %v15512_v21, %v1890_v61  ;;  %v4151_v22 = vmax.f32 %v3681_v8, %v3937_v9  ;;  %v14199_v8 = vld [vmem:[%s19435_s0 + $0x320] sm:$0xff]  }
 0x181   :  { %v3172_v0 = vmax.f32 %v2916_v60, 0.0  ;;  %v13692_v1 = vpop.f32.mrf.mxu0  ;;  %v3679_v25 = vld [vmem:[#allocation2 + $0x280] ss:$2 sm:$0xff]  ;;  %v3935_v26 = vld [vmem:[#allocation2 + $0x281] ss:$2 sm:$0xff] }
 0x182   :  { %v3177_v3 = vmax.f32 %v2921_v62, 0.0  ;;  %v2919_v4 = vadd.f32 %v15522_v59, %v2656_v63  ;;  %v2659_v5 = vmul.f32 %v15512_v21, %v13692_v1  ;;  %v4150_v46 = vmax.f32 %v3679_v25, %v3935_v26  ;;  %v15826_v60 = vld [vmem:[%s19437_s2] ss:$0 sm:$0xff] }
 0x183   :  { %3428 = vst.msk [vmem:[#allocation2 + $0x2a8] sm:$0xff] %vm49_vm3, %v3172_v0  ;;  %v1893_v7 = vpop.f32.mrf.mxu0 }
 0x184   :  { %3433 = vst.msk [vmem:[#allocation2 + $0x2d0] sm:$0xff] %vm49_vm3, %v3177_v3  ;;  %v3175_v10 = vmax.f32 %v2919_v4, 0.0  ;;  %v2922_v11 = vadd.f32 %v15522_v59, %v2659_v5  ;;  %v2657_v12 = vmul.f32 %v15512_v21, %v1893_v7  ;;  %v5134_v15 = vld [vmem:[#allocation3 + $0xf9] sm:$0xff] }
 0x185   :  { %v13695_v13 = vpop.f32.mrf.mxu0  ;;  %13790 = vmatmul.mubr.msk.bf16.gmra.mxu0 %vm1112_vm2, %v14194_v2  ;;  %v5133_v14 = vld [vmem:[#allocation3 + $0xf1] sm:$0xff]  ;;  %v5230_v31 = vld [vmem:[#allocation3 + $0xfa] sm:$0xff] }
 0x186   :  { %3431 = vst.msk [vmem:[#allocation2 + $0x2c0] sm:$0xff] %vm49_vm3, %v3175_v10  ;;  %v3178_v16 = vmax.f32 %v2922_v11, 0.0  ;;  %v2920_v17 = vadd.f32 %v15522_v59, %v2657_v12  ;;  %v2662_v18 = vmul.f32 %v15512_v21, %v13695_v13  ;;  %v5188_v19 = vpack.c.bf16 %v5134_v15, %v5133_v14  ;;  %13793 = vmatprep.mubr.msk.bf16.mxu0 %vm1112_vm2, %v14195_v6  ;;  %v5229_v20 = vld [vmem:[#allocation3 + $0xf2] sm:$0xff] }
 0x187   :  { %v3685_v58 = vld [vmem:[#allocation2 + $0x2b0] ss:$2 sm:$0xff]  ;;  %v3941_v23 = vld [vmem:[#allocation2 + $0x2b1] ss:$2 sm:$0xff]  ;;  %v1906_v24 = vpop.f32.mrf.mxu0  ;;  %v5284_v36 = vpack.c.bf16 %v5230_v31, %v5229_v20 }
 0x188   :  { %v4153_v27 = vmax.f32 %v3685_v58, %v3941_v23  ;;  %3434 = vst.msk [vmem:[#allocation2 + $0x2d8] sm:$0xff] %vm49_vm3, %v3178_v16  ;;  %v3176_v28 = vmax.f32 %v2920_v17, 0.0  ;;  %v2925_v29 = vadd.f32 %v15522_v59, %v2662_v18  ;;  %v2660_v30 = vmul.f32 %v15512_v21, %v1906_v24  ;;  %5357 = vrot.lane.b32.xlu1 %v5188_v19, %s14710_s1  ;;  %v14198_v4 = vld [vmem:[%s19435_s0 + $0x318] sm:$0xff]  }
 0x189   :  { %v13696_v32 = vpop.f32.mrf.mxu0 }
 0x18a   :  { %v4259_v38 = vmax.f32 %v4151_v22, %v4153_v27  ;;  %v3683_v39 = vld [vmem:[#allocation2 + $0x2a0] ss:$2 sm:$0xff]  ;;  %v3939_v40 = vld [vmem:[#allocation2 + $0x2a1] ss:$2 sm:$0xff]  ;;  %3432 = vst.msk [vmem:[#allocation2 + $0x2c8] sm:$0xff] %vm49_vm3, %v3176_v28  ;;  %v3181_v41 = vmax.f32 %v2925_v29, 0.0  ;;  %v2923_v42 = vadd.f32 %v15522_v59, %v2660_v30  ;;  %v2663_v43 = vmul.f32 %v15512_v21, %v13696_v32  ;;  %v5344_v44 = vpop.permute.xlu0 %5343 }
 0x18b   :  { %v4152_v47 = vmax.f32 %v3683_v39, %v3939_v40  ;;  %v1909_v48 = vpop.f32.mrf.mxu0  ;;  %v5507_v56 = vsel %vm49_vm3, %v5085_v51, %v5344_v44  ;;  %v5025_v32 = vld [vmem:[#allocation3 + $0x60] sm:$0xff]  ;;  %v5026_v40 = vld [vmem:[#allocation3 + $0x68] sm:$0xff] }
 0x18c   :  { %4324 = vst.msk [vmem:[#allocation3 + $0x111] sm:$0xff] %vm49_vm3, %v4259_v38  ;;  %3437 = vst.msk [vmem:[#allocation2 + $0x2f0] sm:$0xff] %vm49_vm3, %v3181_v41  ;;  %v3179_v49 = vmax.f32 %v2923_v42, 0.0  ;;  %v2926_v50 = vadd.f32 %v15522_v59, %v2663_v43  ;;  %v2661_v52 = vmul.f32 %v15512_v21, %v1909_v48  ;;  %5453 = vrot.lane.b32.xlu1 %v5284_v36, %s14709_s19 }
 0x18d   :  { %v4258_v53 = vmax.f32 %v4150_v46, %v4152_v47  ;;  %v13699_v54 = vpop.f32.mrf.mxu0  ;;  %13794 = vmatmul.mubr.msk.bf16.gmra.mxu0 %vm1112_vm2, %v14196_v37  ;;  %v14201_v47 = vld [vmem:[%s19435_s0 + $0x330] sm:$0xff]  }
 0x18e   :  { %3435 = vst.msk [vmem:[#allocation2 + $0x2e0] sm:$0xff] %vm49_vm3, %v3179_v49  ;;  %v3182_v55 = vmax.f32 %v2926_v50, 0.0  ;;  %v2924_v57 = vadd.f32 %v15522_v59, %v2661_v52  ;;  %v2666_v21 = vmul.f32 %v15826_v60, %v13699_v54  ;;  %v5440_v61 = vpop.permute.xlu0 %5439  ;;  %13797 = vmatprep.mubr.msk.bf16.mxu0 %vm1112_vm2, %v14197_v45  ;;  %v15836_v59 = vld [vmem:[%s19438_s3] ss:$0 sm:$0xff] }
 0x18f   :  { %4323 = vst.msk [vmem:[#allocation3 + $0x109] sm:$0xff] %vm49_vm3, %v4258_v53  ;;  %v5600_v62 = vsel %vm159_vm5, %v5507_v56, %v5440_v61  ;;  %v1922_v63 = vpop.f32.mrf.mxu0  ;;  %v3689_v10 = vld [vmem:[#allocation2 + $0x2d0] ss:$2 sm:$0xff]  ;;  %v3945_v11 = vld [vmem:[#allocation2 + $0x2d1] ss:$2 sm:$0xff]  ;;  %v5086_v53 = vpack.c.bf16 %v5026_v40, %v5025_v32 }
 0x190   :  { %3438 = vst.msk [vmem:[#allocation2 + $0x2f8] sm:$0xff] %vm49_vm3, %v3182_v55  ;;  %v3180_v0 = vmax.f32 %v2924_v57, 0.0  ;;  %v2929_v1 = vadd.f32 %v15836_v59, %v2666_v21  ;;  %v2664_v2 = vmul.f32 %v15826_v60, %v1922_v63  ;;  %13873 = vmatprep.mubr.msk.bf16.mxu1 %vm5708_vm6, %v5600_v62  ;;  %v4155_v23 = vmax.f32 %v3689_v10, %v3945_v11  ;;  %v14203_v10 = vld [vmem:[%s19435_s0 + $0x340] sm:$0xff]  }
 0x191   :  { %v13700_v3 = vpop.f32.mrf.mxu0  ;;  %v3687_v15 = vld [vmem:[#allocation2 + $0x2c0] ss:$2 sm:$0xff]  ;;  %v3943_v17 = vld [vmem:[#allocation2 + $0x2c1] ss:$2 sm:$0xff] }
 0x192   :  { %3436 = vst.msk [vmem:[#allocation2 + $0x2e8] sm:$0xff] %vm49_vm3, %v3180_v0  ;;  %v3185_v5 = vmax.f32 %v2929_v1, 0.0  ;;  %v2927_v6 = vadd.f32 %v15836_v59, %v2664_v2  ;;  %v2667_v7 = vmul.f32 %v15826_v60, %v13700_v3  ;;  %v4154_v36 = vmax.f32 %v3687_v15, %v3943_v17 }
 0x193   :  { %v1925_v9 = vpop.f32.mrf.mxu0  ;;  %v5136_v58 = vld [vmem:[#allocation3 + $0x111] sm:$0xff] }
 0x194   :  { %3441 = vst.msk [vmem:[#allocation2 + $0x310] sm:$0xff] %vm49_vm3, %v3185_v5  ;;  %v3183_v12 = vmax.f32 %v2927_v6, 0.0  ;;  %v2930_v13 = vadd.f32 %v15836_v59, %v2667_v7  ;;  %v2665_v14 = vmul.f32 %v15826_v60, %v1925_v9  ;;  %v5232_v46 = vld [vmem:[#allocation3 + $0x112] sm:$0xff] }
 0x195   :  { %v13703_v16 = vpop.f32.mrf.mxu0  ;;  %13798 = vmatmul.mubr.msk.bf16.gmra.mxu0 %vm1112_vm2, %v14198_v4  ;;  %v14202_v6 = vld [vmem:[%s19435_s0 + $0x338] sm:$0xff]  }
 0x196   :  { %3439 = vst.msk [vmem:[#allocation2 + $0x300] sm:$0xff] %vm49_vm3, %v3183_v12  ;;  %v3186_v18 = vmax.f32 %v2930_v13, 0.0  ;;  %v2928_v19 = vadd.f32 %v15836_v59, %v2665_v14  ;;  %v2670_v20 = vmul.f32 %v15826_v60, %v13703_v16  ;;  %v5135_v22 = vld [vmem:[#allocation3 + $0x109] sm:$0xff]  ;;  %13801 = vmatprep.mubr.msk.bf16.mxu0 %vm1112_vm2, %v14199_v8 }
 0x197   :  { %v3693_v24 = vld [vmem:[#allocation2 + $0x2f0] ss:$2 sm:$0xff]  ;;  %v3949_v25 = vld [vmem:[#allocation2 + $0x2f1] ss:$2 sm:$0xff]  ;;  %v1938_v26 = vpop.f32.mrf.mxu0  ;;  %v5189_v27 = vpack.c.bf16 %v5136_v58, %v5135_v22 }
 0x198   :  { %v4157_v28 = vmax.f32 %v3693_v24, %v3949_v25  ;;  %3442 = vst.msk [vmem:[#allocation2 + $0x318] sm:$0xff] %vm49_vm3, %v3186_v18  ;;  %v3184_v29 = vmax.f32 %v2928_v19, 0.0  ;;  %v2933_v30 = vadd.f32 %v15836_v59, %v2670_v20  ;;  %v2668_v31 = vmul.f32 %v15826_v60, %v1938_v26  ;;  %v5231_v34 = vld [vmem:[#allocation3 + $0x10a] sm:$0xff] }
 0x199   :  { %v3691_v37 = vld [vmem:[#allocation2 + $0x2e0] ss:$2 sm:$0xff]  ;;  %v3947_v38 = vld [vmem:[#allocation2 + $0x2e1] ss:$2 sm:$0xff]  ;;  %5359 = vrot.lane.b32.xlu0 %v5189_v27, %s14710_s1  ;;  %v13704_v39 = vpop.f32.mrf.mxu0  ;;  %v5285_v50 = vpack.c.bf16 %v5232_v46, %v5231_v34 }
 0x19a   :  { %v4261_v41 = vmax.f32 %v4155_v23, %v4157_v28  ;;  %v4156_v42 = vmax.f32 %v3691_v37, %v3947_v38  ;;  %3440 = vst.msk [vmem:[#allocation2 + $0x308] sm:$0xff] %vm49_vm3, %v3184_v29  ;;  %v3189_v43 = vmax.f32 %v2933_v30, 0.0  ;;  %v2931_v44 = vadd.f32 %v15836_v59, %v2668_v31  ;;  %v5346_v45 = vpop.permute.xlu1 %5345  ;;  %v5027_v28 = vld [vmem:[#allocation3 + $0x78] sm:$0xff]  ;;  %v5028_v29 = vld [vmem:[#allocation3 + $0x80] sm:$0xff] }
 0x19b   :  { %v2671_v48 = vmul.f32 %v15826_v60, %v13704_v39  ;;  %v1941_v49 = vpop.f32.mrf.mxu0  ;;  %v5510_v57 = vsel %vm49_vm3, %v5086_v53, %v5346_v45 }
 0x19c   :  { %4326 = vst.msk [vmem:[#allocation3 + $0x129] sm:$0xff] %vm49_vm3, %v4261_v41  ;;  %v4260_v51 = vmax.f32 %v4154_v36, %v4156_v42  ;;  %3445 = vst.msk [vmem:[#allocation2 + $0x330] sm:$0xff] %vm49_vm3, %v3189_v43  ;;  %v3187_v52 = vmax.f32 %v2931_v44, 0.0  ;;  %v2669_v54 = vmul.f32 %v15826_v60, %v1941_v49  ;;  %v14204_v44 = vld [vmem:[%s19435_s0 + $0x348] sm:$0xff]  }
 0x19d   :  { %v2934_v55 = vadd.f32 %v15836_v59, %v2671_v48  ;;  %5455 = vrot.lane.b32.xlu0 %v5285_v50, %s14709_s19  ;;  %v13707_v56 = vpop.f32.mrf.mxu0  ;;  %13802 = vmatmul.mubr.msk.bf16.gmra.mxu0 %vm1112_vm2, %v14200_v35  ;;  %v14205_v50 = vld [vmem:[%s19435_s0 + $0x350] sm:$0xff]  }
 0x19e   :  { %4325 = vst.msk [vmem:[#allocation3 + $0x121] sm:$0xff] %vm49_vm3, %v4260_v51  ;;  %3443 = vst.msk [vmem:[#allocation2 + $0x320] sm:$0xff] %vm49_vm3, %v3187_v52  ;;  %v2932_v21 = vadd.f32 %v15836_v59, %v2669_v54  ;;  %v2674_v61 = vmul.f32 %v15826_v60, %v13707_v56  ;;  %v5442_v62 = vpop.permute.xlu1 %5441  ;;  %13805 = vmatprep.mubr.msk.bf16.mxu0 %vm1112_vm2, %v14201_v47  ;;  %v5087_v52 = vpack.c.bf16 %v5028_v29, %v5027_v28 }
 0x19f   :  { %v3190_v63 = vmax.f32 %v2934_v55, 0.0  ;;  %v5602_v0 = vsel %vm159_vm5, %v5510_v57, %v5442_v62  ;;  %v1954_v1 = vpop.f32.mrf.mxu0  ;;  %v3697_v12 = vld [vmem:[#allocation2 + $0x310] ss:$2 sm:$0xff]  ;;  %v3953_v16 = vld [vmem:[#allocation2 + $0x311] ss:$2 sm:$0xff] }
 0x1a0   :  { %v3188_v2 = vmax.f32 %v2932_v21, 0.0  ;;  %v2937_v3 = vadd.f32 %v15836_v59, %v2674_v61  ;;  %v2672_v4 = vmul.f32 %v15826_v60, %v1954_v1  ;;  %13874 = vmatmul.mubr.msk.bf16.gmra.mxu1 %vm5708_vm6, %v5602_v0  ;;  %v4159_v37 = vmax.f32 %v3697_v12, %v3953_v16  ;;  %v14207_v12 = vld [vmem:[%s19435_s0 + $0x360] sm:$0xff]  }
 0x1a1   :  { %3446 = vst.msk [vmem:[#allocation2 + $0x338] sm:$0xff] %vm49_vm3, %v3190_v63  ;;  %v13708_v5 = vpop.f32.mrf.mxu0  ;;  %v3695_v20 = vld [vmem:[#allocation2 + $0x300] ss:$2 sm:$0xff]  ;;  %v3951_v22 = vld [vmem:[#allocation2 + $0x301] ss:$2 sm:$0xff] }
 0x1a2   :  { %3444 = vst.msk [vmem:[#allocation2 + $0x328] sm:$0xff] %vm49_vm3, %v3188_v2  ;;  %v3193_v7 = vmax.f32 %v2937_v3, 0.0  ;;  %v2935_v8 = vadd.f32 %v15836_v59, %v2672_v4  ;;  %v2675_v9 = vmul.f32 %v15826_v60, %v13708_v5  ;;  %v4158_v38 = vmax.f32 %v3695_v20, %v3951_v22 }
 0x1a3   :  { %v1957_v11 = vpop.f32.mrf.mxu0  ;;  %v5138_v19 = vld [vmem:[#allocation3 + $0x129] sm:$0xff] }
 0x1a4   :  { %3449 = vst.msk [vmem:[#allocation2 + $0x350] sm:$0xff] %vm49_vm3, %v3193_v7  ;;  %v3191_v13 = vmax.f32 %v2935_v8, 0.0  ;;  %v2938_v14 = vadd.f32 %v15836_v59, %v2675_v9  ;;  %v2673_v15 = vmul.f32 %v15826_v60, %v1957_v11  ;;  %v5234_v36 = vld [vmem:[#allocation3 + $0x12a] sm:$0xff]  ;;  %v14206_v8 = vld [vmem:[%s19435_s0 + $0x358] sm:$0xff]  }
 0x1a5   :  { %v13711_v17 = vpop.f32.mrf.mxu0  ;;  %13806 = vmatmul.mubr.msk.bf16.gmra.mxu0 %vm1112_vm2, %v14202_v6  ;;  %v5137_v18 = vld [vmem:[#allocation3 + $0x121] sm:$0xff] }
 0x1a6   :  { %3447 = vst.msk [vmem:[#allocation2 + $0x340] sm:$0xff] %vm49_vm3, %v3191_v13  ;;  %v3194_v58 = vmax.f32 %v2938_v14, 0.0  ;;  %v2936_v23 = vadd.f32 %v15836_v59, %v2673_v15  ;;  %v2678_v24 = vmul.f32 %v15826_v60, %v13711_v17  ;;  %v5190_v25 = vpack.c.bf16 %v5138_v19, %v5137_v18  ;;  %13809 = vmatprep.mubr.msk.bf16.mxu0 %vm1112_vm2, %v14203_v10  ;;  %v5233_v26 = vld [vmem:[#allocation3 + $0x122] sm:$0xff] }
 0x1a7   :  { %v1970_v27 = vpop.f32.mrf.mxu0  ;;  %v5286_v43 = vpack.c.bf16 %v5234_v36, %v5233_v26 }
 0x1a8   :  { %v3701_v30 = vld [vmem:[#allocation2 + $0x330] ss:$2 sm:$0xff]  ;;  %v3957_v31 = vld [vmem:[#allocation2 + $0x331] ss:$2 sm:$0xff]  ;;  %3450 = vst.msk [vmem:[#allocation2 + $0x358] sm:$0xff] %vm49_vm3, %v3194_v58  ;;  %v3192_v32 = vmax.f32 %v2936_v23, 0.0  ;;  %v2941_v34 = vadd.f32 %v15836_v59, %v2678_v24  ;;  %v2676_v35 = vmul.f32 %v15826_v60, %v1970_v27  ;;  %5361 = vrot.lane.b32.xlu1 %v5190_v25, %s14710_s1 }
 0x1a9   :  { %v4161_v39 = vmax.f32 %v3701_v30, %v3957_v31  ;;  %v3699_v40 = vld [vmem:[#allocation2 + $0x320] ss:$2 sm:$0xff]  ;;  %v3955_v41 = vld [vmem:[#allocation2 + $0x321] ss:$2 sm:$0xff]  ;;  %v13712_v42 = vpop.f32.mrf.mxu0 }
 0x1aa   :  { %v4160_v45 = vmax.f32 %v3699_v40, %v3955_v41  ;;  %3448 = vst.msk [vmem:[#allocation2 + $0x348] sm:$0xff] %vm49_vm3, %v3192_v32  ;;  %v3197_v46 = vmax.f32 %v2941_v34, 0.0  ;;  %v2939_v47 = vadd.f32 %v15836_v59, %v2676_v35  ;;  %v2679_v48 = vmul.f32 %v15826_v60, %v13712_v42  ;;  %v5348_v49 = vpop.permute.xlu0 %5347  ;;  %v14208_v40 = vld [vmem:[%s19435_s0 + $0x368] sm:$0xff]  }
 0x1ab   :  { %v4263_v51 = vmax.f32 %v4159_v37, %v4161_v39  ;;  %v1973_v53 = vpop.f32.mrf.mxu0  ;;  %v5513_v62 = vsel %vm49_vm3, %v5087_v52, %v5348_v49  ;;  %v14209_v52 = vld [vmem:[%s19435_s0 + $0x370] sm:$0xff]  }
 0x1ac   :  { %v4262_v54 = vmax.f32 %v4158_v38, %v4160_v45  ;;  %3453 = vst.msk [vmem:[#allocation2 + $0x370] sm:$0xff] %vm49_vm3, %v3197_v46  ;;  %v3195_v55 = vmax.f32 %v2939_v47, 0.0  ;;  %v2942_v56 = vadd.f32 %v15836_v59, %v2679_v48  ;;  %v2677_v57 = vmul.f32 %v15826_v60, %v1973_v53  ;;  %5457 = vrot.lane.b32.xlu1 %v5286_v43, %s14709_s19  ;;  %v5029_v38 = vld [vmem:[#allocation3 + $0x90] sm:$0xff]  ;;  %v5030_v45 = vld [vmem:[#allocation3 + $0x98] sm:$0xff] }
 0x1ad   :  { %4328 = vst.msk [vmem:[#allocation3 + $0x141] sm:$0xff] %vm49_vm3, %v4263_v51  ;;  %v13715_v21 = vpop.f32.mrf.mxu0  ;;  %13810 = vmatmul.mubr.msk.bf16.gmra.mxu0 %vm1112_vm2, %v14204_v44 }
 0x1ae   :  { %4327 = vst.msk [vmem:[#allocation3 + $0x139] sm:$0xff] %vm49_vm3, %v4262_v54  ;;  %3451 = vst.msk [vmem:[#allocation2 + $0x360] sm:$0xff] %vm49_vm3, %v3195_v55  ;;  %v3198_v61 = vmax.f32 %v2942_v56, 0.0  ;;  %v2940_v63 = vadd.f32 %v15836_v59, %v2677_v57  ;;  %v2682_v0 = vmul.f32 %v15826_v60, %v13715_v21  ;;  %v5444_v1 = vpop.permute.xlu0 %5443  ;;  %13813 = vmatprep.mubr.msk.bf16.mxu0 %vm1112_vm2, %v14205_v50 }
 0x1af   :  { %v5604_v2 = vsel %vm159_vm5, %v5513_v62, %v5444_v1  ;;  %v1986_v3 = vpop.f32.mrf.mxu0  ;;  %v3705_v14 = vld [vmem:[#allocation2 + $0x350] ss:$2 sm:$0xff]  ;;  %v3961_v15 = vld [vmem:[#allocation2 + $0x351] ss:$2 sm:$0xff]  ;;  %v5088_v57 = vpack.c.bf16 %v5030_v45, %v5029_v38 }
 0x1b0   :  { %3454 = vst.msk [vmem:[#allocation2 + $0x378] sm:$0xff] %vm49_vm3, %v3198_v61  ;;  %v3196_v4 = vmax.f32 %v2940_v63, 0.0  ;;  %v2945_v5 = vadd.f32 %v15836_v59, %v2682_v0  ;;  %v2680_v6 = vmul.f32 %v15826_v60, %v1986_v3  ;;  %13877 = vmatprep.mubr.msk.bf16.mxu1 %vm5708_vm6, %v5604_v2  ;;  %v4163_v29 = vmax.f32 %v3705_v14, %v3961_v15  ;;  %v14211_v14 = vld [vmem:[%s19435_s0 + $0x380] sm:$0xff]  }
 0x1b1   :  { %v13716_v7 = vpop.f32.mrf.mxu0  ;;  %v3703_v58 = vld [vmem:[#allocation2 + $0x340] ss:$2 sm:$0xff]  ;;  %v3959_v23 = vld [vmem:[#allocation2 + $0x341] ss:$2 sm:$0xff] }
 0x1b2   :  { %3452 = vst.msk [vmem:[#allocation2 + $0x368] sm:$0xff] %vm49_vm3, %v3196_v4  ;;  %v3201_v9 = vmax.f32 %v2945_v5, 0.0  ;;  %v2943_v10 = vadd.f32 %v15836_v59, %v2680_v6  ;;  %v2683_v11 = vmul.f32 %v15826_v60, %v13716_v7  ;;  %v4162_v41 = vmax.f32 %v3703_v58, %v3959_v23 }
 0x1b3   :  { %v1989_v13 = vpop.f32.mrf.mxu0 }
 0x1b4   :  { %3457 = vst.msk [vmem:[#allocation2 + $0x390] sm:$0xff] %vm49_vm3, %v3201_v9  ;;  %v3199_v16 = vmax.f32 %v2943_v10, 0.0  ;;  %v2946_v17 = vadd.f32 %v15836_v59, %v2683_v11  ;;  %v2681_v18 = vmul.f32 %v15826_v60, %v1989_v13  ;;  %v5140_v22 = vld [vmem:[#allocation3 + $0x141] sm:$0xff]  ;;  %v14210_v10 = vld [vmem:[%s19435_s0 + $0x378] sm:$0xff]  }
 0x1b5   :  { %v13719_v19 = vpop.f32.mrf.mxu0  ;;  %13814 = vmatmul.mubr.msk.bf16.gmra.mxu0 %vm1112_vm2, %v14206_v8  ;;  %v5139_v20 = vld [vmem:[#allocation3 + $0x139] sm:$0xff]  ;;  %v5236_v39 = vld [vmem:[#allocation3 + $0x142] sm:$0xff] }
 0x1b6   :  { %3455 = vst.msk [vmem:[#allocation2 + $0x380] sm:$0xff] %vm49_vm3, %v3199_v16  ;;  %v3202_v24 = vmax.f32 %v2946_v17, 0.0  ;;  %v2944_v25 = vadd.f32 %v15836_v59, %v2681_v18  ;;  %v2686_v26 = vmul.f32 %v15826_v60, %v13719_v19  ;;  %v5191_v27 = vpack.c.bf16 %v5140_v22, %v5139_v20  ;;  %13817 = vmatprep.mubr.msk.bf16.mxu0 %vm1112_vm2, %v14207_v12  ;;  %v5235_v28 = vld [vmem:[#allocation3 + $0x13a] sm:$0xff] }
 0x1b7   :  { %v3709_v30 = vld [vmem:[#allocation2 + $0x370] ss:$2 sm:$0xff]  ;;  %v3965_v31 = vld [vmem:[#allocation2 + $0x371] ss:$2 sm:$0xff]  ;;  %v2002_v32 = vpop.f32.mrf.mxu0  ;;  %v5287_v46 = vpack.c.bf16 %v5236_v39, %v5235_v28 }
 0x1b8   :  { %v4165_v34 = vmax.f32 %v3709_v30, %v3965_v31  ;;  %3458 = vst.msk [vmem:[#allocation2 + $0x398] sm:$0xff] %vm49_vm3, %v3202_v24  ;;  %v3200_v35 = vmax.f32 %v2944_v25, 0.0  ;;  %v2949_v36 = vadd.f32 %v15836_v59, %v2686_v26  ;;  %v2684_v37 = vmul.f32 %v15826_v60, %v2002_v32  ;;  %5363 = vrot.lane.b32.xlu0 %v5191_v27, %s14710_s1  ;;  %v5031_v32 = vld [vmem:[#allocation3 + $0xa8] sm:$0xff] }
 0x1b9   :  { %v3707_v42 = vld [vmem:[#allocation2 + $0x360] ss:$2 sm:$0xff]  ;;  %v3963_v43 = vld [vmem:[#allocation2 + $0x361] ss:$2 sm:$0xff]  ;;  %v13720_v44 = vpop.f32.mrf.mxu0 }
 0x1ba   :  { %v4265_v47 = vmax.f32 %v4163_v29, %v4165_v34  ;;  %v4164_v48 = vmax.f32 %v3707_v42, %v3963_v43  ;;  %3456 = vst.msk [vmem:[#allocation2 + $0x388] sm:$0xff] %vm49_vm3, %v3200_v35  ;;  %v3205_v49 = vmax.f32 %v2949_v36, 0.0  ;;  %v2947_v50 = vadd.f32 %v15836_v59, %v2684_v37  ;;  %v5350_v51 = vpop.permute.xlu1 %5349  ;;  %v5032_v34 = vld [vmem:[#allocation3 + $0xb0] sm:$0xff] }
 0x1bb   :  { %v2687_v53 = vmul.f32 %v15826_v60, %v13720_v44  ;;  %v2005_v54 = vpop.f32.mrf.mxu0  ;;  %v5516_v63 = vsel %vm49_vm3, %v5088_v57, %v5350_v51 }
 0x1bc   :  { %4330 = vst.msk [vmem:[#allocation3 + $0x159] sm:$0xff] %vm49_vm3, %v4265_v47  ;;  %v4264_v55 = vmax.f32 %v4162_v41, %v4164_v48  ;;  %3461 = vst.msk [vmem:[#allocation2 + $0x3b0] sm:$0xff] %vm49_vm3, %v3205_v49  ;;  %v3203_v56 = vmax.f32 %v2947_v50, 0.0  ;;  %v2685_v21 = vmul.f32 %v15826_v60, %v2005_v54  ;;  %5459 = vrot.lane.b32.xlu0 %v5287_v46, %s14709_s19  ;;  %v14212_v48 = vld [vmem:[%s19435_s0 + $0x388] sm:$0xff]   ;;  %v14213_v54 = vld [vmem:[%s19435_s0 + $0x390] sm:$0xff]  }
 0x1bd   :  { %v2950_v61 = vadd.f32 %v15836_v59, %v2687_v53  ;;  %v13723_v62 = vpop.f32.mrf.mxu0  ;;  %13818 = vmatmul.mubr.msk.bf16.gmra.mxu0 %vm1112_vm2, %v14208_v40 }
 0x1be   :  { %4329 = vst.msk [vmem:[#allocation3 + $0x151] sm:$0xff] %vm49_vm3, %v4264_v55  ;;  %3459 = vst.msk [vmem:[#allocation2 + $0x3a0] sm:$0xff] %vm49_vm3, %v3203_v56  ;;  %v2948_v0 = vadd.f32 %v15836_v59, %v2685_v21  ;;  %v2690_v1 = vmul.f32 %v15826_v60, %v13723_v62  ;;  %v5446_v2 = vpop.permute.xlu1 %5445  ;;  %13821 = vmatprep.mubr.msk.bf16.mxu0 %vm1112_vm2, %v14209_v52  ;;  %v5089_v56 = vpack.c.bf16 %v5032_v34, %v5031_v32 }
 0x1bf   :  { %v3206_v3 = vmax.f32 %v2950_v61, 0.0  ;;  %v5606_v4 = vsel %vm159_vm5, %v5516_v63, %v5446_v2  ;;  %v2018_v5 = vpop.f32.mrf.mxu0  ;;  %v3713_v16 = vld [vmem:[#allocation2 + $0x390] ss:$2 sm:$0xff]  ;;  %v3969_v20 = vld [vmem:[#allocation2 + $0x391] ss:$2 sm:$0xff] }
 0x1c0   :  { %v3204_v6 = vmax.f32 %v2948_v0, 0.0  ;;  %v2953_v7 = vadd.f32 %v15836_v59, %v2690_v1  ;;  %v2688_v8 = vmul.f32 %v15826_v60, %v2018_v5  ;;  %13878 = vmatmul.mubr.msk.bf16.gmra.mxu1 %vm5708_vm6, %v5606_v4  ;;  %v4167_v41 = vmax.f32 %v3713_v16, %v3969_v20  ;;  %v14215_v16 = vld [vmem:[%s19435_s0 + $0x3a0] sm:$0xff]  }
 0x1c1   :  { %3462 = vst.msk [vmem:[#allocation2 + $0x3b8] sm:$0xff] %vm49_vm3, %v3206_v3  ;;  %v13724_v9 = vpop.f32.mrf.mxu0  ;;  %v3711_v24 = vld [vmem:[#allocation2 + $0x380] ss:$2 sm:$0xff]  ;;  %v3967_v25 = vld [vmem:[#allocation2 + $0x381] ss:$2 sm:$0xff] }
 0x1c2   :  { %3460 = vst.msk [vmem:[#allocation2 + $0x3a8] sm:$0xff] %vm49_vm3, %v3204_v6  ;;  %v3209_v11 = vmax.f32 %v2953_v7, 0.0  ;;  %v2951_v12 = vadd.f32 %v15836_v59, %v2688_v8  ;;  %v2691_v13 = vmul.f32 %v15826_v60, %v13724_v9  ;;  %v4166_v42 = vmax.f32 %v3711_v24, %v3967_v25 }
 0x1c3   :  { %v2021_v15 = vpop.f32.mrf.mxu0  ;;  %v5142_v23 = vld [vmem:[#allocation3 + $0x159] sm:$0xff] }
 0x1c4   :  { %3465 = vst.msk [vmem:[#allocation2 + $0x3d0] sm:$0xff] %vm49_vm3, %v3209_v11  ;;  %v3207_v17 = vmax.f32 %v2951_v12, 0.0  ;;  %v2954_v18 = vadd.f32 %v15836_v59, %v2691_v13  ;;  %v2689_v19 = vmul.f32 %v15826_v60, %v2021_v15  ;;  %v5238_v40 = vld [vmem:[#allocation3 + $0x15a] sm:$0xff] }
 0x1c5   :  { %v13727_v22 = vpop.f32.mrf.mxu0  ;;  %13822 = vmatmul.mubr.msk.bf16.gmra.mxu0 %vm1112_vm2, %v14210_v10  ;;  %v5141_v58 = vld [vmem:[#allocation3 + $0x151] sm:$0xff] }
 0x1c6   :  { %3463 = vst.msk [vmem:[#allocation2 + $0x3c0] sm:$0xff] %vm49_vm3, %v3207_v17  ;;  %v3210_v26 = vmax.f32 %v2954_v18, 0.0  ;;  %v2952_v27 = vadd.f32 %v15836_v59, %v2689_v19  ;;  %v2694_v28 = vmul.f32 %v15826_v60, %v13727_v22  ;;  %v5192_v29 = vpack.c.bf16 %v5142_v23, %v5141_v58  ;;  %13825 = vmatprep.mubr.msk.bf16.mxu0 %vm1112_vm2, %v14211_v14  ;;  %v5237_v30 = vld [vmem:[#allocation3 + $0x152] sm:$0xff] }
 0x1c7   :  { %v2034_v31 = vpop.f32.mrf.mxu0  ;;  %v5288_v47 = vpack.c.bf16 %v5238_v40, %v5237_v30  ;;  %v14214_v12 = vld [vmem:[%s19435_s0 + $0x398] sm:$0xff]  }
 0x1c8   :  { %v3717_v35 = vld [vmem:[#allocation2 + $0x3b0] ss:$2 sm:$0xff]  ;;  %v3973_v36 = vld [vmem:[#allocation2 + $0x3b1] ss:$2 sm:$0xff]  ;;  %3466 = vst.msk [vmem:[#allocation2 + $0x3d8] sm:$0xff] %vm49_vm3, %v3210_v26  ;;  %v3208_v37 = vmax.f32 %v2952_v27, 0.0  ;;  %v2957_v38 = vadd.f32 %v15836_v59, %v2694_v28  ;;  %v2692_v39 = vmul.f32 %v15826_v60, %v2034_v31  ;;  %5365 = vrot.lane.b32.xlu1 %v5192_v29, %s14710_s1 }
 0x1c9   :  { %v4169_v43 = vmax.f32 %v3717_v35, %v3973_v36  ;;  %v3715_v44 = vld [vmem:[#allocation2 + $0x3a0] ss:$2 sm:$0xff]  ;;  %v3971_v45 = vld [vmem:[#allocation2 + $0x3a1] ss:$2 sm:$0xff]  ;;  %v13728_v46 = vpop.f32.mrf.mxu0 }
 0x1ca   :  { %v4168_v49 = vmax.f32 %v3715_v44, %v3971_v45  ;;  %3464 = vst.msk [vmem:[#allocation2 + $0x3c8] sm:$0xff] %vm49_vm3, %v3208_v37  ;;  %v3213_v50 = vmax.f32 %v2957_v38, 0.0  ;;  %v2955_v51 = vadd.f32 %v15836_v59, %v2692_v39  ;;  %v2695_v52 = vmul.f32 %v15826_v60, %v13728_v46  ;;  %v5352_v53 = vpop.permute.xlu0 %5351  ;;  %v14216_v44 = vld [vmem:[%s19435_s0 + $0x3a8] sm:$0xff]  }
 0x1cb   :  { %v4267_v55 = vmax.f32 %v4167_v41, %v4169_v43  ;;  %v2037_v57 = vpop.f32.mrf.mxu0  ;;  %v5519_v2 = vsel %vm49_vm3, %v5089_v56, %v5352_v53  ;;  %v14217_v56 = vld [vmem:[%s19435_s0 + $0x3b0] sm:$0xff]  }
 0x1cc   :  { %v4266_v21 = vmax.f32 %v4166_v42, %v4168_v49  ;;  %3469 = vst.msk [vmem:[#allocation2 + $0x3f0] sm:$0xff] %vm49_vm3, %v3213_v50  ;;  %v3211_v61 = vmax.f32 %v2955_v51, 0.0  ;;  %v2958_v62 = vadd.f32 %v15836_v59, %v2695_v52  ;;  %v2693_v63 = vmul.f32 %v15826_v60, %v2037_v57  ;;  %5461 = vrot.lane.b32.xlu1 %v5288_v47, %s14709_s19  ;;  %v5033_v42 = vld [vmem:[#allocation3 + $0xc0] sm:$0xff]  ;;  %v5034_v49 = vld [vmem:[#allocation3 + $0xc8] sm:$0xff] }
 0x1cd   :  { %4332 = vst.msk [vmem:[#allocation3 + $0x171] sm:$0xff] %vm49_vm3, %v4267_v55  ;;  %v13731_v0 = vpop.f32.mrf.mxu0  ;;  %13826 = vmatmul.mubr.msk.bf16.gmra.mxu0 %vm1112_vm2, %v14212_v48 }
 0x1ce   :  { %4331 = vst.msk [vmem:[#allocation3 + $0x169] sm:$0xff] %vm49_vm3, %v4266_v21  ;;  %3467 = vst.msk [vmem:[#allocation2 + $0x3e0] sm:$0xff] %vm49_vm3, %v3211_v61  ;;  %v3214_v1 = vmax.f32 %v2958_v62, 0.0  ;;  %v2956_v3 = vadd.f32 %v15836_v59, %v2693_v63  ;;  %v2698_v4 = vmul.f32 %v15826_v60, %v13731_v0  ;;  %v5448_v5 = vpop.permute.xlu0 %5447  ;;  %13829 = vmatprep.mubr.msk.bf16.mxu0 %vm1112_vm2, %v14213_v54 }
 0x1cf   :  { %v5608_v6 = vsel %vm159_vm5, %v5519_v2, %v5448_v5  ;;  %v2050_v7 = vpop.f32.mrf.mxu0  ;;  %v3721_v18 = vld [vmem:[#allocation2 + $0x3d0] ss:$2 sm:$0xff]  ;;  %v3977_v19 = vld [vmem:[#allocation2 + $0x3d1] ss:$2 sm:$0xff]  ;;  %v5090_v63 = vpack.c.bf16 %v5034_v49, %v5033_v42 }
 0x1d0   :  { %3470 = vst.msk [vmem:[#allocation2 + $0x3f8] sm:$0xff] %vm49_vm3, %v3214_v1  ;;  %v3212_v8 = vmax.f32 %v2956_v3, 0.0  ;;  %v2961_v9 = vadd.f32 %v15836_v59, %v2698_v4  ;;  %v2696_v10 = vmul.f32 %v15826_v60, %v2050_v7  ;;  %13881 = vmatprep.mubr.msk.bf16.mxu1 %vm5708_vm6, %v5608_v6  ;;  %v4171_v34 = vmax.f32 %v3721_v18, %v3977_v19  ;;  %v14219_v18 = vld [vmem:[%s19435_s0 + $0x3c0] sm:$0xff]  }
 0x1d1   :  { %v13732_v11 = vpop.f32.mrf.mxu0  ;;  %v3719_v26 = vld [vmem:[#allocation2 + $0x3c0] ss:$2 sm:$0xff]  ;;  %v3975_v27 = vld [vmem:[#allocation2 + $0x3c1] ss:$2 sm:$0xff] }
 0x1d2   :  { %3468 = vst.msk [vmem:[#allocation2 + $0x3e8] sm:$0xff] %vm49_vm3, %v3212_v8  ;;  %v3217_v13 = vmax.f32 %v2961_v9, 0.0  ;;  %v2959_v14 = vadd.f32 %v15836_v59, %v2696_v10  ;;  %v2699_v15 = vmul.f32 %v15826_v60, %v13732_v11  ;;  %v4170_v45 = vmax.f32 %v3719_v26, %v3975_v27 }
 0x1d3   :  { %v2053_v17 = vpop.f32.mrf.mxu0 }
 0x1d4   :  { %3473 = vst.msk [vmem:[#allocation2 + $0x410] sm:$0xff] %vm49_vm3, %v3217_v13  ;;  %v3215_v20 = vmax.f32 %v2959_v14, 0.0  ;;  %v2962_v22 = vadd.f32 %v15836_v59, %v2699_v15  ;;  %v2697_v58 = vmul.f32 %v15826_v60, %v2053_v17  ;;  %v5144_v25 = vld [vmem:[#allocation3 + $0x171] sm:$0xff] }
 0x1d5   :  { %v13735_v23 = vpop.f32.mrf.mxu0  ;;  %13830 = vmatmul.mubr.msk.bf16.gmra.mxu0 %vm1112_vm2, %v14214_v12  ;;  %v5143_v24 = vld [vmem:[#allocation3 + $0x169] sm:$0xff]  ;;  %v5240_v43 = vld [vmem:[#allocation3 + $0x172] sm:$0xff] }
 0x1d6   :  { %3471 = vst.msk [vmem:[#allocation2 + $0x400] sm:$0xff] %vm49_vm3, %v3215_v20  ;;  %v3218_v28 = vmax.f32 %v2962_v22, 0.0  ;;  %v2960_v29 = vadd.f32 %v15836_v59, %v2697_v58  ;;  %v2702_v30 = vmul.f32 %v15826_v60, %v13735_v23  ;;  %v5193_v31 = vpack.c.bf16 %v5144_v25, %v5143_v24  ;;  %13833 = vmatprep.mubr.msk.bf16.mxu0 %vm1112_vm2, %v14215_v16  ;;  %v5239_v32 = vld [vmem:[#allocation3 + $0x16a] sm:$0xff]  ;;  %v14218_v14 = vld [vmem:[%s19435_s0 + $0x3b8] sm:$0xff]  }
 0x1d7   :  { %v3725_v35 = vld [vmem:[#allocation2 + $0x3f0] ss:$2 sm:$0xff]  ;;  %v3981_v36 = vld [vmem:[#allocation2 + $0x3f1] ss:$2 sm:$0xff]  ;;  %v2066_v37 = vpop.f32.mrf.mxu0  ;;  %v5289_v50 = vpack.c.bf16 %v5240_v43, %v5239_v32 }
 0x1d8   :  { %v4173_v38 = vmax.f32 %v3725_v35, %v3981_v36  ;;  %3474 = vst.msk [vmem:[#allocation2 + $0x418] sm:$0xff] %vm49_vm3, %v3218_v28  ;;  %v3216_v39 = vmax.f32 %v2960_v29, 0.0  ;;  %v2965_v40 = vadd.f32 %v15836_v59, %v2702_v30  ;;  %v2700_v41 = vmul.f32 %v15826_v60, %v2066_v37  ;;  %5367 = vrot.lane.b32.xlu0 %v5193_v31, %s14710_s1  ;;  %v5035_v37 = vld [vmem:[#allocation3 + $0xd8] sm:$0xff] }
 0x1d9   :  { %v3723_v46 = vld [vmem:[#allocation2 + $0x3e0] ss:$2 sm:$0xff]  ;;  %v3979_v47 = vld [vmem:[#allocation2 + $0x3e1] ss:$2 sm:$0xff]  ;;  %v13736_v48 = vpop.f32.mrf.mxu0 }
 0x1da   :  { %v4269_v51 = vmax.f32 %v4171_v34, %v4173_v38  ;;  %v4172_v52 = vmax.f32 %v3723_v46, %v3979_v47  ;;  %3472 = vst.msk [vmem:[#allocation2 + $0x408] sm:$0xff] %vm49_vm3, %v3216_v39  ;;  %v3221_v53 = vmax.f32 %v2965_v40, 0.0  ;;  %v2963_v54 = vadd.f32 %v15836_v59, %v2700_v41  ;;  %v5354_v55 = vpop.permute.xlu1 %5353  ;;  %v5036_v38 = vld [vmem:[#allocation3 + $0xe0] sm:$0xff] }
 0x1db   :  { %v2703_v57 = vmul.f32 %v15826_v60, %v13736_v48  ;;  %v2069_v21 = vpop.f32.mrf.mxu0  ;;  %v5522_v3 = vsel %vm49_vm3, %v5090_v63, %v5354_v55 }
 0x1dc   :  { %4334 = vst.msk [vmem:[#allocation3 + $0x189] sm:$0xff] %vm49_vm3, %v4269_v51  ;;  %v4268_v61 = vmax.f32 %v4170_v45, %v4172_v52  ;;  %3477 = vst.msk [vmem:[#allocation2 + $0x430] sm:$0xff] %vm49_vm3, %v3221_v53  ;;  %v3219_v62 = vmax.f32 %v2963_v54, 0.0  ;;  %v2701_v0 = vmul.f32 %v15826_v60, %v2069_v21  ;;  %5463 = vrot.lane.b32.xlu0 %v5289_v50, %s14709_s19  ;;  %v14220_v52 = vld [vmem:[%s19435_s0 + $0x3c8] sm:$0xff]   ;;  %v14221_v21 = vld [vmem:[%s19435_s0 + $0x3d0] sm:$0xff]  }
 0x1dd   :  { %v2966_v1 = vadd.f32 %v15836_v59, %v2703_v57  ;;  %v13739_v2 = vpop.f32.mrf.mxu0  ;;  %13834 = vmatmul.mubr.msk.bf16.gmra.mxu0 %vm1112_vm2, %v14216_v44 }
 0x1de   :  { %4333 = vst.msk [vmem:[#allocation3 + $0x181] sm:$0xff] %vm49_vm3, %v4268_v61  ;;  %3475 = vst.msk [vmem:[#allocation2 + $0x420] sm:$0xff] %vm49_vm3, %v3219_v62  ;;  %v2964_v4 = vadd.f32 %v15836_v59, %v2701_v0  ;;  %v2706_v5 = vmul.f32 %v15826_v60, %v13739_v2  ;;  %13837 = vmatprep.mubr.msk.bf16.mxu0 %vm1112_vm2, %v14217_v56  ;;  %v5091_v62 = vpack.c.bf16 %v5036_v38, %v5035_v37 }
 0x1df   :  { %v5450_v6 = vpop.permute.xlu1 %5449  ;;  %v3222_v7 = vmax.f32 %v2966_v1, 0.0  ;;  %v2082_v9 = vpop.f32.mrf.mxu0  ;;  %v3729_v20 = vld [vmem:[#allocation2 + $0x410] ss:$2 sm:$0xff]  ;;  %v3985_v24 = vld [vmem:[#allocation2 + $0x411] ss:$2 sm:$0xff] }
 0x1e0   :  { %v5610_v8 = vsel %vm159_vm5, %v5522_v3, %v5450_v6  ;;  %v3220_v10 = vmax.f32 %v2964_v4, 0.0  ;;  %v2969_v11 = vadd.f32 %v15836_v59, %v2706_v5  ;;  %v2704_v12 = vmul.f32 %v15826_v60, %v2082_v9 }
 0x1e1   :  { %13882 = vmatmul.mubr.msk.bf16.gmra.mxu1 %vm5708_vm6, %v5610_v8  ;;  %3478 = vst.msk [vmem:[#allocation2 + $0x438] sm:$0xff] %vm49_vm3, %v3222_v7  ;;  %v13740_v13 = vpop.f32.mrf.mxu0  ;;  %v3727_v28 = vld [vmem:[#allocation2 + $0x400] ss:$2 sm:$0xff]  ;;  %v3983_v29 = vld [vmem:[#allocation2 + $0x401] ss:$2 sm:$0xff]  ;;  %v4175_v45 = vmax.f32 %v3729_v20, %v3985_v24 }
 0x1e2   :  { %3476 = vst.msk [vmem:[#allocation2 + $0x428] sm:$0xff] %vm49_vm3, %v3220_v10  ;;  %v3225_v15 = vmax.f32 %v2969_v11, 0.0  ;;  %v2967_v16 = vadd.f32 %v15836_v59, %v2704_v12  ;;  %v2707_v17 = vmul.f32 %v15826_v60, %v13740_v13  ;;  %v4174_v46 = vmax.f32 %v3727_v28, %v3983_v29  ;;  %v14223_v20 = vld [vmem:[%s19435_s0 + $0x3e0] sm:$0xff]  }
 0x1e3   :  { %v2085_v19 = vpop.f32.mrf.mxu0  ;;  %v5146_v27 = vld [vmem:[#allocation3 + $0x189] sm:$0xff] }
 0x1e4   :  { %3481 = vst.msk [vmem:[#allocation2 + $0x450] sm:$0xff] %vm49_vm3, %v3225_v15  ;;  %v3223_v22 = vmax.f32 %v2967_v16, 0.0  ;;  %v2970_v58 = vadd.f32 %v15836_v59, %v2707_v17  ;;  %v2705_v23 = vmul.f32 %v15826_v60, %v2085_v19  ;;  %v5242_v44 = vld [vmem:[#allocation3 + $0x18a] sm:$0xff]  ;;  %v14222_v16 = vld [vmem:[%s19435_s0 + $0x3d8] sm:$0xff]  }
 0x1e5   :  { %v13743_v25 = vpop.f32.mrf.mxu0  ;;  %13838 = vmatmul.mubr.msk.bf16.gmra.mxu0 %vm1112_vm2, %v14218_v14  ;;  %v5145_v26 = vld [vmem:[#allocation3 + $0x181] sm:$0xff] }
 0x1e6   :  { %3479 = vst.msk [vmem:[#allocation2 + $0x440] sm:$0xff] %vm49_vm3, %v3223_v22  ;;  %v3226_v30 = vmax.f32 %v2970_v58, 0.0  ;;  %v2968_v31 = vadd.f32 %v15836_v59, %v2705_v23  ;;  %v2710_v32 = vmul.f32 %v15826_v60, %v13743_v25  ;;  %v5194_v34 = vpack.c.bf16 %v5146_v27, %v5145_v26  ;;  %13841 = vmatprep.mubr.msk.bf16.mxu0 %vm1112_vm2, %v14219_v18  ;;  %v5241_v35 = vld [vmem:[#allocation3 + $0x182] sm:$0xff] }
 0x1e7   :  { %v2098_v36 = vpop.f32.mrf.mxu0  ;;  %v5290_v51 = vpack.c.bf16 %v5242_v44, %v5241_v35  ;;  %v16141_v35 = vld [vmem:[%s19437_s2] ss:$0 sm:$0xff] }
 0x1e8   :  { %v3733_v39 = vld [vmem:[#allocation2 + $0x430] ss:$2 sm:$0xff]  ;;  %v3989_v40 = vld [vmem:[#allocation2 + $0x431] ss:$2 sm:$0xff]  ;;  %3482 = vst.msk [vmem:[#allocation2 + $0x458] sm:$0xff] %vm49_vm3, %v3226_v30  ;;  %v3224_v41 = vmax.f32 %v2968_v31, 0.0  ;;  %v2973_v42 = vadd.f32 %v15836_v59, %v2710_v32  ;;  %v2708_v43 = vmul.f32 %v15826_v60, %v2098_v36  ;;  %5369 = vrot.lane.b32.xlu1 %v5194_v34, %s14710_s1 }
 0x1e9   :  { %v4177_v47 = vmax.f32 %v3733_v39, %v3989_v40  ;;  %v3731_v48 = vld [vmem:[#allocation2 + $0x420] ss:$2 sm:$0xff]  ;;  %v3987_v49 = vld [vmem:[#allocation2 + $0x421] ss:$2 sm:$0xff]  ;;  %v13744_v50 = vpop.f32.mrf.mxu0 }
 0x1ea   :  { %v4176_v53 = vmax.f32 %v3731_v48, %v3987_v49  ;;  %3480 = vst.msk [vmem:[#allocation2 + $0x448] sm:$0xff] %vm49_vm3, %v3224_v41  ;;  %v3229_v54 = vmax.f32 %v2973_v42, 0.0  ;;  %v2971_v55 = vadd.f32 %v15836_v59, %v2708_v43  ;;  %v2711_v56 = vmul.f32 %v15826_v60, %v13744_v50  ;;  %v5356_v57 = vpop.permute.xlu0 %5355  ;;  %v14224_v48 = vld [vmem:[%s19435_s0 + $0x3e8] sm:$0xff]  }
 0x1eb   :  { %v4271_v61 = vmax.f32 %v4175_v45, %v4177_v47  ;;  %v2101_v63 = vpop.f32.mrf.mxu0  ;;  %v5525_v6 = vsel %vm49_vm3, %v5091_v62, %v5356_v57  ;;  %v14225_v62 = vld [vmem:[%s19435_s0 + $0x3f0] sm:$0xff]  }
 0x1ec   :  { %v4270_v0 = vmax.f32 %v4174_v46, %v4176_v53  ;;  %3485 = vst.msk [vmem:[#allocation2 + $0x470] sm:$0xff] %vm49_vm3, %v3229_v54  ;;  %v3227_v1 = vmax.f32 %v2971_v55, 0.0  ;;  %v2974_v2 = vadd.f32 %v15836_v59, %v2711_v56  ;;  %v2709_v3 = vmul.f32 %v15826_v60, %v2101_v63  ;;  %5465 = vrot.lane.b32.xlu1 %v5290_v51, %s14709_s19  ;;  %v5037_v46 = vld [vmem:[#allocation3 + $0xf0] sm:$0xff]  ;;  %v5038_v53 = vld [vmem:[#allocation3 + $0xf8] sm:$0xff] }
 0x1ed   :  { %4336 = vst.msk [vmem:[#allocation3 + $0x1d1] sm:$0xff] %vm49_vm3, %v4271_v61  ;;  %v13747_v4 = vpop.f32.mrf.mxu0  ;;  %13842 = vmatmul.mubr.msk.bf16.gmra.mxu0 %vm1112_vm2, %v14220_v52 }
 0x1ee   :  { %4335 = vst.msk [vmem:[#allocation3 + $0x1c9] sm:$0xff] %vm49_vm3, %v4270_v0  ;;  %3483 = vst.msk [vmem:[#allocation2 + $0x460] sm:$0xff] %vm49_vm3, %v3227_v1  ;;  %v3230_v5 = vmax.f32 %v2974_v2, 0.0  ;;  %v2972_v7 = vadd.f32 %v15836_v59, %v2709_v3  ;;  %v2714_v8 = vmul.f32 %v15826_v60, %v13747_v4  ;;  %v5452_v9 = vpop.permute.xlu0 %5451  ;;  %13845 = vmatprep.mubr.msk.bf16.mxu0 %vm1112_vm2, %v14221_v21 }
 0x1ef   :  { %v5612_v10 = vsel %vm159_vm5, %v5525_v6, %v5452_v9  ;;  %v2114_v11 = vpop.f32.mrf.mxu0  ;;  %v3737_v58 = vld [vmem:[#allocation2 + $0x450] ss:$2 sm:$0xff]  ;;  %v3993_v23 = vld [vmem:[#allocation2 + $0x451] ss:$2 sm:$0xff]  ;;  %v5092_v3 = vpack.c.bf16 %v5038_v53, %v5037_v46 }
 0x1f0   :  { %3486 = vst.msk [vmem:[#allocation2 + $0x478] sm:$0xff] %vm49_vm3, %v3230_v5  ;;  %v3228_v12 = vmax.f32 %v2972_v7, 0.0  ;;  %v2977_v13 = vadd.f32 %v15836_v59, %v2714_v8  ;;  %v2712_v14 = vmul.f32 %v15826_v60, %v2114_v11  ;;  %13885 = vmatprep.mubr.msk.bf16.mxu1 %vm5708_vm6, %v5612_v10  ;;  %v4179_v38 = vmax.f32 %v3737_v58, %v3993_v23 }
 0x1f1   :  { %v13748_v15 = vpop.f32.mrf.mxu0  ;;  %v3735_v30 = vld [vmem:[#allocation2 + $0x440] ss:$2 sm:$0xff]  ;;  %v3991_v31 = vld [vmem:[#allocation2 + $0x441] ss:$2 sm:$0xff] }
 0x1f2   :  { %3484 = vst.msk [vmem:[#allocation2 + $0x468] sm:$0xff] %vm49_vm3, %v3228_v12  ;;  %v3233_v17 = vmax.f32 %v2977_v13, 0.0  ;;  %v2975_v18 = vadd.f32 %v15836_v59, %v2712_v14  ;;  %v2715_v19 = vmul.f32 %v15826_v60, %v13748_v15  ;;  %v4178_v49 = vmax.f32 %v3735_v30, %v3991_v31 }
 0x1f3   :  { %v2117_v22 = vpop.f32.mrf.mxu0 }
 0x1f4   :  { %3489 = vst.msk [vmem:[#allocation2 + $0x490] sm:$0xff] %vm49_vm3, %v3233_v17  ;;  %v3231_v24 = vmax.f32 %v2975_v18, 0.0  ;;  %v2978_v25 = vadd.f32 %v15836_v59, %v2715_v19  ;;  %v2713_v26 = vmul.f32 %v15826_v60, %v2117_v22  ;;  %v5148_v29 = vld [vmem:[#allocation3 + $0x1d1] sm:$0xff] }
 0x1f5   :  { %v13751_v27 = vpop.f32.mrf.mxu0  ;;  %13846 = vmatmul.mubr.msk.bf16.gmra.mxu0 %vm1112_vm2, %v14222_v16  ;;  %v5147_v28 = vld [vmem:[#allocation3 + $0x1c9] sm:$0xff]  ;;  %v5244_v47 = vld [vmem:[#allocation3 + $0x1d2] sm:$0xff] }
 0x1f6   :  { %3487 = vst.msk [vmem:[#allocation2 + $0x480] sm:$0xff] %vm49_vm3, %v3231_v24  ;;  %v3234_v32 = vmax.f32 %v2978_v25, 0.0  ;;  %v2976_v34 = vadd.f32 %v15836_v59, %v2713_v26  ;;  %v2718_v36 = vmul.f32 %v16141_v35, %v13751_v27  ;;  %v5195_v60 = vpack.c.bf16 %v5148_v29, %v5147_v28  ;;  %13849 = vmatprep.mubr.msk.bf16.mxu0 %vm1112_vm2, %v14223_v20  ;;  %v5243_v37 = vld [vmem:[#allocation3 + $0x1ca] sm:$0xff]  ;;  %v16149_v59 = vld [vmem:[%s19438_s3] ss:$0 sm:$0xff]  ;;  %v14226_v18 = vld [vmem:[%s19435_s0 + $0x3f8] sm:$0xff]  }
 0x1f7   :  { %v3741_v39 = vld [vmem:[#allocation2 + $0x470] ss:$2 sm:$0xff]  ;;  %v3997_v40 = vld [vmem:[#allocation2 + $0x471] ss:$2 sm:$0xff]  ;;  %v2130_v41 = vpop.f32.mrf.mxu0  ;;  %v5291_v54 = vpack.c.bf16 %v5244_v47, %v5243_v37 }
 0x1f8   :  { %v4181_v42 = vmax.f32 %v3741_v39, %v3997_v40  ;;  %3490 = vst.msk [vmem:[#allocation2 + $0x498] sm:$0xff] %vm49_vm3, %v3234_v32  ;;  %v3232_v43 = vmax.f32 %v2976_v34, 0.0  ;;  %v2981_v44 = vadd.f32 %v16149_v59, %v2718_v36  ;;  %v2716_v45 = vmul.f32 %v16141_v35, %v2130_v41  ;;  %5371 = vrot.lane.b32.xlu0 %v5195_v60, %s14710_s1 }
 0x1f9   :  { %v3739_v50 = vld [vmem:[#allocation2 + $0x460] ss:$2 sm:$0xff]  ;;  %v3995_v51 = vld [vmem:[#allocation2 + $0x461] ss:$2 sm:$0xff]  ;;  %v13752_v52 = vpop.f32.mrf.mxu0 }
 0x1fa   :  { %v4273_v55 = vmax.f32 %v4179_v38, %v4181_v42  ;;  %v4180_v56 = vmax.f32 %v3739_v50, %v3995_v51  ;;  %3488 = vst.msk [vmem:[#allocation2 + $0x488] sm:$0xff] %vm49_vm3, %v3232_v43  ;;  %v3237_v57 = vmax.f32 %v2981_v44, 0.0  ;;  %v2979_v21 = vadd.f32 %v16149_v59, %v2716_v45  ;;  %v5358_v61 = vpop.permute.xlu1 %5357 }
 0x1fb   :  { %v2719_v63 = vmul.f32 %v16141_v35, %v13752_v52  ;;  %v2133_v0 = vpop.f32.mrf.mxu0  ;;  %v5528_v7 = vsel %vm49_vm3, %v5092_v3, %v5358_v61 }
 0x1fc   :  { %4338 = vst.msk [vmem:[#allocation3 + $0x1e9] sm:$0xff] %vm49_vm3, %v4273_v55  ;;  %v4272_v1 = vmax.f32 %v4178_v49, %v4180_v56  ;;  %3493 = vst.msk [vmem:[#allocation2 + $0x4b0] sm:$0xff] %vm49_vm3, %v3237_v57  ;;  %v3235_v2 = vmax.f32 %v2979_v21, 0.0  ;;  %v2717_v4 = vmul.f32 %v16141_v35, %v2133_v0  ;;  %5467 = vrot.lane.b32.xlu0 %v5291_v54, %s14709_s19  ;;  %v5039_v57 = vld [vmem:[#allocation3 + $0x108] sm:$0xff]  ;;  %v5040_v21 = vld [vmem:[#allocation3 + $0x110] sm:$0xff] }
 0x1fd   :  { %v2982_v5 = vadd.f32 %v16149_v59, %v2719_v63  ;;  %v13755_v6 = vpop.f32.mrf.mxu0  ;;  %13850 = vmatmul.mubr.msk.bf16.gmra.mxu0 %vm1112_vm2, %v14224_v48  ;;  %v5093_v3 = vpack.c.bf16 %v5040_v21, %v5039_v57 }
 0x1fe   :  { %4337 = vst.msk [vmem:[#allocation3 + $0x1e1] sm:$0xff] %vm49_vm3, %v4272_v1  ;;  %3491 = vst.msk [vmem:[#allocation2 + $0x4a0] sm:$0xff] %vm49_vm3, %v3235_v2  ;;  %v2980_v8 = vadd.f32 %v16149_v59, %v2717_v4  ;;  %v2722_v9 = vmul.f32 %v16141_v35, %v13755_v6  ;;  %v5454_v10 = vpop.permute.xlu1 %5453  ;;  %13853 = vmatprep.mubr.msk.bf16.mxu0 %vm1112_vm2, %v14225_v62 }
 0x1ff   :  { %v3238_v11 = vmax.f32 %v2982_v5, 0.0  ;;  %v5614_v12 = vsel %vm159_vm5, %v5528_v7, %v5454_v10  ;;  %v2146_v13 = vpop.f32.mrf.mxu0  ;;  %v3745_v23 = vld [vmem:[#allocation2 + $0x490] ss:$2 sm:$0xff]  ;;  %v4001_v27 = vld [vmem:[#allocation2 + $0x491] ss:$2 sm:$0xff] }
 0x200   :  { %v3236_v14 = vmax.f32 %v2980_v8, 0.0  ;;  %v2985_v15 = vadd.f32 %v16149_v59, %v2722_v9  ;;  %v2720_v16 = vmul.f32 %v16141_v35, %v2146_v13  ;;  %13886 = vmatmul.mubr.msk.bf16.gmra.mxu1 %vm5708_vm6, %v5614_v12  ;;  %v4183_v46 = vmax.f32 %v3745_v23, %v4001_v27 }
 0x201   :  { %3494 = vst.msk [vmem:[#allocation2 + $0x4b8] sm:$0xff] %vm49_vm3, %v3238_v11  ;;  %v13756_v17 = vpop.f32.mrf.mxu0  ;;  %v3743_v31 = vld [vmem:[#allocation2 + $0x480] ss:$2 sm:$0xff]  ;;  %v3999_v32 = vld [vmem:[#allocation2 + $0x481] ss:$2 sm:$0xff] }
 0x202   :  { %3492 = vst.msk [vmem:[#allocation2 + $0x4a8] sm:$0xff] %vm49_vm3, %v3236_v14  ;;  %v3241_v19 = vmax.f32 %v2985_v15, 0.0  ;;  %v2983_v20 = vadd.f32 %v16149_v59, %v2720_v16  ;;  %v2723_v22 = vmul.f32 %v16141_v35, %v13756_v17  ;;  %v4182_v47 = vmax.f32 %v3743_v31, %v3999_v32 }
 0x203   :  { %v2149_v58 = vpop.f32.mrf.mxu0  ;;  %v5150_v30 = vld [vmem:[#allocation3 + $0x1e9] sm:$0xff] }
 0x204   :  { %3497 = vst.msk [vmem:[#allocation2 + $0x4d0] sm:$0xff] %vm49_vm3, %v3241_v19  ;;  %v3239_v24 = vmax.f32 %v2983_v20, 0.0  ;;  %v2986_v25 = vadd.f32 %v16149_v59, %v2723_v22  ;;  %v2721_v26 = vmul.f32 %v16141_v35, %v2149_v58  ;;  %v5246_v45 = vld [vmem:[#allocation3 + $0x1ea] sm:$0xff] }
 0x205   :  { %v13759_v28 = vpop.f32.mrf.mxu0  ;;  %13854 = vmatmul.mubr.msk.bf16.gmra.mxu0 %vm1112_vm2, %v14226_v18  ;;  %v5149_v29 = vld [vmem:[#allocation3 + $0x1e1] sm:$0xff] }
 0x206   :  { %3495 = vst.msk [vmem:[#allocation2 + $0x4c0] sm:$0xff] %vm49_vm3, %v3239_v24  ;;  %v3242_v34 = vmax.f32 %v2986_v25, 0.0  ;;  %v2984_v36 = vadd.f32 %v16149_v59, %v2721_v26  ;;  %v2726_v60 = vmul.f32 %v16141_v35, %v13759_v28  ;;  %v5196_v37 = vpack.c.bf16 %v5150_v30, %v5149_v29  ;;  %v5245_v38 = vld [vmem:[#allocation3 + $0x1e2] sm:$0xff] }
 0x207   :  { %v2162_v39 = vpop.f32.mrf.mxu0  ;;  %v5292_v52 = vpack.c.bf16 %v5246_v45, %v5245_v38 }
 0x208   :  { %v3749_v40 = vld [vmem:[#allocation2 + $0x4b0] ss:$2 sm:$0xff]  ;;  %v4005_v41 = vld [vmem:[#allocation2 + $0x4b1] ss:$2 sm:$0xff]  ;;  %3498 = vst.msk [vmem:[#allocation2 + $0x4d8] sm:$0xff] %vm49_vm3, %v3242_v34  ;;  %v3240_v42 = vmax.f32 %v2984_v36, 0.0  ;;  %v2989_v43 = vadd.f32 %v16149_v59, %v2726_v60  ;;  %v2724_v44 = vmul.f32 %v16141_v35, %v2162_v39  ;;  %5373 = vrot.lane.b32.xlu1 %v5196_v37, %s14710_s1 }
 0x209   :  { %v4185_v48 = vmax.f32 %v3749_v40, %v4005_v41  ;;  %v3747_v49 = vld [vmem:[#allocation2 + $0x4a0] ss:$2 sm:$0xff]  ;;  %v4003_v50 = vld [vmem:[#allocation2 + $0x4a1] ss:$2 sm:$0xff]  ;;  %v13760_v51 = vpop.f32.mrf.mxu0 }
 0x20a   :  { %v4184_v53 = vmax.f32 %v3747_v49, %v4003_v50  ;;  %3496 = vst.msk [vmem:[#allocation2 + $0x4c8] sm:$0xff] %vm49_vm3, %v3240_v42  ;;  %v3245_v54 = vmax.f32 %v2989_v43, 0.0  ;;  %v2987_v55 = vadd.f32 %v16149_v59, %v2724_v44  ;;  %v2727_v56 = vmul.f32 %v16141_v35, %v13760_v51 }
 0x20b   :  { %v4275_v61 = vmax.f32 %v4183_v46, %v4185_v48  ;;  %v5360_v62 = vpop.permute.xlu0 %5359  ;;  %v2165_v63 = vpop.f32.mrf.mxu0  ;;  %v5042_v48 = vld [vmem:[#allocation3 + $0x128] sm:$0xff] }
 0x20c   :  { %v4274_v0 = vmax.f32 %v4182_v47, %v4184_v53  ;;  %3501 = vst.msk [vmem:[#allocation2 + $0x4f0] sm:$0xff] %vm49_vm3, %v3245_v54  ;;  %v3243_v1 = vmax.f32 %v2987_v55, 0.0  ;;  %v2990_v2 = vadd.f32 %v16149_v59, %v2727_v56  ;;  %5469 = vrot.lane.b32.xlu1 %v5292_v52, %s14709_s19  ;;  %v2725_v4 = vmul.f32 %v16141_v35, %v2165_v63  ;;  %v5041_v47 = vld [vmem:[#allocation3 + $0x120] sm:$0xff] }
 0x20d   :  { %4340 = vst.msk [vmem:[#allocation3 + $0x201] sm:$0xff] %vm49_vm3, %v4275_v61  ;;  %v13763_v5 = vpop.f32.mrf.mxu0  ;;  %v5531_v8 = vsel %vm49_vm3, %v5093_v3, %v5360_v62 }
 0x20e   :  { %4339 = vst.msk [vmem:[#allocation3 + $0x1f9] sm:$0xff] %vm49_vm3, %v4274_v0  ;;  %3499 = vst.msk [vmem:[#allocation2 + $0x4e0] sm:$0xff] %vm49_vm3, %v3243_v1  ;;  %v3246_v6 = vmax.f32 %v2990_v2, 0.0  ;;  %v2730_v7 = vmul.f32 %v16141_v35, %v13763_v5  ;;  %v2988_v9 = vadd.f32 %v16149_v59, %v2725_v4  ;;  %v5094_v0 = vpack.c.bf16 %v5042_v48, %v5041_v47  ;;  %v5044_v48 = vld [vmem:[#allocation3 + $0x140] sm:$0xff] }
 0x20f   :  { %v5456_v10 = vpop.permute.xlu0 %5455  ;;  %v2178_v11 = vpop.f32.mrf.mxu0  ;;  %v3753_v22 = vld [vmem:[#allocation2 + $0x4d0] ss:$2 sm:$0xff]  ;;  %v4009_v58 = vld [vmem:[#allocation2 + $0x4d1] ss:$2 sm:$0xff] }
 0x210   :  { %3502 = vst.msk [vmem:[#allocation2 + $0x4f8] sm:$0xff] %vm49_vm3, %v3246_v6  ;;  %v2993_v12 = vadd.f32 %v16149_v59, %v2730_v7  ;;  %v5616_v13 = vsel %vm159_vm5, %v5531_v8, %v5456_v10  ;;  %v2728_v14 = vmul.f32 %v16141_v35, %v2178_v11  ;;  %v3244_v15 = vmax.f32 %v2988_v9, 0.0 }
 0x211   :  { %13889 = vmatprep.mubr.msk.bf16.mxu1 %vm5708_vm6, %v5616_v13  ;;  %v13764_v16 = vpop.f32.mrf.mxu0  ;;  %v4187_v36 = vmax.f32 %v3753_v22, %v4009_v58  ;;  %v3751_v39 = vld [vmem:[#allocation2 + $0x4c0] ss:$2 sm:$0xff]  ;;  %v4007_v40 = vld [vmem:[#allocation2 + $0x4c1] ss:$2 sm:$0xff] }
 0x212   :  { %v3249_v17 = vmax.f32 %v2993_v12, 0.0  ;;  %v2991_v18 = vadd.f32 %v16149_v59, %v2728_v14  ;;  %v2731_v19 = vmul.f32 %v16141_v35, %v13764_v16  ;;  %3500 = vst.msk [vmem:[#allocation2 + $0x4e8] sm:$0xff] %vm49_vm3, %v3244_v15  ;;  %v4186_v57 = vmax.f32 %v3751_v39, %v4007_v40 }
 0x213   :  { %v2181_v20 = vpop.f32.mrf.mxu0 }
 0x214   :  { %3505 = vst.msk [vmem:[#allocation2 + $0x510] sm:$0xff] %vm49_vm3, %v3249_v17  ;;  %v3247_v23 = vmax.f32 %v2991_v18, 0.0  ;;  %v2994_v24 = vadd.f32 %v16149_v59, %v2731_v19  ;;  %v2729_v25 = vmul.f32 %v16141_v35, %v2181_v20  ;;  %v5152_v28 = vld [vmem:[#allocation3 + $0x201] sm:$0xff] }
 0x215   :  { %v13767_v26 = vpop.f32.mrf.mxu0  ;;  %v5151_v27 = vld [vmem:[#allocation3 + $0x1f9] sm:$0xff]  ;;  %v5248_v45 = vld [vmem:[#allocation3 + $0x202] sm:$0xff] }
 0x216   :  { %3503 = vst.msk [vmem:[#allocation2 + $0x500] sm:$0xff] %vm49_vm3, %v3247_v23  ;;  %v3250_v29 = vmax.f32 %v2994_v24, 0.0  ;;  %v2992_v30 = vadd.f32 %v16149_v59, %v2729_v25  ;;  %v2734_v31 = vmul.f32 %v16141_v35, %v13767_v26  ;;  %v5197_v32 = vpack.c.bf16 %v5152_v28, %v5151_v27  ;;  %v5247_v34 = vld [vmem:[#allocation3 + $0x1fa] sm:$0xff] }
 0x217   :  { %v3757_v60 = vld [vmem:[#allocation2 + $0x4f0] ss:$2 sm:$0xff]  ;;  %v4013_v37 = vld [vmem:[#allocation2 + $0x4f1] ss:$2 sm:$0xff]  ;;  %v2194_v38 = vpop.f32.mrf.mxu0  ;;  %v5293_v49 = vpack.c.bf16 %v5248_v45, %v5247_v34 }
 0x218   :  { %v4189_v41 = vmax.f32 %v3757_v60, %v4013_v37  ;;  %3506 = vst.msk [vmem:[#allocation2 + $0x518] sm:$0xff] %vm49_vm3, %v3250_v29  ;;  %v3248_v42 = vmax.f32 %v2992_v30, 0.0  ;;  %v2997_v43 = vadd.f32 %v16149_v59, %v2734_v31  ;;  %v2732_v44 = vmul.f32 %v16141_v35, %v2194_v38  ;;  %5375 = vrot.lane.b32.xlu0 %v5197_v32, %s14710_s1 }
 0x219   :  { %v13768_v46 = vpop.f32.mrf.mxu0  ;;  %v3755_v51 = vld [vmem:[#allocation2 + $0x4e0] ss:$2 sm:$0xff]  ;;  %v4011_v52 = vld [vmem:[#allocation2 + $0x4e1] ss:$2 sm:$0xff] }
 0x21a   :  { %v4277_v50 = vmax.f32 %v4187_v36, %v4189_v41  ;;  %3504 = vst.msk [vmem:[#allocation2 + $0x508] sm:$0xff] %vm49_vm3, %v3248_v42  ;;  %v3253_v53 = vmax.f32 %v2997_v43, 0.0  ;;  %v2995_v54 = vadd.f32 %v16149_v59, %v2732_v44  ;;  %v2735_v55 = vmul.f32 %v16141_v35, %v13768_v46  ;;  %v5362_v56 = vpop.permute.xlu1 %5361  ;;  %v5043_v42 = vld [vmem:[#allocation3 + $0x138] sm:$0xff] }
 0x21b   :  { %v4188_v21 = vmax.f32 %v3755_v51, %v4011_v52  ;;  %v2197_v61 = vpop.f32.mrf.mxu0  ;;  %v5534_v5 = vsel %vm49_vm3, %v5094_v0, %v5362_v56 }
 0x21c   :  { %4342 = vst.msk [vmem:[#allocation3 + $0x219] sm:$0xff] %vm49_vm3, %v4277_v50  ;;  %3509 = vst.msk [vmem:[#allocation2 + $0x530] sm:$0xff] %vm49_vm3, %v3253_v53  ;;  %v3251_v62 = vmax.f32 %v2995_v54, 0.0  ;;  %v2998_v63 = vadd.f32 %v16149_v59, %v2735_v55  ;;  %v2733_v1 = vmul.f32 %v16141_v35, %v2197_v61  ;;  %5471 = vrot.lane.b32.xlu0 %v5293_v49, %s14709_s19 }
 0x21d   :  { %v4276_v2 = vmax.f32 %v4186_v57, %v4188_v21  ;;  %v13771_v3 = vpop.f32.mrf.mxu0 }
 0x21e   :  { %3507 = vst.msk [vmem:[#allocation2 + $0x520] sm:$0xff] %vm49_vm3, %v3251_v62  ;;  %v3254_v4 = vmax.f32 %v2998_v63, 0.0  ;;  %v2996_v6 = vadd.f32 %v16149_v59, %v2733_v1  ;;  %v2738_v7 = vmul.f32 %v16141_v35, %v13771_v3  ;;  %v5458_v8 = vpop.permute.xlu1 %5457  ;;  %v5095_v62 = vpack.c.bf16 %v5044_v48, %v5043_v42 }
 0x21f   :  { %4341 = vst.msk [vmem:[#allocation3 + $0x211] sm:$0xff] %vm49_vm3, %v4276_v2  ;;  %v5618_v9 = vsel %vm159_vm5, %v5534_v5, %v5458_v8  ;;  %v2210_v10 = vpop.f32.mrf.mxu0  ;;  %v3761_v19 = vld [vmem:[#allocation2 + $0x510] ss:$2 sm:$0xff]  ;;  %v4017_v20 = vld [vmem:[#allocation2 + $0x511] ss:$2 sm:$0xff] }
 0x220   :  { %3510 = vst.msk [vmem:[#allocation2 + $0x538] sm:$0xff] %vm49_vm3, %v3254_v4  ;;  %v3252_v11 = vmax.f32 %v2996_v6, 0.0  ;;  %v3001_v12 = vadd.f32 %v16149_v59, %v2738_v7  ;;  %v2736_v13 = vmul.f32 %v16141_v35, %v2210_v10  ;;  %13890 = vmatmul.mubr.msk.bf16.gmra.mxu1 %vm5708_vm6, %v5618_v9  ;;  %v4191_v32 = vmax.f32 %v3761_v19, %v4017_v20 }
 0x221   :  { %v13772_v14 = vpop.f32.mrf.mxu0  ;;  %v3759_v24 = vld [vmem:[#allocation2 + $0x500] ss:$2 sm:$0xff]  ;;  %v4015_v26 = vld [vmem:[#allocation2 + $0x501] ss:$2 sm:$0xff] }
 0x222   :  { %3508 = vst.msk [vmem:[#allocation2 + $0x528] sm:$0xff] %vm49_vm3, %v3252_v11  ;;  %v3257_v15 = vmax.f32 %v3001_v12, 0.0  ;;  %v2999_v16 = vadd.f32 %v16149_v59, %v2736_v13  ;;  %v2739_v17 = vmul.f32 %v16141_v35, %v13772_v14  ;;  %v4190_v44 = vmax.f32 %v3759_v24, %v4015_v26 }
 0x223   :  { %v2213_v18 = vpop.f32.mrf.mxu0  ;;  %v5154_v31 = vld [vmem:[#allocation3 + $0x219] sm:$0xff] }
 0x224   :  { %3513 = vst.msk [vmem:[#allocation2 + $0x550] sm:$0xff] %vm49_vm3, %v3257_v15  ;;  %v3255_v22 = vmax.f32 %v2999_v16, 0.0  ;;  %v3002_v58 = vadd.f32 %v16149_v59, %v2739_v17  ;;  %v2737_v23 = vmul.f32 %v16141_v35, %v2213_v18  ;;  %v5250_v54 = vld [vmem:[#allocation3 + $0x21a] sm:$0xff] }
 0x225   :  { %v13775_v25 = vpop.f32.mrf.mxu0 }
 0x226   :  { %3511 = vst.msk [vmem:[#allocation2 + $0x540] sm:$0xff] %vm49_vm3, %v3255_v22  ;;  %v3258_v27 = vmax.f32 %v3002_v58, 0.0  ;;  %v3000_v28 = vadd.f32 %v16149_v59, %v2737_v23  ;;  %v2742_v29 = vmul.f32 %v16141_v35, %v13775_v25  ;;  %v5153_v30 = vld [vmem:[#allocation3 + $0x211] sm:$0xff] }
 0x227   :  { %v3765_v34 = vld [vmem:[#allocation2 + $0x530] ss:$2 sm:$0xff]  ;;  %v4021_v36 = vld [vmem:[#allocation2 + $0x531] ss:$2 sm:$0xff]  ;;  %v2226_v60 = vpop.f32.mrf.mxu0  ;;  %v5198_v37 = vpack.c.bf16 %v5154_v31, %v5153_v30 }
 0x228   :  { %v4193_v38 = vmax.f32 %v3765_v34, %v4021_v36  ;;  %3514 = vst.msk [vmem:[#allocation2 + $0x558] sm:$0xff] %vm49_vm3, %v3258_v27  ;;  %v3256_v39 = vmax.f32 %v3000_v28, 0.0  ;;  %v3005_v40 = vadd.f32 %v16149_v59, %v2742_v29  ;;  %v2740_v41 = vmul.f32 %v16141_v35, %v2226_v60  ;;  %v5249_v43 = vld [vmem:[#allocation3 + $0x212] sm:$0xff] }
 0x229   :  { %v3763_v45 = vld [vmem:[#allocation2 + $0x520] ss:$2 sm:$0xff]  ;;  %v4019_v46 = vld [vmem:[#allocation2 + $0x521] ss:$2 sm:$0xff]  ;;  %5377 = vrot.lane.b32.xlu1 %v5198_v37, %s14710_s1  ;;  %v13776_v47 = vpop.f32.mrf.mxu0  ;;  %v5294_v57 = vpack.c.bf16 %v5250_v54, %v5249_v43  ;;  %v5045_v34 = vld [vmem:[#allocation3 + $0x150] sm:$0xff] }
 0x22a   :  { %v4279_v49 = vmax.f32 %v4191_v32, %v4193_v38  ;;  %v4192_v50 = vmax.f32 %v3763_v45, %v4019_v46  ;;  %3512 = vst.msk [vmem:[#allocation2 + $0x548] sm:$0xff] %vm49_vm3, %v3256_v39  ;;  %v3261_v51 = vmax.f32 %v3005_v40, 0.0  ;;  %v3003_v52 = vadd.f32 %v16149_v59, %v2740_v41  ;;  %v5364_v53 = vpop.permute.xlu0 %5363  ;;  %v5046_v36 = vld [vmem:[#allocation3 + $0x158] sm:$0xff] }
 0x22b   :  { %v2743_v55 = vmul.f32 %v16141_v35, %v13776_v47  ;;  %v2229_v56 = vpop.f32.mrf.mxu0  ;;  %v5537_v2 = vsel %vm49_vm3, %v5095_v62, %v5364_v53 }
 0x22c   :  { %4344 = vst.msk [vmem:[#allocation3 + $0x231] sm:$0xff] %vm49_vm3, %v4279_v49  ;;  %v4278_v21 = vmax.f32 %v4190_v44, %v4192_v50  ;;  %3517 = vst.msk [vmem:[#allocation2 + $0x570] sm:$0xff] %vm49_vm3, %v3261_v51  ;;  %v3259_v61 = vmax.f32 %v3003_v52, 0.0  ;;  %v2741_v63 = vmul.f32 %v16141_v35, %v2229_v56 }
 0x22d   :  { %v3006_v0 = vadd.f32 %v16149_v59, %v2743_v55  ;;  %5473 = vrot.lane.b32.xlu1 %v5294_v57, %s14709_s19  ;;  %v13779_v1 = vpop.f32.mrf.mxu0  ;;  %v5096_v55 = vpack.c.bf16 %v5046_v36, %v5045_v34 }
 0x22e   :  { %4343 = vst.msk [vmem:[#allocation3 + $0x229] sm:$0xff] %vm49_vm3, %v4278_v21  ;;  %3515 = vst.msk [vmem:[#allocation2 + $0x560] sm:$0xff] %vm49_vm3, %v3259_v61  ;;  %v3004_v3 = vadd.f32 %v16149_v59, %v2741_v63  ;;  %v2746_v4 = vmul.f32 %v16141_v35, %v13779_v1  ;;  %v5460_v5 = vpop.permute.xlu0 %5459 }
 0x22f   :  { %v3262_v6 = vmax.f32 %v3006_v0, 0.0  ;;  %v5620_v7 = vsel %vm159_vm5, %v5537_v2, %v5460_v5  ;;  %v2242_v8 = vpop.f32.mrf.mxu0  ;;  %v3769_v17 = vld [vmem:[#allocation2 + $0x550] ss:$2 sm:$0xff]  ;;  %v4025_v22 = vld [vmem:[#allocation2 + $0x551] ss:$2 sm:$0xff] }
 0x230   :  { %v3260_v9 = vmax.f32 %v3004_v3, 0.0  ;;  %v3009_v10 = vadd.f32 %v16149_v59, %v2746_v4  ;;  %v2744_v11 = vmul.f32 %v16141_v35, %v2242_v8  ;;  %13893 = vmatprep.mubr.msk.bf16.mxu1 %vm5708_vm6, %v5620_v7  ;;  %v4195_v42 = vmax.f32 %v3769_v17, %v4025_v22 }
 0x231   :  { %3518 = vst.msk [vmem:[#allocation2 + $0x578] sm:$0xff] %vm49_vm3, %v3262_v6  ;;  %v13780_v12 = vpop.f32.mrf.mxu0  ;;  %v3767_v25 = vld [vmem:[#allocation2 + $0x540] ss:$2 sm:$0xff]  ;;  %v4023_v26 = vld [vmem:[#allocation2 + $0x541] ss:$2 sm:$0xff] }
 0x232   :  { %3516 = vst.msk [vmem:[#allocation2 + $0x568] sm:$0xff] %vm49_vm3, %v3260_v9  ;;  %v3265_v13 = vmax.f32 %v3009_v10, 0.0  ;;  %v3007_v14 = vadd.f32 %v16149_v59, %v2744_v11  ;;  %v2747_v15 = vmul.f32 %v16141_v35, %v13780_v12  ;;  %v4194_v43 = vmax.f32 %v3767_v25, %v4023_v26 }
 0x233   :  { %v2245_v16 = vpop.f32.mrf.mxu0  ;;  %v5156_v24 = vld [vmem:[#allocation3 + $0x231] sm:$0xff] }
 0x234   :  { %3521 = vst.msk [vmem:[#allocation2 + $0x590] sm:$0xff] %vm49_vm3, %v3265_v13  ;;  %v3263_v18 = vmax.f32 %v3007_v14, 0.0  ;;  %v3010_v19 = vadd.f32 %v16149_v59, %v2747_v15  ;;  %v2745_v20 = vmul.f32 %v16141_v35, %v2245_v16  ;;  %v5252_v41 = vld [vmem:[#allocation3 + $0x232] sm:$0xff] }
 0x235   :  { %v13783_v58 = vpop.f32.mrf.mxu0  ;;  %v5155_v23 = vld [vmem:[#allocation3 + $0x229] sm:$0xff] }
 0x236   :  { %3519 = vst.msk [vmem:[#allocation2 + $0x580] sm:$0xff] %vm49_vm3, %v3263_v18  ;;  %v3266_v27 = vmax.f32 %v3010_v19, 0.0  ;;  %v3008_v28 = vadd.f32 %v16149_v59, %v2745_v20  ;;  %v2750_v29 = vmul.f32 %v16141_v35, %v13783_v58  ;;  %v5199_v30 = vpack.c.bf16 %v5156_v24, %v5155_v23  ;;  %v5251_v31 = vld [vmem:[#allocation3 + $0x22a] sm:$0xff] }
 0x237   :  { %v2258_v32 = vpop.f32.mrf.mxu0  ;;  %v5295_v48 = vpack.c.bf16 %v5252_v41, %v5251_v31 }
 0x238   :  { %v3773_v60 = vld [vmem:[#allocation2 + $0x570] ss:$2 sm:$0xff]  ;;  %v4029_v37 = vld [vmem:[#allocation2 + $0x571] ss:$2 sm:$0xff]  ;;  %3522 = vst.msk [vmem:[#allocation2 + $0x598] sm:$0xff] %vm49_vm3, %v3266_v27  ;;  %v3264_v38 = vmax.f32 %v3008_v28, 0.0  ;;  %v3013_v39 = vadd.f32 %v16149_v59, %v2750_v29  ;;  %v2748_v40 = vmul.f32 %v16141_v35, %v2258_v32  ;;  %5379 = vrot.lane.b32.xlu0 %v5199_v30, %s14710_s1 }
 0x239   :  { %v4197_v44 = vmax.f32 %v3773_v60, %v4029_v37  ;;  %v3771_v45 = vld [vmem:[#allocation2 + $0x560] ss:$2 sm:$0xff]  ;;  %v4027_v46 = vld [vmem:[#allocation2 + $0x561] ss:$2 sm:$0xff]  ;;  %v13784_v47 = vpop.f32.mrf.mxu0 }
 0x23a   :  { %v4196_v49 = vmax.f32 %v3771_v45, %v4027_v46  ;;  %3520 = vst.msk [vmem:[#allocation2 + $0x588] sm:$0xff] %vm49_vm3, %v3264_v38  ;;  %v3269_v50 = vmax.f32 %v3013_v39, 0.0  ;;  %v3011_v51 = vadd.f32 %v16149_v59, %v2748_v40  ;;  %v2751_v52 = vmul.f32 %v16141_v35, %v13784_v47  ;;  %v5366_v53 = vpop.permute.xlu1 %5365  ;;  %v5047_v39 = vld [vmem:[#allocation3 + $0x168] sm:$0xff]  ;;  %v5048_v45 = vld [vmem:[#allocation3 + $0x170] sm:$0xff] }
 0x23b   :  { %v4281_v54 = vmax.f32 %v4195_v42, %v4197_v44  ;;  %v2261_v56 = vpop.f32.mrf.mxu0  ;;  %v5540_v1 = vsel %vm49_vm3, %v5096_v55, %v5366_v53 }
 0x23c   :  { %v4280_v57 = vmax.f32 %v4194_v43, %v4196_v49  ;;  %3525 = vst.msk [vmem:[#allocation2 + $0x5b0] sm:$0xff] %vm49_vm3, %v3269_v50  ;;  %v3267_v21 = vmax.f32 %v3011_v51, 0.0  ;;  %v3014_v61 = vadd.f32 %v16149_v59, %v2751_v52  ;;  %v2749_v62 = vmul.f32 %v16141_v35, %v2261_v56  ;;  %5475 = vrot.lane.b32.xlu0 %v5295_v48, %s14709_s19 }
 0x23d   :  { %4346 = vst.msk [vmem:[#allocation3 + $0x249] sm:$0xff] %vm49_vm3, %v4281_v54  ;;  %v13787_v63 = vpop.f32.mrf.mxu0  ;;  %v5097_v56 = vpack.c.bf16 %v5048_v45, %v5047_v39 }
 0x23e   :  { %4345 = vst.msk [vmem:[#allocation3 + $0x241] sm:$0xff] %vm49_vm3, %v4280_v57  ;;  %3523 = vst.msk [vmem:[#allocation2 + $0x5a0] sm:$0xff] %vm49_vm3, %v3267_v21  ;;  %v3270_v0 = vmax.f32 %v3014_v61, 0.0  ;;  %v3012_v2 = vadd.f32 %v16149_v59, %v2749_v62  ;;  %v2754_v3 = vmul.f32 %v16141_v35, %v13787_v63  ;;  %v5462_v4 = vpop.permute.xlu1 %5461  ;;  %v16849_v33 = vpop.f32.mrf.mxu1 }
 0x23f   :  { %v5622_v5 = vsel %vm159_vm5, %v5540_v1, %v5462_v4  ;;  %v2274_v6 = vpop.f32.mrf.mxu0  ;;  %v3777_v15 = vld [vmem:[#allocation2 + $0x590] ss:$2 sm:$0xff]  ;;  %v4033_v16 = vld [vmem:[#allocation2 + $0x591] ss:$2 sm:$0xff] }
 0x240   :  { %3526 = vst.msk [vmem:[#allocation2 + $0x5b8] sm:$0xff] %vm49_vm3, %v3270_v0  ;;  %v3268_v7 = vmax.f32 %v3012_v2, 0.0  ;;  %v3017_v8 = vadd.f32 %v16149_v59, %v2754_v3  ;;  %v2752_v9 = vmul.f32 %v16141_v35, %v2274_v6  ;;  %13894 = vmatmul.mubr.msk.bf16.gmra.mxu1 %vm5708_vm6, %v5622_v5  ;;  %v4199_v30 = vmax.f32 %v3777_v15, %v4033_v16 }
 0x241   :  { %v13788_v10 = vpop.f32.mrf.mxu0  ;;  %v3775_v23 = vld [vmem:[#allocation2 + $0x580] ss:$2 sm:$0xff]  ;;  %v4031_v24 = vld [vmem:[#allocation2 + $0x581] ss:$2 sm:$0xff] }
 0x242   :  { %3524 = vst.msk [vmem:[#allocation2 + $0x5a8] sm:$0xff] %vm49_vm3, %v3268_v7  ;;  %v3273_v11 = vmax.f32 %v3017_v8, 0.0  ;;  %v3015_v12 = vadd.f32 %v16149_v59, %v2752_v9  ;;  %v2755_v13 = vmul.f32 %v16141_v35, %v13788_v10  ;;  %v4198_v41 = vmax.f32 %v3775_v23, %v4031_v24 }
 0x243   :  { %v2277_v14 = vpop.f32.mrf.mxu0 }
 0x244   :  { %3529 = vst.msk [vmem:[#allocation2 + $0x5d0] sm:$0xff] %vm49_vm3, %v3273_v11  ;;  %v3271_v17 = vmax.f32 %v3015_v12, 0.0  ;;  %v3018_v18 = vadd.f32 %v16149_v59, %v2755_v13  ;;  %v2753_v19 = vmul.f32 %v16141_v35, %v2277_v14  ;;  %v5158_v58 = vld [vmem:[#allocation3 + $0x249] sm:$0xff] }
 0x245   :  { %v13791_v20 = vpop.f32.mrf.mxu0  ;;  %v5157_v22 = vld [vmem:[#allocation3 + $0x241] sm:$0xff]  ;;  %v5254_v40 = vld [vmem:[#allocation3 + $0x24a] sm:$0xff] }
 0x246   :  { %3527 = vst.msk [vmem:[#allocation2 + $0x5c0] sm:$0xff] %vm49_vm3, %v3271_v17  ;;  %v3274_v25 = vmax.f32 %v3018_v18, 0.0  ;;  %v3016_v26 = vadd.f32 %v16149_v59, %v2753_v19  ;;  %v2758_v27 = vmul.f32 %v16141_v35, %v13791_v20  ;;  %v5200_v28 = vpack.c.bf16 %v5158_v58, %v5157_v22  ;;  %v5253_v29 = vld [vmem:[#allocation3 + $0x242] sm:$0xff] }
 0x247   :  { %v3781_v31 = vld [vmem:[#allocation2 + $0x5b0] ss:$2 sm:$0xff]  ;;  %v4037_v32 = vld [vmem:[#allocation2 + $0x5b1] ss:$2 sm:$0xff]  ;;  %v2290_v34 = vpop.f32.mrf.mxu0  ;;  %v5296_v46 = vpack.c.bf16 %v5254_v40, %v5253_v29  ;;  %v5049_v29 = vld [vmem:[#allocation3 + $0x180] sm:$0xff] }
 0x248   :  { %v4201_v36 = vmax.f32 %v3781_v31, %v4037_v32  ;;  %3530 = vst.msk [vmem:[#allocation2 + $0x5d8] sm:$0xff] %vm49_vm3, %v3274_v25  ;;  %v3272_v60 = vmax.f32 %v3016_v26, 0.0  ;;  %v3021_v37 = vadd.f32 %v16149_v59, %v2758_v27  ;;  %v2756_v38 = vmul.f32 %v16141_v35, %v2290_v34  ;;  %5381 = vrot.lane.b32.xlu1 %v5200_v28, %s14710_s1 }
 0x249   :  { %v3779_v42 = vld [vmem:[#allocation2 + $0x5a0] ss:$2 sm:$0xff]  ;;  %v4035_v43 = vld [vmem:[#allocation2 + $0x5a1] ss:$2 sm:$0xff]  ;;  %v13792_v44 = vpop.f32.mrf.mxu0 }
 0x24a   :  { %v4283_v47 = vmax.f32 %v4199_v30, %v4201_v36  ;;  %v4200_v48 = vmax.f32 %v3779_v42, %v4035_v43  ;;  %3528 = vst.msk [vmem:[#allocation2 + $0x5c8] sm:$0xff] %vm49_vm3, %v3272_v60  ;;  %v3277_v49 = vmax.f32 %v3021_v37, 0.0  ;;  %v3019_v50 = vadd.f32 %v16149_v59, %v2756_v38  ;;  %v5368_v51 = vpop.permute.xlu0 %5367  ;;  %v5050_v30 = vld [vmem:[#allocation3 + $0x188] sm:$0xff] }
 0x24b   :  { %v2759_v52 = vmul.f32 %v16141_v35, %v13792_v44  ;;  %v2293_v53 = vpop.f32.mrf.mxu0  ;;  %v5543_v62 = vsel %vm49_vm3, %v5097_v56, %v5368_v51  ;;  %v5098_v51 = vpack.c.bf16 %v5050_v30, %v5049_v29 }
 0x24c   :  { %4348 = vst.msk [vmem:[#allocation3 + $0x261] sm:$0xff] %vm49_vm3, %v4283_v47  ;;  %v4282_v54 = vmax.f32 %v4198_v41, %v4200_v48  ;;  %3533 = vst.msk [vmem:[#allocation2 + $0x5f0] sm:$0xff] %vm49_vm3, %v3277_v49  ;;  %v3275_v55 = vmax.f32 %v3019_v50, 0.0  ;;  %v2757_v57 = vmul.f32 %v16141_v35, %v2293_v53  ;;  %5477 = vrot.lane.b32.xlu1 %v5296_v46, %s14709_s19 }
 0x24d   :  { %v3022_v21 = vadd.f32 %v16149_v59, %v2759_v52  ;;  %v13795_v61 = vpop.f32.mrf.mxu0 }
 0x24e   :  { %4347 = vst.msk [vmem:[#allocation3 + $0x259] sm:$0xff] %vm49_vm3, %v4282_v54  ;;  %3531 = vst.msk [vmem:[#allocation2 + $0x5e0] sm:$0xff] %vm49_vm3, %v3275_v55  ;;  %v3020_v63 = vadd.f32 %v16149_v59, %v2757_v57  ;;  %v2762_v0 = vmul.f32 %v16141_v35, %v13795_v61  ;;  %v5464_v1 = vpop.permute.xlu0 %5463 }
 0x24f   :  { %v3278_v2 = vmax.f32 %v3022_v21, 0.0  ;;  %v5624_v3 = vsel %vm159_vm5, %v5543_v62, %v5464_v1  ;;  %v2306_v4 = vpop.f32.mrf.mxu0  ;;  %v3785_v13 = vld [vmem:[#allocation2 + $0x5d0] ss:$2 sm:$0xff]  ;;  %v4041_v17 = vld [vmem:[#allocation2 + $0x5d1] ss:$2 sm:$0xff] }
 0x250   :  { %v3276_v5 = vmax.f32 %v3020_v63, 0.0  ;;  %v3025_v6 = vadd.f32 %v16149_v59, %v2762_v0  ;;  %v2760_v7 = vmul.f32 %v16141_v35, %v2306_v4  ;;  %13897 = vmatprep.mubr.msk.bf16.mxu1 %vm5708_vm6, %v5624_v3  ;;  %v4203_v38 = vmax.f32 %v3785_v13, %v4041_v17 }
 0x251   :  { %3534 = vst.msk [vmem:[#allocation2 + $0x5f8] sm:$0xff] %vm49_vm3, %v3278_v2  ;;  %v13796_v8 = vpop.f32.mrf.mxu0  ;;  %v3783_v22 = vld [vmem:[#allocation2 + $0x5c0] ss:$2 sm:$0xff]  ;;  %v4039_v58 = vld [vmem:[#allocation2 + $0x5c1] ss:$2 sm:$0xff] }
 0x252   :  { %3532 = vst.msk [vmem:[#allocation2 + $0x5e8] sm:$0xff] %vm49_vm3, %v3276_v5  ;;  %v3281_v9 = vmax.f32 %v3025_v6, 0.0  ;;  %v3023_v10 = vadd.f32 %v16149_v59, %v2760_v7  ;;  %v2763_v11 = vmul.f32 %v16141_v35, %v13796_v8  ;;  %v4202_v39 = vmax.f32 %v3783_v22, %v4039_v58 }
 0x253   :  { %v2309_v12 = vpop.f32.mrf.mxu0  ;;  %v5160_v20 = vld [vmem:[#allocation3 + $0x261] sm:$0xff] }
 0x254   :  { %3537 = vst.msk [vmem:[#allocation2 + $0x610] sm:$0xff] %vm49_vm3, %v3281_v9  ;;  %v3279_v14 = vmax.f32 %v3023_v10, 0.0  ;;  %v3026_v15 = vadd.f32 %v16149_v59, %v2763_v11  ;;  %v2761_v16 = vmul.f32 %v16141_v35, %v2309_v12  ;;  %v5256_v37 = vld [vmem:[#allocation3 + $0x262] sm:$0xff] }
 0x255   :  { %v13799_v18 = vpop.f32.mrf.mxu0  ;;  %v5159_v19 = vld [vmem:[#allocation3 + $0x259] sm:$0xff] }
 0x256   :  { %3535 = vst.msk [vmem:[#allocation2 + $0x600] sm:$0xff] %vm49_vm3, %v3279_v14  ;;  %v3282_v23 = vmax.f32 %v3026_v15, 0.0  ;;  %v3024_v24 = vadd.f32 %v16149_v59, %v2761_v16  ;;  %v2766_v25 = vmul.f32 %v16141_v35, %v13799_v18  ;;  %v5201_v26 = vpack.c.bf16 %v5160_v20, %v5159_v19  ;;  %v5255_v27 = vld [vmem:[#allocation3 + $0x25a] sm:$0xff] }
 0x257   :  { %v2322_v28 = vpop.f32.mrf.mxu0  ;;  %v5297_v44 = vpack.c.bf16 %v5256_v37, %v5255_v27 }
 0x258   :  { %v3789_v31 = vld [vmem:[#allocation2 + $0x5f0] ss:$2 sm:$0xff]  ;;  %v4045_v32 = vld [vmem:[#allocation2 + $0x5f1] ss:$2 sm:$0xff]  ;;  %3538 = vst.msk [vmem:[#allocation2 + $0x618] sm:$0xff] %vm49_vm3, %v3282_v23  ;;  %v3280_v34 = vmax.f32 %v3024_v24, 0.0  ;;  %v3029_v36 = vadd.f32 %v16149_v59, %v2766_v25  ;;  %v2764_v60 = vmul.f32 %v16141_v35, %v2322_v28  ;;  %5383 = vrot.lane.b32.xlu0 %v5201_v26, %s14710_s1 }
 0x259   :  { %v4205_v40 = vmax.f32 %v3789_v31, %v4045_v32  ;;  %v3787_v41 = vld [vmem:[#allocation2 + $0x5e0] ss:$2 sm:$0xff]  ;;  %v4043_v42 = vld [vmem:[#allocation2 + $0x5e1] ss:$2 sm:$0xff]  ;;  %v13800_v43 = vpop.f32.mrf.mxu0 }
 0x25a   :  { %v4204_v45 = vmax.f32 %v3787_v41, %v4043_v42  ;;  %3536 = vst.msk [vmem:[#allocation2 + $0x608] sm:$0xff] %vm49_vm3, %v3280_v34  ;;  %v3285_v46 = vmax.f32 %v3029_v36, 0.0  ;;  %v3027_v47 = vadd.f32 %v16149_v59, %v2764_v60  ;;  %v2767_v48 = vmul.f32 %v16141_v35, %v13800_v43  ;;  %v5370_v49 = vpop.permute.xlu1 %5369  ;;  %v14227_v26 = vld [vmem:[%s19439_s4 + $0x28] sm:$0xff]   ;;  %v5052_v42 = vld [vmem:[#allocation3 + $0x1d0] sm:$0xff] }
 0x25b   :  { %v4285_v50 = vmax.f32 %v4203_v38, %v4205_v40  ;;  %v2325_v52 = vpop.f32.mrf.mxu0  ;;  %v5546_v61 = vsel %vm49_vm3, %v5098_v51, %v5370_v49  ;;  %v5051_v60 = vld [vmem:[#allocation3 + $0x1c8] sm:$0xff]  ;;  %13933 = vmatprep.subr.bf16.mxu1 %v14227_v26 }
 0x25c   :  { %v4284_v53 = vmax.f32 %v4202_v39, %v4204_v45  ;;  %3541 = vst.msk [vmem:[#allocation2 + $0x630] sm:$0xff] %vm49_vm3, %v3285_v46  ;;  %v3283_v54 = vmax.f32 %v3027_v47, 0.0  ;;  %v3030_v55 = vadd.f32 %v16149_v59, %v2767_v48  ;;  %v2765_v56 = vmul.f32 %v16141_v35, %v2325_v52  ;;  %5479 = vrot.lane.b32.xlu0 %v5297_v44, %s14709_s19  ;;  %v16395_v46 = vld [vmem:[%s19438_s3] ss:$0 sm:$0xff] }
 0x25d   :  { %4350 = vst.msk [vmem:[#allocation3 + $0x279] sm:$0xff] %vm49_vm3, %v4285_v50  ;;  %v13803_v57 = vpop.f32.mrf.mxu0  ;;  %13934 = vmatpush3.bf16.msra.mxu1 %v14227_v26  ;;  %v5053_v26 = vld [vmem:[#allocation3 + $0x1e0] sm:$0xff] }
 0x25e   :  { %4349 = vst.msk [vmem:[#allocation3 + $0x271] sm:$0xff] %vm49_vm3, %v4284_v53  ;;  %3539 = vst.msk [vmem:[#allocation2 + $0x620] sm:$0xff] %vm49_vm3, %v3283_v54  ;;  %v3286_v21 = vmax.f32 %v3030_v55, 0.0  ;;  %v3028_v62 = vadd.f32 %v16149_v59, %v2765_v56  ;;  %v2770_v63 = vmul.f32 %v16141_v35, %v13803_v57  ;;  %v5466_v0 = vpop.permute.xlu1 %5465  ;;  %v5099_v53 = vpack.c.bf16 %v5052_v42, %v5051_v60 }
 0x25f   :  { %v5626_v1 = vsel %vm159_vm5, %v5546_v61, %v5466_v0  ;;  %v2338_v2 = vpop.f32.mrf.mxu0  ;;  %v3793_v11 = vld [vmem:[#allocation2 + $0x610] ss:$2 sm:$0xff]  ;;  %v4049_v12 = vld [vmem:[#allocation2 + $0x611] ss:$2 sm:$0xff] }
 0x260   :  { %3542 = vst.msk [vmem:[#allocation2 + $0x638] sm:$0xff] %vm49_vm3, %v3286_v21  ;;  %v3284_v3 = vmax.f32 %v3028_v62, 0.0  ;;  %v3033_v4 = vadd.f32 %v16149_v59, %v2770_v63  ;;  %v2768_v5 = vmul.f32 %v16141_v35, %v2338_v2  ;;  %13898 = vmatmul.mubr.msk.bf16.gmra.mxu1 %vm5708_vm6, %v5626_v1  ;;  %v4207_v27 = vmax.f32 %v3793_v11, %v4049_v12 }
 0x261   :  { %v13804_v6 = vpop.f32.mrf.mxu0  ;;  %v3791_v16 = vld [vmem:[#allocation2 + $0x600] ss:$2 sm:$0xff]  ;;  %v4047_v20 = vld [vmem:[#allocation2 + $0x601] ss:$2 sm:$0xff] }
 0x262   :  { %3540 = vst.msk [vmem:[#allocation2 + $0x628] sm:$0xff] %vm49_vm3, %v3284_v3  ;;  %v3289_v7 = vmax.f32 %v3033_v4, 0.0  ;;  %v3031_v8 = vadd.f32 %v16149_v59, %v2768_v5  ;;  %v2771_v9 = vmul.f32 %v16141_v35, %v13804_v6  ;;  %v4206_v38 = vmax.f32 %v3791_v16, %v4047_v20 }
 0x263   :  { %v2341_v10 = vpop.f32.mrf.mxu0 }
 0x264   :  { %3545 = vst.msk [vmem:[#allocation2 + $0x650] sm:$0xff] %vm49_vm3, %v3289_v7  ;;  %v3287_v13 = vmax.f32 %v3031_v8, 0.0  ;;  %v3034_v14 = vadd.f32 %v16149_v59, %v2771_v9  ;;  %v2769_v15 = vmul.f32 %v16141_v35, %v2341_v10  ;;  %v5162_v19 = vld [vmem:[#allocation3 + $0x279] sm:$0xff] }
 0x265   :  { %v13807_v17 = vpop.f32.mrf.mxu0  ;;  %v5161_v18 = vld [vmem:[#allocation3 + $0x271] sm:$0xff]  ;;  %v5258_v37 = vld [vmem:[#allocation3 + $0x27a] sm:$0xff] }
 0x266   :  { %3543 = vst.msk [vmem:[#allocation2 + $0x640] sm:$0xff] %vm49_vm3, %v3287_v13  ;;  %v3290_v22 = vmax.f32 %v3034_v14, 0.0  ;;  %v3032_v58 = vadd.f32 %v16149_v59, %v2769_v15  ;;  %v2774_v23 = vmul.f32 %v16141_v35, %v13807_v17  ;;  %v5202_v24 = vpack.c.bf16 %v5162_v19, %v5161_v18  ;;  %v5257_v25 = vld [vmem:[#allocation3 + $0x272] sm:$0xff]  ;;  %v16387_v35 = vld [vmem:[%s19437_s2] ss:$0 sm:$0xff] }
 0x267   :  { %v3797_v28 = vld [vmem:[#allocation2 + $0x630] ss:$2 sm:$0xff]  ;;  %v4053_v29 = vld [vmem:[#allocation2 + $0x631] ss:$2 sm:$0xff]  ;;  %v2354_v30 = vpop.f32.mrf.mxu0  ;;  %v5298_v43 = vpack.c.bf16 %v5258_v37, %v5257_v25 }
 0x268   :  { %v4209_v31 = vmax.f32 %v3797_v28, %v4053_v29  ;;  %3546 = vst.msk [vmem:[#allocation2 + $0x658] sm:$0xff] %vm49_vm3, %v3290_v22  ;;  %v3288_v32 = vmax.f32 %v3032_v58, 0.0  ;;  %v3037_v34 = vadd.f32 %v16149_v59, %v2774_v23  ;;  %v2772_v36 = vmul.f32 %v16387_v35, %v2354_v30  ;;  %5385 = vrot.lane.b32.xlu1 %v5202_v24, %s14710_s1 }
 0x269   :  { %v3795_v39 = vld [vmem:[#allocation2 + $0x620] ss:$2 sm:$0xff]  ;;  %v4051_v40 = vld [vmem:[#allocation2 + $0x621] ss:$2 sm:$0xff]  ;;  %v13808_v41 = vpop.f32.mrf.mxu0 }
 0x26a   :  { %v4287_v59 = vmax.f32 %v4207_v27, %v4209_v31  ;;  %v4208_v44 = vmax.f32 %v3795_v39, %v4051_v40  ;;  %3544 = vst.msk [vmem:[#allocation2 + $0x648] sm:$0xff] %vm49_vm3, %v3288_v32  ;;  %v3293_v45 = vmax.f32 %v3037_v34, 0.0  ;;  %v3035_v47 = vadd.f32 %v16395_v46, %v2772_v36  ;;  %v5372_v48 = vpop.permute.xlu0 %5371  ;;  %v5054_v27 = vld [vmem:[#allocation3 + $0x1e8] sm:$0xff] }
 0x26b   :  { %v2775_v49 = vmul.f32 %v16387_v35, %v13808_v41  ;;  %v2357_v50 = vpop.f32.mrf.mxu0  ;;  %v5549_v57 = vsel %vm49_vm3, %v5099_v53, %v5372_v48  ;;  %v5100_v48 = vpack.c.bf16 %v5054_v27, %v5053_v26 }
 0x26c   :  { %4352 = vst.msk [vmem:[#allocation3 + $0x291] sm:$0xff] %vm49_vm3, %v4287_v59  ;;  %v4286_v51 = vmax.f32 %v4206_v38, %v4208_v44  ;;  %3549 = vst.msk [vmem:[#allocation2 + $0x670] sm:$0xff] %vm49_vm3, %v3293_v45  ;;  %v3291_v52 = vmax.f32 %v3035_v47, 0.0  ;;  %v2773_v54 = vmul.f32 %v16387_v35, %v2357_v50  ;;  %5481 = vrot.lane.b32.xlu1 %v5298_v43, %s14709_s19 }
 0x26d   :  { %v3038_v55 = vadd.f32 %v16395_v46, %v2775_v49  ;;  %v13811_v56 = vpop.f32.mrf.mxu0 }
 0x26e   :  { %4351 = vst.msk [vmem:[#allocation3 + $0x289] sm:$0xff] %vm49_vm3, %v4286_v51  ;;  %3547 = vst.msk [vmem:[#allocation2 + $0x660] sm:$0xff] %vm49_vm3, %v3291_v52  ;;  %v3036_v21 = vadd.f32 %v16395_v46, %v2773_v54  ;;  %v2778_v61 = vmul.f32 %v16387_v35, %v13811_v56  ;;  %v5468_v62 = vpop.permute.xlu0 %5467 }
 0x26f   :  { %v3294_v63 = vmax.f32 %v3038_v55, 0.0  ;;  %v5628_v0 = vsel %vm159_vm5, %v5549_v57, %v5468_v62  ;;  %v2370_v1 = vpop.f32.mrf.mxu0  ;;  %v3801_v10 = vld [vmem:[#allocation2 + $0x650] ss:$2 sm:$0xff]  ;;  %v4057_v14 = vld [vmem:[#allocation2 + $0x651] ss:$2 sm:$0xff]  ;;  %v14228_v55 = vld [vmem:[%s19439_s4 + $0x20] sm:$0xff]  }
 0x270   :  { %v3292_v2 = vmax.f32 %v3036_v21, 0.0  ;;  %v3041_v3 = vadd.f32 %v16395_v46, %v2778_v61  ;;  %v2776_v4 = vmul.f32 %v16387_v35, %v2370_v1  ;;  %13901 = vmatprep.mubr.msk.bf16.mxu1 %vm5708_vm6, %v5628_v0  ;;  %v4211_v36 = vmax.f32 %v3801_v10, %v4057_v14  ;;  %13935 = vmatprep.subr.bf16.mxu1 %v14228_v55 }
 0x271   :  { %3550 = vst.msk [vmem:[#allocation2 + $0x678] sm:$0xff] %vm49_vm3, %v3294_v63  ;;  %v13812_v5 = vpop.f32.mrf.mxu0  ;;  %v3799_v18 = vld [vmem:[#allocation2 + $0x640] ss:$2 sm:$0xff]  ;;  %v4055_v19 = vld [vmem:[#allocation2 + $0x641] ss:$2 sm:$0xff]  ;;  %13936 = vmatpush3.bf16.msra.mxu1 %v14228_v55 }
 0x272   :  { %3548 = vst.msk [vmem:[#allocation2 + $0x668] sm:$0xff] %vm49_vm3, %v3292_v2  ;;  %v3297_v6 = vmax.f32 %v3041_v3, 0.0  ;;  %v3039_v7 = vadd.f32 %v16395_v46, %v2776_v4  ;;  %v2779_v8 = vmul.f32 %v16387_v35, %v13812_v5  ;;  %v4210_v60 = vmax.f32 %v3799_v18, %v4055_v19 }
 0x273   :  { %v2373_v9 = vpop.f32.mrf.mxu0  ;;  %v5164_v17 = vld [vmem:[#allocation3 + $0x291] sm:$0xff] }
 0x274   :  { %3553 = vst.msk [vmem:[#allocation2 + $0x690] sm:$0xff] %vm49_vm3, %v3297_v6  ;;  %v3295_v11 = vmax.f32 %v3039_v7, 0.0  ;;  %v3042_v12 = vadd.f32 %v16395_v46, %v2779_v8  ;;  %v2777_v13 = vmul.f32 %v16387_v35, %v2373_v9  ;;  %v5260_v34 = vld [vmem:[#allocation3 + $0x292] sm:$0xff] }
 0x275   :  { %v13815_v15 = vpop.f32.mrf.mxu0  ;;  %v5163_v16 = vld [vmem:[#allocation3 + $0x289] sm:$0xff] }
 0x276   :  { %3551 = vst.msk [vmem:[#allocation2 + $0x680] sm:$0xff] %vm49_vm3, %v3295_v11  ;;  %v3298_v20 = vmax.f32 %v3042_v12, 0.0  ;;  %v3040_v22 = vadd.f32 %v16395_v46, %v2777_v13  ;;  %v2782_v58 = vmul.f32 %v16387_v35, %v13815_v15  ;;  %v5203_v23 = vpack.c.bf16 %v5164_v17, %v5163_v16  ;;  %v5259_v24 = vld [vmem:[#allocation3 + $0x28a] sm:$0xff] }
 0x277   :  { %v2386_v25 = vpop.f32.mrf.mxu0  ;;  %v5299_v41 = vpack.c.bf16 %v5260_v34, %v5259_v24 }
 0x278   :  { %v3805_v28 = vld [vmem:[#allocation2 + $0x670] ss:$2 sm:$0xff]  ;;  %v4061_v29 = vld [vmem:[#allocation2 + $0x671] ss:$2 sm:$0xff]  ;;  %3554 = vst.msk [vmem:[#allocation2 + $0x698] sm:$0xff] %vm49_vm3, %v3298_v20  ;;  %v3296_v30 = vmax.f32 %v3040_v22, 0.0  ;;  %v3045_v31 = vadd.f32 %v16395_v46, %v2782_v58  ;;  %v2780_v32 = vmul.f32 %v16387_v35, %v2386_v25  ;;  %5387 = vrot.lane.b32.xlu0 %v5203_v23, %s14710_s1 }
 0x279   :  { %v4213_v37 = vmax.f32 %v3805_v28, %v4061_v29  ;;  %v3803_v38 = vld [vmem:[#allocation2 + $0x660] ss:$2 sm:$0xff]  ;;  %v4059_v39 = vld [vmem:[#allocation2 + $0x661] ss:$2 sm:$0xff]  ;;  %v13816_v40 = vpop.f32.mrf.mxu0 }
 0x27a   :  { %v4212_v42 = vmax.f32 %v3803_v38, %v4059_v39  ;;  %3552 = vst.msk [vmem:[#allocation2 + $0x688] sm:$0xff] %vm49_vm3, %v3296_v30  ;;  %v3301_v43 = vmax.f32 %v3045_v31, 0.0  ;;  %v3043_v59 = vadd.f32 %v16395_v46, %v2780_v32  ;;  %v2783_v44 = vmul.f32 %v16387_v35, %v13816_v40  ;;  %v5374_v45 = vpop.permute.xlu1 %5373  ;;  %v5055_v32 = vld [vmem:[#allocation3 + $0x1f8] sm:$0xff]  ;;  %v5056_v39 = vld [vmem:[#allocation3 + $0x200] sm:$0xff] }
 0x27b   :  { %v4289_v47 = vmax.f32 %v4211_v36, %v4213_v37  ;;  %v2389_v49 = vpop.f32.mrf.mxu0  ;;  %v5552_v57 = vsel %vm49_vm3, %v5100_v48, %v5374_v45 }
 0x27c   :  { %v4288_v50 = vmax.f32 %v4210_v60, %v4212_v42  ;;  %3557 = vst.msk [vmem:[#allocation2 + $0x6b0] sm:$0xff] %vm49_vm3, %v3301_v43  ;;  %v3299_v51 = vmax.f32 %v3043_v59, 0.0  ;;  %v3046_v52 = vadd.f32 %v16395_v46, %v2783_v44  ;;  %v2781_v53 = vmul.f32 %v16387_v35, %v2389_v49  ;;  %5483 = vrot.lane.b32.xlu0 %v5299_v41, %s14709_s19 }
 0x27d   :  { %4354 = vst.msk [vmem:[#allocation3 + $0x2a9] sm:$0xff] %vm49_vm3, %v4289_v47  ;;  %v13819_v54 = vpop.f32.mrf.mxu0 }
 0x27e   :  { %4353 = vst.msk [vmem:[#allocation3 + $0x2a1] sm:$0xff] %vm49_vm3, %v4288_v50  ;;  %3555 = vst.msk [vmem:[#allocation2 + $0x6a0] sm:$0xff] %vm49_vm3, %v3299_v51  ;;  %v3302_v56 = vmax.f32 %v3046_v52, 0.0  ;;  %v3044_v21 = vadd.f32 %v16395_v46, %v2781_v53  ;;  %v2786_v61 = vmul.f32 %v16387_v35, %v13819_v54  ;;  %v5470_v62 = vpop.permute.xlu1 %5469  ;;  %v5101_v50 = vpack.c.bf16 %v5056_v39, %v5055_v32 }
 0x27f   :  { %v5630_v63 = vsel %vm159_vm5, %v5552_v57, %v5470_v62  ;;  %v2402_v0 = vpop.f32.mrf.mxu0  ;;  %v3809_v9 = vld [vmem:[#allocation2 + $0x690] ss:$2 sm:$0xff]  ;;  %v4065_v10 = vld [vmem:[#allocation2 + $0x691] ss:$2 sm:$0xff] }
 0x280   :  { %3558 = vst.msk [vmem:[#allocation2 + $0x6b8] sm:$0xff] %vm49_vm3, %v3302_v56  ;;  %v3300_v1 = vmax.f32 %v3044_v21, 0.0  ;;  %v3049_v2 = vadd.f32 %v16395_v46, %v2786_v61  ;;  %v2784_v3 = vmul.f32 %v16387_v35, %v2402_v0  ;;  %13902 = vmatmul.mubr.msk.bf16.gmra.mxu1 %vm5708_vm6, %v5630_v63  ;;  %v4215_v24 = vmax.f32 %v3809_v9, %v4065_v10 }
 0x281   :  { %v13820_v4 = vpop.f32.mrf.mxu0  ;;  %v3807_v17 = vld [vmem:[#allocation2 + $0x680] ss:$2 sm:$0xff]  ;;  %v4063_v18 = vld [vmem:[#allocation2 + $0x681] ss:$2 sm:$0xff] }
 0x282   :  { %3556 = vst.msk [vmem:[#allocation2 + $0x6a8] sm:$0xff] %vm49_vm3, %v3300_v1  ;;  %v3305_v5 = vmax.f32 %v3049_v2, 0.0  ;;  %v3047_v6 = vadd.f32 %v16395_v46, %v2784_v3  ;;  %v2787_v7 = vmul.f32 %v16387_v35, %v13820_v4  ;;  %v4214_v36 = vmax.f32 %v3807_v17, %v4063_v18  ;;  %v14229_v3 = vld [vmem:[%s19439_s4 + $0x18] sm:$0xff]  }
 0x283   :  { %v2405_v8 = vpop.f32.mrf.mxu0  ;;  %13937 = vmatprep.subr.bf16.mxu1 %v14229_v3 }
 0x284   :  { %3561 = vst.msk [vmem:[#allocation2 + $0x6d0] sm:$0xff] %vm49_vm3, %v3305_v5  ;;  %v3303_v11 = vmax.f32 %v3047_v6, 0.0  ;;  %v3050_v12 = vadd.f32 %v16395_v46, %v2787_v7  ;;  %v2785_v13 = vmul.f32 %v16387_v35, %v2405_v8  ;;  %v5166_v16 = vld [vmem:[#allocation3 + $0x2a9] sm:$0xff]  ;;  %13938 = vmatpush3.bf16.msra.mxu1 %v14229_v3 }
 0x285   :  { %v13823_v14 = vpop.f32.mrf.mxu0  ;;  %v5165_v15 = vld [vmem:[#allocation3 + $0x2a1] sm:$0xff]  ;;  %v5262_v34 = vld [vmem:[#allocation3 + $0x2aa] sm:$0xff] }
 0x286   :  { %3559 = vst.msk [vmem:[#allocation2 + $0x6c0] sm:$0xff] %vm49_vm3, %v3303_v11  ;;  %v3306_v19 = vmax.f32 %v3050_v12, 0.0  ;;  %v3048_v20 = vadd.f32 %v16395_v46, %v2785_v13  ;;  %v2790_v22 = vmul.f32 %v16387_v35, %v13823_v14  ;;  %v5204_v58 = vpack.c.bf16 %v5166_v16, %v5165_v15  ;;  %v5261_v23 = vld [vmem:[#allocation3 + $0x2a2] sm:$0xff] }
 0x287   :  { %v3813_v25 = vld [vmem:[#allocation2 + $0x6b0] ss:$2 sm:$0xff]  ;;  %v4069_v26 = vld [vmem:[#allocation2 + $0x6b1] ss:$2 sm:$0xff]  ;;  %v2418_v27 = vpop.f32.mrf.mxu0  ;;  %v5300_v40 = vpack.c.bf16 %v5262_v34, %v5261_v23 }
 0x288   :  { %v4217_v28 = vmax.f32 %v3813_v25, %v4069_v26  ;;  %3562 = vst.msk [vmem:[#allocation2 + $0x6d8] sm:$0xff] %vm49_vm3, %v3306_v19  ;;  %v3304_v29 = vmax.f32 %v3048_v20, 0.0  ;;  %v3053_v30 = vadd.f32 %v16395_v46, %v2790_v22  ;;  %v2788_v31 = vmul.f32 %v16387_v35, %v2418_v27  ;;  %5389 = vrot.lane.b32.xlu1 %v5204_v58, %s14710_s1 }
 0x289   :  { %v3811_v60 = vld [vmem:[#allocation2 + $0x6a0] ss:$2 sm:$0xff]  ;;  %v4067_v37 = vld [vmem:[#allocation2 + $0x6a1] ss:$2 sm:$0xff]  ;;  %v13824_v38 = vpop.f32.mrf.mxu0 }
 0x28a   :  { %v4291_v41 = vmax.f32 %v4215_v24, %v4217_v28  ;;  %v4216_v42 = vmax.f32 %v3811_v60, %v4067_v37  ;;  %3560 = vst.msk [vmem:[#allocation2 + $0x6c8] sm:$0xff] %vm49_vm3, %v3304_v29  ;;  %v3309_v43 = vmax.f32 %v3053_v30, 0.0  ;;  %v3051_v59 = vadd.f32 %v16395_v46, %v2788_v31  ;;  %v5376_v44 = vpop.permute.xlu0 %5375 }
 0x28b   :  { %v2791_v45 = vmul.f32 %v16387_v35, %v13824_v38  ;;  %v2421_v47 = vpop.f32.mrf.mxu0  ;;  %v5555_v54 = vsel %vm49_vm3, %v5101_v50, %v5376_v44 }
 0x28c   :  { %4356 = vst.msk [vmem:[#allocation3 + $0x2c1] sm:$0xff] %vm49_vm3, %v4291_v41  ;;  %v4290_v48 = vmax.f32 %v4214_v36, %v4216_v42  ;;  %3565 = vst.msk [vmem:[#allocation2 + $0x6f0] sm:$0xff] %vm49_vm3, %v3309_v43  ;;  %v3307_v49 = vmax.f32 %v3051_v59, 0.0  ;;  %v2789_v51 = vmul.f32 %v16387_v35, %v2421_v47  ;;  %5485 = vrot.lane.b32.xlu1 %v5300_v40, %s14709_s19  ;;  %v5057_v42 = vld [vmem:[#allocation3 + $0x210] sm:$0xff]  ;;  %v5058_v43 = vld [vmem:[#allocation3 + $0x218] sm:$0xff] }
 0x28d   :  { %v3054_v52 = vadd.f32 %v16395_v46, %v2791_v45  ;;  %v13827_v53 = vpop.f32.mrf.mxu0  ;;  %v5102_v50 = vpack.c.bf16 %v5058_v43, %v5057_v42 }
 0x28e   :  { %4355 = vst.msk [vmem:[#allocation3 + $0x2b9] sm:$0xff] %vm49_vm3, %v4290_v48  ;;  %3563 = vst.msk [vmem:[#allocation2 + $0x6e0] sm:$0xff] %vm49_vm3, %v3307_v49  ;;  %v3052_v55 = vadd.f32 %v16395_v46, %v2789_v51  ;;  %v2794_v56 = vmul.f32 %v16387_v35, %v13827_v53  ;;  %v5472_v57 = vpop.permute.xlu0 %5471 }
 0x28f   :  { %v3310_v21 = vmax.f32 %v3054_v52, 0.0  ;;  %v5632_v61 = vsel %vm159_vm5, %v5555_v54, %v5472_v57  ;;  %v2434_v62 = vpop.f32.mrf.mxu0  ;;  %v3817_v8 = vld [vmem:[#allocation2 + $0x6d0] ss:$2 sm:$0xff]  ;;  %v4073_v12 = vld [vmem:[#allocation2 + $0x6d1] ss:$2 sm:$0xff] }
 0x290   :  { %v3308_v63 = vmax.f32 %v3052_v55, 0.0  ;;  %v3057_v0 = vadd.f32 %v16395_v46, %v2794_v56  ;;  %v2792_v1 = vmul.f32 %v16387_v35, %v2434_v62  ;;  %13905 = vmatprep.mubr.msk.bf16.mxu1 %vm5708_vm6, %v5632_v61  ;;  %v4219_v30 = vmax.f32 %v3817_v8, %v4073_v12 }
 0x291   :  { %3566 = vst.msk [vmem:[#allocation2 + $0x6f8] sm:$0xff] %vm49_vm3, %v3310_v21  ;;  %v13828_v2 = vpop.f32.mrf.mxu0  ;;  %v3815_v16 = vld [vmem:[#allocation2 + $0x6c0] ss:$2 sm:$0xff]  ;;  %v4071_v17 = vld [vmem:[#allocation2 + $0x6c1] ss:$2 sm:$0xff] }
 0x292   :  { %3564 = vst.msk [vmem:[#allocation2 + $0x6e8] sm:$0xff] %vm49_vm3, %v3308_v63  ;;  %v3313_v4 = vmax.f32 %v3057_v0, 0.0  ;;  %v3055_v5 = vadd.f32 %v16395_v46, %v2792_v1  ;;  %v2795_v6 = vmul.f32 %v16387_v35, %v13828_v2  ;;  %v4218_v31 = vmax.f32 %v3815_v16, %v4071_v17 }
 0x293   :  { %v2437_v7 = vpop.f32.mrf.mxu0  ;;  %v5168_v15 = vld [vmem:[#allocation3 + $0x2c1] sm:$0xff] }
 0x294   :  { %3569 = vst.msk [vmem:[#allocation2 + $0x710] sm:$0xff] %vm49_vm3, %v3313_v4  ;;  %v3311_v9 = vmax.f32 %v3055_v5, 0.0  ;;  %v3058_v10 = vadd.f32 %v16395_v46, %v2795_v6  ;;  %v2793_v11 = vmul.f32 %v16387_v35, %v2437_v7  ;;  %v5264_v29 = vld [vmem:[#allocation3 + $0x2c2] sm:$0xff] }
 0x295   :  { %v13831_v13 = vpop.f32.mrf.mxu0  ;;  %v5167_v14 = vld [vmem:[#allocation3 + $0x2b9] sm:$0xff] }
 0x296   :  { %3567 = vst.msk [vmem:[#allocation2 + $0x700] sm:$0xff] %vm49_vm3, %v3311_v9  ;;  %v3314_v18 = vmax.f32 %v3058_v10, 0.0  ;;  %v3056_v19 = vadd.f32 %v16395_v46, %v2793_v11  ;;  %v2798_v20 = vmul.f32 %v16387_v35, %v13831_v13  ;;  %v5205_v22 = vpack.c.bf16 %v5168_v15, %v5167_v14  ;;  %v5263_v58 = vld [vmem:[#allocation3 + $0x2ba] sm:$0xff] }
 0x297   :  { %v2450_v23 = vpop.f32.mrf.mxu0  ;;  %v5301_v37 = vpack.c.bf16 %v5264_v29, %v5263_v58 }
 0x298   :  { %v3821_v24 = vld [vmem:[#allocation2 + $0x6f0] ss:$2 sm:$0xff]  ;;  %v4077_v25 = vld [vmem:[#allocation2 + $0x6f1] ss:$2 sm:$0xff]  ;;  %3570 = vst.msk [vmem:[#allocation2 + $0x718] sm:$0xff] %vm49_vm3, %v3314_v18  ;;  %v3312_v26 = vmax.f32 %v3056_v19, 0.0  ;;  %v3061_v27 = vadd.f32 %v16395_v46, %v2798_v20  ;;  %v2796_v28 = vmul.f32 %v16387_v35, %v2450_v23  ;;  %5391 = vrot.lane.b32.xlu0 %v5205_v22, %s14710_s1 }
 0x299   :  { %v4221_v32 = vmax.f32 %v3821_v24, %v4077_v25  ;;  %v3819_v34 = vld [vmem:[#allocation2 + $0x6e0] ss:$2 sm:$0xff]  ;;  %v4075_v36 = vld [vmem:[#allocation2 + $0x6e1] ss:$2 sm:$0xff]  ;;  %v13832_v60 = vpop.f32.mrf.mxu0  ;;  %v14230_v19 = vld [vmem:[%s19439_s4 + $0x10] sm:$0xff]  }
 0x29a   :  { %v4220_v38 = vmax.f32 %v3819_v34, %v4075_v36  ;;  %3568 = vst.msk [vmem:[#allocation2 + $0x708] sm:$0xff] %vm49_vm3, %v3312_v26  ;;  %v3317_v39 = vmax.f32 %v3061_v27, 0.0  ;;  %v3059_v40 = vadd.f32 %v16395_v46, %v2796_v28  ;;  %v2799_v41 = vmul.f32 %v16387_v35, %v13832_v60  ;;  %13939 = vmatprep.subr.bf16.mxu1 %v14230_v19  ;;  %v5060_v34 = vld [vmem:[#allocation3 + $0x230] sm:$0xff] }
 0x29b   :  { %v4293_v59 = vmax.f32 %v4219_v30, %v4221_v32  ;;  %v5378_v44 = vpop.permute.xlu1 %5377  ;;  %v2453_v45 = vpop.f32.mrf.mxu0  ;;  %v5059_v32 = vld [vmem:[#allocation3 + $0x228] sm:$0xff]  ;;  %13940 = vmatpush3.bf16.msra.mxu1 %v14230_v19 }
 0x29c   :  { %v4292_v47 = vmax.f32 %v4218_v31, %v4220_v38  ;;  %3573 = vst.msk [vmem:[#allocation2 + $0x730] sm:$0xff] %vm49_vm3, %v3317_v39  ;;  %v3315_v48 = vmax.f32 %v3059_v40, 0.0  ;;  %v3062_v49 = vadd.f32 %v16395_v46, %v2799_v41  ;;  %5487 = vrot.lane.b32.xlu0 %v5301_v37, %s14709_s19  ;;  %v2797_v51 = vmul.f32 %v16387_v35, %v2453_v45 }
 0x29d   :  { %4358 = vst.msk [vmem:[#allocation3 + $0x2d9] sm:$0xff] %vm49_vm3, %v4293_v59  ;;  %v13835_v52 = vpop.f32.mrf.mxu0  ;;  %v5558_v55 = vsel %vm49_vm3, %v5102_v50, %v5378_v44 }
 0x29e   :  { %4357 = vst.msk [vmem:[#allocation3 + $0x2d1] sm:$0xff] %vm49_vm3, %v4292_v47  ;;  %3571 = vst.msk [vmem:[#allocation2 + $0x720] sm:$0xff] %vm49_vm3, %v3315_v48  ;;  %v3318_v53 = vmax.f32 %v3062_v49, 0.0  ;;  %v2802_v54 = vmul.f32 %v16387_v35, %v13835_v52  ;;  %v3060_v56 = vadd.f32 %v16395_v46, %v2797_v51  ;;  %v5103_v48 = vpack.c.bf16 %v5060_v34, %v5059_v32  ;;  %v5062_v34 = vld [vmem:[#allocation3 + $0x248] sm:$0xff] }
 0x29f   :  { %v5474_v57 = vpop.permute.xlu1 %5473  ;;  %v2466_v21 = vpop.f32.mrf.mxu0  ;;  %v3825_v6 = vld [vmem:[#allocation2 + $0x710] ss:$2 sm:$0xff]  ;;  %v4081_v7 = vld [vmem:[#allocation2 + $0x711] ss:$2 sm:$0xff] }
 0x2a0   :  { %3574 = vst.msk [vmem:[#allocation2 + $0x738] sm:$0xff] %vm49_vm3, %v3318_v53  ;;  %v3065_v61 = vadd.f32 %v16395_v46, %v2802_v54  ;;  %v5634_v62 = vsel %vm159_vm5, %v5558_v55, %v5474_v57  ;;  %v2800_v63 = vmul.f32 %v16387_v35, %v2466_v21  ;;  %v3316_v0 = vmax.f32 %v3060_v56, 0.0 }
 0x2a1   :  { %13906 = vmatmul.mubr.msk.bf16.gmra.mxu1 %vm5708_vm6, %v5634_v62  ;;  %v13836_v1 = vpop.f32.mrf.mxu0  ;;  %v4223_v20 = vmax.f32 %v3825_v6, %v4081_v7  ;;  %v3823_v24 = vld [vmem:[#allocation2 + $0x700] ss:$2 sm:$0xff]  ;;  %v4079_v25 = vld [vmem:[#allocation2 + $0x701] ss:$2 sm:$0xff] }
 0x2a2   :  { %v3321_v2 = vmax.f32 %v3065_v61, 0.0  ;;  %v3063_v3 = vadd.f32 %v16395_v46, %v2800_v63  ;;  %v2803_v4 = vmul.f32 %v16387_v35, %v13836_v1  ;;  %3572 = vst.msk [vmem:[#allocation2 + $0x728] sm:$0xff] %vm49_vm3, %v3316_v0  ;;  %v4222_v43 = vmax.f32 %v3823_v24, %v4079_v25 }
 0x2a3   :  { %v2469_v5 = vpop.f32.mrf.mxu0 }
 0x2a4   :  { %3577 = vst.msk [vmem:[#allocation2 + $0x750] sm:$0xff] %vm49_vm3, %v3321_v2  ;;  %v3319_v8 = vmax.f32 %v3063_v3, 0.0  ;;  %v3066_v9 = vadd.f32 %v16395_v46, %v2803_v4  ;;  %v2801_v10 = vmul.f32 %v16387_v35, %v2469_v5  ;;  %v5170_v13 = vld [vmem:[#allocation3 + $0x2d9] sm:$0xff] }
 0x2a5   :  { %v13839_v11 = vpop.f32.mrf.mxu0  ;;  %v5169_v12 = vld [vmem:[#allocation3 + $0x2d1] sm:$0xff]  ;;  %v5266_v30 = vld [vmem:[#allocation3 + $0x2da] sm:$0xff] }
 0x2a6   :  { %3575 = vst.msk [vmem:[#allocation2 + $0x740] sm:$0xff] %vm49_vm3, %v3319_v8  ;;  %v3322_v14 = vmax.f32 %v3066_v9, 0.0  ;;  %v3064_v15 = vadd.f32 %v16395_v46, %v2801_v10  ;;  %v2806_v16 = vmul.f32 %v16387_v35, %v13839_v11  ;;  %v5206_v17 = vpack.c.bf16 %v5170_v13, %v5169_v12  ;;  %v5265_v18 = vld [vmem:[#allocation3 + $0x2d2] sm:$0xff] }
 0x2a7   :  { %v3829_v22 = vld [vmem:[#allocation2 + $0x730] ss:$2 sm:$0xff]  ;;  %v4085_v58 = vld [vmem:[#allocation2 + $0x731] ss:$2 sm:$0xff]  ;;  %v2482_v23 = vpop.f32.mrf.mxu0  ;;  %v16529_v36 = vpack.c.bf16 %v5266_v30, %v5265_v18 }
 0x2a8   :  { %v4225_v26 = vmax.f32 %v3829_v22, %v4085_v58  ;;  %3578 = vst.msk [vmem:[#allocation2 + $0x758] sm:$0xff] %vm49_vm3, %v3322_v14  ;;  %v3320_v27 = vmax.f32 %v3064_v15, 0.0  ;;  %v3069_v28 = vadd.f32 %v16395_v46, %v2806_v16  ;;  %v2804_v29 = vmul.f32 %v16387_v35, %v2482_v23  ;;  %5393 = vrot.lane.b32.xlu1 %v5206_v17, %s14710_s1 }
 0x2a9   :  { %v13840_v31 = vpop.f32.mrf.mxu0  ;;  %v3827_v37 = vld [vmem:[#allocation2 + $0x720] ss:$2 sm:$0xff]  ;;  %v4083_v38 = vld [vmem:[#allocation2 + $0x721] ss:$2 sm:$0xff] }
 0x2aa   :  { %v4295_v60 = vmax.f32 %v4223_v20, %v4225_v26  ;;  %3576 = vst.msk [vmem:[#allocation2 + $0x748] sm:$0xff] %vm49_vm3, %v3320_v27  ;;  %v3325_v39 = vmax.f32 %v3069_v28, 0.0  ;;  %v3067_v40 = vadd.f32 %v16395_v46, %v2804_v29  ;;  %v2807_v41 = vmul.f32 %v16387_v35, %v13840_v31  ;;  %v5380_v42 = vpop.permute.xlu0 %5379  ;;  %v5061_v27 = vld [vmem:[#allocation3 + $0x240] sm:$0xff] }
 0x2ab   :  { %v4224_v59 = vmax.f32 %v3827_v37, %v4083_v38  ;;  %v2485_v44 = vpop.f32.mrf.mxu0  ;;  %v5561_v53 = vsel %vm49_vm3, %v5103_v48, %v5380_v42 }
 0x2ac   :  { %4360 = vst.msk [vmem:[#allocation3 + $0x2f1] sm:$0xff] %vm49_vm3, %v4295_v60  ;;  %3581 = vst.msk [vmem:[#allocation2 + $0x770] sm:$0xff] %vm49_vm3, %v3325_v39  ;;  %v3323_v45 = vmax.f32 %v3067_v40, 0.0  ;;  %v3070_v47 = vadd.f32 %v16395_v46, %v2807_v41  ;;  %v2805_v49 = vmul.f32 %v16387_v35, %v2485_v44  ;;  %5489 = vrot.lane.b32.xlu1 %v16529_v36, %s14709_s19 }
 0x2ad   :  { %v4294_v50 = vmax.f32 %v4222_v43, %v4224_v59  ;;  %v13843_v51 = vpop.f32.mrf.mxu0 }
 0x2ae   :  { %3579 = vst.msk [vmem:[#allocation2 + $0x760] sm:$0xff] %vm49_vm3, %v3323_v45  ;;  %v3326_v52 = vmax.f32 %v3070_v47, 0.0  ;;  %v3068_v54 = vadd.f32 %v16395_v46, %v2805_v49  ;;  %v2810_v55 = vmul.f32 %v16387_v35, %v13843_v51  ;;  %v5476_v56 = vpop.permute.xlu0 %5475  ;;  %v5104_v47 = vpack.c.bf16 %v5062_v34, %v5061_v27  ;;  %v14231_v51 = vld [vmem:[%s19439_s4 + $0x8] sm:$0xff]  }
 0x2af   :  { %4359 = vst.msk [vmem:[#allocation3 + $0x2e9] sm:$0xff] %vm49_vm3, %v4294_v50  ;;  %v5636_v57 = vsel %vm159_vm5, %v5561_v53, %v5476_v56  ;;  %v2498_v21 = vpop.f32.mrf.mxu0  ;;  %v3833_v5 = vld [vmem:[#allocation2 + $0x750] ss:$2 sm:$0xff]  ;;  %v4089_v6 = vld [vmem:[#allocation2 + $0x751] ss:$2 sm:$0xff]  ;;  %13941 = vmatprep.subr.bf16.mxu1 %v14231_v51 }
 0x2b0   :  { %3582 = vst.msk [vmem:[#allocation2 + $0x778] sm:$0xff] %vm49_vm3, %v3326_v52  ;;  %v3324_v61 = vmax.f32 %v3068_v54, 0.0  ;;  %v3073_v62 = vadd.f32 %v16395_v46, %v2810_v55  ;;  %v2808_v63 = vmul.f32 %v16387_v35, %v2498_v21  ;;  %13909 = vmatprep.mubr.msk.bf16.mxu1 %vm5708_vm6, %v5636_v57  ;;  %v4227_v18 = vmax.f32 %v3833_v5, %v4089_v6 }
 0x2b1   :  { %v13844_v0 = vpop.f32.mrf.mxu0  ;;  %v3831_v10 = vld [vmem:[#allocation2 + $0x740] ss:$2 sm:$0xff]  ;;  %v4087_v12 = vld [vmem:[#allocation2 + $0x741] ss:$2 sm:$0xff]  ;;  %13942 = vmatpush3.bf16.msra.mxu1 %v14231_v51 }
 0x2b2   :  { %3580 = vst.msk [vmem:[#allocation2 + $0x768] sm:$0xff] %vm49_vm3, %v3324_v61  ;;  %v3329_v1 = vmax.f32 %v3073_v62, 0.0  ;;  %v3071_v2 = vadd.f32 %v16395_v46, %v2808_v63  ;;  %v2811_v3 = vmul.f32 %v16387_v35, %v13844_v0  ;;  %v4226_v29 = vmax.f32 %v3831_v10, %v4087_v12 }
 0x2b3   :  { %v2501_v4 = vpop.f32.mrf.mxu0  ;;  %v5172_v17 = vld [vmem:[#allocation3 + $0x2f1] sm:$0xff] }
 0x2b4   :  { %3585 = vst.msk [vmem:[#allocation2 + $0x790] sm:$0xff] %vm49_vm3, %v3329_v1  ;;  %v3327_v7 = vmax.f32 %v3071_v2, 0.0  ;;  %v3074_v8 = vadd.f32 %v16395_v46, %v2811_v3  ;;  %v2809_v9 = vmul.f32 %v16387_v35, %v2501_v4  ;;  %v5268_v41 = vld [vmem:[#allocation3 + $0x2f2] sm:$0xff] }
 0x2b5   :  { %v13847_v11 = vpop.f32.mrf.mxu0 }
 0x2b6   :  { %3583 = vst.msk [vmem:[#allocation2 + $0x780] sm:$0xff] %vm49_vm3, %v3327_v7  ;;  %v3330_v13 = vmax.f32 %v3074_v8, 0.0  ;;  %v3072_v14 = vadd.f32 %v16395_v46, %v2809_v9  ;;  %v2814_v15 = vmul.f32 %v16387_v35, %v13847_v11  ;;  %v5171_v16 = vld [vmem:[#allocation3 + $0x2e9] sm:$0xff] }
 0x2b7   :  { %v3837_v19 = vld [vmem:[#allocation2 + $0x770] ss:$2 sm:$0xff]  ;;  %v4093_v20 = vld [vmem:[#allocation2 + $0x771] ss:$2 sm:$0xff]  ;;  %v2514_v22 = vpop.f32.mrf.mxu0  ;;  %v16559_v58 = vpack.c.bf16 %v5172_v17, %v5171_v16 }
 0x2b8   :  { %v4229_v23 = vmax.f32 %v3837_v19, %v4093_v20  ;;  %3586 = vst.msk [vmem:[#allocation2 + $0x798] sm:$0xff] %vm49_vm3, %v3330_v13  ;;  %v3328_v24 = vmax.f32 %v3072_v14, 0.0  ;;  %v3077_v25 = vadd.f32 %v16395_v46, %v2814_v15  ;;  %v2812_v26 = vmul.f32 %v16387_v35, %v2514_v22  ;;  %v5267_v28 = vld [vmem:[#allocation3 + $0x2ea] sm:$0xff]  ;;  %v5063_v22 = vld [vmem:[#allocation3 + $0x258] sm:$0xff] }
 0x2b9   :  { %v3835_v30 = vld [vmem:[#allocation2 + $0x760] ss:$2 sm:$0xff]  ;;  %v4091_v31 = vld [vmem:[#allocation2 + $0x761] ss:$2 sm:$0xff]  ;;  %5395 = vrot.lane.b32.xlu0 %v16559_v58, %s14710_s1  ;;  %v13848_v32 = vpop.f32.mrf.mxu0  ;;  %v16569_v59 = vpack.c.bf16 %v5268_v41, %v5267_v28 }
 0x2ba   :  { %v4297_v60 = vmax.f32 %v4227_v18, %v4229_v23  ;;  %v4228_v37 = vmax.f32 %v3835_v30, %v4091_v31  ;;  %3584 = vst.msk [vmem:[#allocation2 + $0x788] sm:$0xff] %vm49_vm3, %v3328_v24  ;;  %v3333_v38 = vmax.f32 %v3077_v25, 0.0  ;;  %v3075_v39 = vadd.f32 %v16395_v46, %v2812_v26  ;;  %v5382_v40 = vpop.permute.xlu1 %5381  ;;  %v5064_v23 = vld [vmem:[#allocation3 + $0x260] sm:$0xff] }
 0x2bb   :  { %v2815_v42 = vmul.f32 %v16387_v35, %v13848_v32  ;;  %v2517_v43 = vpop.f32.mrf.mxu0  ;;  %v5564_v52 = vsel %vm49_vm3, %v5104_v47, %v5382_v40 }
 0x2bc   :  { %4362 = vst.msk [vmem:[#allocation3 + $0x309] sm:$0xff] %vm49_vm3, %v4297_v60  ;;  %v4296_v44 = vmax.f32 %v4226_v29, %v4228_v37  ;;  %3589 = vst.msk [vmem:[#allocation2 + $0x7b0] sm:$0xff] %vm49_vm3, %v3333_v38  ;;  %v3331_v45 = vmax.f32 %v3075_v39, 0.0  ;;  %v2813_v48 = vmul.f32 %v16387_v35, %v2517_v43 }
 0x2bd   :  { %v3078_v49 = vadd.f32 %v16395_v46, %v2815_v42  ;;  %5491 = vrot.lane.b32.xlu0 %v16569_v59, %s14709_s19  ;;  %v13851_v50 = vpop.f32.mrf.mxu0 }
 0x2be   :  { %4361 = vst.msk [vmem:[#allocation3 + $0x301] sm:$0xff] %vm49_vm3, %v4296_v44  ;;  %3587 = vst.msk [vmem:[#allocation2 + $0x7a0] sm:$0xff] %vm49_vm3, %v3331_v45  ;;  %v3076_v53 = vadd.f32 %v16395_v46, %v2813_v48  ;;  %v2818_v54 = vmul.f32 %v16387_v35, %v13851_v50  ;;  %v5478_v55 = vpop.permute.xlu1 %5477  ;;  %v5105_v45 = vpack.c.bf16 %v5064_v23, %v5063_v22 }
 0x2bf   :  { %v3334_v56 = vmax.f32 %v3078_v49, 0.0  ;;  %v5638_v57 = vsel %vm159_vm5, %v5564_v52, %v5478_v55  ;;  %v2530_v21 = vpop.f32.mrf.mxu0  ;;  %v3841_v5 = vld [vmem:[#allocation2 + $0x790] ss:$2 sm:$0xff]  ;;  %v4097_v9 = vld [vmem:[#allocation2 + $0x791] ss:$2 sm:$0xff] }
 0x2c0   :  { %v3332_v61 = vmax.f32 %v3076_v53, 0.0  ;;  %v3081_v62 = vadd.f32 %v16395_v46, %v2818_v54  ;;  %v2816_v63 = vmul.f32 %v16387_v35, %v2530_v21  ;;  %13910 = vmatmul.mubr.msk.bf16.gmra.mxu1 %vm5708_vm6, %v5638_v57  ;;  %v4231_v30 = vmax.f32 %v3841_v5, %v4097_v9  ;;  %v14232_v57 = vld [vmem:[%s19439_s4] sm:$0xff]   ;;  %v5066_v9 = vld [vmem:[#allocation3 + $0x278] sm:$0xff] }
 0x2c1   :  { %3590 = vst.msk [vmem:[#allocation2 + $0x7b8] sm:$0xff] %vm49_vm3, %v3334_v56  ;;  %v13852_v0 = vpop.f32.mrf.mxu0  ;;  %v3839_v13 = vld [vmem:[#allocation2 + $0x780] ss:$2 sm:$0xff]  ;;  %v4095_v14 = vld [vmem:[#allocation2 + $0x781] ss:$2 sm:$0xff]  ;;  %13943 = vmatprep.subr.bf16.mxu1 %v14232_v57 }
 0x2c2   :  { %3588 = vst.msk [vmem:[#allocation2 + $0x7a8] sm:$0xff] %vm49_vm3, %v3332_v61  ;;  %v3337_v1 = vmax.f32 %v3081_v62, 0.0  ;;  %v3079_v2 = vadd.f32 %v16395_v46, %v2816_v63  ;;  %v2819_v3 = vmul.f32 %v16387_v35, %v13852_v0  ;;  %v4230_v31 = vmax.f32 %v3839_v13, %v4095_v14  ;;  %13944 = vmatpush3.bf16.msra.mxu1 %v14232_v57  ;;  %v4463_v5 = vld [vmem:[#allocation3 + $0x1] sm:$0xff] }
 0x2c3   :  { %v2533_v4 = vpop.f32.mrf.mxu0  ;;  %v5174_v12 = vld [vmem:[#allocation3 + $0x309] sm:$0xff] }
 0x2c4   :  { %3593 = vst.msk [vmem:[#allocation2 + $0x7d0] sm:$0xff] %vm49_vm3, %v3337_v1  ;;  %v3335_v6 = vmax.f32 %v3079_v2, 0.0  ;;  %v3082_v7 = vadd.f32 %v16395_v46, %v2819_v3  ;;  %v2817_v8 = vmul.f32 %v16387_v35, %v2533_v4  ;;  %v5270_v29 = vld [vmem:[#allocation3 + $0x30a] sm:$0xff] }
 0x2c5   :  { %v13855_v10 = vpop.f32.mrf.mxu0  ;;  %v5173_v11 = vld [vmem:[#allocation3 + $0x301] sm:$0xff] }
 0x2c6   :  { %3591 = vst.msk [vmem:[#allocation2 + $0x7c0] sm:$0xff] %vm49_vm3, %v3335_v6  ;;  %v3338_v15 = vmax.f32 %v3082_v7, 0.0  ;;  %v3080_v16 = vadd.f32 %v16395_v46, %v2817_v8  ;;  %v2822_v17 = vmul.f32 %v16387_v35, %v13855_v10  ;;  %v16599_v18 = vpack.c.bf16 %v5174_v12, %v5173_v11  ;;  %v5269_v19 = vld [vmem:[#allocation3 + $0x302] sm:$0xff]  ;;  %v5065_v8 = vld [vmem:[#allocation3 + $0x270] sm:$0xff] }
 0x2c7   :  { %v2546_v20 = vpop.f32.mrf.mxu0  ;;  %v16606_v38 = vpack.c.bf16 %v5270_v29, %v5269_v19  ;;  %v4464_v10 = vld [vmem:[#allocation3 + $0x9] sm:$0xff]  ;;  %v5106_v22 = vpack.c.bf16 %v5066_v9, %v5065_v8 }
 0x2c8   :  { %v3845_v24 = vld [vmem:[#allocation2 + $0x7b0] ss:$2 sm:$0xff]  ;;  %v4101_v25 = vld [vmem:[#allocation2 + $0x7b1] ss:$2 sm:$0xff]  ;;  %3594 = vst.msk [vmem:[#allocation2 + $0x7d8] sm:$0xff] %vm49_vm3, %v3338_v15  ;;  %v3336_v26 = vmax.f32 %v3080_v16, 0.0  ;;  %v3085_v27 = vadd.f32 %v16395_v46, %v2822_v17  ;;  %v2820_v28 = vmul.f32 %v16387_v35, %v2546_v20  ;;  %5397 = vrot.lane.b32.xlu1 %v16599_v18, %s14710_s1  ;;  %v4527_v23 = vpack.c.bf16 %v4464_v10, %v4463_v5 }
 0x2c9   :  { %v4233_v32 = vmax.f32 %v3845_v24, %v4101_v25  ;;  %v3843_v34 = vld [vmem:[#allocation2 + $0x7a0] ss:$2 sm:$0xff]  ;;  %v4099_v60 = vld [vmem:[#allocation2 + $0x7a1] ss:$2 sm:$0xff]  ;;  %v13856_v37 = vpop.f32.mrf.mxu0  ;;  %v4470_v5 = vld [vmem:[#allocation3 + $0x51] sm:$0xff] }
 0x2ca   :  { %v4232_v39 = vmax.f32 %v3843_v34, %v4099_v60  ;;  %3592 = vst.msk [vmem:[#allocation2 + $0x7c8] sm:$0xff] %vm49_vm3, %v3336_v26  ;;  %v3341_v40 = vmax.f32 %v3085_v27, 0.0  ;;  %v3083_v41 = vadd.f32 %v16395_v46, %v2820_v28  ;;  %v2823_v42 = vmul.f32 %v16387_v35, %v13856_v37  ;;  %v5384_v43 = vpop.permute.xlu0 %5383  ;;  %v4559_v24 = vld [vmem:[#allocation3 + $0x2] sm:$0xff]  ;;  %v4560_v25 = vld [vmem:[#allocation3 + $0xa] sm:$0xff]  ;;  %v4468_v34 = vld [vmem:[#allocation3 + $0x39] sm:$0xff] }
 0x2cb   :  { %v4299_v44 = vmax.f32 %v4231_v30, %v4233_v32  ;;  %v2549_v47 = vpop.f32.mrf.mxu0  ;;  %v5567_v53 = vsel %vm49_vm3, %v5105_v45, %v5384_v43  ;;  %v4623_v29 = vpack.c.bf16 %v4560_v25, %v4559_v24  ;;  %v4467_v30 = vld [vmem:[#allocation3 + $0x31] sm:$0xff]  ;;  %v5067_v43 = vld [vmem:[#allocation3 + $0x288] sm:$0xff] }
 0x2cc   :  { %v4298_v48 = vmax.f32 %v4230_v31, %v4232_v39  ;;  %3597 = vst.msk [vmem:[#allocation2 + $0x7f0] sm:$0xff] %vm49_vm3, %v3341_v40  ;;  %v3339_v49 = vmax.f32 %v3083_v41, 0.0  ;;  %v3086_v50 = vadd.f32 %v16395_v46, %v2823_v42  ;;  %v2821_v51 = vmul.f32 %v16387_v35, %v2549_v47  ;;  %5493 = vrot.lane.b32.xlu1 %v16606_v38, %s14709_s19  ;;  %v4563_v40 = vld [vmem:[#allocation3 + $0x32] sm:$0xff]  ;;  %v4564_v41 = vld [vmem:[#allocation3 + $0x3a] sm:$0xff]  ;;  %v16651_v42 = vld [vmem:[%s19439_s4 + $0x88] sm:$0xff]  }
 0x2cd   :  { %4364 = vst.msk [vmem:[#allocation3 + $0x321] sm:$0xff] %vm49_vm3, %v4299_v44  ;;  %v16643_v37 = vpack.c.bf16 %v4468_v34, %v4467_v30  ;;  %v5068_v44 = vld [vmem:[#allocation3 + $0x290] sm:$0xff]  ;;  %14009 = vmatprep.subr.bf16.mxu1 %v16651_v42  ;;  %v4474_v24 = vld [vmem:[#allocation3 + $0x81] sm:$0xff] }
 0x2ce   :  { %4363 = vst.msk [vmem:[#allocation3 + $0x319] sm:$0xff] %vm49_vm3, %v4298_v48  ;;  %3595 = vst.msk [vmem:[#allocation2 + $0x7e0] sm:$0xff] %vm49_vm3, %v3339_v49  ;;  %v3342_v52 = vmax.f32 %v3086_v50, 0.0  ;;  %v3084_v54 = vadd.f32 %v16395_v46, %v2821_v51  ;;  %v5480_v55 = vpop.permute.xlu0 %5479  ;;  %v16653_v49 = vpack.c.bf16 %v4564_v41, %v4563_v40  ;;  %v4465_v50 = vld [vmem:[#allocation3 + $0x19] sm:$0xff]  ;;  %v5107_v51 = vpack.c.bf16 %v5068_v44, %v5067_v43  ;;  %v4565_v9 = vld [vmem:[#allocation3 + $0x4a] sm:$0xff] }
 0x2cf   :  { %v5640_v56 = vsel %vm159_vm5, %v5567_v53, %v5480_v55  ;;  %v3849_v21 = vld [vmem:[#allocation2 + $0x7d0] ss:$2 sm:$0xff]  ;;  %v4105_v61 = vld [vmem:[#allocation2 + $0x7d1] ss:$2 sm:$0xff]  ;;  %v4466_v53 = vld [vmem:[#allocation3 + $0x21] sm:$0xff] }
 0x2d0   :  { %3598 = vst.msk [vmem:[#allocation2 + $0x7f8] sm:$0xff] %vm49_vm3, %v3342_v52  ;;  %v3340_v35 = vmax.f32 %v3084_v54, 0.0  ;;  %13913 = vmatprep.mubr.msk.bf16.mxu1 %vm5708_vm6, %v5640_v56  ;;  %v4235_v6 = vmax.f32 %v3849_v21, %v4105_v61  ;;  %v4471_v52 = vld [vmem:[#allocation3 + $0x61] sm:$0xff]  ;;  %v4528_v56 = vpack.c.bf16 %v4466_v53, %v4465_v50  ;;  %v4571_v10 = vld [vmem:[#allocation3 + $0x92] sm:$0xff]  ;;  %v4477_v41 = vld [vmem:[#allocation3 + $0xa9] sm:$0xff] }
 0x2d1   :  { %v3847_v63 = vld [vmem:[#allocation2 + $0x7c0] ss:$2 sm:$0xff]  ;;  %v4103_v0 = vld [vmem:[#allocation2 + $0x7c1] ss:$2 sm:$0xff]  ;;  %v4483_v43 = vld [vmem:[#allocation3 + $0xf1] sm:$0xff] }
 0x2d2   :  { %3596 = vst.msk [vmem:[#allocation2 + $0x7e8] sm:$0xff] %vm49_vm3, %v3340_v35  ;;  %v4234_v14 = vmax.f32 %v3847_v63, %v4103_v0  ;;  %v4472_v35 = vld [vmem:[#allocation3 + $0x69] sm:$0xff]  ;;  %v4561_v61 = vld [vmem:[#allocation3 + $0x1a] sm:$0xff]  ;;  %v4478_v44 = vld [vmem:[#allocation3 + $0xb1] sm:$0xff] }
 0x2d3   :  { %v16661_v21 = vpack.c.bf16 %v4472_v35, %v4471_v52  ;;  %v4568_v0 = vld [vmem:[#allocation3 + $0x6a] sm:$0xff]  ;;  %v4570_v34 = vld [vmem:[#allocation3 + $0x82] sm:$0xff]  ;;  %v5071_v52 = vld [vmem:[#allocation3 + $0x2b8] sm:$0xff] }
 0x2d4   :  { %v5176_v46 = vld [vmem:[#allocation3 + $0x321] sm:$0xff]  ;;  %v4573_v50 = vld [vmem:[#allocation3 + $0xaa] sm:$0xff] }
 0x2d5   :  { %v5175_v62 = vld [vmem:[#allocation3 + $0x319] sm:$0xff]  ;;  %v5272_v13 = vld [vmem:[#allocation3 + $0x322] sm:$0xff] }
 0x2d6   :  { %v16628_v1 = vpack.c.bf16 %v5176_v46, %v5175_v62  ;;  %v5271_v4 = vld [vmem:[#allocation3 + $0x31a] sm:$0xff]  ;;  %v4567_v62 = vld [vmem:[#allocation3 + $0x62] sm:$0xff] }
 0x2d7   :  { %v3853_v2 = vld [vmem:[#allocation2 + $0x7f0] ss:$2 sm:$0xff]  ;;  %v4109_v3 = vld [vmem:[#allocation2 + $0x7f1] ss:$2 sm:$0xff]  ;;  %v16632_v19 = vpack.c.bf16 %v5272_v13, %v5271_v4  ;;  %v4562_v46 = vld [vmem:[#allocation3 + $0x22] sm:$0xff] }
 0x2d8   :  { %v4237_v7 = vmax.f32 %v3853_v2, %v4109_v3  ;;  %5399 = vrot.lane.b32.xlu0 %v16628_v1, %s14710_s1  ;;  %v4624_v63 = vpack.c.bf16 %v4562_v46, %v4561_v61  ;;  %v16667_v2 = vpack.c.bf16 %v4568_v0, %v4567_v62  ;;  %v4469_v3 = vld [vmem:[#allocation3 + $0x49] sm:$0xff]  ;;  %v4475_v4 = vld [vmem:[#allocation3 + $0x91] sm:$0xff]  ;;  %v5072_v53 = vld [vmem:[#allocation3 + $0x2c0] sm:$0xff] }
 0x2d9   :  { %v3851_v11 = vld [vmem:[#allocation2 + $0x7e0] ss:$2 sm:$0xff]  ;;  %v4107_v12 = vld [vmem:[#allocation2 + $0x7e1] ss:$2 sm:$0xff]  ;;  %v4566_v13 = vld [vmem:[#allocation3 + $0x52] sm:$0xff]  ;;  %v5109_v62 = vpack.c.bf16 %v5072_v53, %v5071_v52 }
 0x2da   :  { %v4301_v15 = vmax.f32 %v4235_v6, %v4237_v7  ;;  %v4236_v16 = vmax.f32 %v3851_v11, %v4107_v12  ;;  %v5386_v17 = vpop.permute.xlu1 %5385  ;;  %v16672_v6 = vpack.c.bf16 %v4470_v5, %v4469_v3  ;;  %v4476_v7 = vld [vmem:[#allocation3 + $0x99] sm:$0xff]  ;;  %v5070_v12 = vld [vmem:[#allocation3 + $0x2a8] sm:$0xff] }
 0x2db   :  { %v5570_v26 = vsel %vm49_vm3, %v5106_v22, %v5386_v17  ;;  %v16674_v8 = vpack.c.bf16 %v4476_v7, %v4475_v4  ;;  %v5069_v11 = vld [vmem:[#allocation3 + $0x2a0] sm:$0xff]  ;;  %v4488_v5 = vld [vmem:[#allocation3 + $0x129] sm:$0xff] }
 0x2dc   :  { %4366 = vst.msk [vmem:[#allocation3 + $0x339] sm:$0xff] %vm49_vm3, %v4301_v15  ;;  %v4300_v20 = vmax.f32 %v4234_v14, %v4236_v16  ;;  %5495 = vrot.lane.b32.xlu0 %v16632_v19, %s14709_s19  ;;  %v16680_v15 = vpack.c.bf16 %v4566_v13, %v4565_v9  ;;  %v4572_v16 = vld [vmem:[#allocation3 + $0x9a] sm:$0xff]  ;;  %v5108_v22 = vpack.c.bf16 %v5070_v12, %v5069_v11  ;;  %v4583_v11 = vld [vmem:[#allocation3 + $0x122] sm:$0xff] }
 0x2dd   :  { %v16682_v17 = vpack.c.bf16 %v4572_v16, %v4571_v10  ;;  %v4580_v35 = vld [vmem:[#allocation3 + $0xfa] sm:$0xff]  ;;  %v4578_v12 = vld [vmem:[#allocation3 + $0xe2] sm:$0xff] }
 0x2de   :  { %4365 = vst.msk [vmem:[#allocation3 + $0x331] sm:$0xff] %vm49_vm3, %v4300_v20  ;;  %v5482_v27 = vpop.permute.xlu1 %5481  ;;  %v4473_v20 = vld [vmem:[#allocation3 + $0x79] sm:$0xff]  ;;  %v4487_v46 = vld [vmem:[#allocation3 + $0x121] sm:$0xff] }
 0x2df   :  { %v5642_v28 = vsel %vm159_vm5, %v5570_v26, %v5482_v27  ;;  %v16689_v27 = vpack.c.bf16 %v4474_v24, %v4473_v20  ;;  %v4481_v61 = vld [vmem:[#allocation3 + $0xd9] sm:$0xff]  ;;  %v16727_v9 = vpack.c.bf16 %v4488_v5, %v4487_v46  ;;  %v4485_v20 = vld [vmem:[#allocation3 + $0x109] sm:$0xff]  ;;  %v4490_v53 = vld [vmem:[#allocation3 + $0x141] sm:$0xff] }
 0x2e0   :  { %13914 = vmatmul.mubr.msk.bf16.gmra.mxu1 %vm5708_vm6, %v5642_v28  ;;  %4687 = vrot.lane.b32.xlu0 %v4527_v23, %s14710_s1  ;;  %v4479_v23 = vld [vmem:[#allocation3 + $0xc1] sm:$0xff]  ;;  %v4480_v28 = vld [vmem:[#allocation3 + $0xc9] sm:$0xff] }
 0x2e1   :  { %v16692_v30 = vpack.c.bf16 %v4480_v28, %v4479_v23  ;;  %v4577_v10 = vld [vmem:[#allocation3 + $0xda] sm:$0xff]  ;;  %v4486_v23 = vld [vmem:[#allocation3 + $0x111] sm:$0xff] }
 0x2e2   :  { %v16734_v13 = vpack.c.bf16 %v4578_v12, %v4577_v10  ;;  %v16742_v24 = vpack.c.bf16 %v4486_v23, %v4485_v20  ;;  %v4581_v28 = vld [vmem:[#allocation3 + $0x10a] sm:$0xff]  ;;  %v4592_v46 = vld [vmem:[#allocation3 + $0x1ba] sm:$0xff] }
 0x2e3   :  { %v5178_v32 = vld [vmem:[#allocation3 + $0x339] sm:$0xff]  ;;  %v4493_v10 = vld [vmem:[#allocation3 + $0x169] sm:$0xff]  ;;  %v4494_v12 = vld [vmem:[#allocation3 + $0x171] sm:$0xff] }
 0x2e4   :  { %4783 = vrot.lane.b32.xlu0 %v4623_v29, %s14709_s19  ;;  %v5274_v45 = vld [vmem:[#allocation3 + $0x33a] sm:$0xff]  ;;  %v4500_v20 = vld [vmem:[#allocation3 + $0x1e9] sm:$0xff] }
 0x2e5   :  { %v5177_v31 = vld [vmem:[#allocation3 + $0x331] sm:$0xff] }
 0x2e6   :  { %v5210_v60 = vpack.c.bf16 %v5178_v32, %v5177_v31  ;;  %v5273_v39 = vld [vmem:[#allocation3 + $0x332] sm:$0xff]  ;;  %v4569_v31 = vld [vmem:[#allocation3 + $0x7a] sm:$0xff]  ;;  %v4575_v32 = vld [vmem:[#allocation3 + $0xc2] sm:$0xff] }
 0x2e7   :  { %v5306_v48 = vpack.c.bf16 %v5274_v45, %v5273_v39  ;;  %v4576_v39 = vld [vmem:[#allocation3 + $0xca] sm:$0xff]  ;;  %v16707_v45 = vpack.c.bf16 %v4478_v44, %v4477_v41 }
 0x2e8   :  { %5401 = vrot.lane.b32.xlu1 %v5210_v60, %s14710_s1  ;;  %4691 = vrot.lane.b32.xlu0 %v16643_v37, %s14710_s1  ;;  %v16699_v60 = vpack.c.bf16 %v4570_v34, %v4569_v31  ;;  %v16701_v40 = vpack.c.bf16 %v4576_v39, %v4575_v32  ;;  %v5073_v31 = vld [vmem:[#allocation3 + $0x2d0] sm:$0xff]  ;;  %v5074_v32 = vld [vmem:[#allocation3 + $0x2d8] sm:$0xff] }
 0x2e9   :  { %v4582_v34 = vld [vmem:[#allocation3 + $0x112] sm:$0xff]  ;;  %v5110_v52 = vpack.c.bf16 %v5074_v32, %v5073_v31  ;;  %v4589_v23 = vld [vmem:[#allocation3 + $0x16a] sm:$0xff] }
 0x2ea   :  { %v5388_v47 = vpop.permute.xlu0 %5387  ;;  %v16750_v41 = vpack.c.bf16 %v4582_v34, %v4581_v28  ;;  %v4495_v44 = vld [vmem:[#allocation3 + $0x1b1] sm:$0xff] }
 0x2eb   :  { %v5573_v54 = vsel %vm49_vm3, %v5107_v51, %v5388_v47  ;;  %v4484_v47 = vld [vmem:[#allocation3 + $0xf9] sm:$0xff]  ;;  %v5076_v31 = vld [vmem:[#allocation3 + $0x2f0] sm:$0xff] }
 0x2ec   :  { %5497 = vrot.lane.b32.xlu1 %v5306_v48, %s14709_s19  ;;  %4787 = vrot.lane.b32.xlu0 %v16653_v49, %s14709_s19  ;;  %v16709_v48 = vpack.c.bf16 %v4484_v47, %v4483_v43  ;;  %v4579_v51 = vld [vmem:[#allocation3 + $0xf2] sm:$0xff]  ;;  %v4588_v43 = vld [vmem:[#allocation3 + $0x15a] sm:$0xff]  ;;  %v4596_v34 = vld [vmem:[#allocation3 + $0x1ea] sm:$0xff] }
 0x2ed   :  { %v4496_v47 = vld [vmem:[#allocation3 + $0x1b9] sm:$0xff] }
 0x2ee   :  { %v5484_v55 = vpop.permute.xlu0 %5483  ;;  %v4590_v28 = vld [vmem:[#allocation3 + $0x172] sm:$0xff] }
 0x2ef   :  { %v5644_v57 = vsel %vm159_vm5, %v5573_v54, %v5484_v55  ;;  %v4574_v54 = vld [vmem:[#allocation3 + $0xb2] sm:$0xff]  ;;  %v16779_v32 = vpack.c.bf16 %v4590_v28, %v4589_v23  ;;  %v4502_v23 = vld [vmem:[#allocation3 + $0x201] sm:$0xff]  ;;  %v4508_v28 = vld [vmem:[#allocation3 + $0x249] sm:$0xff] }
 0x2f0   :  { %13917 = vmatprep.mubr.msk.bf16.mxu1 %vm5708_vm6, %v5644_v57  ;;  %4689 = vrot.lane.b32.xlu1 %v4528_v56, %s14710_s1  ;;  %v16715_v56 = vpack.c.bf16 %v4574_v54, %v4573_v50  ;;  %v16717_v57 = vpack.c.bf16 %v4580_v35, %v4579_v51  ;;  %v4489_v51 = vld [vmem:[#allocation3 + $0x139] sm:$0xff]  ;;  %v4543_v54 = vpack.c.bf16 %v4496_v47, %v4495_v44  ;;  %v4497_v44 = vld [vmem:[#allocation3 + $0x1c9] sm:$0xff]  ;;  %v4503_v47 = vld [vmem:[#allocation3 + $0x211] sm:$0xff] }
 0x2f1   :  { %4695 = vrot.lane.b32.xlu0 %v16661_v21, %s14710_s1 }
 0x2f4   :  { %4785 = vrot.lane.b32.xlu1 %v4624_v63, %s14709_s19  ;;  %v4482_v63 = vld [vmem:[#allocation3 + $0xe1] sm:$0xff] }
 0x2f5   :  { %4791 = vrot.lane.b32.xlu0 %v16667_v2, %s14709_s19  ;;  %v16724_v4 = vpack.c.bf16 %v4482_v63, %v4481_v61  ;;  %v16759_v61 = vpack.c.bf16 %v4490_v53, %v4489_v51 }
 0x2f8   :  { %4693 = vrot.lane.b32.xlu1 %v16672_v6, %s14710_s1 }
 0x2f9   :  { %4699 = vrot.lane.b32.xlu0 %v16674_v8, %s14710_s1 }
 0x2fa   :  { %v5390_v14 = vpop.permute.xlu1 %5389 }
 0x2fb   :  { %v5576_v25 = vsel %vm49_vm3, %v5108_v22, %v5390_v14  ;;  %v4584_v14 = vld [vmem:[#allocation3 + $0x12a] sm:$0xff] }
 0x2fc   :  { %4789 = vrot.lane.b32.xlu1 %v16680_v15, %s14709_s19  ;;  %v16736_v16 = vpack.c.bf16 %v4584_v14, %v4583_v11  ;;  %v4491_v22 = vld [vmem:[#allocation3 + $0x151] sm:$0xff]  ;;  %v4499_v11 = vld [vmem:[#allocation3 + $0x1e1] sm:$0xff]  ;;  %v16771_v14 = vpack.c.bf16 %v4494_v12, %v4493_v10  ;;  %v4501_v12 = vld [vmem:[#allocation3 + $0x1f9] sm:$0xff] }
 0x2fd   :  { %4795 = vrot.lane.b32.xlu0 %v16682_v17, %s14709_s19  ;;  %v4600_v10 = vld [vmem:[#allocation3 + $0x21a] sm:$0xff] }
 0x2fe   :  { %v5486_v26 = vpop.permute.xlu1 %5485 }
 0x2ff   :  { %v5646_v29 = vsel %vm159_vm5, %v5576_v25, %v5486_v26  ;;  %v4492_v25 = vld [vmem:[#allocation3 + $0x159] sm:$0xff] }
 0x300   :  { %13918 = vmatmul.mubr.msk.bf16.gmra.mxu1 %vm5708_vm6, %v5646_v29  ;;  %4697 = vrot.lane.b32.xlu1 %v16689_v27, %s14710_s1  ;;  %v16744_v26 = vpack.c.bf16 %v4492_v25, %v4491_v22  ;;  %v4587_v29 = vld [vmem:[#allocation3 + $0x152] sm:$0xff]  ;;  %v16773_v22 = vpack.c.bf16 %v4500_v20, %v4499_v11  ;;  %v4595_v25 = vld [vmem:[#allocation3 + $0x1e2] sm:$0xff] }
 0x301   :  { %4703 = vrot.lane.b32.xlu0 %v16692_v30, %s14710_s1  ;;  %v16752_v50 = vpack.c.bf16 %v4588_v43, %v4587_v29  ;;  %v5075_v29 = vld [vmem:[#allocation3 + $0x2e8] sm:$0xff]  ;;  %v16781_v43 = vpack.c.bf16 %v4596_v34, %v4595_v25  ;;  %v16800_v25 = vpack.c.bf16 %v4502_v23, %v4501_v12 }
 0x302   :  { %v5111_v51 = vpack.c.bf16 %v5076_v31, %v5075_v29  ;;  %v4507_v20 = vld [vmem:[#allocation3 + $0x241] sm:$0xff]  ;;  %v4601_v23 = vld [vmem:[#allocation3 + $0x22a] sm:$0xff] }
 0x303   :  { %v16802_v29 = vpack.c.bf16 %v4508_v28, %v4507_v20  ;;  %v4597_v31 = vld [vmem:[#allocation3 + $0x1fa] sm:$0xff]  ;;  %v4603_v34 = vld [vmem:[#allocation3 + $0x242] sm:$0xff]  ;;  %v4607_v28 = vld [vmem:[#allocation3 + $0x272] sm:$0xff] }
 0x304   :  { %4793 = vrot.lane.b32.xlu1 %v16699_v60, %s14709_s19 }
 0x305   :  { %4799 = vrot.lane.b32.xlu0 %v16701_v40, %s14709_s19 }
 0x308   :  { %4701 = vrot.lane.b32.xlu1 %v16707_v45, %s14710_s1 }
 0x309   :  { %4707 = vrot.lane.b32.xlu0 %v16709_v48, %s14710_s1 }
 0x30a   :  { %v5392_v55 = vpop.permute.xlu0 %5391 }
 0x30b   :  { %v5579_v0 = vsel %vm49_vm3, %v5109_v62, %v5392_v55  ;;  %v4591_v62 = vld [vmem:[#allocation3 + $0x1b2] sm:$0xff] }
 0x30c   :  { %4797 = vrot.lane.b32.xlu1 %v16715_v56, %s14709_s19  ;;  %v4639_v5 = vpack.c.bf16 %v4592_v46, %v4591_v62  ;;  %v4593_v46 = vld [vmem:[#allocation3 + $0x1ca] sm:$0xff] }
 0x30d   :  { %4803 = vrot.lane.b32.xlu0 %v16717_v57, %s14709_s19 }
 0x30e   :  { %v5488_v3 = vpop.permute.xlu0 %5487 }
 0x30f   :  { %v5648_v7 = vsel %vm159_vm5, %v5579_v0, %v5488_v3  ;;  %v4585_v0 = vld [vmem:[#allocation3 + $0x13a] sm:$0xff]  ;;  %v4586_v3 = vld [vmem:[#allocation3 + $0x142] sm:$0xff] }
 0x310   :  { %13921 = vmatprep.mubr.msk.bf16.mxu1 %vm5708_vm6, %v5648_v7  ;;  %4705 = vrot.lane.b32.xlu1 %v16724_v4, %s14710_s1  ;;  %v16766_v7 = vpack.c.bf16 %v4586_v3, %v4585_v0  ;;  %v4599_v0 = vld [vmem:[#allocation3 + $0x212] sm:$0xff] }
 0x311   :  { %4711 = vrot.lane.b32.xlu0 %v16727_v9, %s14710_s1  ;;  %v4594_v3 = vld [vmem:[#allocation3 + $0x1d2] sm:$0xff]  ;;  %v16795_v11 = vpack.c.bf16 %v4600_v10, %v4599_v0 }
 0x312   :  { %v4512_v10 = vld [vmem:[#allocation3 + $0x279] sm:$0xff] }
 0x314   :  { %4801 = vrot.lane.b32.xlu1 %v16734_v13, %s14709_s19 }
 0x315   :  { %4807 = vrot.lane.b32.xlu0 %v16736_v16, %s14709_s19 }
 0x318   :  { %4709 = vrot.lane.b32.xlu1 %v16742_v24, %s14710_s1 }
 0x319   :  { %4715 = vrot.lane.b32.xlu0 %v16744_v26, %s14710_s1 }
 0x31a   :  { %v5394_v39 = vpop.permute.xlu1 %5393 }
 0x31b   :  { %v5582_v55 = vsel %vm49_vm3, %v5110_v52, %v5394_v39  ;;  %v4498_v52 = vld [vmem:[#allocation3 + $0x1d1] sm:$0xff] }
 0x31c   :  { %4805 = vrot.lane.b32.xlu1 %v16750_v41, %s14709_s19  ;;  %v4544_v53 = vpack.c.bf16 %v4498_v52, %v4497_v44  ;;  %v5078_v44 = vld [vmem:[#allocation3 + $0x308] sm:$0xff] }
 0x31d   :  { %4811 = vrot.lane.b32.xlu0 %v16752_v50, %s14709_s19 }
 0x31e   :  { %v5490_v35 = vpop.permute.xlu1 %5489 }
 0x31f   :  { %v5650_v63 = vsel %vm159_vm5, %v5582_v55, %v5490_v35 }
 0x320   :  { %13922 = vmatmul.mubr.msk.bf16.gmra.mxu1 %vm5708_vm6, %v5650_v63  ;;  %4713 = vrot.lane.b32.xlu1 %v16759_v61, %s14710_s1 }
 0x321   :  { %4719 = vrot.lane.b32.xlu0 %v4543_v54, %s14710_s1  ;;  %v4504_v54 = vld [vmem:[#allocation3 + $0x219] sm:$0xff] }
 0x322   :  { %v16788_v62 = vpack.c.bf16 %v4504_v54, %v4503_v47  ;;  %v4598_v47 = vld [vmem:[#allocation3 + $0x202] sm:$0xff] }
 0x323   :  { %v16808_v52 = vpack.c.bf16 %v4598_v47, %v4597_v31  ;;  %v4602_v31 = vld [vmem:[#allocation3 + $0x232] sm:$0xff] }
 0x324   :  { %4809 = vrot.lane.b32.xlu1 %v16766_v7, %s14709_s19  ;;  %v4509_v47 = vld [vmem:[#allocation3 + $0x259] sm:$0xff] }
 0x325   :  { %4815 = vrot.lane.b32.xlu0 %v4639_v5, %s14709_s19  ;;  %v4640_v5 = vpack.c.bf16 %v4594_v3, %v4593_v46  ;;  %v4511_v46 = vld [vmem:[#allocation3 + $0x271] sm:$0xff] }
 0x326   :  { %v16820_v20 = vpack.c.bf16 %v4512_v10, %v4511_v46  ;;  %v4611_v10 = vld [vmem:[#allocation3 + $0x2a2] sm:$0xff] }
 0x328   :  { %4717 = vrot.lane.b32.xlu1 %v16771_v14, %s14710_s1  ;;  %19459 = vst [vmem:[#allocation10_spill] sm:$0xff] %v16820_v20 }
 0x329   :  { %4723 = vrot.lane.b32.xlu0 %v16773_v22, %s14710_s1 }
 0x32b   :  { %v5396_v39 = vpop.permute.xlu0 %5395 }
 0x32c   :  { %4813 = vrot.lane.b32.xlu1 %v16779_v32, %s14709_s19  ;;  %v5585_v55 = vsel %vm49_vm3, %v5111_v51, %v5396_v39  ;;  %v5077_v39 = vld [vmem:[#allocation3 + $0x300] sm:$0xff] }
 0x32d   :  { %4819 = vrot.lane.b32.xlu0 %v16781_v43, %s14709_s19 }
 0x32f   :  { %v5492_v35 = vpop.permute.xlu0 %5491 }
 0x330   :  { %v5652_v63 = vsel %vm159_vm5, %v5585_v55, %v5492_v35  ;;  %4721 = vrot.lane.b32.xlu1 %v4544_v53, %s14710_s1  ;;  %v4604_v53 = vld [vmem:[#allocation3 + $0x24a] sm:$0xff]  ;;  %v5112_v35 = vpack.c.bf16 %v5078_v44, %v5077_v39  ;;  %v4608_v39 = vld [vmem:[#allocation3 + $0x27a] sm:$0xff] }
 0x331   :  { %13925 = vmatprep.mubr.msk.bf16.mxu1 %vm5708_vm6, %v5652_v63  ;;  %4727 = vrot.lane.b32.xlu0 %v16788_v62, %s14710_s1  ;;  %v16810_v54 = vpack.c.bf16 %v4604_v53, %v4603_v34  ;;  %v4505_v55 = vld [vmem:[#allocation3 + $0x229] sm:$0xff]  ;;  %v4506_v63 = vld [vmem:[#allocation3 + $0x231] sm:$0xff]  ;;  %v16827_v34 = vpack.c.bf16 %v4602_v31, %v4601_v23  ;;  %v16829_v44 = vpack.c.bf16 %v4608_v39, %v4607_v28  ;;  %v4510_v53 = vld [vmem:[#allocation3 + $0x261] sm:$0xff] }
 0x332   :  { %v16839_v46 = vpack.c.bf16 %v4510_v53, %v4509_v47  ;;  %v5080_v23 = vld [vmem:[#allocation3 + $0x320] sm:$0xff]  ;;  %v4612_v47 = vld [vmem:[#allocation3 + $0x2aa] sm:$0xff] }
 0x333   :  { %19460 = vst [vmem:[#allocation11_spill] sm:$0xff] %v16827_v34  ;;  %19461 = vst [vmem:[#allocation12_spill] sm:$0xff] %v16829_v44  ;;  %v4606_v28 = vld [vmem:[#allocation3 + $0x262] sm:$0xff]  ;;  %v4649_v53 = vpack.c.bf16 %v4612_v47, %v4611_v10  ;;  %v16856_v10 = vpop.f32.mrf.mxu1  ;;  %v4517_v47 = vld [vmem:[#allocation3 + $0x2b9] sm:$0xff] }
 0x334   :  { %4817 = vrot.lane.b32.xlu1 %v4640_v5, %s14709_s19  ;;  %v16817_v5 = vpack.c.bf16 %v4506_v63, %v4505_v55  ;;  %v19452_v55 = vmov 0   ;;  %19462 = vst [vmem:[#allocation13_spill] sm:$0xff] %v16839_v46  ;;  %v4516_v63 = vld [vmem:[#allocation3 + $0x2a9] sm:$0xff] }
 0x335   :  { %4823 = vrot.lane.b32.xlu0 %v16795_v11, %s14709_s19  ;;  %9417 = vmatprep.subr.bf16.mxu0 %v19452_v55 }
 0x338   :  { %4725 = vrot.lane.b32.xlu1 %v16800_v25, %s14710_s1 }
 0x339   :  { %4731 = vrot.lane.b32.xlu0 %v16802_v29, %s14710_s1 }
 0x33a   :  { %v5398_v51 = vpop.permute.xlu1 %5397 }
 0x33b   :  { %v5588_v0 = vsel %vm49_vm3, %v5112_v35, %v5398_v51  ;;  %v4515_v51 = vld [vmem:[#allocation3 + $0x2a1] sm:$0xff]  ;;  %v14238_v35 = vld [vmem:[%s19442_s7 + $0xf8] sm:$0xff]  }
 0x33c   :  { %4821 = vrot.lane.b32.xlu1 %v16808_v52, %s14709_s19  ;;  %9418 = vmatpush1.bf16.msra.mxu0 %v14238_v35  ;;  %v4519_v35 = vld [vmem:[#allocation3 + $0x2d1] sm:$0xff] }
 0x33d   :  { %4827 = vrot.lane.b32.xlu0 %v16810_v54, %s14709_s19  ;;  %9419 = vmatprep.subr.bf16.mxu0 %v19452_v55  ;;  %v4514_v55 = vld [vmem:[#allocation3 + $0x291] sm:$0xff] }
 0x33e   :  { %v5494_v3 = vpop.permute.xlu1 %5493 }
 0x33f   :  { %v5654_v12 = vsel %vm159_vm5, %v5588_v0, %v5494_v3  ;;  %v16841_v0 = vpack.c.bf16 %v4516_v63, %v4515_v51  ;;  %v4605_v3 = vld [vmem:[#allocation3 + $0x25a] sm:$0xff]  ;;  %v4513_v51 = vld [vmem:[#allocation3 + $0x289] sm:$0xff] }
 0x340   :  { %13926 = vmatmul.mubr.msk.bf16.gmra.mxu1 %vm5708_vm6, %v5654_v12  ;;  %4729 = vrot.lane.b32.xlu1 %v16817_v5, %s14710_s1  ;;  %v5079_v12 = vld [vmem:[#allocation3 + $0x318] sm:$0xff]  ;;  %v4646_v39 = vpack.c.bf16 %v4606_v28, %v4605_v3  ;;  %v4609_v28 = vld [vmem:[#allocation3 + $0x28a] sm:$0xff] }
 0x341   :  { %4735 = vrot.lane.b32.xlu0 %v16820_v20, %s14710_s1  ;;  %19463 = vst [vmem:[#allocation14_spill] sm:$0xff] %v16841_v0  ;;  %v5113_v63 = vpack.c.bf16 %v5080_v23, %v5079_v12  ;;  %v4610_v12 = vld [vmem:[#allocation3 + $0x292] sm:$0xff] }
 0x344   :  { %4825 = vrot.lane.b32.xlu1 %v16827_v34, %s14709_s19  ;;  %v4520_v34 = vld [vmem:[#allocation3 + $0x2d9] sm:$0xff] }
 0x345   :  { %4831 = vrot.lane.b32.xlu0 %v16829_v44, %s14709_s19  ;;  %v4552_v44 = vpack.c.bf16 %v4514_v55, %v4513_v51  ;;  %v4555_v3 = vpack.c.bf16 %v4520_v34, %v4519_v35  ;;  %v16860_v55 = vpop.f32.mrf.mxu1  ;;  %v5082_v35 = vld [vmem:[#allocation3 + $0x338] sm:$0xff] }
 0x346   :  { %19464 = vst [vmem:[#allocation15_spill] sm:$0xff] %v16860_v55 }
 0x347   :  { %v16865_v51 = vpop.f32.mrf.mxu1 }
 0x348   :  { %4733 = vrot.lane.b32.xlu1 %v16839_v46, %s14710_s1  ;;  %19465 = vst [vmem:[#allocation16_spill] sm:$0xff] %v16865_v51 }
 0x349   :  { %4739 = vrot.lane.b32.xlu0 %v16841_v0, %s14710_s1  ;;  %v16870_v55 = vpop.f32.mrf.mxu1 }
 0x34a   :  { %v5400_v31 = vpop.permute.xlu0 %5399 }
 0x34b   :  { %v5591_v46 = vsel %vm49_vm3, %v5113_v63, %v5400_v31  ;;  %v4368_v31 = vld [vmem:[#allocation3 + $0x8] sm:$0xff]  ;;  %v5081_v63 = vld [vmem:[#allocation3 + $0x330] sm:$0xff]  ;;  %v16878_v51 = vpop.f32.mrf.mxu1 }
 0x34c   :  { %4829 = vrot.lane.b32.xlu1 %v4646_v39, %s14709_s19  ;;  %v4648_v39 = vpack.c.bf16 %v4610_v12, %v4609_v28 }
 0x34d   :  { %4835 = vrot.lane.b32.xlu0 %v4649_v53, %s14709_s19  ;;  %v4367_v53 = vld [vmem:[#allocation3] sm:$0xff] }
 0x34e   :  { %v5496_v0 = vpop.permute.xlu0 %5495 }
 0x34f   :  { %v5656_v20 = vsel %vm159_vm5, %v5591_v46, %v5496_v0  ;;  %v4431_v46 = vpack.c.bf16 %v4368_v31, %v4367_v53  ;;  %v4613_v0 = vld [vmem:[#allocation3 + $0x2ba] sm:$0xff] }
 0x350   :  { %13929 = vmatprep.mubr.msk.bf16.mxu1 %vm5708_vm6, %v5656_v20  ;;  %4737 = vrot.lane.b32.xlu1 %v4552_v44, %s14710_s1  ;;  %v4518_v20 = vld [vmem:[#allocation3 + $0x2c1] sm:$0xff] }
 0x351   :  { %4743 = vrot.lane.b32.xlu0 %v4555_v3, %s14710_s1  ;;  %v4554_v44 = vpack.c.bf16 %v4518_v20, %v4517_v47  ;;  %v4614_v3 = vld [vmem:[#allocation3 + $0x2c2] sm:$0xff]  ;;  %v5114_v47 = vpack.c.bf16 %v5082_v35, %v5081_v63  ;;  %v16886_v35 = vpop.f32.mrf.mxu1 }
 0x352   :  { %v4688_v23 = vpop.permute.xlu0 %4687 }
 0x354   :  { %4833 = vrot.lane.b32.xlu1 %v4648_v39, %s14709_s19  ;;  %v4650_v39 = vpack.c.bf16 %v4614_v3, %v4613_v0  ;;  %v4372_v0 = vld [vmem:[#allocation3 + $0x38] sm:$0xff] }
 0x355   :  { %4839 = vrot.lane.b32.xlu0 %v16529_v36, %s14709_s19  ;;  %v4849_v36 = vsel %vm49_vm3, %v4431_v46, %v4688_v23  ;;  %v4369_v23 = vld [vmem:[#allocation3 + $0x18] sm:$0xff]  ;;  %v4371_v46 = vld [vmem:[#allocation3 + $0x30] sm:$0xff] }
 0x356   :  { %v4784_v34 = vpop.permute.xlu0 %4783 }
 0x357   :  { %v4944_v31 = vsel %vm159_vm5, %v4849_v36, %v4784_v34 }
 0x358   :  { %4741 = vrot.lane.b32.xlu1 %v4554_v44, %s14710_s1 }
 0x359   :  { %4747 = vrot.lane.b32.xlu0 %v16599_v18, %s14710_s1 }
 0x35a   :  { %v5402_v28 = vpop.permute.xlu1 %5401  ;;  %v4692_v12 = vpop.permute.xlu0 %4691 }
 0x35b   :  { %v5594_v18 = vsel %vm49_vm3, %v5114_v47, %v5402_v28 }
 0x35c   :  { %4837 = vrot.lane.b32.xlu1 %v4650_v39, %s14709_s19  ;;  %v14234_v39 = vld [vmem:[%s19439_s4 + $0x80] sm:$0xff]  }
 0x35d   :  { %4843 = vrot.lane.b32.xlu0 %v16606_v38, %s14709_s19  ;;  %v4370_v38 = vld [vmem:[#allocation3 + $0x20] sm:$0xff] }
 0x35e   :  { %v5498_v53 = vpop.permute.xlu1 %5497  ;;  %v4788_v20 = vpop.permute.xlu0 %4787  ;;  %v4432_v3 = vpack.c.bf16 %v4370_v38, %v4369_v23  ;;  %v4375_v23 = vld [vmem:[#allocation3 + $0x60] sm:$0xff]  ;;  %v4376_v38 = vld [vmem:[#allocation3 + $0x68] sm:$0xff] }
 0x35f   :  { %v5658_v44 = vsel %vm159_vm5, %v5594_v18, %v5498_v53  ;;  %v4374_v53 = vld [vmem:[#allocation3 + $0x50] sm:$0xff] }
 0x360   :  { %13930 = vmatmul.mubr.msk.bf16.gmra.mxu1 %vm5708_vm6, %v5658_v44  ;;  %4745 = vrot.lane.b32.xlu1 %v16559_v58, %s14710_s1  ;;  %v4433_v58 = vpack.c.bf16 %v4372_v0, %v4371_v46 }
 0x361   :  { %6772 = vrot.lane.b32.xlu0 %v16643_v37, %s14710_s1  ;;  %13945 = vmatprep.mubr.msk.bf16.mxu1 %vm5708_vm6, %v4944_v31  ;;  %v16897_v31 = vpop.f32.mrf.mxu1 }
 0x362   :  { %v4690_v34 = vpop.permute.xlu1 %4689  ;;  %v4855_v18 = vsel %vm49_vm3, %v4433_v58, %v4692_v12 }
 0x363   :  { %v4696_v63 = vpop.permute.xlu0 %4695  ;;  %v4852_v37 = vsel %vm49_vm3, %v4432_v3, %v4690_v34  ;;  %v16907_v44 = vpop.f32.mrf.mxu1 }
 0x364   :  { %4841 = vrot.lane.b32.xlu1 %v16569_v59, %s14709_s19  ;;  %v4948_v59 = vsel %vm159_vm5, %v4855_v18, %v4788_v20  ;;  %v4379_v18 = vld [vmem:[#allocation3 + $0x90] sm:$0xff] }
 0x365   :  { %6868 = vrot.lane.b32.xlu0 %v16653_v49, %s14709_s19  ;;  %v4373_v49 = vld [vmem:[#allocation3 + $0x48] sm:$0xff] }
 0x366   :  { %v4786_v28 = vpop.permute.xlu1 %4785  ;;  %v4434_v34 = vpack.c.bf16 %v4374_v53, %v4373_v49  ;;  %v14237_v49 = vld [vmem:[%s19439_s4 + $0x68] sm:$0xff]   ;;  %v19466_v53 = vmov 0  }
 0x367   :  { %v4946_v36 = vsel %vm159_vm5, %v4852_v37, %v4786_v28  ;;  %v4792_v47 = vpop.permute.xlu0 %4791 }
 0x368   :  { %4749 = vrot.lane.b32.xlu1 %v16628_v1, %s14710_s1  ;;  %13946 = vmatmul.mubr.msk.bf16.vlgmr.msra.gmra.mxu1 %vm5708_vm6, %v4946_v36  ;;  %v14235_v1 = vld [vmem:[%s19439_s4 + $0x78] sm:$0xff]  }
 0x369   :  { %6776 = vrot.lane.b32.xlu0 %v16661_v21, %s14710_s1  ;;  %14010 = vmatpush3.bf16.msra.mxu1 %v16651_v42  ;;  %v4435_v42 = vpack.c.bf16 %v4376_v38, %v4375_v23  ;;  %v16917_v21 = vpop.f32.mrf.mxu1 }
 0x36a   :  { %13949 = vmatprep.mubr.msk.bf16.mxu1 %vm5708_vm6, %v4948_v59  ;;  %v4694_v12 = vpop.permute.xlu1 %4693  ;;  %14011 = vmatprep.subr.bf16.mxu1 %v14234_v39 }
 0x36b   :  { %v4700_v20 = vpop.permute.xlu0 %4699  ;;  %v4858_v46 = vsel %vm49_vm3, %v4434_v34, %v4694_v12  ;;  %v4861_v3 = vsel %vm49_vm3, %v4435_v42, %v4696_v63  ;;  %v4377_v63 = vld [vmem:[#allocation3 + $0x78] sm:$0xff]  ;;  %v16935_v36 = vpop.f32.mrf.mxu1 }
 0x36c   :  { %4845 = vrot.lane.b32.xlu1 %v16632_v19, %s14709_s19  ;;  %v14236_v19 = vld [vmem:[%s19439_s4 + $0x70] sm:$0xff]   ;;  %v4952_v28 = vsel %vm159_vm5, %v4861_v3, %v4792_v47  ;;  %v4380_v47 = vld [vmem:[#allocation3 + $0x98] sm:$0xff] }
 0x36d   :  { %6872 = vrot.lane.b32.xlu0 %v16667_v2, %s14709_s19  ;;  %14012 = vmatpush3.bf16.msra.mxu1 %v14234_v39  ;;  %v14240_v2 = vld [vmem:[%s19442_s7 + $0xf0] sm:$0xff]   ;;  %v4378_v39 = vld [vmem:[#allocation3 + $0x80] sm:$0xff]  ;;  %v4437_v23 = vpack.c.bf16 %v4380_v47, %v4379_v18  ;;  %v16945_v38 = vpop.f32.mrf.mxu1 }
 0x36e   :  { %v4790_v0 = vpop.permute.xlu1 %4789  ;;  %14013 = vmatprep.subr.bf16.mxu1 %v14235_v1  ;;  %9420 = vmatpush1.bf16.msra.mxu0 %v14240_v2  ;;  %v4382_v3 = vld [vmem:[#allocation3 + $0xb0] sm:$0xff] }
 0x36f   :  { %v4950_v58 = vsel %vm159_vm5, %v4858_v46, %v4790_v0  ;;  %v4796_v37 = vpop.permute.xlu0 %4795  ;;  %9421 = vmatprep.subr.bf16.mxu0 %v19466_v53  ;;  %v4867_v34 = vsel %vm49_vm3, %v4437_v23, %v4700_v20  ;;  %v16953_v0 = vpop.f32.mrf.mxu1  ;;  %v4381_v20 = vld [vmem:[#allocation3 + $0xa8] sm:$0xff]  ;;  %v4388_v23 = vld [vmem:[#allocation3 + $0xf8] sm:$0xff] }
 0x370   :  { %6774 = vrot.lane.b32.xlu1 %v16672_v6, %s14710_s1  ;;  %13950 = vmatmul.mubr.msk.bf16.gmra.mxu1 %vm5708_vm6, %v4950_v58  ;;  %v4383_v58 = vld [vmem:[#allocation3 + $0xc0] sm:$0xff] }
 0x371   :  { %6780 = vrot.lane.b32.xlu0 %v16674_v8, %s14710_s1  ;;  %13953 = vmatprep.mubr.msk.bf16.mxu1 %vm5708_vm6, %v4952_v28  ;;  %v4436_v8 = vpack.c.bf16 %v4378_v39, %v4377_v63  ;;  %v16962_v63 = vpop.f32.mrf.mxu1 }
 0x372   :  { %v4698_v59 = vpop.permute.xlu1 %4697  ;;  %14014 = vmatpush3.bf16.msra.mxu1 %v14235_v1 }
 0x373   :  { %v4704_v6 = vpop.permute.xlu0 %4703  ;;  %14015 = vmatprep.subr.bf16.mxu1 %v14236_v19  ;;  %v4864_v12 = vsel %vm49_vm3, %v4436_v8, %v4698_v59  ;;  %v4387_v8 = vld [vmem:[#allocation3 + $0xf0] sm:$0xff] }
 0x374   :  { %6870 = vrot.lane.b32.xlu1 %v16680_v15, %s14709_s19  ;;  %v14239_v15 = vld [vmem:[%s19439_s4 + $0x60] sm:$0xff]  }
 0x375   :  { %6876 = vrot.lane.b32.xlu0 %v16682_v17, %s14709_s19  ;;  %v4956_v17 = vsel %vm159_vm5, %v4867_v34, %v4796_v37  ;;  %v16964_v37 = vpack.c.bf16 %v4382_v3, %v4381_v20 }
 0x376   :  { %v4794_v1 = vpop.permute.xlu1 %4793  ;;  %14016 = vmatpush3.bf16.msra.mxu1 %v14236_v19  ;;  %v4384_v19 = vld [vmem:[#allocation3 + $0xc8] sm:$0xff] }
 0x377   :  { %v4954_v42 = vsel %vm159_vm5, %v4864_v12, %v4794_v1  ;;  %v4800_v46 = vpop.permute.xlu0 %4799  ;;  %14017 = vmatprep.subr.bf16.mxu1 %v14237_v49 }
 0x378   :  { %6778 = vrot.lane.b32.xlu1 %v16689_v27, %s14710_s1  ;;  %13954 = vmatmul.mubr.msk.bf16.gmra.mxu1 %vm5708_vm6, %v4954_v42  ;;  %v4439_v27 = vpack.c.bf16 %v4384_v19, %v4383_v58 }
 0x379   :  { %6784 = vrot.lane.b32.xlu0 %v16692_v30, %s14710_s1  ;;  %13957 = vmatprep.mubr.msk.bf16.mxu1 %vm5708_vm6, %v4956_v17 }
 0x37a   :  { %v4702_v28 = vpop.permute.xlu1 %4701  ;;  %14018 = vmatpush3.bf16.msra.mxu1 %v14237_v49  ;;  %v4873_v18 = vsel %vm49_vm3, %v4439_v27, %v4704_v6  ;;  %v16975_v49 = vpop.f32.mrf.mxu1  ;;  %v4386_v6 = vld [vmem:[#allocation3 + $0xe0] sm:$0xff] }
 0x37b   :  { %v4708_v2 = vpop.permute.xlu0 %4707  ;;  %14019 = vmatprep.subr.bf16.mxu1 %v14239_v15  ;;  %v4870_v30 = vsel %vm49_vm3, %v16964_v37, %v4702_v28  ;;  %v4391_v28 = vld [vmem:[#allocation3 + $0x120] sm:$0xff] }
 0x37c   :  { %6874 = vrot.lane.b32.xlu1 %v16699_v60, %s14709_s19  ;;  %v4960_v60 = vsel %vm159_vm5, %v4873_v18, %v4800_v46  ;;  %v16984_v34 = vpop.f32.mrf.mxu1 }
 0x37d   :  { %6880 = vrot.lane.b32.xlu0 %v16701_v40, %s14709_s19  ;;  %v4385_v40 = vld [vmem:[#allocation3 + $0xd8] sm:$0xff] }
 0x37e   :  { %v4798_v39 = vpop.permute.xlu1 %4797  ;;  %14020 = vmatpush3.bf16.msra.mxu1 %v14239_v15  ;;  %v16986_v42 = vpack.c.bf16 %v4386_v6, %v4385_v40 }
 0x37f   :  { %v4958_v47 = vsel %vm159_vm5, %v4870_v30, %v4798_v39  ;;  %v4804_v59 = vpop.permute.xlu0 %4803  ;;  %8701 = vmatprep.subr.bf16.mxu1 %v19466_v53 }
 0x380   :  { %6782 = vrot.lane.b32.xlu1 %v16707_v45, %s14710_s1  ;;  %13958 = vmatmul.mubr.msk.bf16.gmra.mxu1 %vm5708_vm6, %v4958_v47  ;;  %v16990_v45 = vpack.c.bf16 %v4388_v23, %v4387_v8  ;;  %v4395_v23 = vld [vmem:[#allocation3 + $0x150] sm:$0xff] }
 0x381   :  { %6788 = vrot.lane.b32.xlu0 %v16709_v48, %s14710_s1  ;;  %13961 = vmatprep.mubr.msk.bf16.mxu1 %vm5708_vm6, %v4960_v60  ;;  %v16994_v48 = vpop.f32.mrf.mxu1 }
 0x382   :  { %v4706_v12 = vpop.permute.xlu1 %4705  ;;  %v4879_v17 = vsel %vm49_vm3, %v16990_v45, %v4708_v2  ;;  %v4392_v2 = vld [vmem:[#allocation3 + $0x128] sm:$0xff] }
 0x383   :  { %v4712_v1 = vpop.permute.xlu0 %4711  ;;  %v4876_v46 = vsel %vm49_vm3, %v16986_v42, %v4706_v12  ;;  %v4964_v58 = vsel %vm159_vm5, %v4879_v17, %v4804_v59  ;;  %v17008_v19 = vpop.f32.mrf.mxu1  ;;  %v4396_v12 = vld [vmem:[#allocation3 + $0x158] sm:$0xff] }
 0x384   :  { %6878 = vrot.lane.b32.xlu1 %v16715_v56, %s14709_s19  ;;  %v4389_v56 = vld [vmem:[#allocation3 + $0x108] sm:$0xff] }
 0x385   :  { %6884 = vrot.lane.b32.xlu0 %v16717_v57, %s14709_s19  ;;  %v4390_v57 = vld [vmem:[#allocation3 + $0x110] sm:$0xff] }
 0x386   :  { %v4802_v15 = vpop.permute.xlu1 %4801  ;;  %v17010_v39 = vpack.c.bf16 %v4390_v57, %v4389_v56  ;;  %v6577_v57 = vld [vmem:[#allocation3 + $0x189] sm:$0xff] }
 0x387   :  { %v4962_v20 = vsel %vm159_vm5, %v4876_v46, %v4802_v15  ;;  %v4808_v3 = vpop.permute.xlu0 %4807 }
 0x388   :  { %6786 = vrot.lane.b32.xlu1 %v16724_v4, %s14710_s1  ;;  %13962 = vmatmul.mubr.msk.bf16.gmra.mxu1 %vm5708_vm6, %v4962_v20  ;;  %v17014_v4 = vpack.c.bf16 %v4392_v2, %v4391_v28  ;;  %v4400_v20 = vld [vmem:[#allocation3 + $0x1b8] sm:$0xff] }
 0x389   :  { %6792 = vrot.lane.b32.xlu0 %v16727_v9, %s14710_s1  ;;  %13965 = vmatprep.mubr.msk.bf16.mxu1 %vm5708_vm6, %v4964_v58  ;;  %v17018_v9 = vpop.f32.mrf.mxu1 }
 0x38a   :  { %v4710_v27 = vpop.permute.xlu1 %4709  ;;  %19467 = vst [vmem:[#allocation17_spill] sm:$0xff] %v17018_v9  ;;  %v4885_v59 = vsel %vm49_vm3, %v17014_v4, %v4712_v1 }
 0x38b   :  { %v4716_v30 = vpop.permute.xlu0 %4715  ;;  %v4882_v18 = vsel %vm49_vm3, %v17010_v39, %v4710_v27  ;;  %v4968_v6 = vsel %vm159_vm5, %v4885_v59, %v4808_v3  ;;  %v17032_v8 = vpop.f32.mrf.mxu1  ;;  %v17040_v3 = vpack.c.bf16 %v4396_v12, %v4395_v23 }
 0x38c   :  { %6882 = vrot.lane.b32.xlu1 %v16734_v13, %s14709_s19  ;;  %v4393_v13 = vld [vmem:[#allocation3 + $0x138] sm:$0xff]  ;;  %19468 = vst [vmem:[#allocation18_spill] sm:$0xff] %v17032_v8 }
 0x38d   :  { %6888 = vrot.lane.b32.xlu0 %v16736_v16, %s14709_s19  ;;  %v4394_v16 = vld [vmem:[#allocation3 + $0x140] sm:$0xff]  ;;  %v17034_v15 = vpop.f32.mrf.mxu1  ;;  %v4891_v28 = vsel %vm49_vm3, %v17040_v3, %v4716_v30  ;;  %v4397_v30 = vld [vmem:[#allocation3 + $0x168] sm:$0xff] }
 0x38e   :  { %v4806_v47 = vpop.permute.xlu1 %4805  ;;  %19469 = vst [vmem:[#allocation19_spill] sm:$0xff] %v17034_v15  ;;  %v17036_v17 = vpack.c.bf16 %v4394_v16, %v4393_v13  ;;  %v6673_v13 = vld [vmem:[#allocation3 + $0x18a] sm:$0xff] }
 0x38f   :  { %v4966_v60 = vsel %vm159_vm5, %v4882_v18, %v4806_v47  ;;  %v4812_v40 = vpop.permute.xlu0 %4811 }
 0x390   :  { %6790 = vrot.lane.b32.xlu1 %v16742_v24, %s14710_s1  ;;  %13966 = vmatmul.mubr.msk.bf16.gmra.mxu1 %vm5708_vm6, %v4966_v60  ;;  %v4399_v24 = vld [vmem:[#allocation3 + $0x1b0] sm:$0xff]  ;;  %v4972_v59 = vsel %vm159_vm5, %v4891_v28, %v4812_v40  ;;  %v6578_v28 = vld [vmem:[#allocation3 + $0x199] sm:$0xff] }
 0x391   :  { %6796 = vrot.lane.b32.xlu0 %v16744_v26, %s14710_s1  ;;  %13969 = vmatprep.mubr.msk.bf16.mxu1 %vm5708_vm6, %v4968_v6  ;;  %v6576_v26 = vld [vmem:[#allocation3 + $0x181] sm:$0xff]  ;;  %v4447_v2 = vpack.c.bf16 %v4400_v20, %v4399_v24  ;;  %v4398_v60 = vld [vmem:[#allocation3 + $0x170] sm:$0xff] }
 0x392   :  { %v4714_v1 = vpop.permute.xlu1 %4713  ;;  %v6626_v47 = vpack.c.bf16 %v6577_v57, %v6576_v26  ;;  %v17060_v40 = vpack.c.bf16 %v4398_v60, %v4397_v30  ;;  %v4402_v57 = vld [vmem:[#allocation3 + $0x1d0] sm:$0xff] }
 0x393   :  { %v4720_v46 = vpop.permute.xlu0 %4719  ;;  %v4888_v58 = vsel %vm49_vm3, %v17036_v17, %v4714_v1 }
 0x394   :  { %6886 = vrot.lane.b32.xlu1 %v16750_v41, %s14709_s19  ;;  %v17049_v41 = vpop.f32.mrf.mxu1  ;;  %v4897_v16 = vsel %vm49_vm3, %v4447_v2, %v4720_v46  ;;  %v6579_v2 = vld [vmem:[#allocation3 + $0x1a1] sm:$0xff] }
 0x395   :  { %6892 = vrot.lane.b32.xlu0 %v16752_v50, %s14709_s19  ;;  %19470 = vst [vmem:[#allocation20_spill] sm:$0xff] %v17049_v41  ;;  %v6672_v50 = vld [vmem:[#allocation3 + $0x182] sm:$0xff] }
 0x396   :  { %v4810_v56 = vpop.permute.xlu1 %4809  ;;  %v6722_v12 = vpack.c.bf16 %v6673_v13, %v6672_v50  ;;  %v17058_v1 = vpop.f32.mrf.mxu1 }
 0x397   :  { %v4970_v27 = vsel %vm159_vm5, %v4888_v58, %v4810_v56  ;;  %v4816_v18 = vpop.permute.xlu0 %4815  ;;  %19471 = vst [vmem:[#allocation21_spill] sm:$0xff] %v17058_v1 }
 0x398   :  { %6794 = vrot.lane.b32.xlu1 %v16759_v61, %s14710_s1  ;;  %13970 = vmatmul.mubr.msk.bf16.gmra.mxu1 %vm5708_vm6, %v4970_v27  ;;  %v14241_v61 = vld [vmem:[%s19442_s7 + $0xe8] sm:$0xff]   ;;  %v4976_v24 = vsel %vm159_vm5, %v4897_v16, %v4816_v18  ;;  %v17073_v56 = vpop.f32.mrf.mxu1  ;;  %v4403_v18 = vld [vmem:[#allocation3 + $0x1e0] sm:$0xff] }
 0x399   :  { %6800 = vrot.lane.b32.xlu0 %v6626_v47, %s14710_s1  ;;  %13973 = vmatprep.mubr.msk.bf16.mxu1 %vm5708_vm6, %v4972_v59  ;;  %19472 = vst [vmem:[#allocation22_spill] sm:$0xff] %v17073_v56  ;;  %v4404_v47 = vld [vmem:[#allocation3 + $0x1e8] sm:$0xff] }
 0x39a   :  { %v4718_v6 = vpop.permute.xlu1 %4717  ;;  %9422 = vmatpush1.bf16.msra.mxu0 %v14241_v61  ;;  %v17081_v27 = vpop.f32.mrf.mxu1  ;;  %v17085_v60 = vpack.c.bf16 %v4404_v47, %v4403_v18 }
 0x39b   :  { %v4724_v23 = vpop.permute.xlu0 %4723  ;;  %v4894_v46 = vsel %vm49_vm3, %v17060_v40, %v4718_v6  ;;  %9423 = vmatprep.subr.bf16.mxu0 %v19466_v53  ;;  %19473 = vst [vmem:[#allocation23_spill] sm:$0xff] %v17081_v27  ;;  %v6675_v6 = vld [vmem:[#allocation3 + $0x1a2] sm:$0xff]  ;;  %v6609_v27 = vld [vmem:[#allocation3 + $0x339] sm:$0xff] }
 0x39c   :  { %6890 = vrot.lane.b32.xlu1 %v16766_v7, %s14709_s19  ;;  %v4401_v7 = vld [vmem:[#allocation3 + $0x1c8] sm:$0xff]  ;;  %v17089_v13 = vpop.f32.mrf.mxu1  ;;  %v4903_v61 = vsel %vm49_vm3, %v17085_v60, %v4724_v23  ;;  %v4407_v23 = vld [vmem:[#allocation3 + $0x210] sm:$0xff] }
 0x39d   :  { %6896 = vrot.lane.b32.xlu0 %v6722_v12, %s14709_s19  ;;  %v4448_v30 = vpack.c.bf16 %v4402_v57, %v4401_v7  ;;  %19474 = vst [vmem:[#allocation24_spill] sm:$0xff] %v17089_v13  ;;  %v4408_v57 = vld [vmem:[#allocation3 + $0x218] sm:$0xff] }
 0x39e   :  { %v4814_v20 = vpop.permute.xlu1 %4813  ;;  %v17101_v7 = vpop.f32.mrf.mxu1 }
 0x39f   :  { %v4974_v26 = vsel %vm159_vm5, %v4894_v46, %v4814_v20  ;;  %v4820_v58 = vpop.permute.xlu0 %4819  ;;  %v4405_v20 = vld [vmem:[#allocation3 + $0x1f8] sm:$0xff]  ;;  %19475 = vst [vmem:[#allocation25_spill] sm:$0xff] %v17101_v7  ;;  %v6605_v7 = vld [vmem:[#allocation3 + $0x309] sm:$0xff] }
 0x3a0   :  { %6798 = vrot.lane.b32.xlu1 %v16771_v14, %s14710_s1  ;;  %13974 = vmatmul.mubr.msk.bf16.gmra.mxu1 %vm5708_vm6, %v4974_v26  ;;  %v6627_v14 = vpack.c.bf16 %v6579_v2, %v6578_v28  ;;  %v4406_v26 = vld [vmem:[#allocation3 + $0x200] sm:$0xff] }
 0x3a1   :  { %6804 = vrot.lane.b32.xlu0 %v16773_v22, %s14710_s1  ;;  %13977 = vmatprep.mubr.msk.bf16.mxu1 %vm5708_vm6, %v4976_v24  ;;  %v6674_v22 = vld [vmem:[#allocation3 + $0x19a] sm:$0xff]  ;;  %v17103_v18 = vpack.c.bf16 %v4406_v26, %v4405_v20 }
 0x3a2   :  { %v4722_v59 = vpop.permute.xlu1 %4721 }
 0x3a3   :  { %v4728_v50 = vpop.permute.xlu0 %4727  ;;  %v4900_v16 = vsel %vm49_vm3, %v4448_v30, %v4722_v59 }
 0x3a4   :  { %6894 = vrot.lane.b32.xlu1 %v16779_v32, %s14709_s19  ;;  %v4980_v32 = vsel %vm159_vm5, %v4903_v61, %v4820_v58  ;;  %v17106_v58 = vpack.c.bf16 %v4408_v57, %v4407_v23  ;;  %v4412_v61 = vld [vmem:[#allocation3 + $0x248] sm:$0xff] }
 0x3a5   :  { %6900 = vrot.lane.b32.xlu0 %v16781_v43, %s14709_s19  ;;  %v6723_v43 = vpack.c.bf16 %v6675_v6, %v6674_v22 }
 0x3a6   :  { %v4818_v12 = vpop.permute.xlu1 %4817  ;;  %v4909_v30 = vsel %vm49_vm3, %v17106_v58, %v4728_v50  ;;  %v4411_v50 = vld [vmem:[#allocation3 + $0x240] sm:$0xff] }
 0x3a7   :  { %v4978_v24 = vsel %vm159_vm5, %v4900_v16, %v4818_v12  ;;  %v4824_v46 = vpop.permute.xlu0 %4823  ;;  %v4410_v12 = vld [vmem:[#allocation3 + $0x230] sm:$0xff] }
 0x3a8   :  { %6802 = vrot.lane.b32.xlu1 %v6627_v14, %s14710_s1  ;;  %13978 = vmatmul.mubr.msk.bf16.gmra.mxu1 %vm5708_vm6, %v4978_v24  ;;  %v4984_v16 = vsel %vm159_vm5, %v4909_v30, %v4824_v46  ;;  %v4416_v30 = vld [vmem:[#allocation3 + $0x278] sm:$0xff] }
 0x3a9   :  { %6808 = vrot.lane.b32.xlu0 %v16788_v62, %s14710_s1  ;;  %13981 = vmatprep.mubr.msk.bf16.mxu1 %vm5708_vm6, %v4980_v32  ;;  %v17110_v62 = vpop.f32.mrf.mxu1 }
 0x3aa   :  { %v4726_v28 = vpop.permute.xlu1 %4725  ;;  %19476 = vst [vmem:[#allocation26_spill] sm:$0xff] %v17110_v62 }
 0x3ab   :  { %v4732_v2 = vpop.permute.xlu0 %4731  ;;  %v4906_v47 = vsel %vm49_vm3, %v17103_v18, %v4726_v28  ;;  %v17117_v6 = vpop.f32.mrf.mxu1 }
 0x3ac   :  { %6898 = vrot.lane.b32.xlu1 %v6723_v43, %s14709_s19  ;;  %19477 = vst [vmem:[#allocation27_spill] sm:$0xff] %v17117_v6 }
 0x3ad   :  { %6904 = vrot.lane.b32.xlu0 %v16795_v11, %s14709_s19  ;;  %v4409_v11 = vld [vmem:[#allocation3 + $0x228] sm:$0xff]  ;;  %v17126_v43 = vpop.f32.mrf.mxu1 }
 0x3ae   :  { %v4822_v59 = vpop.permute.xlu1 %4821  ;;  %19478 = vst [vmem:[#allocation28_spill] sm:$0xff] %v17126_v43  ;;  %v17128_v20 = vpack.c.bf16 %v4410_v12, %v4409_v11 }
 0x3af   :  { %v4982_v14 = vsel %vm159_vm5, %v4906_v47, %v4822_v59  ;;  %v4828_v22 = vpop.permute.xlu0 %4827  ;;  %v17141_v28 = vpop.f32.mrf.mxu1  ;;  %v4414_v59 = vld [vmem:[#allocation3 + $0x260] sm:$0xff] }
 0x3b0   :  { %6806 = vrot.lane.b32.xlu1 %v16800_v25, %s14710_s1  ;;  %13982 = vmatmul.mubr.msk.bf16.gmra.mxu1 %vm5708_vm6, %v4982_v14  ;;  %v17132_v25 = vpack.c.bf16 %v4412_v61, %v4411_v50  ;;  %19479 = vst [vmem:[#allocation29_spill] sm:$0xff] %v17141_v28  ;;  %v19483_v50 = vld [vmem:[#allocation12_spill] sm:$0xff] }
 0x3b1   :  { %6812 = vrot.lane.b32.xlu0 %v16802_v29, %s14710_s1  ;;  %13985 = vmatprep.mubr.msk.bf16.mxu1 %vm5708_vm6, %v4984_v16  ;;  %v17150_v11 = vpop.f32.mrf.mxu1 }
 0x3b2   :  { %v4730_v24 = vpop.permute.xlu1 %4729  ;;  %v4915_v26 = vsel %vm49_vm3, %v17132_v25, %v4732_v2  ;;  %v4415_v2 = vld [vmem:[#allocation3 + $0x270] sm:$0xff] }
 0x3b3   :  { %v4736_v32 = vpop.permute.xlu0 %4735  ;;  %v4912_v29 = vsel %vm49_vm3, %v17128_v20, %v4730_v24  ;;  %v4988_v47 = vsel %vm159_vm5, %v4915_v26, %v4828_v22  ;;  %v19482_v22 = vld [vmem:[#allocation11_spill] sm:$0xff]  ;;  %v17160_v61 = vpop.f32.mrf.mxu1 }
 0x3b4   :  { %6902 = vrot.lane.b32.xlu1 %v16808_v52, %s14709_s19  ;;  %v19480_v52 = vld [vmem:[#allocation10_spill] sm:$0xff]  ;;  %19484 = vst [vmem:[#allocation11_spill] sm:$0xff] %v17160_v61 }
 0x3b5   :  { %6908 = vrot.lane.b32.xlu0 %v16810_v54, %s14709_s19  ;;  %v4413_v54 = vld [vmem:[#allocation3 + $0x258] sm:$0xff]  ;;  %19481 = vst [vmem:[#allocation10_spill] sm:$0xff] %v17150_v11  ;;  %v6594_v11 = vld [vmem:[#allocation3 + $0x289] sm:$0xff] }
 0x3b6   :  { %v4826_v46 = vpop.permute.xlu1 %4825  ;;  %v17152_v12 = vpack.c.bf16 %v4414_v59, %v4413_v54  ;;  %v19485_v54 = vld [vmem:[#allocation13_spill] sm:$0xff]  ;;  %v6692_v59 = vld [vmem:[#allocation3 + $0x2a2] sm:$0xff] }
 0x3b7   :  { %v4986_v23 = vsel %vm159_vm5, %v4912_v29, %v4826_v46  ;;  %v4832_v57 = vpop.permute.xlu0 %4831 }
 0x3b8   :  { %6810 = vrot.lane.b32.xlu1 %v16817_v5, %s14710_s1  ;;  %13986 = vmatmul.mubr.msk.bf16.gmra.mxu1 %vm5708_vm6, %v4986_v23  ;;  %v17156_v5 = vpack.c.bf16 %v4416_v30, %v4415_v2  ;;  %v19486_v2 = vld [vmem:[#allocation14_spill] sm:$0xff] }
 0x3b9   :  { %6816 = vrot.lane.b32.xlu0 %v19480_v52, %s14710_s1  ;;  %13989 = vmatprep.mubr.msk.bf16.mxu1 %vm5708_vm6, %v4988_v47  ;;  %v6686_v47 = vld [vmem:[#allocation3 + $0x25a] sm:$0xff]  ;;  %v4417_v30 = vld [vmem:[#allocation3 + $0x288] sm:$0xff] }
 0x3ba   :  { %v4734_v14 = vpop.permute.xlu1 %4733  ;;  %v4921_v46 = vsel %vm49_vm3, %v17156_v5, %v4736_v32  ;;  %v6687_v32 = vld [vmem:[#allocation3 + $0x262] sm:$0xff] }
 0x3bb   :  { %v4740_v16 = vpop.permute.xlu0 %4739  ;;  %v4918_v24 = vsel %vm49_vm3, %v17152_v12, %v4734_v14  ;;  %v4992_v52 = vsel %vm159_vm5, %v4921_v46, %v4832_v57  ;;  %v4418_v14 = vld [vmem:[#allocation3 + $0x290] sm:$0xff]  ;;  %v6729_v57 = vpack.c.bf16 %v6687_v32, %v6686_v47 }
 0x3bc   :  { %6906 = vrot.lane.b32.xlu1 %v19482_v22, %s14709_s19  ;;  %v17174_v22 = vpop.f32.mrf.mxu1  ;;  %v6693_v46 = vld [vmem:[#allocation3 + $0x2aa] sm:$0xff] }
 0x3bd   :  { %6912 = vrot.lane.b32.xlu0 %v19483_v50, %s14709_s19  ;;  %19487 = vst [vmem:[#allocation12_spill] sm:$0xff] %v17174_v22  ;;  %v4419_v50 = vld [vmem:[#allocation3 + $0x2a0] sm:$0xff] }
 0x3be   :  { %v4830_v29 = vpop.permute.xlu1 %4829  ;;  %v14242_v22 = vld [vmem:[%s19442_s7 + $0xe0] sm:$0xff]   ;;  %v17185_v43 = vpop.f32.mrf.mxu1 }
 0x3bf   :  { %v4990_v26 = vsel %vm159_vm5, %v4918_v24, %v4830_v29  ;;  %v4836_v23 = vpop.permute.xlu0 %4835  ;;  %v4420_v24 = vld [vmem:[#allocation3 + $0x2a8] sm:$0xff]  ;;  %19488 = vst [vmem:[#allocation13_spill] sm:$0xff] %v17185_v43  ;;  %9424 = vmatpush1.bf16.msra.mxu0 %v14242_v22  ;;  %v6696_v43 = vld [vmem:[#allocation3 + $0x2d2] sm:$0xff] }
 0x3c0   :  { %6814 = vrot.lane.b32.xlu1 %v19485_v54, %s14710_s1  ;;  %13990 = vmatmul.mubr.msk.bf16.gmra.mxu1 %vm5708_vm6, %v4990_v26  ;;  %v6732_v54 = vpack.c.bf16 %v6693_v46, %v6692_v59  ;;  %v17176_v26 = vpack.c.bf16 %v4418_v14, %v4417_v30  ;;  %v17179_v28 = vpack.c.bf16 %v4420_v24, %v4419_v50  ;;  %v6601_v14 = vld [vmem:[#allocation3 + $0x2d9] sm:$0xff]  ;;  %v6690_v46 = vld [vmem:[#allocation3 + $0x28a] sm:$0xff] }
 0x3c1   :  { %6820 = vrot.lane.b32.xlu0 %v19486_v2, %s14710_s1  ;;  %13993 = vmatprep.mubr.msk.bf16.mxu1 %vm5708_vm6, %v4992_v52  ;;  %v6600_v2 = vld [vmem:[#allocation3 + $0x2d1] sm:$0xff] }
 0x3c2   :  { %v4738_v29 = vpop.permute.xlu1 %4737  ;;  %v6595_v52 = vld [vmem:[#allocation3 + $0x291] sm:$0xff]  ;;  %v4927_v32 = vsel %vm49_vm3, %v17179_v28, %v4740_v16  ;;  %9425 = vmatprep.subr.bf16.mxu0 %v19466_v53 }
 0x3c3   :  { %v4744_v61 = vpop.permute.xlu0 %4743  ;;  %v4924_v47 = vsel %vm49_vm3, %v17176_v26, %v4738_v29  ;;  %v6635_v30 = vpack.c.bf16 %v6595_v52, %v6594_v11  ;;  %v4421_v11 = vld [vmem:[#allocation3 + $0x2b8] sm:$0xff]  ;;  %v4422_v29 = vld [vmem:[#allocation3 + $0x2c0] sm:$0xff]  ;;  %v17197_v52 = vpop.f32.mrf.mxu1 }
 0x3c4   :  { %6910 = vrot.lane.b32.xlu1 %v6729_v57, %s14709_s19  ;;  %v6638_v57 = vpack.c.bf16 %v6601_v14, %v6600_v2  ;;  %v6691_v16 = vld [vmem:[#allocation3 + $0x292] sm:$0xff]  ;;  %19489 = vst [vmem:[#allocation14_spill] sm:$0xff] %v17197_v52  ;;  %v6697_v14 = vld [vmem:[#allocation3 + $0x2da] sm:$0xff] }
 0x3c5   :  { %6916 = vrot.lane.b32.xlu0 %v6732_v54, %s14709_s19  ;;  %v4996_v54 = vsel %vm159_vm5, %v4927_v32, %v4836_v23  ;;  %v4424_v2 = vld [vmem:[#allocation3 + $0x2d8] sm:$0xff]  ;;  %v6731_v22 = vpack.c.bf16 %v6691_v16, %v6690_v46  ;;  %v6599_v52 = vld [vmem:[#allocation3 + $0x2c1] sm:$0xff] }
 0x3c6   :  { %v4834_v59 = vpop.permute.xlu1 %4833  ;;  %v6598_v32 = vld [vmem:[#allocation3 + $0x2b9] sm:$0xff] }
 0x3c7   :  { %v4994_v50 = vsel %vm159_vm5, %v4924_v47, %v4834_v59  ;;  %v4840_v24 = vpop.permute.xlu0 %4839  ;;  %v4423_v47 = vld [vmem:[#allocation3 + $0x2d0] sm:$0xff]  ;;  %v6637_v62 = vpack.c.bf16 %v6599_v52, %v6598_v32  ;;  %v4425_v52 = vld [vmem:[#allocation3 + $0x2e8] sm:$0xff] }
 0x3c8   :  { %6818 = vrot.lane.b32.xlu1 %v6635_v30, %s14710_s1  ;;  %13994 = vmatmul.mubr.msk.bf16.gmra.mxu1 %vm5708_vm6, %v4994_v50  ;;  %v6734_v30 = vpack.c.bf16 %v6697_v14, %v6696_v43  ;;  %v17200_v50 = vpop.f32.mrf.mxu1  ;;  %v17205_v6 = vpack.c.bf16 %v4424_v2, %v4423_v47  ;;  %v6700_v2 = vld [vmem:[#allocation3 + $0x302] sm:$0xff] }
 0x3c9   :  { %6824 = vrot.lane.b32.xlu0 %v6638_v57, %s14710_s1  ;;  %13997 = vmatprep.mubr.msk.bf16.mxu1 %vm5708_vm6, %v4996_v54  ;;  %19490 = vst [vmem:[#allocation30_spill] sm:$0xff] %v17200_v50  ;;  %v17202_v57 = vpack.c.bf16 %v4422_v29, %v4421_v11  ;;  %v6604_v54 = vld [vmem:[#allocation3 + $0x301] sm:$0xff] }
 0x3ca   :  { %v4742_v59 = vpop.permute.xlu1 %4741  ;;  %v4933_v43 = vsel %vm49_vm3, %v17205_v6, %v4744_v61  ;;  %v6640_v14 = vpack.c.bf16 %v6605_v7, %v6604_v54  ;;  %v17213_v50 = vpop.f32.mrf.mxu1  ;;  %v4426_v61 = vld [vmem:[#allocation3 + $0x2f0] sm:$0xff]  ;;  %v4428_v32 = vld [vmem:[#allocation3 + $0x308] sm:$0xff] }
 0x3cb   :  { %v4748_v23 = vpop.permute.xlu0 %4747  ;;  %v4930_v46 = vsel %vm49_vm3, %v17202_v57, %v4742_v59  ;;  %19491 = vst [vmem:[#allocation31_spill] sm:$0xff] %v17213_v50  ;;  %v5000_v47 = vsel %vm159_vm5, %v4933_v43, %v4840_v24  ;;  %v6695_v59 = vld [vmem:[#allocation3 + $0x2c2] sm:$0xff] }
 0x3cc   :  { %6914 = vrot.lane.b32.xlu1 %v6731_v22, %s14709_s19  ;;  %v6694_v22 = vld [vmem:[#allocation3 + $0x2ba] sm:$0xff]  ;;  %v6602_v24 = vld [vmem:[#allocation3 + $0x2e9] sm:$0xff]  ;;  %v17220_v43 = vpop.f32.mrf.mxu1 }
 0x3cd   :  { %6920 = vrot.lane.b32.xlu0 %v6734_v30, %s14709_s19  ;;  %v4427_v30 = vld [vmem:[#allocation3 + $0x300] sm:$0xff]  ;;  %v6733_v54 = vpack.c.bf16 %v6695_v59, %v6694_v22  ;;  %19492 = vst [vmem:[#allocation32_spill] sm:$0xff] %v17220_v43 }
 0x3ce   :  { %v4838_v16 = vpop.permute.xlu1 %4837  ;;  %v17233_v43 = vpop.f32.mrf.mxu1 }
 0x3cf   :  { %v4998_v11 = vsel %vm159_vm5, %v4930_v46, %v4838_v16  ;;  %v4844_v29 = vpop.permute.xlu0 %4843  ;;  %v6701_v46 = vld [vmem:[#allocation3 + $0x30a] sm:$0xff]  ;;  %19493 = vst [vmem:[#allocation33_spill] sm:$0xff] %v17233_v43 }
 0x3d0   :  { %6822 = vrot.lane.b32.xlu1 %v6637_v62, %s14710_s1  ;;  %13998 = vmatmul.mubr.msk.bf16.gmra.mxu1 %vm5708_vm6, %v4998_v11  ;;  %v6736_v50 = vpack.c.bf16 %v6701_v46, %v6700_v2  ;;  %v17222_v62 = vpack.c.bf16 %v4426_v61, %v4425_v52  ;;  %v6608_v11 = vld [vmem:[#allocation3 + $0x331] sm:$0xff] }
 0x3d1   :  { %6828 = vrot.lane.b32.xlu0 %v6640_v14, %s14710_s1  ;;  %14001 = vmatprep.mubr.msk.bf16.mxu1 %vm5708_vm6, %v5000_v47  ;;  %v17225_v14 = vpack.c.bf16 %v4428_v32, %v4427_v30  ;;  %v6603_v47 = vld [vmem:[#allocation3 + $0x2f1] sm:$0xff]  ;;  %v6642_v46 = vpack.c.bf16 %v6609_v27, %v6608_v11 }
 0x3d2   :  { %v4746_v7 = vpop.permute.xlu1 %4745  ;;  %v6639_v59 = vpack.c.bf16 %v6603_v47, %v6602_v24  ;;  %v4429_v32 = vld [vmem:[#allocation3 + $0x318] sm:$0xff]  ;;  %v6452_v27 = vld [vmem:[#allocation3 + $0x30] sm:$0xff] }
 0x3d3   :  { %v6773_v16 = vpop.permute.xlu0 %6772  ;;  %v4936_v13 = vsel %vm49_vm3, %v17222_v62, %v4746_v7  ;;  %v4939_v2 = vsel %vm49_vm3, %v17225_v14, %v4748_v23  ;;  %v4430_v23 = vld [vmem:[#allocation3 + $0x320] sm:$0xff]  ;;  %v6699_v7 = vld [vmem:[#allocation3 + $0x2f2] sm:$0xff] }
 0x3d4   :  { %6918 = vrot.lane.b32.xlu1 %v6733_v54, %s14709_s19  ;;  %v6698_v54 = vld [vmem:[#allocation3 + $0x2ea] sm:$0xff]  ;;  %v5004_v30 = vsel %vm159_vm5, %v4939_v2, %v4844_v29  ;;  %v6453_v24 = vld [vmem:[#allocation3 + $0x38] sm:$0xff]  ;;  %v17242_v43 = vpack.c.bf16 %v4430_v23, %v4429_v32 }
 0x3d5   :  { %6924 = vrot.lane.b32.xlu0 %v6736_v50, %s14709_s19  ;;  %v6704_v50 = vld [vmem:[#allocation3 + $0x332] sm:$0xff]  ;;  %v6735_v47 = vpack.c.bf16 %v6699_v7, %v6698_v54  ;;  %v6702_v32 = vld [vmem:[#allocation3 + $0x31a] sm:$0xff] }
 0x3d6   :  { %v4842_v22 = vpop.permute.xlu1 %4841 }
 0x3d7   :  { %v5002_v52 = vsel %vm159_vm5, %v4936_v13, %v4842_v22  ;;  %v6869_v61 = vpop.permute.xlu0 %6868  ;;  %v17240_v13 = vpop.f32.mrf.mxu1  ;;  %v6705_v22 = vld [vmem:[#allocation3 + $0x33a] sm:$0xff] }
 0x3d8   :  { %6826 = vrot.lane.b32.xlu1 %v6639_v59, %s14710_s1  ;;  %14002 = vmatmul.mubr.msk.bf16.gmra.mxu1 %vm5708_vm6, %v5002_v52  ;;  %19494 = vst [vmem:[#allocation34_spill] sm:$0xff] %v17240_v13  ;;  %v6738_v2 = vpack.c.bf16 %v6705_v22, %v6704_v50  ;;  %v6606_v59 = vld [vmem:[#allocation3 + $0x319] sm:$0xff]  ;;  %v6516_v52 = vpack.c.bf16 %v6453_v24, %v6452_v27  ;;  %v6454_v27 = vld [vmem:[#allocation3 + $0x48] sm:$0xff]  ;;  %v6455_v24 = vld [vmem:[#allocation3 + $0x50] sm:$0xff] }
 0x3d9   :  { %6832 = vrot.lane.b32.xlu0 %v6642_v46, %s14710_s1  ;;  %14005 = vmatprep.mubr.msk.bf16.mxu1 %vm5708_vm6, %v5004_v30  ;;  %v6607_v46 = vld [vmem:[#allocation3 + $0x321] sm:$0xff]  ;;  %v17246_v30 = vpop.f32.mrf.mxu1  ;;  %v6611_v22 = vld [vmem:[#allocation3 + $0x351] sm:$0xff] }
 0x3da   :  { %v4750_v11 = vpop.permute.xlu1 %4749  ;;  %19495 = vst [vmem:[#allocation35_spill] sm:$0xff] %v17246_v30  ;;  %v6641_v1 = vpack.c.bf16 %v6607_v46, %v6606_v59  ;;  %v6934_v54 = vsel %vm49_vm3, %v6516_v52, %v6773_v16  ;;  %v6456_v16 = vld [vmem:[#allocation3 + $0x60] sm:$0xff]  ;;  %v6457_v59 = vld [vmem:[#allocation3 + $0x68] sm:$0xff]  ;;  %v6517_v46 = vpack.c.bf16 %v6455_v24, %v6454_v27  ;;  %v6458_v24 = vld [vmem:[#allocation3 + $0x78] sm:$0xff] }
 0x3db   :  { %v6777_v29 = vpop.permute.xlu0 %6776  ;;  %v4942_v13 = vsel %vm49_vm3, %v17242_v43, %v4750_v11  ;;  %v7029_v23 = vsel %vm159_vm5, %v6934_v54, %v6869_v61  ;;  %v6610_v11 = vld [vmem:[#allocation3 + $0x349] sm:$0xff]  ;;  %v6518_v61 = vpack.c.bf16 %v6457_v59, %v6456_v16 }
 0x3dc   :  { %6922 = vrot.lane.b32.xlu1 %v6735_v47, %s14709_s19  ;;  %v6703_v47 = vld [vmem:[#allocation3 + $0x322] sm:$0xff]  ;;  %v6706_v54 = vld [vmem:[#allocation3 + $0x34a] sm:$0xff] }
 0x3dd   :  { %6928 = vrot.lane.b32.xlu0 %v6738_v2, %s14709_s19  ;;  %v17256_v2 = vpop.f32.mrf.mxu1  ;;  %v6940_v15 = vsel %vm49_vm3, %v6518_v61, %v6777_v29 }
 0x3de   :  { %v4846_v56 = vpop.permute.xlu1 %4845  ;;  %19496 = vst [vmem:[#allocation36_spill] sm:$0xff] %v17256_v2 }
 0x3df   :  { %v5006_v50 = vsel %vm159_vm5, %v4942_v13, %v4846_v56  ;;  %v6873_v7 = vpop.permute.xlu0 %6872  ;;  %v6737_v13 = vpack.c.bf16 %v6703_v47, %v6702_v32  ;;  %v17259_v30 = vpop.f32.mrf.mxu1  ;;  %v6459_v47 = vld [vmem:[#allocation3 + $0x80] sm:$0xff] }
 0x3e0   :  { %6830 = vrot.lane.b32.xlu1 %v6641_v1, %s14710_s1  ;;  %14006 = vmatmul.mubr.msk.bf16.gmra.mxu1 %vm5708_vm6, %v5006_v50  ;;  %v6643_v1 = vpack.c.bf16 %v6611_v22, %v6610_v11  ;;  %v6707_v50 = vld [vmem:[#allocation3 + $0x352] sm:$0xff]  ;;  %19497 = vst [vmem:[#allocation37_spill] sm:$0xff] %v17259_v30  ;;  %v7033_v32 = vsel %vm159_vm5, %v6940_v15, %v6873_v7  ;;  %v14246_v30 = vld [vmem:[%s19442_s7 + $0xc0] sm:$0xff]  }
 0x3e1   :  { %14021 = vmatprep.mubr.msk.bf16.mxu1 %vm5708_vm6, %v7029_v23  ;;  %v17264_v9 = vpop.f32.mrf.mxu1  ;;  %v6739_v27 = vpack.c.bf16 %v6707_v50, %v6706_v54  ;;  %v6460_v11 = vld [vmem:[#allocation3 + $0x90] sm:$0xff]  ;;  %v6461_v22 = vld [vmem:[#allocation3 + $0x98] sm:$0xff]  ;;  %v6464_v50 = vld [vmem:[#allocation3 + $0xc0] sm:$0xff] }
 0x3e2   :  { %v6775_v56 = vpop.permute.xlu1 %6774  ;;  %19498 = vst [vmem:[#allocation38_spill] sm:$0xff] %v17264_v9  ;;  %v14243_v54 = vld [vmem:[%s19442_s7 + $0xd8] sm:$0xff]  }
 0x3e3   :  { %v6781_v52 = vpop.permute.xlu0 %6780  ;;  %v6937_v23 = vsel %vm49_vm3, %v6517_v46, %v6775_v56  ;;  %v17270_v59 = vpop.f32.mrf.mxu1  ;;  %v6520_v56 = vpack.c.bf16 %v6461_v22, %v6460_v11  ;;  %9426 = vmatpush1.bf16.msra.mxu0 %v14243_v54 }
 0x3e4   :  { %6926 = vrot.lane.b32.xlu1 %v6737_v13, %s14709_s19  ;;  %19499 = vst [vmem:[#allocation39_spill] sm:$0xff] %v17270_v59  ;;  %9427 = vmatprep.subr.bf16.mxu0 %v19466_v53 }
 0x3e6   :  { %v6871_v41 = vpop.permute.xlu1 %6870 }
 0x3e7   :  { %v7031_v2 = vsel %vm159_vm5, %v6937_v23, %v6871_v41  ;;  %v6877_v8 = vpop.permute.xlu0 %6876  ;;  %v6519_v41 = vpack.c.bf16 %v6459_v47, %v6458_v24  ;;  %v6465_v23 = vld [vmem:[#allocation3 + $0xc8] sm:$0xff] }
 0x3e8   :  { %6834 = vrot.lane.b32.xlu1 %v6643_v1, %s14710_s1  ;;  %14022 = vmatmul.mubr.msk.bf16.vlgmr.msra.gmra.mxu1 %vm5708_vm6, %v7031_v2  ;;  %v6946_v2 = vsel %vm49_vm3, %v6520_v56, %v6781_v52  ;;  %v17276_v1 = vpop.f32.mrf.mxu1  ;;  %v6522_v24 = vpack.c.bf16 %v6465_v23, %v6464_v50 }
 0x3e9   :  { %14025 = vmatprep.mubr.msk.bf16.mxu1 %vm5708_vm6, %v7033_v32  ;;  %19500 = vst [vmem:[#allocation40_spill] sm:$0xff] %v17276_v1  ;;  %v7037_v61 = vsel %vm159_vm5, %v6946_v2, %v6877_v8 }
 0x3ea   :  { %v6779_v16 = vpop.permute.xlu1 %6778  ;;  %v17284_v52 = vpop.f32.mrf.mxu1 }
 0x3eb   :  { %v6785_v29 = vpop.permute.xlu0 %6784  ;;  %v6943_v15 = vsel %vm49_vm3, %v6519_v41, %v6779_v16  ;;  %19501 = vst [vmem:[#allocation41_spill] sm:$0xff] %v17284_v52 }
 0x3ec   :  { %6930 = vrot.lane.b32.xlu1 %v6739_v27, %s14709_s19  ;;  %v17287_v47 = vpop.f32.mrf.mxu1  ;;  %v6952_v22 = vsel %vm49_vm3, %v6522_v24, %v6785_v29 }
 0x3ed   :  { %19502 = vst [vmem:[#allocation42_spill] sm:$0xff] %v17287_v47 }
 0x3ee   :  { %v6875_v7 = vpop.permute.xlu1 %6874 }
 0x3ef   :  { %v7035_v13 = vsel %vm159_vm5, %v6943_v15, %v6875_v7  ;;  %v6881_v46 = vpop.permute.xlu0 %6880  ;;  %v17296_v15 = vpop.f32.mrf.mxu1 }
 0x3f0   :  { %14026 = vmatmul.mubr.msk.bf16.gmra.mxu1 %vm5708_vm6, %v7035_v13  ;;  %v7041_v56 = vsel %vm159_vm5, %v6952_v22, %v6881_v46  ;;  %19503 = vst [vmem:[#allocation43_spill] sm:$0xff] %v17296_v15 }
 0x3f1   :  { %14029 = vmatprep.mubr.msk.bf16.mxu1 %vm5708_vm6, %v7037_v61  ;;  %v17298_v13 = vpop.f32.mrf.mxu1 }
 0x3f2   :  { %v6783_v32 = vpop.permute.xlu1 %6782  ;;  %19504 = vst [vmem:[#allocation44_spill] sm:$0xff] %v17298_v13 }
 0x3f3   :  { %v6789_v27 = vpop.permute.xlu0 %6788  ;;  %v6949_v8 = vsel %vm49_vm3, %v16964_v37, %v6783_v32  ;;  %v17308_v23 = vpop.f32.mrf.mxu1 }
 0x3f4   :  { %v6958_v29 = vsel %vm49_vm3, %v16990_v45, %v6789_v27  ;;  %19505 = vst [vmem:[#allocation45_spill] sm:$0xff] %v17308_v23 }
 0x3f6   :  { %v6879_v11 = vpop.permute.xlu1 %6878 }
 0x3f7   :  { %v7039_v16 = vsel %vm159_vm5, %v6949_v8, %v6879_v11  ;;  %v6885_v41 = vpop.permute.xlu0 %6884  ;;  %v17310_v8 = vpop.f32.mrf.mxu1 }
 0x3f8   :  { %14030 = vmatmul.mubr.msk.bf16.gmra.mxu1 %vm5708_vm6, %v7039_v16  ;;  %v7045_v50 = vsel %vm159_vm5, %v6958_v29, %v6885_v41  ;;  %19506 = vst [vmem:[#allocation46_spill] sm:$0xff] %v17310_v8  ;;  %v6515_v8 = vld [vmem:[#allocation3 + $0x350] sm:$0xff] }
 0x3f9   :  { %14033 = vmatprep.mubr.msk.bf16.mxu1 %vm5708_vm6, %v7041_v56  ;;  %v17317_v16 = vpop.f32.mrf.mxu1 }
 0x3fa   :  { %v6787_v7 = vpop.permute.xlu1 %6786  ;;  %19507 = vst [vmem:[#allocation47_spill] sm:$0xff] %v17317_v16 }
 0x3fb   :  { %v6793_v2 = vpop.permute.xlu0 %6792  ;;  %v6955_v37 = vsel %vm49_vm3, %v16986_v42, %v6787_v7 }
 0x3fc   :  { %v6964_v45 = vsel %vm49_vm3, %v17014_v4, %v6793_v2 }
 0x3fe   :  { %v6883_v61 = vpop.permute.xlu1 %6882 }
 0x3ff   :  { %v7043_v54 = vsel %vm159_vm5, %v6955_v37, %v6883_v61  ;;  %v6889_v46 = vpop.permute.xlu0 %6888  ;;  %v17322_v37 = vpop.f32.mrf.mxu1 }
 0x400   :  { %14034 = vmatmul.mubr.msk.bf16.gmra.mxu1 %vm5708_vm6, %v7043_v54  ;;  %v7049_v41 = vsel %vm159_vm5, %v6964_v45, %v6889_v46  ;;  %19508 = vst [vmem:[#allocation48_spill] sm:$0xff] %v17322_v37 }
 0x401   :  { %14037 = vmatprep.mubr.msk.bf16.mxu1 %vm5708_vm6, %v7045_v50  ;;  %v17329_v54 = vpop.f32.mrf.mxu1 }
 0x402   :  { %v6791_v32 = vpop.permute.xlu1 %6790  ;;  %19509 = vst [vmem:[#allocation49_spill] sm:$0xff] %v17329_v54  ;;  %v6513_v54 = vld [vmem:[#allocation3 + $0x338] sm:$0xff] }
 0x403   :  { %v6797_v24 = vpop.permute.xlu0 %6796  ;;  %v6961_v42 = vsel %vm49_vm3, %v17010_v39, %v6791_v32  ;;  %v17334_v50 = vpop.f32.mrf.mxu1  ;;  %v6480_v32 = vld [vmem:[#allocation3 + $0x180] sm:$0xff] }
 0x404   :  { %v6970_v4 = vsel %vm49_vm3, %v17040_v3, %v6797_v24  ;;  %19510 = vst [vmem:[#allocation50_spill] sm:$0xff] %v17334_v50  ;;  %v6512_v50 = vld [vmem:[#allocation3 + $0x330] sm:$0xff] }
 0x405   :  { %v6546_v16 = vpack.c.bf16 %v6513_v54, %v6512_v50 }
 0x406   :  { %v6887_v11 = vpop.permute.xlu1 %6886 }
 0x407   :  { %v7047_v27 = vsel %vm159_vm5, %v6961_v42, %v6887_v11  ;;  %v6893_v22 = vpop.permute.xlu0 %6892  ;;  %v6481_v42 = vld [vmem:[#allocation3 + $0x188] sm:$0xff] }
 0x408   :  { %14038 = vmatmul.mubr.msk.bf16.gmra.mxu1 %vm5708_vm6, %v7047_v27  ;;  %v7053_v46 = vsel %vm159_vm5, %v6970_v4, %v6893_v22  ;;  %v6530_v45 = vpack.c.bf16 %v6481_v42, %v6480_v32  ;;  %v17336_v27 = vpop.f32.mrf.mxu1 }
 0x409   :  { %14041 = vmatprep.mubr.msk.bf16.mxu1 %vm5708_vm6, %v7049_v41  ;;  %19511 = vst [vmem:[#allocation51_spill] sm:$0xff] %v17336_v27  ;;  %v19518_v27 = vmov 0.0  }
 0x40a   :  { %v6795_v56 = vpop.permute.xlu1 %6794  ;;  %164 = vst.msk [vmem:[#allocation5 + $0x18] sm:$0x3] %vm161_vm7, %v19518_v27  ;;  %162 = vst.msk [vmem:[#allocation5 + $0x8] sm:$0x3] %vm161_vm7, %v19518_v27 }
 0x40b   :  { %v6801_v7 = vpop.permute.xlu0 %6800  ;;  %v6967_v39 = vsel %vm49_vm3, %v17036_v17, %v6795_v56  ;;  %166 = vst.msk [vmem:[#allocation5 + $0x28] sm:$0x3] %vm161_vm7, %v19518_v27  ;;  %168 = vst.msk [vmem:[#allocation5 + $0x38] sm:$0x3] %vm161_vm7, %v19518_v27 }
 0x40c   :  { %v6976_v41 = vsel %vm49_vm3, %v6530_v45, %v6801_v7  ;;  %170 = vst.msk [vmem:[#allocation5 + $0x48] sm:$0x3] %vm161_vm7, %v19518_v27  ;;  %172 = vst.msk [vmem:[#allocation5 + $0x58] sm:$0x3] %vm161_vm7, %v19518_v27 }
 0x40d   :  { %174 = vst.msk [vmem:[#allocation5 + $0x68] sm:$0x3] %vm161_vm7, %v19518_v27  ;;  %176 = vst.msk [vmem:[#allocation5 + $0x78] sm:$0x3] %vm161_vm7, %v19518_v27 }
 0x40e   :  { %v6891_v61 = vpop.permute.xlu1 %6890  ;;  %178 = vst.msk [vmem:[#allocation5 + $0x88] sm:$0x3] %vm161_vm7, %v19518_v27  ;;  %180 = vst.msk [vmem:[#allocation5 + $0x98] sm:$0x3] %vm161_vm7, %v19518_v27 }
 0x40f   :  { %v7051_v2 = vsel %vm159_vm5, %v6967_v39, %v6891_v61  ;;  %v6897_v29 = vpop.permute.xlu0 %6896  ;;  %v6482_v39 = vld [vmem:[#allocation3 + $0x198] sm:$0xff]  ;;  %v6483_v61 = vld [vmem:[#allocation3 + $0x1a0] sm:$0xff]  ;;  %182 = vst.msk [vmem:[#allocation5 + $0xa8] sm:$0x3] %vm161_vm7, %v19518_v27  ;;  %184 = vst.msk [vmem:[#allocation5 + $0xb8] sm:$0x3] %vm161_vm7, %v19518_v27 }
 0x410   :  { %14042 = vmatmul.mubr.msk.bf16.gmra.mxu1 %vm5708_vm6, %v7051_v2  ;;  %v7057_v4 = vsel %vm159_vm5, %v6976_v41, %v6897_v29  ;;  %v17345_v2 = vpop.f32.mrf.mxu1  ;;  %186 = vst.msk [vmem:[#allocation5 + $0xc8] sm:$0x3] %vm161_vm7, %v19518_v27  ;;  %188 = vst.msk [vmem:[#allocation5 + $0xd8] sm:$0x3] %vm161_vm7, %v19518_v27 }
 0x411   :  { %14045 = vmatprep.mubr.msk.bf16.mxu1 %vm5708_vm6, %v7053_v46  ;;  %19512 = vst [vmem:[#allocation52_spill] sm:$0xff] %v17345_v2  ;;  %v6531_v46 = vpack.c.bf16 %v6483_v61, %v6482_v39  ;;  %190 = vst.msk [vmem:[#allocation5 + $0xe8] sm:$0x3] %vm161_vm7, %v19518_v27 }
 0x412   :  { %v6799_v17 = vpop.permute.xlu1 %6798  ;;  %v17350_v7 = vpop.f32.mrf.mxu1  ;;  %192 = vst.msk [vmem:[#allocation5 + $0xf8] sm:$0x3] %vm161_vm7, %v19518_v27  ;;  %194 = vst.msk [vmem:[#allocation5 + $0x108] sm:$0x3] %vm161_vm7, %v19518_v27 }
 0x413   :  { %v6805_v11 = vpop.permute.xlu0 %6804  ;;  %v6973_v3 = vsel %vm49_vm3, %v17060_v40, %v6799_v17  ;;  %v14244_v40 = vld [vmem:[%s19442_s7 + $0xd0] sm:$0xff]   ;;  %19513 = vst [vmem:[#allocation53_spill] sm:$0xff] %v17350_v7  ;;  %196 = vst.msk [vmem:[#allocation5 + $0x118] sm:$0x3] %vm161_vm7, %v19518_v27 }
 0x414   :  { %9428 = vmatpush1.bf16.msra.mxu0 %v14244_v40  ;;  %v6982_v29 = vsel %vm49_vm3, %v17085_v60, %v6805_v11  ;;  %198 = vst.msk [vmem:[#allocation5 + $0x128] sm:$0x3] %vm161_vm7, %v19518_v27  ;;  %200 = vst.msk [vmem:[#allocation5 + $0x138] sm:$0x3] %vm161_vm7, %v19518_v27 }
 0x415   :  { %9429 = vmatprep.subr.bf16.mxu0 %v19466_v53 }
 0x416   :  { %v6895_v24 = vpop.permute.xlu1 %6894 }
 0x417   :  { %v7055_v22 = vsel %vm159_vm5, %v6973_v3, %v6895_v24  ;;  %v6901_v56 = vpop.permute.xlu0 %6900 }
 0x418   :  { %14046 = vmatmul.mubr.msk.bf16.gmra.mxu1 %vm5708_vm6, %v7055_v22  ;;  %v7061_v41 = vsel %vm159_vm5, %v6982_v29, %v6901_v56 }
 0x419   :  { %14049 = vmatprep.mubr.msk.bf16.mxu1 %vm5708_vm6, %v7057_v4 }
 0x41a   :  { %v6803_v32 = vpop.permute.xlu1 %6802 }
 0x41b   :  { %v6809_v42 = vpop.permute.xlu0 %6808  ;;  %v6979_v17 = vsel %vm49_vm3, %v6531_v46, %v6803_v32 }
 0x41c   :  { %v6988_v56 = vsel %vm49_vm3, %v17106_v58, %v6809_v42 }
 0x41e   :  { %v6899_v45 = vpop.permute.xlu1 %6898 }
 0x41f   :  { %v7059_v3 = vsel %vm159_vm5, %v6979_v17, %v6899_v45  ;;  %v6905_v24 = vpop.permute.xlu0 %6904 }
 0x420   :  { %v17358_v22 = vpop.f32.mrf.mxu1  ;;  %14050 = vmatmul.mubr.msk.bf16.gmra.mxu1 %vm5708_vm6, %v7059_v3  ;;  %v7065_v45 = vsel %vm159_vm5, %v6988_v56, %v6905_v24 }
 0x421   :  { %19514 = vst [vmem:[#allocation54_spill] sm:$0xff] %v17358_v22  ;;  %14053 = vmatprep.mubr.msk.bf16.mxu1 %vm5708_vm6, %v7061_v41 }
 0x422   :  { %v17362_v39 = vpop.f32.mrf.mxu1  ;;  %v6807_v61 = vpop.permute.xlu1 %6806 }
 0x423   :  { %19515 = vst [vmem:[#allocation55_spill] sm:$0xff] %v17362_v39  ;;  %v6813_v4 = vpop.permute.xlu0 %6812  ;;  %v6985_v60 = vsel %vm49_vm3, %v17103_v18, %v6807_v61 }
 0x424   :  { %v17364_v46 = vpop.f32.mrf.mxu1  ;;  %v6994_v24 = vsel %vm49_vm3, %v17132_v25, %v6813_v4 }
 0x425   :  { %19516 = vst [vmem:[#allocation56_spill] sm:$0xff] %v17364_v46 }
 0x426   :  { %v17368_v11 = vpop.f32.mrf.mxu1  ;;  %v6903_v32 = vpop.permute.xlu1 %6902 }
 0x427   :  { %19517 = vst [vmem:[#allocation57_spill] sm:$0xff] %v17368_v11  ;;  %v7063_v40 = vsel %vm159_vm5, %v6985_v60, %v6903_v32  ;;  %v6909_v17 = vpop.permute.xlu0 %6908 }
 0x428   :  { %v17374_v29 = vpop.f32.mrf.mxu1  ;;  %14054 = vmatmul.mubr.msk.bf16.gmra.mxu1 %vm5708_vm6, %v7063_v40  ;;  %v7069_v40 = vsel %vm159_vm5, %v6994_v24, %v6909_v17 }
 0x429   :  { %14057 = vmatprep.mubr.msk.bf16.mxu1 %vm5708_vm6, %v7065_v45 }
 0x42a   :  { %v6811_v3 = vpop.permute.xlu1 %6810  ;;  %v17378_v41 = vpop.f32.mrf.mxu1 }
 0x42b   :  { %v6817_v18 = vpop.permute.xlu0 %6816  ;;  %v6991_v58 = vsel %vm49_vm3, %v17128_v20, %v6811_v3 }
 0x42c   :  { %v17380_v61 = vpop.f32.mrf.mxu1  ;;  %v7000_v17 = vsel %vm49_vm3, %v17156_v5, %v6817_v18 }
 0x42e   :  { %v6907_v42 = vpop.permute.xlu1 %6906  ;;  %v17384_v60 = vpop.f32.mrf.mxu1 }
 0x42f   :  { %v7067_v32 = vsel %vm159_vm5, %v6991_v58, %v6907_v42  ;;  %v6913_v56 = vpop.permute.xlu0 %6912 }
 0x430   :  { %v17390_v45 = vpop.f32.mrf.mxu1  ;;  %14058 = vmatmul.mubr.msk.bf16.gmra.mxu1 %vm5708_vm6, %v7067_v32  ;;  %v7073_v32 = vsel %vm159_vm5, %v7000_v17, %v6913_v56 }
 0x431   :  { %14061 = vmatprep.mubr.msk.bf16.mxu1 %vm5708_vm6, %v7069_v40 }
 0x432   :  { %v6815_v11 = vpop.permute.xlu1 %6814  ;;  %v17394_v46 = vpop.f32.mrf.mxu1 }
 0x433   :  { %v6821_v20 = vpop.permute.xlu0 %6820  ;;  %v6997_v25 = vsel %vm49_vm3, %v17152_v12, %v6815_v11 }
 0x434   :  { %v17396_v3 = vpop.f32.mrf.mxu1  ;;  %v7006_v56 = vsel %vm49_vm3, %v17179_v28, %v6821_v20 }
 0x436   :  { %v6911_v4 = vpop.permute.xlu1 %6910  ;;  %v17400_v58 = vpop.f32.mrf.mxu1 }
 0x437   :  { %v7071_v42 = vsel %vm159_vm5, %v6997_v25, %v6911_v4  ;;  %v6917_v24 = vpop.permute.xlu0 %6916 }
 0x438   :  { %v17406_v40 = vpop.f32.mrf.mxu1  ;;  %14062 = vmatmul.mubr.msk.bf16.gmra.mxu1 %vm5708_vm6, %v7071_v42  ;;  %v7077_v42 = vsel %vm159_vm5, %v7006_v56, %v6917_v24 }
 0x439   :  { %14065 = vmatprep.mubr.msk.bf16.mxu1 %vm5708_vm6, %v7073_v32 }
 0x43a   :  { %v6819_v39 = vpop.permute.xlu1 %6818  ;;  %v17410_v22 = vpop.f32.mrf.mxu1 }
 0x43b   :  { %v6825_v12 = vpop.permute.xlu0 %6824  ;;  %v7003_v5 = vsel %vm49_vm3, %v17176_v26, %v6819_v39 }
 0x43c   :  { %v17412_v11 = vpop.f32.mrf.mxu1  ;;  %v7012_v24 = vsel %vm49_vm3, %v17205_v6, %v6825_v12 }
 0x43e   :  { %v6915_v18 = vpop.permute.xlu1 %6914  ;;  %v17416_v25 = vpop.f32.mrf.mxu1 }
 0x43f   :  { %v7075_v4 = vsel %vm159_vm5, %v7003_v5, %v6915_v18  ;;  %v6921_v17 = vpop.permute.xlu0 %6920 }
 0x440   :  { %v17422_v32 = vpop.f32.mrf.mxu1  ;;  %14066 = vmatmul.mubr.msk.bf16.gmra.mxu1 %vm5708_vm6, %v7075_v4  ;;  %v7081_v56 = vsel %vm159_vm5, %v7012_v24, %v6921_v17 }
 0x441   :  { %14069 = vmatprep.mubr.msk.bf16.mxu1 %vm5708_vm6, %v7077_v42 }
 0x442   :  { %v6823_v7 = vpop.permute.xlu1 %6822  ;;  %v17426_v2 = vpop.f32.mrf.mxu1 }
 0x443   :  { %v6829_v26 = vpop.permute.xlu0 %6828  ;;  %v7009_v28 = vsel %vm49_vm3, %v17202_v57, %v6823_v7 }
 0x444   :  { %v17428_v39 = vpop.f32.mrf.mxu1 }
 0x446   :  { %v6919_v20 = vpop.permute.xlu1 %6918  ;;  %v17432_v5 = vpop.f32.mrf.mxu1 }
 0x447   :  { %v7079_v18 = vsel %vm159_vm5, %v7009_v28, %v6919_v20  ;;  %v6925_v42 = vpop.permute.xlu0 %6924  ;;  %v7018_v20 = vsel %vm49_vm3, %v17225_v14, %v6829_v26 }
 0x448   :  { %v17438_v4 = vpop.f32.mrf.mxu1  ;;  %14070 = vmatmul.mubr.msk.bf16.gmra.mxu1 %vm5708_vm6, %v7079_v18 }
 0x449   :  { %14073 = vmatprep.mubr.msk.bf16.mxu1 %vm5708_vm6, %v7081_v56  ;;  %v7085_v56 = vsel %vm159_vm5, %v7018_v20, %v6925_v42 }
 0x44a   :  { %v6827_v6 = vpop.permute.xlu1 %6826  ;;  %v17482_v57 = vpop.f32.mrf.mxu1 }
 0x44b   :  { %v7015_v12 = vsel %vm49_vm3, %v17222_v62, %v6827_v6  ;;  %v6833_v24 = vpop.permute.xlu0 %6832 }
 0x44c   :  { %v17484_v7 = vpop.f32.mrf.mxu1  ;;  %v7024_v20 = vsel %vm49_vm3, %v6546_v16, %v6833_v24 }
 0x44e   :  { %v6923_v17 = vpop.permute.xlu1 %6922  ;;  %v17488_v28 = vpop.f32.mrf.mxu1 }
 0x44f   :  { %v7083_v18 = vsel %vm159_vm5, %v7015_v12, %v6923_v17  ;;  %v6929_v14 = vpop.permute.xlu0 %6928  ;;  %v14245_v17 = vld [vmem:[%s19442_s7 + $0xc8] sm:$0xff]  }
 0x450   :  { %v17494_v27 = vpop.f32.mrf.mxu1  ;;  %14074 = vmatmul.mubr.msk.bf16.gmra.mxu1 %vm5708_vm6, %v7083_v18  ;;  %v7089_v23 = vsel %vm159_vm5, %v7024_v20, %v6929_v14  ;;  %9430 = vmatpush1.bf16.msra.mxu0 %v14245_v17 }
 0x451   :  { %14077 = vmatprep.mubr.msk.bf16.mxu1 %vm5708_vm6, %v7085_v56  ;;  %v6514_v56 = vld [vmem:[#allocation3 + $0x348] sm:$0xff]  ;;  %9431 = vmatprep.subr.bf16.mxu0 %v19466_v53 }
 0x452   :  { %v6831_v62 = vpop.permute.xlu1 %6830  ;;  %v17498_v6 = vpop.f32.mrf.mxu1 }
 0x453   :  { %v7021_v26 = vsel %vm49_vm3, %v17242_v43, %v6831_v62  ;;  %v6547_v43 = vpack.c.bf16 %v6515_v8, %v6514_v56 }
 0x454   :  { %v17500_v37 = vpop.f32.mrf.mxu1  ;;  %9432 = vmatpush1.bf16.msra.mxu0 %v14246_v30  ;;  %v14247_v30 = vld [vmem:[%s19442_s7 + $0x98] sm:$0xff]  }
 0x455   :  { %9441 = vmatprep.subr.bf16.mxu0 %v19466_v53  ;;  %8702 = vmatpush1.bf16.msra.mxu1 %v14247_v30 }
 0x456   :  { %v6927_v12 = vpop.permute.xlu1 %6926  ;;  %v17504_v42 = vpop.f32.mrf.mxu1  ;;  %8703 = vmatprep.subr.bf16.mxu1 %v19466_v53 }
 0x457   :  { %v7087_v18 = vsel %vm159_vm5, %v7021_v26, %v6927_v12 }
 0x458   :  { %v17512_v54 = vpop.f32.mrf.mxu1  ;;  %14078 = vmatmul.mubr.msk.bf16.gmra.mxu1 %vm5708_vm6, %v7087_v18 }
 0x459   :  { %14081 = vmatprep.mubr.msk.bf16.mxu1 %vm5708_vm6, %v7089_v23 }
 0x45a   :  { %v6835_v50 = vpop.permute.xlu1 %6834  ;;  %v17517_v62 = vpop.f32.mrf.mxu1 }
 0x45b   :  { %v7027_v24 = vsel %vm49_vm3, %v6547_v43, %v6835_v50 }
 0x45c   :  { %v17519_v16 = vpop.f32.mrf.mxu1 }
 0x45e   :  { %v6931_v26 = vpop.permute.xlu1 %6930  ;;  %v17522_v12 = vpop.f32.mrf.mxu1 }
 0x45f   :  { %v7091_v14 = vsel %vm159_vm5, %v7027_v24, %v6931_v26 }
 0x460   :  { %v17525_v20 = vpop.f32.mrf.mxu1  ;;  %14082 = vmatmul.mubr.msk.bf16.gmra.mxu1 %vm5708_vm6, %v7091_v14 }
 0x462   :  { %v17528_v23 = vpop.f32.mrf.mxu1 }
 0x464   :  { %v17530_v17 = vpop.f32.mrf.mxu1 }
 0x466   :  { %v17532_v8 = vpop.f32.mrf.mxu1 }
 0x468   :  { %v17534_v18 = vpop.f32.mrf.mxu1 }
 0x46a   :  { %v17536_v56 = vpop.f32.mrf.mxu1 }
 0x46c   :  { %v17538_v43 = vpop.f32.mrf.mxu1 }
 0x46d   :  { %19519 = vst [vmem:[#allocation58_spill] sm:$0xff] %v17538_v43 }
 0x46e   :  { %v17540_v50 = vpop.f32.mrf.mxu1 }
 0x46f   :  { %19520 = vst [vmem:[#allocation59_spill] sm:$0xff] %v17540_v50 }
 0x470   :  { %v17542_v13 = vpop.f32.mrf.mxu1 }
 0x471   :  { %19521 = vst [vmem:[#allocation60_spill] sm:$0xff] %v17542_v13 }
 0x472   :  { %v17544_v24 = vpop.f32.mrf.mxu1 }
 0x473   :  { %19522 = vst [vmem:[#allocation61_spill] sm:$0xff] %v17544_v24 }
 0x474   :  { %v17546_v26 = vpop.f32.mrf.mxu1 }
 0x475   :  { %19523 = vst [vmem:[#allocation62_spill] sm:$0xff] %v17546_v26 }
 0x476   :  { %v17548_v14 = vpop.f32.mrf.mxu1 }
 0x477   :  { %19524 = vst [vmem:[#allocation63_spill] sm:$0xff] %v17548_v14 }
 0x478   :  { %v17550_v15 = vpop.f32.mrf.mxu1 }
 0x479   :  { %19525 = vst [vmem:[#allocation64_spill] sm:$0xff] %v17550_v15 }
 0x47a   :  { %v17552_v47 = vpop.f32.mrf.mxu1 }
 0x47b   :  { %19526 = vst [vmem:[#allocation65_spill] sm:$0xff] %v17552_v47 }
 0x47c   :  { %v17554_v52 = vpop.f32.mrf.mxu1 }
 0x47d   :  { %19527 = vst [vmem:[#allocation66_spill] sm:$0xff] %v17554_v52 }
 0x47e   :  { %v17556_v1 = vpop.f32.mrf.mxu1 }
 0x47f   :  { %19528 = vst [vmem:[#allocation67_spill] sm:$0xff] %v17556_v1 }
 0x480   :  { %v17558_v59 = vpop.f32.mrf.mxu1 }
 0x481   :  { %19529 = vst [vmem:[#allocation68_spill] sm:$0xff] %v17558_v59 }
 0x482   :  { %v17560_v9 = vpop.f32.mrf.mxu1 }
 0x483   :  { %19530 = vst [vmem:[#allocation69_spill] sm:$0xff] %v17560_v9 }
 0x484   :  { %v17565_v24 = vpop.f32.mrf.mxu1 }
 0x485   :  { %19531 = vst [vmem:[#allocation70_spill] sm:$0xff] %v17565_v24 }
 0x486   :  { %v17567_v14 = vpop.f32.mrf.mxu1 }
 0x487   :  { %19532 = vst [vmem:[#allocation71_spill] sm:$0xff] %v17567_v14 }
 0x488   :  { %v17570_v47 = vpop.f32.mrf.mxu1 }
 0x489   :  { %19533 = vst [vmem:[#allocation72_spill] sm:$0xff] %v17570_v47  ;;  %v14248_v47 = vld [vmem:[%s19442_s7 + $0x90] sm:$0xff]  }
 0x48a   :  { %v17572_v52 = vpop.f32.mrf.mxu1  ;;  %8704 = vmatpush1.bf16.msra.mxu1 %v14248_v47  ;;  %v14249_v47 = vld [vmem:[%s19442_s7 + $0x88] sm:$0xff]  }
 0x48b   :  { %19534 = vst [vmem:[#allocation73_spill] sm:$0xff] %v17572_v52  ;;  %8705 = vmatprep.subr.bf16.mxu1 %v19466_v53 }
 0x48c   :  { %v17574_v1 = vpop.f32.mrf.mxu1 }
 0x48d   :  { %19535 = vst [vmem:[#allocation74_spill] sm:$0xff] %v17574_v1 }
 0x48e   :  { %v17576_v59 = vpop.f32.mrf.mxu1  ;;  %8706 = vmatpush1.bf16.msra.mxu1 %v14249_v47 }
 0x48f   :  { %19536 = vst [vmem:[#allocation75_spill] sm:$0xff] %v17576_v59  ;;  %8707 = vmatprep.subr.bf16.mxu1 %v19466_v53 }
 0x490   :  { %v17578_v9 = vpop.f32.mrf.mxu1 }
 0x491   :  { %19537 = vst [vmem:[#allocation76_spill] sm:$0xff] %v17578_v9 }
 0x492   :  { %v17580_v15 = vpop.f32.mrf.mxu1 }
 0x493   :  { %19538 = vst [vmem:[#allocation77_spill] sm:$0xff] %v17580_v15 }
 0x494   :  { %v17582_v26 = vpop.f32.mrf.mxu1 }
 0x495   :  { %19539 = vst [vmem:[#allocation78_spill] sm:$0xff] %v17582_v26 }
 0x496   :  { %v17587_v14 = vpop.f32.mrf.mxu1 }
 0x497   :  { %19540 = vst [vmem:[#allocation79_spill] sm:$0xff] %v17587_v14 }
 0x498   :  { %v17590_v52 = vpop.f32.mrf.mxu1 }
 0x499   :  { %19541 = vst [vmem:[#allocation80_spill] sm:$0xff] %v17590_v52 }
 0x49a   :  { %v17592_v1 = vpop.f32.mrf.mxu1 }
 0x49b   :  { %19542 = vst [vmem:[#allocation81_spill] sm:$0xff] %v17592_v1 }
 0x49c   :  { %v17594_v59 = vpop.f32.mrf.mxu1 }
 0x49d   :  { %19543 = vst [vmem:[#allocation82_spill] sm:$0xff] %v17594_v59  ;;  %v6205_v59 = vadd.f32 %v17374_v29, %v16849_v33  ;;  %v19549_v29 = vld [vmem:[#allocation15_spill] sm:$0xff] }
 0x49e   :  { %v17596_v9 = vpop.f32.mrf.mxu1 }
 0x49f   :  { %19544 = vst [vmem:[#allocation83_spill] sm:$0xff] %v17596_v9 }
 0x4a0   :  { %v17598_v15 = vpop.f32.mrf.mxu1 }
 0x4a1   :  { %19545 = vst [vmem:[#allocation84_spill] sm:$0xff] %v17598_v15  ;;  %v17615_v15 = vld [vmem:[%s19440_s5] ss:$0 sm:$0xff] }
 0x4a2   :  { %v17600_v26 = vpop.f32.mrf.mxu1 }
 0x4a3   :  { %19546 = vst [vmem:[#allocation85_spill] sm:$0xff] %v17600_v26  ;;  %v6197_v26 = vadd.f32 %v17378_v41, %v16856_v10  ;;  %v14250_v10 = vld [vmem:[%s19442_s7 + $0x118] sm:$0xff]  }
 0x4a4   :  { %v17605_v14 = vpop.f32.mrf.mxu1  ;;  %9442 = vmatpush2.bf16.msra.mxu0 %v14250_v10 }
 0x4a5   :  { %19547 = vst [vmem:[#allocation86_spill] sm:$0xff] %v17605_v14  ;;  %v6208_v14 = vadd.f32 %v17380_v61, %v19549_v29  ;;  %v6221_v61 = vadd.f32 %v17390_v45, %v16870_v55  ;;  %9443 = vmatprep.subr.bf16.mxu0 %v19466_v53 }
 0x4a6   :  { %v17607_v30 = vpop.f32.mrf.mxu1 }
 0x4a7   :  { %19548 = vst [vmem:[#allocation87_spill] sm:$0xff] %v17607_v30  ;;  %v17625_v30 = vld [vmem:[%s19441_s6] ss:$0 sm:$0xff] }
 0x4a8   :  { %v14023_v1 = vpop.f32.mrf.mxu1 }
 0x4a9   :  { %v7496_v9 = vadd.f32 %v14023_v1, %v6205_v59  ;;  %v19550_v1 = vld [vmem:[#allocation16_spill] sm:$0xff] }
 0x4aa   :  { %v7239_v33 = vpop.f32.mrf.mxu1  ;;  %v6200_v41 = vadd.f32 %v17384_v60, %v19550_v1 }
 0x4ab   :  { %v7567_v52 = vmul.f32 %v17615_v15, %v7496_v9  ;;  %v7494_v24 = vadd.f32 %v7239_v33, %v6197_v26  ;;  %v14251_v9 = vld [vmem:[%s19442_s7 + $0x80] sm:$0xff]  }
 0x4ac   :  { %v14024_v59 = vpop.f32.mrf.mxu1  ;;  %8708 = vmatpush1.bf16.msra.mxu1 %v14251_v9 }
 0x4ad   :  { %v7638_v13 = vadd.f32 %v17625_v30, %v7567_v52  ;;  %v7565_v50 = vmul.f32 %v17615_v15, %v7494_v24  ;;  %v7497_v43 = vadd.f32 %v14024_v59, %v6208_v14  ;;  %v6213_v24 = vadd.f32 %v17394_v46, %v16878_v51  ;;  %8709 = vmatprep.subr.bf16.mxu1 %v19466_v53 }
 0x4ae   :  { %v7242_v26 = vpop.f32.mrf.mxu1 }
 0x4af   :  { %v7702_v47 = vmax.f32 %v7638_v13, 0.0  ;;  %v7636_v33 = vadd.f32 %v17625_v30, %v7565_v50  ;;  %v7568_v60 = vmul.f32 %v17615_v15, %v7497_v43  ;;  %v7495_v52 = vadd.f32 %v7242_v26, %v6200_v41  ;;  %v14252_v43 = vld [vmem:[%s19442_s7 + $0x78] sm:$0xff]  }
 0x4b0   :  { %v14027_v14 = vpop.f32.mrf.mxu1  ;;  %v6224_v50 = vadd.f32 %v17396_v3, %v16886_v35  ;;  %8710 = vmatpush1.bf16.msra.mxu1 %v14252_v43  ;;  %v6216_v41 = vadd.f32 %v17400_v58, %v16897_v31 }
 0x4b1   :  { %7766 = vst.msk [vmem:[#allocation4 + $0x10] sm:$0xff] %vm159_vm5, %v7702_v47  ;;  %v7700_v29 = vmax.f32 %v7636_v33, 0.0  ;;  %v7639_v55 = vadd.f32 %v17625_v30, %v7568_v60  ;;  %v7566_v45 = vmul.f32 %v17615_v15, %v7495_v52  ;;  %v7500_v13 = vadd.f32 %v14027_v14, %v6221_v61  ;;  %8711 = vmatprep.subr.bf16.mxu1 %v19466_v53  ;;  %v14253_v47 = vld [vmem:[%s19442_s7 + $0x70] sm:$0xff]  }
 0x4b2   :  { %v7255_v10 = vpop.f32.mrf.mxu1  ;;  %v6237_v33 = vadd.f32 %v17406_v40, %v16907_v44  ;;  %v6229_v14 = vadd.f32 %v17410_v22, %v16917_v21 }
 0x4b3   :  { %7764 = vst.msk [vmem:[#allocation4] sm:$0xff] %vm159_vm5, %v7700_v29  ;;  %v7703_v51 = vmax.f32 %v7639_v55, 0.0  ;;  %v7637_v46 = vadd.f32 %v17625_v30, %v7566_v45  ;;  %v7571_v59 = vmul.f32 %v17615_v15, %v7500_v13  ;;  %v7498_v1 = vadd.f32 %v7255_v10, %v6213_v24  ;;  %v14254_v13 = vld [vmem:[%s19442_s7 + $0x68] sm:$0xff]  }
 0x4b4   :  { %v14028_v9 = vpop.f32.mrf.mxu1  ;;  %8712 = vmatpush1.bf16.msra.mxu1 %v14253_v47 }
 0x4b5   :  { %7767 = vst.msk [vmem:[#allocation4 + $0x18] sm:$0xff] %vm159_vm5, %v7703_v51  ;;  %v7701_v61 = vmax.f32 %v7637_v46, 0.0  ;;  %v7642_v35 = vadd.f32 %v17625_v30, %v7571_v59  ;;  %v7569_v3 = vmul.f32 %v17615_v15, %v7498_v1  ;;  %v7501_v26 = vadd.f32 %v14028_v9, %v6224_v50  ;;  %8713 = vmatprep.subr.bf16.mxu1 %v19466_v53 }
 0x4b6   :  { %v7258_v60 = vpop.f32.mrf.mxu1  ;;  %v6240_v51 = vadd.f32 %v17412_v11, %v16935_v36  ;;  %v6232_v9 = vadd.f32 %v17416_v25, %v16945_v38  ;;  %v6253_v36 = vadd.f32 %v17422_v32, %v16953_v0  ;;  %v6245_v0 = vadd.f32 %v17426_v2, %v16962_v63 }
 0x4b7   :  { %7765 = vst.msk [vmem:[#allocation4 + $0x8] sm:$0xff] %vm159_vm5, %v7701_v61  ;;  %v7706_v31 = vmax.f32 %v7642_v35, 0.0  ;;  %v7640_v58 = vadd.f32 %v17625_v30, %v7569_v3  ;;  %v7572_v52 = vmul.f32 %v17615_v15, %v7501_v26  ;;  %v7499_v24 = vadd.f32 %v7258_v60, %v6216_v41  ;;  %v14255_v41 = vld [vmem:[%s19442_s7 + $0x60] sm:$0xff]  }
 0x4b8   :  { %v14031_v29 = vpop.f32.mrf.mxu1  ;;  %8714 = vmatpush1.bf16.msra.mxu1 %v14254_v13  ;;  %v14259_v13 = vld [vmem:[%s19442_s7 + $0x110] sm:$0xff]  }
 0x4b9   :  { %7770 = vst.msk [vmem:[#allocation4 + $0x30] sm:$0xff] %vm159_vm5, %v7706_v31  ;;  %v7704_v55 = vmax.f32 %v7640_v58, 0.0  ;;  %v7643_v44 = vadd.f32 %v17625_v30, %v7572_v52  ;;  %v7570_v40 = vmul.f32 %v17615_v15, %v7499_v24  ;;  %v7504_v45 = vadd.f32 %v14031_v29, %v6237_v33  ;;  %8715 = vmatprep.subr.bf16.mxu1 %v19466_v53  ;;  %v14256_v52 = vld [vmem:[%s19442_s7 + $0xb8] sm:$0xff]  }
 0x4ba   :  { %v7271_v43 = vpop.f32.mrf.mxu1  ;;  %9444 = vmatpush2.bf16.msra.mxu0 %v14259_v13 }
 0x4bb   :  { %7768 = vst.msk [vmem:[#allocation4 + $0x20] sm:$0xff] %vm159_vm5, %v7704_v55  ;;  %v7707_v50 = vmax.f32 %v7643_v44, 0.0  ;;  %v7641_v21 = vadd.f32 %v17625_v30, %v7570_v40  ;;  %v7575_v22 = vmul.f32 %v17615_v15, %v7504_v45  ;;  %v7502_v10 = vadd.f32 %v7271_v43, %v6229_v14  ;;  %9445 = vmatprep.subr.bf16.mxu0 %v19466_v53 }
 0x4bc   :  { %v7830_v46 = vld [vmem:[#allocation4 + $0x10] ss:$2 sm:$0xff]  ;;  %v7894_v59 = vld [vmem:[#allocation4 + $0x11] ss:$2 sm:$0xff]  ;;  %v14032_v1 = vpop.f32.mrf.mxu1  ;;  %8716 = vmatpush1.bf16.msra.mxu1 %v14255_v41 }
 0x4bd   :  { %7771 = vst.msk [vmem:[#allocation4 + $0x38] sm:$0xff] %vm159_vm5, %v7707_v50  ;;  %v7705_v61 = vmax.f32 %v7641_v21, 0.0  ;;  %v7646_v35 = vadd.f32 %v17625_v30, %v7575_v22  ;;  %v7573_v3 = vmul.f32 %v17615_v15, %v7502_v10  ;;  %v7956_v11 = vmax.f32 %v7830_v46, %v7894_v59  ;;  %8725 = vmatprep.subr.bf16.mxu1 %v19466_v53  ;;  %v14257_v50 = vld [vmem:[%s19442_s7 + $0xb0] sm:$0xff]  }
 0x4be   :  { %v7828_v26 = vld [vmem:[#allocation4] ss:$2 sm:$0xff]  ;;  %v7892_v47 = vld [vmem:[#allocation4 + $0x1] ss:$2 sm:$0xff]  ;;  %v7505_v33 = vadd.f32 %v14032_v1, %v6240_v51  ;;  %v7274_v60 = vpop.f32.mrf.mxu1  ;;  %v6256_v21 = vadd.f32 %v17428_v39, %v16975_v49  ;;  %v6248_v59 = vadd.f32 %v17432_v5, %v16984_v34  ;;  %v6269_v49 = vadd.f32 %v17438_v4, %v16994_v48 }
 0x4bf   :  { %v7955_v31 = vmax.f32 %v7828_v26, %v7892_v47  ;;  %7769 = vst.msk [vmem:[#allocation4 + $0x28] sm:$0xff] %vm159_vm5, %v7705_v61  ;;  %v7710_v58 = vmax.f32 %v7646_v35, 0.0  ;;  %v7644_v38 = vadd.f32 %v17625_v30, %v7573_v3  ;;  %v7503_v25 = vadd.f32 %v7274_v60, %v6232_v9  ;;  %v14258_v47 = vld [vmem:[%s19442_s7 + $0xa8] sm:$0xff]  }
 0x4c0   :  { %v7576_v32 = vmul.f32 %v17615_v15, %v7505_v33  ;;  %v14035_v24 = vpop.f32.mrf.mxu1  ;;  %8726 = vmatpush2.bf16.msra.mxu1 %v14256_v52  ;;  %v6261_v48 = vadd.f32 %v17482_v57, %v17008_v19 }
 0x4c1   :  { %v7987_v14 = vmax.f32 %v7955_v31, %v7956_v11  ;;  %7774 = vst.msk [vmem:[#allocation4 + $0x50] sm:$0xff] %vm159_vm5, %v7710_v58  ;;  %v7708_v29 = vmax.f32 %v7644_v38, 0.0  ;;  %v7574_v55 = vmul.f32 %v17615_v15, %v7503_v25  ;;  %v7508_v44 = vadd.f32 %v14035_v24, %v6253_v36  ;;  %8727 = vmatprep.subr.bf16.mxu1 %v19466_v53  ;;  %v19551_v25 = vld [vmem:[#allocation17_spill] sm:$0xff] }
 0x4c2   :  { %v7647_v40 = vadd.f32 %v17625_v30, %v7576_v32  ;;  %v7287_v45 = vpop.f32.mrf.mxu1  ;;  %v6272_v52 = vadd.f32 %v17484_v7, %v19551_v25 }
 0x4c3   :  { %7772 = vst.msk [vmem:[#allocation4 + $0x40] sm:$0xff] %vm159_vm5, %v7708_v29  ;;  %v7645_v63 = vadd.f32 %v17625_v30, %v7574_v55  ;;  %v7579_v2 = vmul.f32 %v17615_v15, %v7508_v44  ;;  %v7506_v43 = vadd.f32 %v7287_v45, %v6245_v0  ;;  %8004 = vst.msk [vmem:[#allocation5 + $0x11] sm:$0xff] %vm159_vm5, %v7987_v14  ;;  %v14260_v55 = vld [vmem:[%s19442_s7 + $0xa0] sm:$0xff]  }
 0x4c4   :  { %v7834_v22 = vld [vmem:[#allocation4 + $0x30] ss:$2 sm:$0xff]  ;;  %v7898_v10 = vld [vmem:[#allocation4 + $0x31] ss:$2 sm:$0xff]  ;;  %v7711_v51 = vmax.f32 %v7647_v40, 0.0  ;;  %v14036_v46 = vpop.f32.mrf.mxu1  ;;  %8728 = vmatpush2.bf16.msra.mxu1 %v14257_v50  ;;  %v19552_v50 = vld [vmem:[#allocation18_spill] sm:$0xff] }
 0x4c5   :  { %v7709_v1 = vmax.f32 %v7645_v63, 0.0  ;;  %v7650_v41 = vadd.f32 %v17625_v30, %v7579_v2  ;;  %v7577_v9 = vmul.f32 %v17615_v15, %v7506_v43  ;;  %v7958_v39 = vmax.f32 %v7834_v22, %v7898_v10  ;;  %8729 = vmatprep.subr.bf16.mxu1 %v19466_v53  ;;  %v19553_v22 = vld [vmem:[#allocation19_spill] sm:$0xff] }
 0x4c6   :  { %v7832_v61 = vld [vmem:[#allocation4 + $0x20] ss:$2 sm:$0xff]  ;;  %v7896_v35 = vld [vmem:[#allocation4 + $0x21] ss:$2 sm:$0xff]  ;;  %7775 = vst.msk [vmem:[#allocation4 + $0x58] sm:$0xff] %vm159_vm5, %v7711_v51  ;;  %v7509_v3 = vadd.f32 %v14036_v46, %v6256_v21  ;;  %v7290_v36 = vpop.f32.mrf.mxu1  ;;  %v6264_v21 = vadd.f32 %v17488_v28, %v19552_v50  ;;  %v6285_v10 = vadd.f32 %v17494_v27, %v19553_v22  ;;  %v19558_v22 = vld [vmem:[#allocation24_spill] sm:$0xff] }
 0x4c7   :  { %v7957_v11 = vmax.f32 %v7832_v61, %v7896_v35  ;;  %7773 = vst.msk [vmem:[#allocation4 + $0x48] sm:$0xff] %vm159_vm5, %v7709_v1  ;;  %v7714_v34 = vmax.f32 %v7650_v41, 0.0  ;;  %v7648_v5 = vadd.f32 %v17625_v30, %v7577_v9  ;;  %v7507_v26 = vadd.f32 %v7290_v36, %v6248_v59  ;;  %v19554_v61 = vld [vmem:[#allocation20_spill] sm:$0xff] }
 0x4c8   :  { %v7580_v4 = vmul.f32 %v17615_v15, %v7509_v3  ;;  %v14039_v33 = vpop.f32.mrf.mxu1  ;;  %8730 = vmatpush2.bf16.msra.mxu1 %v14258_v47  ;;  %v6277_v28 = vadd.f32 %v17498_v6, %v19554_v61 }
 0x4c9   :  { %v7988_v60 = vmax.f32 %v7957_v11, %v7958_v39  ;;  %7778 = vst.msk [vmem:[#allocation4 + $0x70] sm:$0xff] %vm159_vm5, %v7714_v34  ;;  %v7712_v31 = vmax.f32 %v7648_v5, 0.0  ;;  %v7578_v58 = vmul.f32 %v17615_v15, %v7507_v26  ;;  %v7512_v38 = vadd.f32 %v14039_v33, %v6269_v49  ;;  %8731 = vmatprep.subr.bf16.mxu1 %v19466_v53  ;;  %v19555_v5 = vld [vmem:[#allocation21_spill] sm:$0xff] }
 0x4ca   :  { %v7651_v0 = vadd.f32 %v17625_v30, %v7580_v4  ;;  %v7303_v32 = vpop.f32.mrf.mxu1  ;;  %v8332_v24 = vld [vmem:[#allocation5 + $0x11] sm:$0xff]  ;;  %v6288_v26 = vadd.f32 %v17500_v37, %v19555_v5 }
 0x4cb   :  { %7776 = vst.msk [vmem:[#allocation4 + $0x60] sm:$0xff] %vm159_vm5, %v7712_v31  ;;  %v7649_v19 = vadd.f32 %v17625_v30, %v7578_v58  ;;  %v7583_v57 = vmul.f32 %v17615_v15, %v7512_v38  ;;  %v7510_v14 = vadd.f32 %v7303_v32, %v6261_v48  ;;  %v8348_v29 = vpack.c.bf16 %v8332_v24, %v8332_v24  ;;  %v8364_v38 = vld [vmem:[#allocation5 + $0x12] sm:$0xff] }
 0x4cc   :  { %8005 = vst.msk [vmem:[#allocation5 + $0x21] sm:$0xff] %vm159_vm5, %v7988_v60  ;;  %v7715_v7 = vmax.f32 %v7651_v0, 0.0  ;;  %v14040_v44 = vpop.f32.mrf.mxu1  ;;  %8732 = vmatpush2.bf16.msra.mxu1 %v14260_v55  ;;  %v19557_v55 = vld [vmem:[#allocation23_spill] sm:$0xff] }
 0x4cd   :  { %v7838_v40 = vld [vmem:[#allocation4 + $0x50] ss:$2 sm:$0xff]  ;;  %v7902_v45 = vld [vmem:[#allocation4 + $0x51] ss:$2 sm:$0xff]  ;;  %v7713_v13 = vmax.f32 %v7649_v19, 0.0  ;;  %v7654_v63 = vadd.f32 %v17625_v30, %v7583_v57  ;;  %v7581_v2 = vmul.f32 %v17615_v15, %v7510_v14  ;;  %v7513_v43 = vadd.f32 %v14040_v44, %v6272_v52  ;;  %8412 = vrot.lane.b32.xlu0 %v8348_v29, %s14709_s19  ;;  %8918 = vmatprep.subr.bf16.mxu1 %v19466_v53  ;;  %v19556_v14 = vld [vmem:[#allocation22_spill] sm:$0xff] }
 0x4ce   :  { %v7960_v51 = vmax.f32 %v7838_v40, %v7902_v45  ;;  %v7836_v46 = vld [vmem:[#allocation4 + $0x40] ss:$2 sm:$0xff]  ;;  %v7900_v59 = vld [vmem:[#allocation4 + $0x41] ss:$2 sm:$0xff]  ;;  %7779 = vst.msk [vmem:[#allocation4 + $0x78] sm:$0xff] %vm159_vm5, %v7715_v7  ;;  %v7306_v1 = vpop.f32.mrf.mxu1  ;;  %v6280_v29 = vadd.f32 %v17504_v42, %v19556_v14  ;;  %v6301_v7 = vadd.f32 %v17512_v54, %v19557_v55 }
 0x4cf   :  { %v7959_v41 = vmax.f32 %v7836_v46, %v7900_v59  ;;  %7777 = vst.msk [vmem:[#allocation4 + $0x68] sm:$0xff] %vm159_vm5, %v7713_v13  ;;  %v7718_v9 = vmax.f32 %v7654_v63, 0.0  ;;  %v7652_v49 = vadd.f32 %v17625_v30, %v7581_v2  ;;  %v7584_v39 = vmul.f32 %v17615_v15, %v7513_v43 }
 0x4d0   :  { %v7511_v35 = vadd.f32 %v7306_v1, %v6264_v21  ;;  %v14043_v27 = vpop.f32.mrf.mxu1 }
 0x4d1   :  { %v7989_v3 = vmax.f32 %v7959_v41, %v7960_v51  ;;  %7782 = vst.msk [vmem:[#allocation4 + $0x90] sm:$0xff] %vm159_vm5, %v7718_v9  ;;  %v7716_v36 = vmax.f32 %v7652_v49, 0.0  ;;  %v7655_v11 = vadd.f32 %v17625_v30, %v7584_v39  ;;  %v7516_v34 = vadd.f32 %v14043_v27, %v6285_v10  ;;  %v19559_v41 = vld [vmem:[#allocation25_spill] sm:$0xff] }
 0x4d2   :  { %v7582_v47 = vmul.f32 %v17615_v15, %v7511_v35  ;;  %v7319_v48 = vpop.f32.mrf.mxu1  ;;  %v6293_v10 = vadd.f32 %v17517_v62, %v19558_v22  ;;  %v6304_v9 = vadd.f32 %v17519_v16, %v19559_v41 }
 0x4d3   :  { %v8333_v4 = vld [vmem:[#allocation5 + $0x21] sm:$0xff]  ;;  %7780 = vst.msk [vmem:[#allocation4 + $0x80] sm:$0xff] %vm159_vm5, %v7716_v36  ;;  %v7719_v6 = vmax.f32 %v7655_v11, 0.0  ;;  %8006 = vst.msk [vmem:[#allocation5 + $0x31] sm:$0xff] %vm159_vm5, %v7989_v3  ;;  %v7587_v60 = vmul.f32 %v17615_v15, %v7516_v34  ;;  %v7514_v31 = vadd.f32 %v7319_v48, %v6277_v28 }
 0x4d4   :  { %v8365_v33 = vld [vmem:[#allocation5 + $0x22] sm:$0xff]  ;;  %v17776_v58 = vpack.c.bf16 %v8333_v4, %v8333_v4  ;;  %v7653_v25 = vadd.f32 %v17625_v30, %v7582_v47  ;;  %v14044_v52 = vpop.f32.mrf.mxu1 }
 0x4d5   :  { %v13307_v37 = vpack.c.bf16 %v8365_v33, %v8364_v38  ;;  %v7842_v0 = vld [vmem:[#allocation4 + $0x70] ss:$2 sm:$0xff]  ;;  %v7906_v32 = vld [vmem:[#allocation4 + $0x71] ss:$2 sm:$0xff]  ;;  %7783 = vst.msk [vmem:[#allocation4 + $0x98] sm:$0xff] %vm159_vm5, %v7719_v6  ;;  %v7658_v24 = vadd.f32 %v17625_v30, %v7587_v60  ;;  %v7585_v19 = vmul.f32 %v17615_v15, %v7514_v31  ;;  %v7517_v57 = vadd.f32 %v14044_v52, %v6288_v26  ;;  %v19560_v34 = vld [vmem:[#allocation26_spill] sm:$0xff] }
 0x4d6   :  { %8414 = vrot.lane.b32.xlu1 %v17776_v58, %s14709_s19  ;;  %v7962_v44 = vmax.f32 %v7842_v0, %v7906_v32  ;;  %v7840_v40 = vld [vmem:[#allocation4 + $0x60] ss:$2 sm:$0xff]  ;;  %v7904_v45 = vld [vmem:[#allocation4 + $0x61] ss:$2 sm:$0xff]  ;;  %v7717_v13 = vmax.f32 %v7653_v25, 0.0  ;;  %v7322_v63 = vpop.f32.mrf.mxu1  ;;  %v6296_v5 = vadd.f32 %v17522_v12, %v19560_v34 }
 0x4d7   :  { %12688 = vmatprep.mubr.msk.bf16.mxu1 %vm159_vm5, %v13307_v37  ;;  %v7961_v2 = vmax.f32 %v7840_v40, %v7904_v45  ;;  %v7722_v43 = vmax.f32 %v7658_v24, 0.0  ;;  %v7656_v50 = vadd.f32 %v17625_v30, %v7585_v19  ;;  %v7588_v21 = vmul.f32 %v17615_v15, %v7517_v57  ;;  %v19562_v24 = vld [vmem:[#allocation28_spill] sm:$0xff] }
 0x4d8   :  { %7781 = vst.msk [vmem:[#allocation4 + $0x88] sm:$0xff] %vm159_vm5, %v7717_v13  ;;  %v7515_v42 = vadd.f32 %v7322_v63, %v6280_v29  ;;  %v14047_v54 = vpop.f32.mrf.mxu1  ;;  %v6309_v19 = vadd.f32 %v17528_v23, %v19562_v24 }
 0x4d9   :  { %v7990_v51 = vmax.f32 %v7961_v2, %v7962_v44  ;;  %7786 = vst.msk [vmem:[#allocation4 + $0xb0] sm:$0xff] %vm159_vm5, %v7722_v43  ;;  %v7720_v46 = vmax.f32 %v7656_v50, 0.0  ;;  %v7659_v59 = vadd.f32 %v17625_v30, %v7588_v21  ;;  %v7520_v1 = vadd.f32 %v14047_v54, %v6301_v7  ;;  %v19563_v50 = vld [vmem:[#allocation29_spill] sm:$0xff] }
 0x4da   :  { %v7586_v49 = vmul.f32 %v17615_v15, %v7515_v42  ;;  %v7335_v39 = vpop.f32.mrf.mxu1  ;;  %v17799_v61 = vld [vmem:[#allocation5 + $0x32] sm:$0xff]  ;;  %v6320_v21 = vadd.f32 %v17530_v17, %v19563_v50  ;;  %v19564_v42 = vld [vmem:[#allocation10_spill] sm:$0xff] }
 0x4db   :  { %v8334_v62 = vld [vmem:[#allocation5 + $0x31] sm:$0xff]  ;;  %8007 = vst.msk [vmem:[#allocation5 + $0x41] sm:$0xff] %vm159_vm5, %v7990_v51  ;;  %7784 = vst.msk [vmem:[#allocation4 + $0xa0] sm:$0xff] %vm159_vm5, %v7720_v46  ;;  %v7723_v28 = vmax.f32 %v7659_v59, 0.0  ;;  %v7591_v35 = vmul.f32 %v17615_v15, %v7520_v1  ;;  %v7518_v27 = vadd.f32 %v7335_v39, %v6293_v10  ;;  %v13323_v3 = vpack.c.bf16 %v17799_v61, %v8365_v33 }
 0x4dc   :  { %v7657_v36 = vadd.f32 %v17625_v30, %v7586_v49  ;;  %v14048_v11 = vpop.f32.mrf.mxu1  ;;  %v17806_v16 = vpack.c.bf16 %v8334_v62, %v8334_v62  ;;  %v7846_v26 = vld [vmem:[#allocation4 + $0x90] ss:$2 sm:$0xff]  ;;  %v7910_v47 = vld [vmem:[#allocation4 + $0x91] ss:$2 sm:$0xff]  ;;  %v6312_v54 = vadd.f32 %v17532_v8, %v19564_v42 }
 0x4dd   :  { %7787 = vst.msk [vmem:[#allocation4 + $0xb8] sm:$0xff] %vm159_vm5, %v7723_v28  ;;  %v7662_v48 = vadd.f32 %v17625_v30, %v7591_v35  ;;  %v7589_v4 = vmul.f32 %v17615_v15, %v7518_v27  ;;  %v7521_v6 = vadd.f32 %v14048_v11, %v6304_v9  ;;  %12784 = vmatprep.mubr.msk.bf16.mxu0 %vm159_vm5, %v13323_v3  ;;  %v19561_v33 = vld [vmem:[#allocation27_spill] sm:$0xff] }
 0x4de   :  { %v6317_v60 = vadd.f32 %v17525_v20, %v19561_v33  ;;  %v7721_v31 = vmax.f32 %v7657_v36, 0.0  ;;  %8416 = vrot.lane.b32.xlu0 %v17806_v16, %s14709_s19  ;;  %v7338_v38 = vpop.f32.mrf.mxu1  ;;  %v7964_v57 = vmax.f32 %v7846_v26, %v7910_v47  ;;  %v19565_v49 = vld [vmem:[#allocation11_spill] sm:$0xff] }
 0x4df   :  { %v7844_v12 = vld [vmem:[#allocation4 + $0x80] ss:$2 sm:$0xff]  ;;  %v7908_v25 = vld [vmem:[#allocation4 + $0x81] ss:$2 sm:$0xff]  ;;  %v7726_v52 = vmax.f32 %v7662_v48, 0.0  ;;  %v7660_v37 = vadd.f32 %v17625_v30, %v7589_v4  ;;  %v7592_v0 = vmul.f32 %v17615_v15, %v7521_v6  ;;  %v7519_v32 = vadd.f32 %v7338_v38, %v6296_v5  ;;  %v19566_v5 = vld [vmem:[#allocation12_spill] sm:$0xff] }
 0x4e0   :  { %v7963_v14 = vmax.f32 %v7844_v12, %v7908_v25  ;;  %7785 = vst.msk [vmem:[#allocation4 + $0xa8] sm:$0xff] %vm159_vm5, %v7721_v31  ;;  %v14051_v20 = vpop.f32.mrf.mxu1  ;;  %v6333_v39 = vadd.f32 %v17534_v18, %v19565_v49  ;;  %v6325_v26 = vadd.f32 %v17536_v56, %v19566_v5  ;;  %v14261_v49 = vld [vmem:[%s19442_s7 + $0x108] sm:$0xff]  }
 0x4e1   :  { %7790 = vst.msk [vmem:[#allocation4 + $0xd0] sm:$0xff] %vm159_vm5, %v7726_v52  ;;  %v7724_v29 = vmax.f32 %v7660_v37, 0.0  ;;  %v7663_v55 = vadd.f32 %v17625_v30, %v7592_v0  ;;  %v7590_v7 = vmul.f32 %v17615_v15, %v7519_v32  ;;  %v7524_v44 = vadd.f32 %v14051_v20, %v6317_v60  ;;  %v19567_v52 = vld [vmem:[#allocation13_spill] sm:$0xff]  ;;  %v19568_v37 = vld [vmem:[#allocation58_spill] sm:$0xff]  ;;  %9446 = vmatpush2.bf16.msra.mxu0 %v14261_v49 }
 0x4e2   :  { %v7991_v40 = vmax.f32 %v7963_v14, %v7964_v57  ;;  %v7351_v45 = vpop.f32.mrf.mxu1  ;;  %v8335_v13 = vld [vmem:[#allocation5 + $0x41] sm:$0xff]  ;;  %v6336_v0 = vadd.f32 %v19568_v37, %v19567_v52  ;;  %9447 = vmatprep.subr.bf16.mxu0 %v19466_v53  ;;  %v19578_v37 = vld [vmem:[#allocation63_spill] sm:$0xff] }
 0x4e3   :  { %7788 = vst.msk [vmem:[#allocation4 + $0xc0] sm:$0xff] %vm159_vm5, %v7724_v29  ;;  %v7727_v63 = vmax.f32 %v7663_v55, 0.0  ;;  %v7661_v23 = vadd.f32 %v17625_v30, %v7590_v7  ;;  %v7595_v2 = vmul.f32 %v17615_v15, %v7524_v44  ;;  %v7522_v43 = vadd.f32 %v7351_v45, %v6309_v19  ;;  %v17854_v25 = vld [vmem:[#allocation5 + $0x42] sm:$0xff]  ;;  %v19570_v55 = vld [vmem:[#allocation59_spill] sm:$0xff]  ;;  %v19577_v52 = vld [vmem:[#allocation33_spill] sm:$0xff] }
 0x4e4   :  { %8008 = vst.msk [vmem:[#allocation5 + $0x51] sm:$0xff] %vm159_vm5, %v7991_v40  ;;  %v14052_v22 = vpop.f32.mrf.mxu1  ;;  %v17832_v10 = vpack.c.bf16 %v8335_v13, %v8335_v13  ;;  %v7850_v51 = vld [vmem:[#allocation4 + $0xb0] ss:$2 sm:$0xff]  ;;  %v7914_v46 = vld [vmem:[#allocation4 + $0xb1] ss:$2 sm:$0xff]  ;;  %v19569_v29 = vld [vmem:[#allocation14_spill] sm:$0xff] }
 0x4e5   :  { %7791 = vst.msk [vmem:[#allocation4 + $0xd8] sm:$0xff] %vm159_vm5, %v7727_v63  ;;  %v7725_v59 = vmax.f32 %v7661_v23, 0.0  ;;  %v7666_v1 = vadd.f32 %v17625_v30, %v7595_v2  ;;  %v7593_v41 = vmul.f32 %v17615_v15, %v7522_v43  ;;  %v7525_v9 = vadd.f32 %v14052_v22, %v6320_v21  ;;  %v19571_v13 = vld [vmem:[#allocation30_spill] sm:$0xff]  ;;  %v19572_v63 = vld [vmem:[#allocation60_spill] sm:$0xff] }
 0x4e6   :  { %8418 = vrot.lane.b32.xlu1 %v17832_v10, %s14709_s19  ;;  %v7354_v17 = vpop.f32.mrf.mxu1  ;;  %v7966_v3 = vmax.f32 %v7850_v51, %v7914_v46  ;;  %v6328_v7 = vadd.f32 %v19570_v55, %v19569_v29  ;;  %v6349_v23 = vadd.f32 %v19572_v63, %v19571_v13  ;;  %v19581_v63 = vld [vmem:[#allocation35_spill] sm:$0xff] }
 0x4e7   :  { %v7848_v62 = vld [vmem:[#allocation4 + $0xa0] ss:$2 sm:$0xff]  ;;  %v7912_v28 = vld [vmem:[#allocation4 + $0xa1] ss:$2 sm:$0xff]  ;;  %7789 = vst.msk [vmem:[#allocation4 + $0xc8] sm:$0xff] %vm159_vm5, %v7725_v59  ;;  %v7730_v8 = vmax.f32 %v7666_v1, 0.0  ;;  %v7664_v35 = vadd.f32 %v17625_v30, %v7593_v41  ;;  %v7523_v27 = vadd.f32 %v7354_v17, %v6312_v54  ;;  %v7596_v11 = vmul.f32 %v17615_v15, %v7525_v9 }
 0x4e8   :  { %v7965_v36 = vmax.f32 %v7848_v62, %v7912_v28  ;;  %v14055_v34 = vpop.f32.mrf.mxu1  ;;  %v19573_v59 = vld [vmem:[#allocation31_spill] sm:$0xff]  ;;  %v19574_v1 = vld [vmem:[#allocation61_spill] sm:$0xff] }
 0x4e9   :  { %7794 = vst.msk [vmem:[#allocation4 + $0xf0] sm:$0xff] %vm159_vm5, %v7730_v8  ;;  %v7728_v47 = vmax.f32 %v7664_v35, 0.0  ;;  %v7594_v18 = vmul.f32 %v17615_v15, %v7523_v27  ;;  %v7528_v48 = vadd.f32 %v14055_v34, %v6333_v39  ;;  %v7667_v6 = vadd.f32 %v17625_v30, %v7596_v11 }
 0x4ea   :  { %v7992_v4 = vmax.f32 %v7965_v36, %v7966_v3  ;;  %v7367_v33 = vpop.f32.mrf.mxu1  ;;  %v6341_v41 = vadd.f32 %v19574_v1, %v19573_v59  ;;  %v19575_v3 = vld [vmem:[#allocation32_spill] sm:$0xff]  ;;  %v19576_v36 = vld [vmem:[#allocation62_spill] sm:$0xff] }
 0x4eb   :  { %7792 = vst.msk [vmem:[#allocation4 + $0xe0] sm:$0xff] %vm159_vm5, %v7728_v47  ;;  %v7665_v60 = vadd.f32 %v17625_v30, %v7594_v18  ;;  %v7599_v31 = vmul.f32 %v17615_v15, %v7528_v48  ;;  %v7526_v38 = vadd.f32 %v7367_v33, %v6325_v26  ;;  %v8336_v12 = vld [vmem:[#allocation5 + $0x51] sm:$0xff]  ;;  %v7731_v19 = vmax.f32 %v7667_v6, 0.0 }
 0x4ec   :  { %v17856_v56 = vld [vmem:[#allocation5 + $0x52] sm:$0xff]  ;;  %8009 = vst.msk [vmem:[#allocation5 + $0x61] sm:$0xff] %vm159_vm5, %v7992_v4  ;;  %v14056_v57 = vpop.f32.mrf.mxu1  ;;  %v17861_v14 = vpack.c.bf16 %v8336_v12, %v8336_v12  ;;  %v6352_v11 = vadd.f32 %v19576_v36, %v19575_v3 }
 0x4ed   :  { %v7854_v32 = vld [vmem:[#allocation4 + $0xd0] ss:$2 sm:$0xff]  ;;  %v7918_v24 = vld [vmem:[#allocation4 + $0xd1] ss:$2 sm:$0xff]  ;;  %v17865_v20 = vpack.c.bf16 %v17856_v56, %v17854_v25  ;;  %v7729_v44 = vmax.f32 %v7665_v60, 0.0  ;;  %v7670_v40 = vadd.f32 %v17625_v30, %v7599_v31  ;;  %v7597_v45 = vmul.f32 %v17615_v15, %v7526_v38  ;;  %7795 = vst.msk [vmem:[#allocation4 + $0xf8] sm:$0xff] %vm159_vm5, %v7731_v19 }
 0x4ee   :  { %v7968_v2 = vmax.f32 %v7854_v32, %v7918_v24  ;;  %v7852_v43 = vld [vmem:[#allocation4 + $0xc0] ss:$2 sm:$0xff]  ;;  %v7916_v50 = vld [vmem:[#allocation4 + $0xc1] ss:$2 sm:$0xff]  ;;  %v7529_v21 = vadd.f32 %v14056_v57, %v6336_v0  ;;  %8420 = vrot.lane.b32.xlu0 %v17861_v14, %s14709_s19  ;;  %v7370_v22 = vpop.f32.mrf.mxu1  ;;  %v6344_v0 = vadd.f32 %v19578_v37, %v19577_v52  ;;  %v19580_v24 = vld [vmem:[#allocation64_spill] sm:$0xff] }
 0x4ef   :  { %v7967_v42 = vmax.f32 %v7852_v43, %v7916_v50  ;;  %7793 = vst.msk [vmem:[#allocation4 + $0xe8] sm:$0xff] %vm159_vm5, %v7729_v44  ;;  %v7734_v54 = vmax.f32 %v7670_v40, 0.0  ;;  %v7668_v51 = vadd.f32 %v17625_v30, %v7597_v45  ;;  %v7527_v46 = vadd.f32 %v7370_v22, %v6328_v7  ;;  %v19579_v32 = vld [vmem:[#allocation34_spill] sm:$0xff] }
 0x4f0   :  { %v7600_v9 = vmul.f32 %v17615_v15, %v7529_v21  ;;  %v14059_v17 = vpop.f32.mrf.mxu1  ;;  %v6365_v19 = vadd.f32 %v19580_v24, %v19579_v32 }
 0x4f1   :  { %v7993_v39 = vmax.f32 %v7967_v42, %v7968_v2  ;;  %7798 = vst.msk [vmem:[#allocation4 + $0x110] sm:$0xff] %vm159_vm5, %v7734_v54  ;;  %v7732_v62 = vmax.f32 %v7668_v51, 0.0  ;;  %v7598_v28 = vmul.f32 %v17615_v15, %v7527_v46  ;;  %v7532_v8 = vadd.f32 %v14059_v17, %v6349_v23  ;;  %v19582_v23 = vld [vmem:[#allocation65_spill] sm:$0xff]  ;;  %v19583_v51 = vld [vmem:[#allocation36_spill] sm:$0xff]  ;;  %v19584_v46 = vld [vmem:[#allocation66_spill] sm:$0xff] }
 0x4f2   :  { %v7671_v35 = vadd.f32 %v17625_v30, %v7600_v9  ;;  %v7383_v27 = vpop.f32.mrf.mxu1  ;;  %v6357_v2 = vadd.f32 %v19582_v23, %v19581_v63  ;;  %v6368_v59 = vadd.f32 %v19584_v46, %v19583_v51  ;;  %v19591_v23 = vld [vmem:[#allocation40_spill] sm:$0xff] }
 0x4f3   :  { %8010 = vst.msk [vmem:[#allocation5 + $0x71] sm:$0xff] %vm159_vm5, %v7993_v39  ;;  %7796 = vst.msk [vmem:[#allocation4 + $0x100] sm:$0xff] %vm159_vm5, %v7732_v62  ;;  %v7669_v34 = vadd.f32 %v17625_v30, %v7598_v28  ;;  %v7603_v5 = vmul.f32 %v17615_v15, %v7532_v8  ;;  %v7530_v26 = vadd.f32 %v7383_v27, %v6341_v41  ;;  %v8337_v47 = vld [vmem:[#allocation5 + $0x61] sm:$0xff] }
 0x4f4   :  { %v7735_v18 = vmax.f32 %v7671_v35, 0.0  ;;  %v14060_v48 = vpop.f32.mrf.mxu1  ;;  %v17894_v4 = vpack.c.bf16 %v8337_v47, %v8337_v47  ;;  %v7858_v6 = vld [vmem:[#allocation4 + $0xf0] ss:$2 sm:$0xff]  ;;  %v7922_v33 = vld [vmem:[#allocation4 + $0xf1] ss:$2 sm:$0xff]  ;;  %v17922_v8 = vld [vmem:[#allocation5 + $0x62] sm:$0xff] }
 0x4f5   :  { %v7733_v60 = vmax.f32 %v7669_v34, 0.0  ;;  %v7674_v31 = vadd.f32 %v17625_v30, %v7603_v5  ;;  %v7601_v38 = vmul.f32 %v17615_v15, %v7530_v26  ;;  %v7533_v12 = vadd.f32 %v14060_v48, %v6352_v11  ;;  %v19585_v47 = vld [vmem:[#allocation37_spill] sm:$0xff] }
 0x4f6   :  { %v7970_v57 = vmax.f32 %v7858_v6, %v7922_v33  ;;  %v7856_v29 = vld [vmem:[#allocation4 + $0xe0] ss:$2 sm:$0xff]  ;;  %v7920_v55 = vld [vmem:[#allocation4 + $0xe1] ss:$2 sm:$0xff]  ;;  %7799 = vst.msk [vmem:[#allocation4 + $0x118] sm:$0xff] %vm159_vm5, %v7735_v18  ;;  %8422 = vrot.lane.b32.xlu1 %v17894_v4, %s14709_s19  ;;  %v7386_v7 = vpop.f32.mrf.mxu1  ;;  %v19588_v33 = vld [vmem:[#allocation68_spill] sm:$0xff] }
 0x4f7   :  { %v7969_v44 = vmax.f32 %v7856_v29, %v7920_v55  ;;  %7797 = vst.msk [vmem:[#allocation4 + $0x108] sm:$0xff] %vm159_vm5, %v7733_v60  ;;  %v7738_v40 = vmax.f32 %v7674_v31, 0.0  ;;  %v7672_v45 = vadd.f32 %v17625_v30, %v7601_v38  ;;  %v7604_v13 = vmul.f32 %v17615_v15, %v7533_v12  ;;  %v19586_v18 = vld [vmem:[#allocation67_spill] sm:$0xff]  ;;  %v19587_v6 = vld [vmem:[#allocation38_spill] sm:$0xff]  ;;  %v19590_v29 = vld [vmem:[#allocation69_spill] sm:$0xff] }
 0x4f8   :  { %v7531_v43 = vadd.f32 %v7386_v7, %v6344_v0  ;;  %v14063_v50 = vpop.f32.mrf.mxu1  ;;  %v6360_v48 = vadd.f32 %v19586_v18, %v19585_v47  ;;  %v6381_v60 = vadd.f32 %v19588_v33, %v19587_v6 }
 0x4f9   :  { %v7994_v21 = vmax.f32 %v7969_v44, %v7970_v57  ;;  %7802 = vst.msk [vmem:[#allocation4 + $0x130] sm:$0xff] %vm159_vm5, %v7738_v40  ;;  %v7736_v22 = vmax.f32 %v7672_v45, 0.0  ;;  %v7675_v42 = vadd.f32 %v17625_v30, %v7604_v13  ;;  %v7536_v54 = vadd.f32 %v14063_v50, %v6365_v19  ;;  %v19589_v57 = vld [vmem:[#allocation39_spill] sm:$0xff] }
 0x4fa   :  { %v7602_v1 = vmul.f32 %v17615_v15, %v7531_v43  ;;  %v7399_v41 = vpop.f32.mrf.mxu1  ;;  %v8338_v9 = vld [vmem:[#allocation5 + $0x71] sm:$0xff]  ;;  %v6373_v55 = vadd.f32 %v19590_v29, %v19589_v57 }
 0x4fb   :  { %v17915_v17 = vld [vmem:[#allocation5 + $0x72] sm:$0xff]  ;;  %8011 = vst.msk [vmem:[#allocation5 + $0x81] sm:$0xff] %vm159_vm5, %v7994_v21  ;;  %7800 = vst.msk [vmem:[#allocation4 + $0x120] sm:$0xff] %vm159_vm5, %v7736_v22  ;;  %v7739_v49 = vmax.f32 %v7675_v42, 0.0  ;;  %v7607_v39 = vmul.f32 %v17615_v15, %v7536_v54  ;;  %v7534_v62 = vadd.f32 %v7399_v41, %v6357_v2  ;;  %v17920_v28 = vpack.c.bf16 %v8338_v9, %v8338_v9  ;;  %v19592_v2 = vld [vmem:[#allocation70_spill] sm:$0xff] }
 0x4fc   :  { %v7673_v35 = vadd.f32 %v17625_v30, %v7602_v1  ;;  %v14064_v27 = vpop.f32.mrf.mxu1  ;;  %v17927_v3 = vpack.c.bf16 %v17915_v17, %v17922_v8  ;;  %v6384_v43 = vadd.f32 %v19592_v2, %v19591_v23  ;;  %v19593_v41 = vld [vmem:[#allocation41_spill] sm:$0xff]  ;;  %v19594_v9 = vld [vmem:[#allocation71_spill] sm:$0xff]  ;;  %v19599_v23 = vld [vmem:[#allocation44_spill] sm:$0xff] }
 0x4fd   :  { %v7862_v36 = vld [vmem:[#allocation4 + $0x110] ss:$2 sm:$0xff]  ;;  %v7926_v11 = vld [vmem:[#allocation4 + $0x111] ss:$2 sm:$0xff]  ;;  %7803 = vst.msk [vmem:[#allocation4 + $0x138] sm:$0xff] %vm159_vm5, %v7739_v49  ;;  %v7678_v34 = vadd.f32 %v17625_v30, %v7607_v39  ;;  %v7605_v5 = vmul.f32 %v17615_v15, %v7534_v62  ;;  %v7537_v26 = vadd.f32 %v14064_v27, %v6368_v59  ;;  %8424 = vrot.lane.b32.xlu0 %v17920_v28, %s14709_s19  ;;  %v19600_v2 = vld [vmem:[#allocation74_spill] sm:$0xff] }
 0x4fe   :  { %v7972_v31 = vmax.f32 %v7862_v36, %v7926_v11  ;;  %v7860_v38 = vld [vmem:[#allocation4 + $0x100] ss:$2 sm:$0xff]  ;;  %v7924_v12 = vld [vmem:[#allocation4 + $0x101] ss:$2 sm:$0xff]  ;;  %v7737_v52 = vmax.f32 %v7673_v35, 0.0  ;;  %v7402_v37 = vpop.f32.mrf.mxu1  ;;  %v6376_v49 = vadd.f32 %v19594_v9, %v19593_v41 }
 0x4ff   :  { %v7971_v0 = vmax.f32 %v7860_v38, %v7924_v12  ;;  %v7742_v32 = vmax.f32 %v7678_v34, 0.0  ;;  %v7676_v24 = vadd.f32 %v17625_v30, %v7605_v5  ;;  %v7608_v19 = vmul.f32 %v17615_v15, %v7537_v26  ;;  %v19595_v11 = vld [vmem:[#allocation42_spill] sm:$0xff]  ;;  %v19596_v34 = vld [vmem:[#allocation72_spill] sm:$0xff]  ;;  %v19597_v38 = vld [vmem:[#allocation43_spill] sm:$0xff] }
 0x500   :  { %7801 = vst.msk [vmem:[#allocation4 + $0x128] sm:$0xff] %vm159_vm5, %v7737_v52  ;;  %v7535_v7 = vadd.f32 %v7402_v37, %v6360_v48  ;;  %v14067_v44 = vpop.f32.mrf.mxu1  ;;  %v6397_v5 = vadd.f32 %v19596_v34, %v19595_v11  ;;  %v19598_v12 = vld [vmem:[#allocation73_spill] sm:$0xff] }
 0x501   :  { %v7995_v40 = vmax.f32 %v7971_v0, %v7972_v31  ;;  %7806 = vst.msk [vmem:[#allocation4 + $0x150] sm:$0xff] %vm159_vm5, %v7742_v32  ;;  %v7740_v45 = vmax.f32 %v7676_v24, 0.0  ;;  %v7679_v13 = vadd.f32 %v17625_v30, %v7608_v19  ;;  %v7540_v63 = vadd.f32 %v14067_v44, %v6381_v60 }
 0x502   :  { %v7606_v50 = vmul.f32 %v17615_v15, %v7535_v7  ;;  %v7415_v21 = vpop.f32.mrf.mxu1  ;;  %v8339_v22 = vld [vmem:[#allocation5 + $0x81] sm:$0xff]  ;;  %v6389_v52 = vadd.f32 %v19598_v12, %v19597_v38 }
 0x503   :  { %8012 = vst.msk [vmem:[#allocation5 + $0xb1] sm:$0xff] %vm159_vm5, %v7995_v40  ;;  %7804 = vst.msk [vmem:[#allocation4 + $0x140] sm:$0xff] %vm159_vm5, %v7740_v45  ;;  %v7743_v42 = vmax.f32 %v7679_v13, 0.0  ;;  %v7611_v54 = vmul.f32 %v17615_v15, %v7540_v63  ;;  %v7538_v51 = vadd.f32 %v7415_v21, %v6373_v55  ;;  %v17951_v46 = vpack.c.bf16 %v8339_v22, %v8339_v22  ;;  %v19601_v22 = vld [vmem:[#allocation45_spill] sm:$0xff] }
 0x504   :  { %v7677_v59 = vadd.f32 %v17625_v30, %v7606_v50  ;;  %v14068_v1 = vpop.f32.mrf.mxu1  ;;  %v7866_v39 = vld [vmem:[#allocation4 + $0x130] ss:$2 sm:$0xff]  ;;  %v7930_v62 = vld [vmem:[#allocation4 + $0x131] ss:$2 sm:$0xff] }
 0x505   :  { %7807 = vst.msk [vmem:[#allocation4 + $0x158] sm:$0xff] %vm159_vm5, %v7743_v42  ;;  %v7682_v35 = vadd.f32 %v17625_v30, %v7611_v54  ;;  %v7609_v27 = vmul.f32 %v17615_v15, %v7538_v51  ;;  %v7541_v36 = vadd.f32 %v14068_v1, %v6384_v43  ;;  %8426 = vrot.lane.b32.xlu1 %v17951_v46, %s14709_s19  ;;  %v19602_v42 = vld [vmem:[#allocation75_spill] sm:$0xff] }
 0x506   :  { %v7741_v26 = vmax.f32 %v7677_v59, 0.0  ;;  %v7418_v47 = vpop.f32.mrf.mxu1  ;;  %v7974_v37 = vmax.f32 %v7866_v39, %v7930_v62  ;;  %v6400_v43 = vadd.f32 %v19600_v2, %v19599_v23  ;;  %v6392_v54 = vadd.f32 %v19602_v42, %v19601_v22  ;;  %v19603_v62 = vld [vmem:[#allocation46_spill] sm:$0xff]  ;;  %v19609_v2 = vld [vmem:[#allocation49_spill] sm:$0xff] }
 0x507   :  { %v7864_v18 = vld [vmem:[#allocation4 + $0x120] ss:$2 sm:$0xff]  ;;  %v7928_v48 = vld [vmem:[#allocation4 + $0x121] ss:$2 sm:$0xff]  ;;  %v7746_v6 = vmax.f32 %v7682_v35, 0.0  ;;  %v7680_v33 = vadd.f32 %v17625_v30, %v7609_v27  ;;  %v7612_v60 = vmul.f32 %v17615_v15, %v7541_v36  ;;  %v7539_v31 = vadd.f32 %v7418_v47, %v6376_v49  ;;  %v19604_v35 = vld [vmem:[#allocation76_spill] sm:$0xff] }
 0x508   :  { %v7973_v0 = vmax.f32 %v7864_v18, %v7928_v48  ;;  %7805 = vst.msk [vmem:[#allocation4 + $0x148] sm:$0xff] %vm159_vm5, %v7741_v26  ;;  %v14071_v32 = vpop.f32.mrf.mxu1  ;;  %v6413_v27 = vadd.f32 %v19604_v35, %v19603_v62 }
 0x509   :  { %7810 = vst.msk [vmem:[#allocation4 + $0x170] sm:$0xff] %vm159_vm5, %v7746_v6  ;;  %v7744_v24 = vmax.f32 %v7680_v33, 0.0  ;;  %v7683_v19 = vadd.f32 %v17625_v30, %v7612_v60  ;;  %v7610_v57 = vmul.f32 %v17615_v15, %v7539_v31  ;;  %v7544_v29 = vadd.f32 %v14071_v32, %v6397_v5  ;;  %v19605_v33 = vld [vmem:[#allocation47_spill] sm:$0xff]  ;;  %v19606_v60 = vld [vmem:[#allocation77_spill] sm:$0xff] }
 0x50a   :  { %v7996_v55 = vmax.f32 %v7973_v0, %v7974_v37  ;;  %v7431_v7 = vpop.f32.mrf.mxu1  ;;  %v8340_v44 = vld [vmem:[#allocation5 + $0xb1] sm:$0xff]  ;;  %v6405_v31 = vadd.f32 %v19606_v60, %v19605_v33  ;;  %v18003_v37 = vld [vmem:[%s19441_s6] ss:$0 sm:$0xff] }
 0x50b   :  { %7808 = vst.msk [vmem:[#allocation4 + $0x160] sm:$0xff] %vm159_vm5, %v7744_v24  ;;  %v7747_v40 = vmax.f32 %v7683_v19, 0.0  ;;  %v7681_v45 = vadd.f32 %v17625_v30, %v7610_v57  ;;  %v7615_v13 = vmul.f32 %v17615_v15, %v7544_v29  ;;  %v7542_v63 = vadd.f32 %v7431_v7, %v6389_v52  ;;  %v19608_v7 = vld [vmem:[#allocation78_spill] sm:$0xff] }
 0x50c   :  { %8013 = vst.msk [vmem:[#allocation5 + $0xc1] sm:$0xff] %vm159_vm5, %v7996_v55  ;;  %v14072_v50 = vpop.f32.mrf.mxu1  ;;  %v17977_v21 = vpack.c.bf16 %v8340_v44, %v8340_v44  ;;  %v7870_v51 = vld [vmem:[#allocation4 + $0x150] ss:$2 sm:$0xff]  ;;  %v7934_v59 = vld [vmem:[#allocation4 + $0x151] ss:$2 sm:$0xff] }
 0x50d   :  { %7811 = vst.msk [vmem:[#allocation4 + $0x178] sm:$0xff] %vm159_vm5, %v7747_v40  ;;  %v7745_v1 = vmax.f32 %v7681_v45, 0.0  ;;  %v7686_v41 = vadd.f32 %v17625_v30, %v7615_v13  ;;  %v7613_v9 = vmul.f32 %v17615_v15, %v7542_v63  ;;  %v7545_v49 = vadd.f32 %v14072_v50, %v6400_v43  ;;  %v17993_v15 = vld [vmem:[%s19440_s5] ss:$0 sm:$0xff]  ;;  %v19607_v55 = vld [vmem:[#allocation48_spill] sm:$0xff]  ;;  %v19610_v43 = vld [vmem:[#allocation79_spill] sm:$0xff] }
 0x50e   :  { %8428 = vrot.lane.b32.xlu0 %v17977_v21, %s14709_s19  ;;  %v7434_v39 = vpop.f32.mrf.mxu1  ;;  %v7976_v47 = vmax.f32 %v7870_v51, %v7934_v59  ;;  %v6416_v44 = vadd.f32 %v19608_v7, %v19607_v55  ;;  %v6408_v50 = vadd.f32 %v19610_v43, %v19609_v2  ;;  %v19611_v51 = vld [vmem:[#allocation50_spill] sm:$0xff]  ;;  %v19612_v59 = vld [vmem:[#allocation80_spill] sm:$0xff] }
 0x50f   :  { %v7868_v36 = vld [vmem:[#allocation4 + $0x140] ss:$2 sm:$0xff]  ;;  %v7932_v11 = vld [vmem:[#allocation4 + $0x141] ss:$2 sm:$0xff]  ;;  %7809 = vst.msk [vmem:[#allocation4 + $0x168] sm:$0xff] %vm159_vm5, %v7745_v1  ;;  %v7750_v34 = vmax.f32 %v7686_v41, 0.0  ;;  %v7684_v5 = vadd.f32 %v17625_v30, %v7613_v9  ;;  %v7543_v26 = vadd.f32 %v7434_v39, %v6392_v54  ;;  %v7616_v48 = vmul.f32 %v17993_v15, %v7545_v49 }
 0x510   :  { %v7975_v18 = vmax.f32 %v7868_v36, %v7932_v11  ;;  %v14075_v6 = vpop.f32.mrf.mxu1  ;;  %v6429_v1 = vadd.f32 %v19612_v59, %v19611_v51  ;;  %v19619_v59 = vld [vmem:[#allocation54_spill] sm:$0xff] }
 0x511   :  { %7814 = vst.msk [vmem:[#allocation4 + $0x190] sm:$0xff] %vm159_vm5, %v7750_v34  ;;  %v7748_v38 = vmax.f32 %v7684_v5, 0.0  ;;  %v7614_v12 = vmul.f32 %v17993_v15, %v7543_v26  ;;  %v7548_v30 = vadd.f32 %v14075_v6, %v6413_v27  ;;  %v7687_v0 = vadd.f32 %v18003_v37, %v7616_v48  ;;  %v19613_v34 = vld [vmem:[#allocation51_spill] sm:$0xff]  ;;  %v19614_v5 = vld [vmem:[#allocation81_spill] sm:$0xff] }
 0x512   :  { %v7997_v52 = vmax.f32 %v7975_v18, %v7976_v47  ;;  %v7447_v32 = vpop.f32.mrf.mxu1  ;;  %v6421_v26 = vadd.f32 %v19614_v5, %v19613_v34  ;;  %v19621_v34 = vld [vmem:[#allocation55_spill] sm:$0xff]  ;;  %v19622_v5 = vld [vmem:[#allocation85_spill] sm:$0xff] }
 0x513   :  { %7812 = vst.msk [vmem:[#allocation4 + $0x180] sm:$0xff] %vm159_vm5, %v7748_v38  ;;  %v7685_v24 = vadd.f32 %v18003_v37, %v7614_v12  ;;  %v7619_v19 = vmul.f32 %v17993_v15, %v7548_v30  ;;  %v7546_v57 = vadd.f32 %v7447_v32, %v6405_v31  ;;  %v8341_v29 = vld [vmem:[#allocation5 + $0xc1] sm:$0xff]  ;;  %v7751_v13 = vmax.f32 %v7687_v0, 0.0  ;;  %v19615_v12 = vld [vmem:[#allocation52_spill] sm:$0xff] }
 0x514   :  { %8014 = vst.msk [vmem:[#allocation5 + $0xd1] sm:$0xff] %vm159_vm5, %v7997_v52  ;;  %v7874_v40 = vld [vmem:[#allocation4 + $0x170] ss:$2 sm:$0xff]  ;;  %v7938_v45 = vld [vmem:[#allocation4 + $0x171] ss:$2 sm:$0xff]  ;;  %v14076_v63 = vpop.f32.mrf.mxu1  ;;  %v18012_v23 = vpack.c.bf16 %v8341_v29, %v8341_v29  ;;  %v19616_v30 = vld [vmem:[#allocation82_spill] sm:$0xff] }
 0x515   :  { %v7749_v22 = vmax.f32 %v7685_v24, 0.0  ;;  %v7690_v42 = vadd.f32 %v18003_v37, %v7619_v19  ;;  %v7617_v54 = vmul.f32 %v17993_v15, %v7546_v57  ;;  %v7978_v41 = vmax.f32 %v7874_v40, %v7938_v45  ;;  %7815 = vst.msk [vmem:[#allocation4 + $0x198] sm:$0xff] %vm159_vm5, %v7751_v13  ;;  %v18037_v57 = vld [vmem:[#allocation5 + $0xc2] sm:$0xff] }
 0x516   :  { %v7872_v9 = vld [vmem:[#allocation4 + $0x160] ss:$2 sm:$0xff]  ;;  %v7936_v49 = vld [vmem:[#allocation4 + $0x161] ss:$2 sm:$0xff]  ;;  %v7549_v39 = vadd.f32 %v14076_v63, %v6416_v44  ;;  %8430 = vrot.lane.b32.xlu1 %v18012_v23, %s14709_s19  ;;  %v7450_v62 = vpop.f32.mrf.mxu1  ;;  %v6432_v52 = vadd.f32 %v19616_v30, %v19615_v12 }
 0x517   :  { %v7977_v35 = vmax.f32 %v7872_v9, %v7936_v49  ;;  %7813 = vst.msk [vmem:[#allocation4 + $0x188] sm:$0xff] %vm159_vm5, %v7749_v22  ;;  %v7754_v27 = vmax.f32 %v7690_v42, 0.0  ;;  %v7688_v36 = vadd.f32 %v18003_v37, %v7617_v54  ;;  %v7547_v11 = vadd.f32 %v7450_v62, %v6408_v50  ;;  %v14267_v40 = vld [vmem:[%s19442_s7 + $0x100] sm:$0xff]   ;;  %v19618_v54 = vld [vmem:[#allocation83_spill] sm:$0xff] }
 0x518   :  { %v7620_v47 = vmul.f32 %v17993_v15, %v7549_v39  ;;  %v14079_v18 = vpop.f32.mrf.mxu1  ;;  %v19617_v42 = vld [vmem:[#allocation53_spill] sm:$0xff]  ;;  %9448 = vmatpush2.bf16.msra.mxu0 %v14267_v40 }
 0x519   :  { %v7998_v48 = vmax.f32 %v7977_v35, %v7978_v41  ;;  %7818 = vst.msk [vmem:[#allocation4 + $0x1b0] sm:$0xff] %vm159_vm5, %v7754_v27  ;;  %v7752_v6 = vmax.f32 %v7688_v36, 0.0  ;;  %v7618_v33 = vmul.f32 %v17993_v15, %v7547_v11  ;;  %v7552_v60 = vadd.f32 %v14079_v18, %v6429_v1  ;;  %v19620_v1 = vld [vmem:[#allocation84_spill] sm:$0xff] }
 0x51a   :  { %v7691_v31 = vadd.f32 %v18003_v37, %v7620_v47  ;;  %v7463_v38 = vpop.f32.mrf.mxu1  ;;  %v6424_v51 = vadd.f32 %v19618_v54, %v19617_v42  ;;  %v6445_v41 = vadd.f32 %v19620_v1, %v19619_v59  ;;  %v19626_v42 = vld [vmem:[#allocation87_spill] sm:$0xff] }
 0x51b   :  { %8015 = vst.msk [vmem:[#allocation5 + $0xe1] sm:$0xff] %vm159_vm5, %v7998_v48  ;;  %7816 = vst.msk [vmem:[#allocation4 + $0x1a0] sm:$0xff] %vm159_vm5, %v7752_v6  ;;  %v7689_v0 = vadd.f32 %v18003_v37, %v7618_v33  ;;  %v7623_v32 = vmul.f32 %v17993_v15, %v7552_v60  ;;  %v7550_v24 = vadd.f32 %v7463_v38, %v6421_v26  ;;  %v8342_v19 = vld [vmem:[#allocation5 + $0xd1] sm:$0xff]  ;;  %v19624_v38 = vld [vmem:[#allocation86_spill] sm:$0xff] }
 0x51c   :  { %v18039_v29 = vld [vmem:[#allocation5 + $0xd2] sm:$0xff]  ;;  %v7755_v55 = vmax.f32 %v7691_v31, 0.0  ;;  %v14080_v7 = vpop.f32.mrf.mxu1  ;;  %v18041_v44 = vpack.c.bf16 %v8342_v19, %v8342_v19  ;;  %v6437_v26 = vadd.f32 %v19622_v5, %v19621_v34 }
 0x51d   :  { %v18048_v45 = vpack.c.bf16 %v18039_v29, %v18037_v57  ;;  %v7878_v13 = vld [vmem:[#allocation4 + $0x190] ss:$2 sm:$0xff]  ;;  %v7942_v63 = vld [vmem:[#allocation4 + $0x191] ss:$2 sm:$0xff]  ;;  %v7753_v2 = vmax.f32 %v7689_v0, 0.0  ;;  %v7694_v43 = vadd.f32 %v18003_v37, %v7623_v32  ;;  %v7621_v50 = vmul.f32 %v17993_v15, %v7550_v24 }
 0x51e   :  { %v7553_v22 = vadd.f32 %v14080_v7, %v6432_v52  ;;  %v7980_v9 = vmax.f32 %v7878_v13, %v7942_v63  ;;  %v7876_v49 = vld [vmem:[#allocation4 + $0x180] ss:$2 sm:$0xff]  ;;  %v7940_v39 = vld [vmem:[#allocation4 + $0x181] ss:$2 sm:$0xff]  ;;  %7819 = vst.msk [vmem:[#allocation4 + $0x1b8] sm:$0xff] %vm159_vm5, %v7755_v55  ;;  %8432 = vrot.lane.b32.xlu0 %v18041_v44, %s14709_s19  ;;  %v7466_v62 = vpop.f32.mrf.mxu1  ;;  %v19623_v31 = vld [vmem:[#allocation56_spill] sm:$0xff] }
 0x51f   :  { %v7979_v35 = vmax.f32 %v7876_v49, %v7940_v39  ;;  %7817 = vst.msk [vmem:[#allocation4 + $0x1a8] sm:$0xff] %vm159_vm5, %v7753_v2  ;;  %v7758_v27 = vmax.f32 %v7694_v43, 0.0  ;;  %v7692_v36 = vadd.f32 %v18003_v37, %v7621_v50  ;;  %v7551_v47 = vadd.f32 %v7466_v62, %v6424_v51 }
 0x520   :  { %v7624_v11 = vmul.f32 %v17993_v15, %v7553_v22  ;;  %v14083_v18 = vpop.f32.mrf.mxu1  ;;  %v6448_v12 = vadd.f32 %v19624_v38, %v19623_v31  ;;  %v19625_v22 = vld [vmem:[#allocation57_spill] sm:$0xff] }
 0x521   :  { %v7999_v48 = vmax.f32 %v7979_v35, %v7980_v9  ;;  %7822 = vst.msk [vmem:[#allocation4 + $0x1d0] sm:$0xff] %vm159_vm5, %v7758_v27  ;;  %v7756_v6 = vmax.f32 %v7692_v36, 0.0  ;;  %v7556_v60 = vadd.f32 %v14083_v18, %v6445_v41  ;;  %v7622_v30 = vmul.f32 %v17993_v15, %v7551_v47 }
 0x522   :  { %v7695_v33 = vadd.f32 %v18003_v37, %v7624_v11  ;;  %v7479_v52 = vpop.f32.mrf.mxu1  ;;  %v8343_v0 = vld [vmem:[#allocation5 + $0xe1] sm:$0xff]  ;;  %v6440_v54 = vadd.f32 %v19626_v42, %v19625_v22 }
 0x523   :  { %8016 = vst.msk [vmem:[#allocation5 + $0xf1] sm:$0xff] %vm159_vm5, %v7999_v48  ;;  %7820 = vst.msk [vmem:[#allocation4 + $0x1c0] sm:$0xff] %vm159_vm5, %v7756_v6  ;;  %v7627_v24 = vmul.f32 %v17993_v15, %v7556_v60  ;;  %v7554_v19 = vadd.f32 %v7479_v52, %v6437_v26  ;;  %v18072_v55 = vpack.c.bf16 %v8343_v0, %v8343_v0  ;;  %v18088_v47 = vld [vmem:[#allocation5 + $0xe2] sm:$0xff] }
 0x524   :  { %v7759_v32 = vmax.f32 %v7695_v33, 0.0  ;;  %v7693_v7 = vadd.f32 %v18003_v37, %v7622_v30  ;;  %v14084_v40 = vpop.f32.mrf.mxu1 }
 0x525   :  { %v7882_v13 = vld [vmem:[#allocation4 + $0x1b0] ss:$2 sm:$0xff]  ;;  %v7946_v63 = vld [vmem:[#allocation4 + $0x1b1] ss:$2 sm:$0xff]  ;;  %v7698_v2 = vadd.f32 %v18003_v37, %v7627_v24  ;;  %v7625_v43 = vmul.f32 %v17993_v15, %v7554_v19  ;;  %v7557_v50 = vadd.f32 %v14084_v40, %v6448_v12  ;;  %8434 = vrot.lane.b32.xlu1 %v18072_v55, %s14709_s19 }
 0x526   :  { %7823 = vst.msk [vmem:[#allocation4 + $0x1d8] sm:$0xff] %vm159_vm5, %v7759_v32  ;;  %v7982_v51 = vmax.f32 %v7882_v13, %v7946_v63  ;;  %v7880_v59 = vld [vmem:[#allocation4 + $0x1a0] ss:$2 sm:$0xff]  ;;  %v7944_v1 = vld [vmem:[#allocation4 + $0x1a1] ss:$2 sm:$0xff]  ;;  %v7757_v41 = vmax.f32 %v7693_v7, 0.0  ;;  %v7482_v9 = vpop.f32.mrf.mxu1 }
 0x527   :  { %v7981_v49 = vmax.f32 %v7880_v59, %v7944_v1  ;;  %v7762_v39 = vmax.f32 %v7698_v2, 0.0  ;;  %v7696_v62 = vadd.f32 %v18003_v37, %v7625_v43  ;;  %v7628_v35 = vmul.f32 %v17993_v15, %v7557_v50  ;;  %v8052_v50 = vld [vmem:[#allocation5 + $0x1] sm:$0xff] }
 0x528   :  { %7821 = vst.msk [vmem:[#allocation4 + $0x1c8] sm:$0xff] %vm159_vm5, %v7757_v41  ;;  %v7555_v27 = vadd.f32 %v7482_v9, %v6440_v54  ;;  %v8068_v1 = vpack.c.bf16 %v8052_v50, %v8052_v50  ;;  %v8300_v41 = vld [vmem:[#allocation5 + $0x10] sm:$0xff] }
 0x529   :  { %v8000_v36 = vmax.f32 %v7981_v49, %v7982_v51  ;;  %7826 = vst.msk [vmem:[#allocation4 + $0x1f0] sm:$0xff] %vm159_vm5, %v7762_v39  ;;  %v7760_v11 = vmax.f32 %v7696_v62, 0.0  ;;  %v7699_v34 = vadd.f32 %v18003_v37, %v7628_v35  ;;  %v8301_v49 = vld [vmem:[#allocation5 + $0x20] sm:$0xff]  ;;  %v8053_v35 = vld [vmem:[#allocation5 + $0x11] sm:$0xff] }
 0x52a   :  { %v7626_v5 = vmul.f32 %v17993_v15, %v7555_v27  ;;  %v8344_v26 = vld [vmem:[#allocation5 + $0xf1] sm:$0xff]  ;;  %v18126_v27 = vpack.c.bf16 %v8300_v41, %v8300_v41 }
 0x52b   :  { %v18090_v18 = vld [vmem:[#allocation5 + $0xf2] sm:$0xff]  ;;  %8017 = vst.msk [vmem:[#allocation5 + $0x101] sm:$0xff] %vm159_vm5, %v8000_v36  ;;  %7824 = vst.msk [vmem:[#allocation4 + $0x1e0] sm:$0xff] %vm159_vm5, %v7760_v11  ;;  %v7763_v48 = vmax.f32 %v7699_v34, 0.0  ;;  %v18094_v6 = vpack.c.bf16 %v8344_v26, %v8344_v26  ;;  %v18132_v36 = vpack.c.bf16 %v8301_v49, %v8301_v49  ;;  %v8069_v26 = vpack.c.bf16 %v8053_v35, %v8053_v35 }
 0x52c   :  { %v18098_v33 = vpack.c.bf16 %v18090_v18, %v18088_v47  ;;  %v7697_v60 = vadd.f32 %v18003_v37, %v7626_v5  ;;  %v14272_v35 = vld [vmem:[%s19442_s7 + $0x50] sm:$0xff]  }
 0x52d   :  { %v7886_v31 = vld [vmem:[#allocation4 + $0x1d0] ss:$2 sm:$0xff]  ;;  %v7950_v15 = vld [vmem:[#allocation4 + $0x1d1] ss:$2 sm:$0xff]  ;;  %7827 = vst.msk [vmem:[#allocation4 + $0x1f8] sm:$0xff] %vm159_vm5, %v7763_v48  ;;  %8436 = vrot.lane.b32.xlu0 %v18094_v6, %s14709_s19 }
 0x52e   :  { %v7761_v38 = vmax.f32 %v7697_v60, 0.0  ;;  %v7984_v52 = vmax.f32 %v7886_v31, %v7950_v15  ;;  %v14262_v48 = vld [vmem:[%s19442_s7 + $0x38] sm:$0xff]   ;;  %v13308_v31 = vpack.c.bf16 %v17854_v25, %v17799_v61  ;;  %v14263_v15 = vld [vmem:[%s19442_s7 + $0x30] sm:$0xff]   ;;  %v8303_v25 = vld [vmem:[#allocation5 + $0x40] sm:$0xff] }
 0x52f   :  { %v7884_v12 = vld [vmem:[#allocation4 + $0x1c0] ss:$2 sm:$0xff]  ;;  %v7948_v30 = vld [vmem:[#allocation4 + $0x1c1] ss:$2 sm:$0xff]  ;;  %v8302_v61 = vld [vmem:[#allocation5 + $0x30] sm:$0xff] }
 0x530   :  { %v7983_v0 = vmax.f32 %v7884_v12, %v7948_v30  ;;  %7825 = vst.msk [vmem:[#allocation4 + $0x1e8] sm:$0xff] %vm159_vm5, %v7761_v38  ;;  %v14265_v38 = vld [vmem:[%s19442_s7 + $0x20] sm:$0xff]   ;;  %v18173_v30 = vpack.c.bf16 %v8303_v25, %v8303_v25 }
 0x531   :  { %v8309_v25 = vld [vmem:[#allocation5 + $0xc0] sm:$0xff] }
 0x532   :  { %v8001_v32 = vmax.f32 %v7983_v0, %v7984_v52  ;;  %v8345_v24 = vld [vmem:[#allocation5 + $0x101] sm:$0xff] }
 0x533   :  { %v18105_v19 = vpack.c.bf16 %v8345_v24, %v8345_v24  ;;  %v18110_v42 = vld [vmem:[#allocation5 + $0x102] sm:$0xff] }
 0x534   :  { %8018 = vst.msk [vmem:[#allocation5 + $0x111] sm:$0xff] %vm159_vm5, %v8001_v32  ;;  %v7890_v37 = vld [vmem:[#allocation4 + $0x1f0] ss:$2 sm:$0xff]  ;;  %v7954_v7 = vld [vmem:[#allocation4 + $0x1f1] ss:$2 sm:$0xff] }
 0x535   :  { %8438 = vrot.lane.b32.xlu1 %v18105_v19, %s14709_s19  ;;  %v7986_v63 = vmax.f32 %v7890_v37, %v7954_v7  ;;  %v14266_v32 = vld [vmem:[%s19442_s7 + $0x18] sm:$0xff]   ;;  %v13309_v37 = vpack.c.bf16 %v17922_v8, %v17856_v56  ;;  %v8060_v7 = vld [vmem:[#allocation5 + $0xa1] sm:$0xff] }
 0x536   :  { %v14269_v56 = vld [vmem:[%s19442_s7 + $0x8] sm:$0xff]  }
 0x537   :  { %v7888_v40 = vld [vmem:[#allocation4 + $0x1e0] ss:$2 sm:$0xff]  ;;  %v7952_v13 = vld [vmem:[#allocation4 + $0x1e1] ss:$2 sm:$0xff] }
 0x538   :  { %v7985_v2 = vmax.f32 %v7888_v40, %v7952_v13  ;;  %v14268_v40 = vld [vmem:[%s19442_s7 + $0x10] sm:$0xff]   ;;  %v8305_v13 = vld [vmem:[#allocation5 + $0x60] sm:$0xff] }
 0x539   :  { %v18213_v50 = vpack.c.bf16 %v8305_v13, %v8305_v13 }
 0x53a   :  { %v8002_v43 = vmax.f32 %v7985_v2, %v7986_v63  ;;  %v14270_v63 = vld [vmem:[%s19442_s7] sm:$0xff]  }
 0x53b   :  { %v8346_v22 = vld [vmem:[#allocation5 + $0x111] sm:$0xff] }
 0x53c   :  { %v18112_v54 = vld [vmem:[#allocation5 + $0x112] sm:$0xff]  ;;  %8019 = vst.msk [vmem:[#allocation5 + $0x121] sm:$0xff] %vm159_vm5, %v8002_v43  ;;  %v18115_v51 = vpack.c.bf16 %v8346_v22, %v8346_v22  ;;  %v18216_v22 = vld [vmem:[#allocation5 + $0x82] sm:$0xff] }
 0x53d   :  { %v18119_v59 = vpack.c.bf16 %v18112_v54, %v18110_v42 }
 0x53e   :  { %8440 = vrot.lane.b32.xlu0 %v18115_v51, %s14709_s19 }
 0x53f   :  { %v8413_v62 = vpop.permute.xlu0 %8412 }
 0x540   :  { %v8446_v34 = vsel %vm159_vm5, %v18126_v27, %v8413_v62  ;;  %v13310_v62 = vpack.c.bf16 %v18216_v22, %v17915_v17  ;;  %v14273_v17 = vld [vmem:[%s19442_s7 + $0x48] sm:$0xff]  }
 0x542   :  { %8132 = vrot.lane.b32.xlu0 %v8068_v1, %s14709_s19 }
 0x543   :  { %v8347_v9 = vld [vmem:[#allocation5 + $0x121] sm:$0xff] }
 0x544   :  { %v18124_v39 = vpack.c.bf16 %v8347_v9, %v8347_v9  ;;  %v14271_v9 = vld [vmem:[%s19442_s7 + $0x58] sm:$0xff]  }
 0x546   :  { %8442 = vrot.lane.b32.xlu1 %v18124_v39, %s14709_s19  ;;  %9128 = vrot.lane.b32.xlu0 %v17776_v58, %s14709_s19 }
 0x548   :  { %v8415_v11 = vpop.permute.xlu1 %8414 }
 0x549   :  { %v8449_v5 = vsel %vm159_vm5, %v18132_v36, %v8415_v11 }
 0x54a   :  { %v12660_v60 = vcombine.low %v8446_v34, %v8449_v5  ;;  %8136 = vrot.lane.b32.xlu0 %v17776_v58, %s14709_s19  ;;  %8134 = vrot.lane.b32.xlu1 %v8069_v26, %s14709_s19  ;;  %v14264_v58 = vld [vmem:[%s19442_s7 + $0x28] sm:$0xff]   ;;  %v14274_v34 = vld [vmem:[%s19442_s7 + $0x40] sm:$0xff]  }
 0x54c   :  { %8734 = vmatmul.mubr.bf16.vlgmr.msra.gmra.mxu1 %v12660_v60 }
 0x54d   :  { %12689 = vmatprep.mubr.msk.bf16.mxu1 %vm159_vm5, %v13308_v31  ;;  %8919 = vmatpush1.bf16.msra.mxu1 %v14262_v48  ;;  %v18265_v31 = vld [vmem:[#allocation5 + $0xb2] sm:$0xff] }
 0x54e   :  { %8920 = vmatprep.subr.bf16.mxu1 %v19466_v53  ;;  %9132 = vrot.lane.b32.xlu0 %v17832_v10, %s14709_s19 }
 0x54f   :  { %9130 = vrot.lane.b32.xlu1 %v17806_v16, %s14709_s19 }
 0x550   :  { %v8417_v12 = vpop.permute.xlu0 %8416 }
 0x551   :  { %8921 = vmatpush1.bf16.msra.mxu1 %v14263_v15  ;;  %v13311_v15 = vpack.c.bf16 %v18037_v57, %v18265_v31 }
 0x552   :  { %8922 = vmatprep.subr.bf16.mxu1 %v19466_v53  ;;  %8140 = vrot.lane.b32.xlu0 %v17832_v10, %s14709_s19  ;;  %v18171_v10 = vpack.c.bf16 %v8302_v61, %v8302_v61  ;;  %v8308_v61 = vld [vmem:[#allocation5 + $0xb0] sm:$0xff] }
 0x553   :  { %8138 = vrot.lane.b32.xlu1 %v17806_v16, %s14709_s19  ;;  %v18281_v57 = vpack.c.bf16 %v8308_v61, %v8308_v61 }
 0x554   :  { %v8452_v52 = vsel %vm159_vm5, %v18171_v10, %v8417_v12 }
 0x555   :  { %8923 = vmatpush1.bf16.msra.mxu1 %v14264_v58  ;;  %v9063_v58 = vld [vmem:[#allocation5 + $0x131] sm:$0xff] }
 0x556   :  { %8924 = vmatprep.subr.bf16.mxu1 %v19466_v53  ;;  %9136 = vrot.lane.b32.xlu0 %v17894_v4, %s14709_s19 }
 0x557   :  { %9134 = vrot.lane.b32.xlu1 %v17861_v14, %s14709_s19 }
 0x558   :  { %v8419_v16 = vpop.permute.xlu1 %8418 }
 0x559   :  { %8925 = vmatpush1.bf16.msra.mxu1 %v14265_v38  ;;  %v8455_v0 = vsel %vm159_vm5, %v18173_v30, %v8419_v16  ;;  %v18283_v38 = vpack.c.bf16 %v8309_v25, %v8309_v25 }
 0x55a   :  { %8926 = vmatprep.subr.bf16.mxu1 %v19466_v53  ;;  %v12662_v24 = vcombine.low %v8452_v52, %v8455_v0  ;;  %8144 = vrot.lane.b32.xlu0 %v17894_v4, %s14709_s19  ;;  %v8076_v4 = vpack.c.bf16 %v8060_v7, %v8060_v7  ;;  %v8310_v0 = vld [vmem:[#allocation5 + $0xd0] sm:$0xff] }
 0x55b   :  { %8142 = vrot.lane.b32.xlu1 %v17861_v14, %s14709_s19  ;;  %v9055_v14 = vld [vmem:[#allocation5 + $0x91] sm:$0xff] }
 0x55c   :  { %8742 = vmatmul.mubr.bf16.gmra.mxu1 %v12662_v24  ;;  %v9071_v8 = vpack.c.bf16 %v9055_v14, %v9055_v14 }
 0x55d   :  { %12690 = vmatprep.mubr.msk.bf16.mxu1 %vm159_vm5, %v13309_v37  ;;  %8927 = vmatpush1.bf16.msra.mxu1 %v14266_v32  ;;  %v8311_v32 = vld [vmem:[#allocation5 + $0xe0] sm:$0xff]  ;;  %v18292_v37 = vpack.c.bf16 %v8310_v0, %v8310_v0 }
 0x55e   :  { %9140 = vrot.lane.b32.xlu0 %v17951_v46, %s14709_s19  ;;  %8928 = vmatprep.subr.bf16.mxu1 %v19466_v53  ;;  %v8304_v46 = vld [vmem:[#allocation5 + $0x50] sm:$0xff]  ;;  %v18294_v7 = vpack.c.bf16 %v8311_v32, %v8311_v32 }
 0x55f   :  { %9138 = vrot.lane.b32.xlu1 %v17920_v28, %s14709_s19  ;;  %v18211_v43 = vpack.c.bf16 %v8304_v46, %v8304_v46 }
 0x560   :  { %v8421_v2 = vpop.permute.xlu0 %8420 }
 0x561   :  { %8929 = vmatpush1.bf16.msra.mxu1 %v14268_v40  ;;  %v8458_v1 = vsel %vm159_vm5, %v18211_v43, %v8421_v2 }
 0x562   :  { %8148 = vrot.lane.b32.xlu0 %v8076_v4, %s14709_s19  ;;  %8930 = vmatprep.subr.bf16.mxu1 %v19466_v53 }
 0x563   :  { %8146 = vrot.lane.b32.xlu1 %v17920_v28, %s14709_s19 }
 0x565   :  { %8931 = vmatpush1.bf16.msra.mxu1 %v14269_v56 }
 0x566   :  { %9144 = vrot.lane.b32.xlu0 %v18012_v23, %s14709_s19  ;;  %8932 = vmatprep.subr.bf16.mxu1 %v19466_v53 }
 0x567   :  { %9142 = vrot.lane.b32.xlu1 %v9071_v8, %s14709_s19  ;;  %v8313_v8 = vld [vmem:[#allocation5 + $0x100] sm:$0xff] }
 0x568   :  { %v8423_v28 = vpop.permute.xlu1 %8422 }
 0x569   :  { %v8461_v41 = vsel %vm159_vm5, %v18213_v50, %v8423_v28  ;;  %8933 = vmatpush1.bf16.msra.mxu1 %v14270_v63  ;;  %v18305_v63 = vpack.c.bf16 %v8313_v8, %v8313_v8  ;;  %v18307_v28 = vld [vmem:[#allocation5 + $0x122] sm:$0xff] }
 0x56a   :  { %v12664_v49 = vcombine.low %v8458_v1, %v8461_v41  ;;  %8152 = vrot.lane.b32.xlu0 %v18012_v23, %s14709_s19  ;;  %8942 = vmatprep.subr.bf16.mxu1 %v19466_v53  ;;  %v8307_v23 = vld [vmem:[#allocation5 + $0x80] sm:$0xff] }
 0x56b   :  { %8150 = vrot.lane.b32.xlu1 %v17977_v21, %s14709_s19  ;;  %v8306_v21 = vld [vmem:[#allocation5 + $0x70] sm:$0xff] }
 0x56c   :  { %8750 = vmatmul.mubr.bf16.gmra.mxu1 %v12664_v49  ;;  %v18252_v5 = vpack.c.bf16 %v8306_v21, %v8306_v21  ;;  %v8314_v49 = vld [vmem:[#allocation5 + $0x110] sm:$0xff] }
 0x56d   :  { %12691 = vmatprep.mubr.msk.bf16.mxu1 %vm159_vm5, %v13310_v62  ;;  %8943 = vmatpush2.bf16.msra.mxu1 %v14271_v9 }
 0x56e   :  { %9148 = vrot.lane.b32.xlu0 %v18072_v55, %s14709_s19  ;;  %8944 = vmatprep.subr.bf16.mxu1 %v19466_v53 }
 0x56f   :  { %9146 = vrot.lane.b32.xlu1 %v18041_v44, %s14709_s19  ;;  %v8425_v11 = vpop.permute.xlu0 %8424 }
 0x570   :  { %v8464_v26 = vsel %vm159_vm5, %v18252_v5, %v8425_v11 }
 0x571   :  { %8945 = vmatpush2.bf16.msra.mxu1 %v14272_v35  ;;  %v8315_v35 = vld [vmem:[#allocation5 + $0x120] sm:$0xff] }
 0x572   :  { %8156 = vrot.lane.b32.xlu0 %v18072_v55, %s14709_s19  ;;  %8946 = vmatprep.subr.bf16.mxu1 %v19466_v53  ;;  %v18258_v55 = vpack.c.bf16 %v8307_v23, %v8307_v23  ;;  %v18318_v21 = vpack.c.bf16 %v8315_v35, %v8315_v35  ;;  %v8020_v23 = vld [vmem:[#allocation5] sm:$0xff] }
 0x573   :  { %8154 = vrot.lane.b32.xlu1 %v18041_v44, %s14709_s19 }
 0x575   :  { %8947 = vmatpush2.bf16.msra.mxu1 %v14273_v17  ;;  %v18316_v17 = vpack.c.bf16 %v8314_v49, %v8314_v49 }
 0x576   :  { %9152 = vrot.lane.b32.xlu0 %v18105_v19, %s14709_s19  ;;  %8948 = vmatprep.subr.bf16.mxu1 %v19466_v53 }
 0x577   :  { %9150 = vrot.lane.b32.xlu1 %v18094_v6, %s14709_s19  ;;  %v8427_v44 = vpop.permute.xlu1 %8426 }
 0x578   :  { %v8467_v48 = vsel %vm159_vm5, %v18258_v55, %v8427_v44  ;;  %v8084_v44 = vld [vmem:[#allocation5 + $0x2] sm:$0xff] }
 0x579   :  { %v12666_v60 = vcombine.low %v8464_v26, %v8467_v48  ;;  %8949 = vmatpush2.bf16.msra.mxu1 %v14274_v34  ;;  %v8085_v26 = vld [vmem:[#allocation5 + $0x12] sm:$0xff] }
 0x57a   :  { %8160 = vrot.lane.b32.xlu0 %v18105_v19, %s14709_s19  ;;  %v9079_v19 = vpack.c.bf16 %v9063_v58, %v9063_v58  ;;  %v13315_v58 = vpack.c.bf16 %v8085_v26, %v8084_v44 }
 0x57b   :  { %8158 = vrot.lane.b32.xlu1 %v18094_v6, %s14709_s19  ;;  %8758 = vmatmul.mubr.bf16.gmra.mxu1 %v12666_v60 }
 0x57c   :  { %12692 = vmatprep.mubr.msk.bf16.mxu1 %vm159_vm5, %v13311_v15  ;;  %v8036_v15 = vpack.c.bf16 %v8020_v23, %v8020_v23 }
 0x57e   :  { %9156 = vrot.lane.b32.xlu0 %v18124_v39, %s14709_s19 }
 0x57f   :  { %9154 = vrot.lane.b32.xlu1 %v18115_v51, %s14709_s19 }
 0x580   :  { %v8429_v6 = vpop.permute.xlu0 %8428 }
 0x581   :  { %v8470_v39 = vsel %vm159_vm5, %v18281_v57, %v8429_v6 }
 0x583   :  { %8162 = vrot.lane.b32.xlu1 %v18115_v51, %s14709_s19  ;;  %v13312_v51 = vpack.c.bf16 %v18088_v47, %v18039_v29  ;;  %v13313_v29 = vpack.c.bf16 %v18110_v42, %v18090_v18  ;;  %v8312_v47 = vld [vmem:[#allocation5 + $0xf0] sm:$0xff]  ;;  %v13314_v42 = vpack.c.bf16 %v18307_v28, %v18112_v54 }
 0x584   :  { %v18303_v13 = vpack.c.bf16 %v8312_v47, %v8312_v47 }
 0x587   :  { %9158 = vrot.lane.b32.xlu1 %v9079_v19, %s14709_s19 }
 0x588   :  { %v8431_v12 = vpop.permute.xlu1 %8430 }
 0x589   :  { %v8473_v16 = vsel %vm159_vm5, %v18283_v38, %v8431_v12 }
 0x58a   :  { %v12668_v52 = vcombine.low %v8470_v39, %v8473_v16  ;;  %v8087_v16 = vld [vmem:[#allocation5 + $0x32] sm:$0xff] }
 0x58c   :  { %8766 = vmatmul.mubr.bf16.gmra.mxu1 %v12668_v52 }
 0x58d   :  { %12693 = vmatprep.mubr.msk.bf16.mxu1 %vm159_vm5, %v13312_v51 }
 0x590   :  { %v8433_v24 = vpop.permute.xlu0 %8432 }
 0x591   :  { %v8476_v4 = vsel %vm159_vm5, %v18292_v37, %v8433_v24  ;;  %v8086_v24 = vld [vmem:[#allocation5 + $0x22] sm:$0xff] }
 0x597   :  { %v8435_v40 = vpop.permute.xlu1 %8434 }
 0x598   :  { %v8479_v14 = vsel %vm159_vm5, %v18294_v7, %v8435_v40  ;;  %v13316_v40 = vpack.c.bf16 %v8087_v16, %v8086_v24 }
 0x599   :  { %v12670_v56 = vcombine.low %v8476_v4, %v8479_v14 }
 0x59b   :  { %8774 = vmatmul.mubr.bf16.gmra.mxu1 %v12670_v56 }
 0x59c   :  { %12694 = vmatprep.mubr.msk.bf16.mxu1 %vm159_vm5, %v13313_v29 }
 0x59f   :  { %v8437_v46 = vpop.permute.xlu0 %8436 }
 0x5a0   :  { %v8482_v1 = vsel %vm159_vm5, %v18303_v13, %v8437_v46 }
 0x5a7   :  { %v8439_v2 = vpop.permute.xlu1 %8438 }
 0x5a8   :  { %v8485_v41 = vsel %vm159_vm5, %v18305_v63, %v8439_v2 }
 0x5a9   :  { %v12672_v18 = vcombine.low %v8482_v1, %v8485_v41 }
 0x5ab   :  { %8782 = vmatmul.mubr.bf16.gmra.mxu1 %v12672_v18 }
 0x5ac   :  { %12695 = vmatprep.mubr.msk.bf16.mxu1 %vm159_vm5, %v13314_v42 }
 0x5b0   :  { %v8441_v9 = vpop.permute.xlu0 %8440 }
 0x5b1   :  { %v8488_v48 = vsel %vm159_vm5, %v18316_v17, %v8441_v9  ;;  %v9087_v9 = vld [vmem:[#allocation5 + $0x92] sm:$0xff] }
 0x5b4   :  { %v8133_v62 = vpop.permute.xlu0 %8132 }
 0x5b5   :  { %v8166_v25 = vsel %vm159_vm5, %v8036_v15, %v8133_v62  ;;  %v8092_v15 = vld [vmem:[#allocation5 + $0xa2] sm:$0xff] }
 0x5b8   :  { %v8443_v11 = vpop.permute.xlu1 %8442  ;;  %v9129_v34 = vpop.permute.xlu0 %9128 }
 0x5b9   :  { %v8491_v54 = vsel %vm159_vm5, %v18318_v21, %v8443_v11  ;;  %v9162_v52 = vsel %vm159_vm5, %v18132_v36, %v9129_v34  ;;  %v9023_v11 = vld [vmem:[#allocation5 + $0x90] sm:$0xff]  ;;  %v13326_v34 = vpack.c.bf16 %v9087_v9, %v18216_v22 }
 0x5ba   :  { %v12674_v60 = vcombine.low %v8488_v48, %v8491_v54  ;;  %v8028_v48 = vld [vmem:[#allocation5 + $0xa0] sm:$0xff] }
 0x5bc   :  { %v8137_v19 = vpop.permute.xlu0 %8136  ;;  %8790 = vmatmul.mubr.bf16.gmra.mxu1 %v12674_v60  ;;  %v8135_v61 = vpop.permute.xlu1 %8134 }
 0x5bd   :  { %12724 = vmatprep.mubr.msk.bf16.mxu1 %vm159_vm5, %v13315_v58  ;;  %v8169_v6 = vsel %vm159_vm5, %v18126_v27, %v8135_v61  ;;  %v8172_v47 = vsel %vm159_vm5, %v18132_v36, %v8137_v19 }
 0x5be   :  { %v12696_v0 = vcombine.low %v8166_v25, %v8169_v6  ;;  %v8044_v25 = vpack.c.bf16 %v8028_v48, %v8028_v48  ;;  %v13319_v6 = vpack.c.bf16 %v18265_v31, %v8092_v15  ;;  %v14281_v48 = vld [vmem:[%s19445_s10 + $0xd0] ss:$8 sps:$4 sm:$0xff]  }
 0x5c0   :  { %v9133_v12 = vpop.permute.xlu0 %9132 }
 0x5c1   :  { %v9131_v39 = vpop.permute.xlu1 %9130  ;;  %v9168_v8 = vsel %vm159_vm5, %v18173_v30, %v9133_v12 }
 0x5c2   :  { %v9165_v51 = vsel %vm159_vm5, %v18171_v10, %v9131_v39 }
 0x5c3   :  { %v12756_v32 = vcombine.low %v9162_v52, %v9165_v51 }
 0x5c4   :  { %v8141_v4 = vpop.permute.xlu0 %8140  ;;  %8951 = vmatmul.mubr.bf16.vlgmr.msra.gmra.mxu1 %v12696_v0 }
 0x5c5   :  { %9450 = vmatmul.mubr.bf16.vlgmr.msra.gmra.mxu0 %v12756_v32  ;;  %v8139_v14 = vpop.permute.xlu1 %8138  ;;  %12725 = vmatprep.mubr.msk.bf16.mxu1 %vm159_vm5, %v13316_v40  ;;  %v8178_v49 = vsel %vm159_vm5, %v18173_v30, %v8141_v4  ;;  %v9039_v30 = vpack.c.bf16 %v9023_v11, %v9023_v11 }
 0x5c6   :  { %12785 = vmatprep.mubr.msk.bf16.mxu0 %vm159_vm5, %v17865_v20  ;;  %v8175_v27 = vsel %vm159_vm5, %v18171_v10, %v8139_v14 }
 0x5c7   :  { %v12698_v2 = vcombine.low %v8172_v47, %v8175_v27 }
 0x5c8   :  { %v9137_v56 = vpop.permute.xlu0 %9136 }
 0x5c9   :  { %v9135_v29 = vpop.permute.xlu1 %9134  ;;  %v9174_v62 = vsel %vm159_vm5, %v18213_v50, %v9137_v56 }
 0x5ca   :  { %v9171_v46 = vsel %vm159_vm5, %v18211_v43, %v9135_v29 }
 0x5cb   :  { %v12758_v1 = vcombine.low %v9168_v8, %v9171_v46  ;;  %v9095_v46 = vld [vmem:[#allocation5 + $0x132] sm:$0xff] }
 0x5cc   :  { %v8145_v41 = vpop.permute.xlu0 %8144  ;;  %8959 = vmatmul.mubr.bf16.gmra.mxu1 %v12698_v2 }
 0x5cd   :  { %9458 = vmatmul.mubr.bf16.gmra.mxu0 %v12758_v1  ;;  %v8143_v18 = vpop.permute.xlu1 %8142  ;;  %12726 = vmatprep.mubr.msk.bf16.mxu1 %vm159_vm5, %v17865_v20  ;;  %v8184_v22 = vsel %vm159_vm5, %v18213_v50, %v8145_v41 }
 0x5ce   :  { %12786 = vmatprep.mubr.msk.bf16.mxu0 %vm159_vm5, %v17927_v3  ;;  %v8181_v36 = vsel %vm159_vm5, %v18211_v43, %v8143_v18 }
 0x5cf   :  { %v12700_v23 = vcombine.low %v8178_v49, %v8181_v36  ;;  %v9031_v36 = vld [vmem:[#allocation5 + $0x130] sm:$0xff] }
 0x5d0   :  { %v9141_v10 = vpop.permute.xlu0 %9140 }
 0x5d1   :  { %v9139_v42 = vpop.permute.xlu1 %9138  ;;  %v9180_v58 = vsel %vm159_vm5, %v18258_v55, %v9141_v10  ;;  %v13330_v10 = vpack.c.bf16 %v9095_v46, %v18307_v28  ;;  %v14314_v46 = vld [vmem:[%s19445_s10 + $0x80] ss:$8 sps:$4 sm:$0xff]  }
 0x5d2   :  { %v9177_v35 = vsel %vm159_vm5, %v18252_v5, %v9139_v42 }
 0x5d3   :  { %v12760_v20 = vcombine.low %v9174_v62, %v9177_v35 }
 0x5d4   :  { %v8149_v44 = vpop.permute.xlu0 %8148  ;;  %8967 = vmatmul.mubr.bf16.gmra.mxu1 %v12700_v23 }
 0x5d5   :  { %9466 = vmatmul.mubr.bf16.gmra.mxu0 %v12760_v20  ;;  %v8147_v43 = vpop.permute.xlu1 %8146  ;;  %12727 = vmatprep.mubr.msk.bf16.mxu1 %vm159_vm5, %v17927_v3  ;;  %v8190_v50 = vsel %vm159_vm5, %v8044_v25, %v8149_v44  ;;  %v14278_v44 = vld [vmem:[%s19445_s10 + $0xe0] ss:$8 sps:$4 sm:$0xff]  }
 0x5d6   :  { %12787 = vmatprep.mubr.msk.bf16.mxu0 %vm159_vm5, %v13326_v34  ;;  %v8187_v26 = vsel %vm159_vm5, %v18252_v5, %v8147_v43  ;;  %v14280_v43 = vld [vmem:[%s19445_s10 + $0xe4] ss:$8 sps:$4 sm:$0xff]  }
 0x5d7   :  { %v12702_v61 = vcombine.low %v8184_v22, %v8187_v26  ;;  %v14284_v22 = vld [vmem:[%s19445_s10 + $0xc0] ss:$8 sps:$4 sm:$0xff]  }
 0x5d8   :  { %v9145_v54 = vpop.permute.xlu0 %9144 }
 0x5d9   :  { %v9143_v60 = vpop.permute.xlu1 %9142  ;;  %v9186_v52 = vsel %vm159_vm5, %v18283_v38, %v9145_v54  ;;  %v14283_v54 = vld [vmem:[%s19445_s10 + $0xd4] ss:$8 sps:$4 sm:$0xff]  }
 0x5da   :  { %v9183_v19 = vsel %vm159_vm5, %v9039_v30, %v9143_v60 }
 0x5db   :  { %v12762_v3 = vcombine.low %v9180_v58, %v9183_v19  ;;  %v14286_v58 = vld [vmem:[%s19445_s10 + $0xc4] ss:$8 sps:$4 sm:$0xff]   ;;  %v14292_v19 = vld [vmem:[%s19445_s10 + $0x174] ss:$8 sps:$4 sm:$0xff]  }
 0x5dc   :  { %v8153_v12 = vpop.permute.xlu0 %8152  ;;  %8975 = vmatmul.mubr.bf16.gmra.mxu1 %v12702_v61  ;;  %10087 = vmatprep.subr.bf16.mxu0 %v14292_v19 }
 0x5dd   :  { %9474 = vmatmul.mubr.bf16.gmra.mxu0 %v12762_v3  ;;  %v8151_v5 = vpop.permute.xlu1 %8150  ;;  %12728 = vmatprep.mubr.msk.bf16.mxu1 %vm159_vm5, %v13319_v6  ;;  %v8196_v4 = vsel %vm159_vm5, %v18283_v38, %v8153_v12  ;;  %v14290_v3 = vld [vmem:[%s19445_s10 + $0x170] ss:$8 sps:$4 sm:$0xff]   ;;  %v14289_v12 = vld [vmem:[%s19445_s10 + $0xb4] ss:$8 sps:$4 sm:$0xff]  }
 0x5de   :  { %12788 = vmatprep.mubr.msk.bf16.mxu0 %vm159_vm5, %v18048_v45  ;;  %v8193_v55 = vsel %vm159_vm5, %v18281_v57, %v8151_v5  ;;  %10088 = vmatpush1.bf16.msra.mxu0 %v14290_v3  ;;  %v14287_v6 = vld [vmem:[%s19445_s10 + $0xb0] ss:$8 sps:$4 sm:$0xff]   ;;  %v14295_v5 = vld [vmem:[%s19445_s10 + $0x164] ss:$8 sps:$4 sm:$0xff]  }
 0x5df   :  { %v12704_v51 = vcombine.low %v8190_v50, %v8193_v55  ;;  %v14293_v55 = vld [vmem:[%s19445_s10 + $0x160] ss:$8 sps:$4 sm:$0xff]   ;;  %10089 = vmatprep.subr.bf16.mxu0 %v14295_v5 }
 0x5e0   :  { %v9149_v39 = vpop.permute.xlu0 %9148 }
 0x5e1   :  { %v9147_v16 = vpop.permute.xlu1 %9146  ;;  %v9192_v14 = vsel %vm159_vm5, %v18294_v7, %v9149_v39 }
 0x5e2   :  { %v9189_v31 = vsel %vm159_vm5, %v18292_v37, %v9147_v16  ;;  %10090 = vmatpush1.bf16.msra.mxu0 %v14293_v55  ;;  %v14301_v16 = vld [vmem:[%s19445_s10 + $0x154] ss:$8 sps:$4 sm:$0xff]  }
 0x5e3   :  { %v12764_v0 = vcombine.low %v9186_v52, %v9189_v31  ;;  %v14299_v52 = vld [vmem:[%s19445_s10 + $0x150] ss:$8 sps:$4 sm:$0xff]   ;;  %10091 = vmatprep.subr.bf16.mxu0 %v14301_v16  ;;  %v14296_v31 = vld [vmem:[%s19445_s10 + $0xa0] ss:$8 sps:$4 sm:$0xff]  }
 0x5e4   :  { %v8157_v32 = vpop.permute.xlu0 %8156  ;;  %8983 = vmatmul.mubr.bf16.gmra.mxu1 %v12704_v51  ;;  %v14298_v51 = vld [vmem:[%s19445_s10 + $0xa4] ss:$8 sps:$4 sm:$0xff]  }
 0x5e5   :  { %9482 = vmatmul.mubr.bf16.gmra.mxu0 %v12764_v0  ;;  %v8155_v24 = vpop.permute.xlu1 %8154  ;;  %12729 = vmatprep.mubr.msk.bf16.mxu1 %vm159_vm5, %v18048_v45  ;;  %v8202_v2 = vsel %vm159_vm5, %v18294_v7, %v8157_v32  ;;  %v9047_v7 = vpack.c.bf16 %v9031_v36, %v9031_v36  ;;  %v14304_v0 = vld [vmem:[%s19445_s10 + $0x144] ss:$8 sps:$4 sm:$0xff]   ;;  %v14302_v32 = vld [vmem:[%s19445_s10 + $0x140] ss:$8 sps:$4 sm:$0xff]  }
 0x5e6   :  { %12789 = vmatprep.mubr.msk.bf16.mxu0 %vm159_vm5, %v18098_v33  ;;  %v8199_v57 = vsel %vm159_vm5, %v18292_v37, %v8155_v24  ;;  %10092 = vmatpush1.bf16.msra.mxu0 %v14299_v52 }
 0x5e7   :  { %v12706_v56 = vcombine.low %v8196_v4, %v8199_v57  ;;  %10093 = vmatprep.subr.bf16.mxu0 %v14304_v0  ;;  %v14310_v57 = vld [vmem:[%s19445_s10 + $0x134] ss:$8 sps:$4 sm:$0xff]  }
 0x5e8   :  { %v9153_v29 = vpop.permute.xlu0 %9152 }
 0x5e9   :  { %v9151_v40 = vpop.permute.xlu1 %9150  ;;  %v9198_v1 = vsel %vm159_vm5, %v18305_v63, %v9153_v29  ;;  %v14313_v29 = vld [vmem:[%s19445_s10 + $0x124] ss:$8 sps:$4 sm:$0xff]  }
 0x5ea   :  { %v9195_v27 = vsel %vm159_vm5, %v18303_v13, %v9151_v40  ;;  %10094 = vmatpush1.bf16.msra.mxu0 %v14302_v32  ;;  %v14308_v40 = vld [vmem:[%s19445_s10 + $0x130] ss:$8 sps:$4 sm:$0xff]  }
 0x5eb   :  { %v12766_v47 = vcombine.low %v9192_v14, %v9195_v27  ;;  %10095 = vmatprep.subr.bf16.mxu0 %v14310_v57  ;;  %v14305_v27 = vld [vmem:[%s19445_s10 + $0x90] ss:$8 sps:$4 sm:$0xff]  }
 0x5ec   :  { %8991 = vmatmul.mubr.bf16.gmra.mxu1 %v12706_v56  ;;  %v8161_v37 = vpop.permute.xlu0 %8160  ;;  %v14307_v56 = vld [vmem:[%s19445_s10 + $0x94] ss:$8 sps:$4 sm:$0xff]  }
 0x5ed   :  { %9490 = vmatmul.mubr.bf16.gmra.mxu0 %v12766_v47  ;;  %v8159_v45 = vpop.permute.xlu1 %8158  ;;  %12730 = vmatprep.mubr.msk.bf16.mxu1 %vm159_vm5, %v18098_v33  ;;  %v8208_v62 = vsel %vm159_vm5, %v18305_v63, %v8161_v37  ;;  %v14275_v63 = vld [vmem:[%s19445_s10 + $0xf0] ss:$8 sps:$4 sm:$0xff]   ;;  %v14311_v47 = vld [vmem:[%s19445_s10 + $0x120] ss:$8 sps:$4 sm:$0xff]  }
 0x5ee   :  { %12790 = vmatprep.mubr.msk.bf16.mxu0 %vm159_vm5, %v18119_v59  ;;  %v8205_v38 = vsel %vm159_vm5, %v18303_v13, %v8159_v45  ;;  %10096 = vmatpush1.bf16.msra.mxu0 %v14308_v40  ;;  %v14317_v37 = vld [vmem:[%s19445_s10 + $0x110] ss:$8 sps:$4 sm:$0xff]  }
 0x5ef   :  { %v12708_v18 = vcombine.low %v8202_v2, %v8205_v38  ;;  %10097 = vmatprep.subr.bf16.mxu0 %v14313_v29  ;;  %v14319_v38 = vld [vmem:[%s19445_s10 + $0x114] ss:$8 sps:$4 sm:$0xff]   ;;  %v14322_v2 = vld [vmem:[%s19445_s10 + $0x104] ss:$8 sps:$4 sm:$0xff]  }
 0x5f0   :  { %v9157_v13 = vpop.permute.xlu0 %9156 }
 0x5f1   :  { %v9155_v8 = vpop.permute.xlu1 %9154  ;;  %v9204_v28 = vsel %vm159_vm5, %v18318_v21, %v9157_v13  ;;  %v14277_v21 = vld [vmem:[%s19445_s10 + $0xf4] ss:$8 sps:$4 sm:$0xff]  }
 0x5f2   :  { %v9201_v41 = vsel %vm159_vm5, %v18316_v17, %v9155_v8  ;;  %9819 = vmatprep.subr.bf16.mxu1 %v14277_v21  ;;  %10098 = vmatpush1.bf16.msra.mxu0 %v14311_v47  ;;  %v14316_v8 = vld [vmem:[%s19445_s10 + $0x84] ss:$8 sps:$4 sm:$0xff]  }
 0x5f3   :  { %v12768_v33 = vcombine.low %v9198_v1, %v9201_v41  ;;  %9820 = vmatpush1.bf16.msra.mxu1 %v14275_v63  ;;  %10099 = vmatprep.subr.bf16.mxu0 %v14319_v38  ;;  %v14320_v1 = vld [vmem:[%s19445_s10 + $0x100] ss:$8 sps:$4 sm:$0xff]   ;;  %v14325_v41 = vld [vmem:[%s19445_s10 + $0x74] ss:$8 sps:$4 sm:$0xff]  }
 0x5f4   :  { %8999 = vmatmul.mubr.bf16.gmra.mxu1 %v12708_v18  ;;  %9821 = vmatprep.subr.bf16.mxu1 %v14280_v43  ;;  %v14328_v18 = vld [vmem:[%s19445_s10 + $0x274] ss:$8 sps:$4 sm:$0xff]  }
 0x5f5   :  { %9498 = vmatmul.mubr.bf16.gmra.mxu0 %v12768_v33  ;;  %v8163_v42 = vpop.permute.xlu1 %8162  ;;  %12731 = vmatprep.mubr.msk.bf16.mxu1 %vm159_vm5, %v18119_v59 }
 0x5f6   :  { %12791 = vmatprep.mubr.msk.bf16.mxu0 %vm159_vm5, %v13330_v10  ;;  %v8211_v9 = vsel %vm159_vm5, %v18316_v17, %v8163_v42  ;;  %10100 = vmatpush1.bf16.msra.mxu0 %v14317_v37 }
 0x5f7   :  { %v12710_v23 = vcombine.low %v8208_v62, %v8211_v9  ;;  %9822 = vmatpush1.bf16.msra.mxu1 %v14278_v44  ;;  %10101 = vmatprep.subr.bf16.mxu0 %v14322_v2 }
 0x5f8   :  { %9823 = vmatprep.subr.bf16.mxu1 %v14283_v54 }
 0x5f9   :  { %v9159_v49 = vpop.permute.xlu1 %9158 }
 0x5fa   :  { %v9207_v35 = vsel %vm159_vm5, %v9047_v7, %v9159_v49  ;;  %10102 = vmatpush1.bf16.msra.mxu0 %v14320_v1 }
 0x5fb   :  { %v12770_v20 = vcombine.low %v9204_v28, %v9207_v35  ;;  %9824 = vmatpush1.bf16.msra.mxu1 %v14281_v48  ;;  %10382 = vmatprep.subr.bf16.mxu0 %v14328_v18 }
 0x5fc   :  { %9007 = vmatmul.mubr.bf16.gmra.mxu1 %v12710_v23  ;;  %9825 = vmatprep.subr.bf16.mxu1 %v14286_v58 }
 0x5fd   :  { %9506 = vmatmul.mubr.bf16.gmra.mxu0 %v12770_v20  ;;  %9851 = vmatprep.mubr.bf16.mxu1 %v19466_v53 }
 0x5fe   :  { %10119 = vmatprep.mubr.bf16.mxu0 %v19466_v53 }
 0x5ff   :  { %9826 = vmatpush1.bf16.msra.mxu1 %v14284_v22  ;;  %v18557_v22 = vld [vmem:[%s19444_s9] ss:$0 sm:$0xff] }
 0x600   :  { %9827 = vmatprep.subr.bf16.mxu1 %v14289_v12 }
 0x603   :  { %9828 = vmatpush1.bf16.msra.mxu1 %v14287_v6 }
 0x604   :  { %9829 = vmatprep.subr.bf16.mxu1 %v14298_v51 }
 0x607   :  { %9830 = vmatpush1.bf16.msra.mxu1 %v14296_v31 }
 0x608   :  { %9831 = vmatprep.subr.bf16.mxu1 %v14307_v56 }
 0x60b   :  { %9832 = vmatpush1.bf16.msra.mxu1 %v14305_v27 }
 0x60c   :  { %v18414_v59 = vpop.f32.mrf.mxu1  ;;  %9833 = vmatprep.subr.bf16.mxu1 %v14316_v8 }
 0x60e   :  { %v8737_v17 = vpop.f32.mrf.mxu1 }
 0x60f   :  { %9834 = vmatpush1.bf16.msra.mxu1 %v14314_v46 }
 0x610   :  { %v18416_v11 = vpop.f32.mrf.mxu1  ;;  %9944 = vmatprep.subr.bf16.mxu1 %v14325_v41 }
 0x612   :  { %v8740_v34 = vpop.f32.mrf.mxu1 }
 0x61c   :  { %v18430_v30 = vpop.f32.mrf.mxu1 }
 0x61e   :  { %v8745_v26 = vpop.f32.mrf.mxu1 }
 0x61f   :  { %v18552_v26 = vld [vmem:[%s19443_s8] ss:$0 sm:$0xff] }
 0x620   :  { %v18438_v60 = vpop.f32.mrf.mxu1 }
 0x622   :  { %v8748_v15 = vpop.f32.mrf.mxu1 }
 0x62c   :  { %v18449_v61 = vpop.f32.mrf.mxu1 }
 0x62e   :  { %v8753_v25 = vpop.f32.mrf.mxu1 }
 0x630   :  { %v18463_v50 = vpop.f32.mrf.mxu1 }
 0x632   :  { %v8756_v39 = vpop.f32.mrf.mxu1 }
 0x63b   :  { %v18486_v24 = vpop.f32.mrf.mxu1 }
 0x63d   :  { %v8761_v4 = vpop.f32.mrf.mxu1 }
 0x63f   :  { %v18494_v14 = vpop.f32.mrf.mxu1 }
 0x641   :  { %v8764_v45 = vpop.f32.mrf.mxu1 }
 0x64c   :  { %v18532_v33 = vpop.f32.mrf.mxu1 }
 0x64e   :  { %v8769_v36 = vpop.f32.mrf.mxu1 }
 0x650   :  { %v18534_v10 = vpop.f32.mrf.mxu1 }
 0x652   :  { %v8772_v42 = vpop.f32.mrf.mxu1 }
 0x65b   :  { %v18536_v7 = vpop.f32.mrf.mxu1 }
 0x65d   :  { %v8777_v13 = vpop.f32.mrf.mxu1 }
 0x65f   :  { %v18538_v9 = vpop.f32.mrf.mxu1 }
 0x661   :  { %v8780_v49 = vpop.f32.mrf.mxu1 }
 0x66b   :  { %v18540_v62 = vpop.f32.mrf.mxu1 }
 0x66d   :  { %v8785_v28 = vpop.f32.mrf.mxu1 }
 0x66f   :  { %v18542_v35 = vpop.f32.mrf.mxu1 }
 0x671   :  { %v8788_v23 = vpop.f32.mrf.mxu1 }
 0x67c   :  { %v18544_v20 = vpop.f32.mrf.mxu1 }
 0x67e   :  { %v8793_v17 = vpop.f32.mrf.mxu1 }
 0x680   :  { %v18546_v63 = vpop.f32.mrf.mxu1 }
 0x682   :  { %v8796_v21 = vpop.f32.mrf.mxu1 }
 0x684   :  { %v8952_v34 = vpop.f32.mrf.mxu1 }
 0x685   :  { %v9451_v44 = vpop.f32.mrf.mxu0  ;;  %v8953_v43 = vadd.f32 %v8952_v34, %v18414_v59 }
 0x686   :  { %v8954_v48 = vpop.f32.mrf.mxu1 }
 0x687   :  { %v9453_v54 = vpop.f32.mrf.mxu0  ;;  %v9514_v15 = vadd.f32 %v9451_v44, %v8953_v43 }
 0x688   :  { %v8955_v58 = vpop.f32.mrf.mxu1 }
 0x689   :  { %v9454_v19 = vpop.f32.mrf.mxu0  ;;  %v9537_v3 = vmul.f32 %v18552_v26, %v9514_v15  ;;  %v8956_v25 = vadd.f32 %v8955_v58, %v18416_v11 }
 0x68a   :  { %v8957_v59 = vpop.f32.mrf.mxu1 }
 0x68b   :  { %v9456_v6 = vpop.f32.mrf.mxu0  ;;  %v9560_v12 = vadd.f32 %v18557_v22, %v9537_v3  ;;  %v9515_v5 = vadd.f32 %v9454_v19, %v8956_v25 }
 0x68c   :  { %v8960_v55 = vpop.f32.mrf.mxu1 }
 0x68d   :  { %v9459_v39 = vpop.f32.mrf.mxu0  ;;  %v9576_v16 = vmax.f32 %v9560_v12, 0.0  ;;  %v9538_v52 = vmul.f32 %v18552_v26, %v9515_v5  ;;  %v8961_v31 = vadd.f32 %v8960_v55, %v18430_v30 }
 0x68e   :  { %v8962_v51 = vpop.f32.mrf.mxu1 }
 0x68f   :  { %v9461_v0 = vpop.f32.mrf.mxu0  ;;  %9592 = vst [vmem:[#allocation6] sm:$0xff] %v9576_v16  ;;  %v9561_v32 = vadd.f32 %v18557_v22, %v9538_v52  ;;  %v9516_v57 = vadd.f32 %v9459_v39, %v8961_v31 }
 0x690   :  { %v8963_v40 = vpop.f32.mrf.mxu1 }
 0x691   :  { %v9462_v11 = vpop.f32.mrf.mxu0  ;;  %v9577_v4 = vmax.f32 %v9561_v32, 0.0  ;;  %v9539_v27 = vmul.f32 %v18552_v26, %v9516_v57  ;;  %v8964_v56 = vadd.f32 %v8963_v40, %v18438_v60 }
 0x692   :  { %v8965_v29 = vpop.f32.mrf.mxu1 }
 0x693   :  { %v9464_v47 = vpop.f32.mrf.mxu0  ;;  %9593 = vst [vmem:[#allocation6 + $0x8] sm:$0xff] %v9577_v4  ;;  %v9562_v45 = vadd.f32 %v18557_v22, %v9539_v27  ;;  %v9517_v38 = vadd.f32 %v9462_v11, %v8964_v56 }
 0x694   :  { %v8968_v30 = vpop.f32.mrf.mxu1 }
 0x695   :  { %v9467_v37 = vpop.f32.mrf.mxu0  ;;  %v9578_v8 = vmax.f32 %v9562_v45, 0.0  ;;  %v9540_v46 = vmul.f32 %v18552_v26, %v9517_v38  ;;  %v8969_v2 = vadd.f32 %v8968_v30, %v18449_v61 }
 0x696   :  { %v8970_v1 = vpop.f32.mrf.mxu1 }
 0x697   :  { %v9469_v41 = vpop.f32.mrf.mxu0  ;;  %9594 = vst [vmem:[#allocation6 + $0x10] sm:$0xff] %v9578_v8  ;;  %v9563_v18 = vadd.f32 %v18557_v22, %v9540_v46  ;;  %v9518_v36 = vadd.f32 %v9467_v37, %v8969_v2 }
 0x698   :  { %v8971_v60 = vpop.f32.mrf.mxu1 }
 0x699   :  { %v9470_v42 = vpop.f32.mrf.mxu0  ;;  %v9579_v13 = vmax.f32 %v9563_v18, 0.0  ;;  %v9541_v49 = vmul.f32 %v18552_v26, %v9518_v36  ;;  %v8972_v28 = vadd.f32 %v8971_v60, %v18463_v50 }
 0x69a   :  { %v8973_v23 = vpop.f32.mrf.mxu1  ;;  %v9610_v8 = vld [vmem:[#allocation6 + $0x8] ss:$2 sm:$0xf]  ;;  %v9642_v41 = vld [vmem:[#allocation6 + $0x9] ss:$2 sm:$0xf] }
 0x69b   :  { %v9472_v17 = vpop.f32.mrf.mxu0  ;;  %9595 = vst [vmem:[#allocation6 + $0x18] sm:$0xff] %v9579_v13  ;;  %v9564_v21 = vadd.f32 %v18557_v22, %v9541_v49  ;;  %v9519_v34 = vadd.f32 %v9470_v42, %v8972_v28  ;;  %v9608_v42 = vld [vmem:[#allocation6] ss:$2 sm:$0xf]  ;;  %v9672_v23 = vmax.f32 %v9610_v8, %v9642_v41 }
 0x69c   :  { %v8976_v61 = vpop.f32.mrf.mxu1  ;;  %v9640_v13 = vld [vmem:[#allocation6 + $0x1] ss:$2 sm:$0xf] }
 0x69d   :  { %v9475_v44 = vpop.f32.mrf.mxu0  ;;  %v9580_v43 = vmax.f32 %v9564_v21, 0.0  ;;  %v9542_v48 = vmul.f32 %v18552_v26, %v9519_v34  ;;  %v8977_v54 = vadd.f32 %v8976_v61, %v18486_v24 }
 0x69e   :  { %v8978_v15 = vpop.f32.mrf.mxu1 }
 0x69f   :  { %v9477_v58 = vpop.f32.mrf.mxu0  ;;  %9596 = vst [vmem:[#allocation6 + $0x20] sm:$0xff] %v9580_v43  ;;  %v9565_v19 = vadd.f32 %v18557_v22, %v9542_v48  ;;  %v9520_v3 = vadd.f32 %v9475_v44, %v8977_v54 }
 0x6a0   :  { %v8979_v50 = vpop.f32.mrf.mxu1 }
 0x6a1   :  { %v9478_v25 = vpop.f32.mrf.mxu0  ;;  %v9581_v59 = vmax.f32 %v9565_v19, 0.0  ;;  %v9543_v6 = vmul.f32 %v18552_v26, %v9520_v3  ;;  %v8980_v12 = vadd.f32 %v8979_v50, %v18494_v14  ;;  %v9612_v50 = vld [vmem:[#allocation6 + $0x10] ss:$2 sm:$0xf] }
 0x6a2   :  { %v8981_v5 = vpop.f32.mrf.mxu1  ;;  %v9614_v54 = vld [vmem:[#allocation6 + $0x18] ss:$2 sm:$0xf]  ;;  %v9646_v15 = vld [vmem:[#allocation6 + $0x19] ss:$2 sm:$0xf] }
 0x6a3   :  { %v9480_v55 = vpop.f32.mrf.mxu0  ;;  %9597 = vst [vmem:[#allocation6 + $0x28] sm:$0xff] %v9581_v59  ;;  %v9566_v39 = vadd.f32 %v18557_v22, %v9543_v6  ;;  %v9521_v16 = vadd.f32 %v9478_v25, %v8980_v12  ;;  %v9644_v12 = vld [vmem:[#allocation6 + $0x11] ss:$2 sm:$0xf] }
 0x6a4   :  { %v8984_v24 = vpop.f32.mrf.mxu1  ;;  %v9674_v55 = vmax.f32 %v9614_v54, %v9646_v15 }
 0x6a5   :  { %v9483_v52 = vpop.f32.mrf.mxu0  ;;  %v9582_v31 = vmax.f32 %v9566_v39, 0.0  ;;  %v9544_v51 = vmul.f32 %v18552_v26, %v9521_v16  ;;  %v8985_v0 = vadd.f32 %v8984_v24, %v18532_v33 }
 0x6a6   :  { %v8986_v32 = vpop.f32.mrf.mxu1 }
 0x6a7   :  { %v9485_v57 = vpop.f32.mrf.mxu0  ;;  %9598 = vst [vmem:[#allocation6 + $0x30] sm:$0xff] %v9582_v31  ;;  %v9567_v40 = vadd.f32 %v18557_v22, %v9544_v51  ;;  %v9522_v11 = vadd.f32 %v9483_v52, %v8985_v0  ;;  %v9673_v32 = vmax.f32 %v9612_v50, %v9644_v12 }
 0x6a8   :  { %v8987_v14 = vpop.f32.mrf.mxu1 }
 0x6a9   :  { %v9486_v4 = vpop.f32.mrf.mxu0  ;;  %v9583_v27 = vmax.f32 %v9567_v40, 0.0  ;;  %v9545_v56 = vmul.f32 %v18552_v26, %v9522_v11  ;;  %v8988_v29 = vadd.f32 %v8987_v14, %v18534_v10 }
 0x6aa   :  { %v8989_v47 = vpop.f32.mrf.mxu1  ;;  %v9618_v8 = vld [vmem:[#allocation6 + $0x28] ss:$2 sm:$0xf]  ;;  %v9650_v41 = vld [vmem:[#allocation6 + $0x29] ss:$2 sm:$0xf] }
 0x6ab   :  { %v9488_v45 = vpop.f32.mrf.mxu0  ;;  %9599 = vst [vmem:[#allocation6 + $0x38] sm:$0xff] %v9583_v27  ;;  %v9568_v38 = vadd.f32 %v18557_v22, %v9545_v56  ;;  %v9523_v30 = vadd.f32 %v9486_v4, %v8988_v29  ;;  %v9688_v56 = vmax.f32 %v9673_v32, %v9674_v55 }
 0x6ac   :  { %v8992_v33 = vpop.f32.mrf.mxu1 }
 0x6ad   :  { %v9491_v37 = vpop.f32.mrf.mxu0  ;;  %v9584_v46 = vmax.f32 %v9568_v38, 0.0  ;;  %v9546_v2 = vmul.f32 %v18552_v26, %v9523_v30  ;;  %v8993_v1 = vadd.f32 %v8992_v33, %v18536_v7  ;;  %v9671_v7 = vmax.f32 %v9608_v42, %v9640_v13 }
 0x6ae   :  { %v8994_v18 = vpop.f32.mrf.mxu1 }
 0x6af   :  { %v9493_v36 = vpop.f32.mrf.mxu0  ;;  %9600 = vst [vmem:[#allocation6 + $0x40] sm:$0xff] %v9584_v46  ;;  %v9569_v10 = vadd.f32 %v18557_v22, %v9546_v2  ;;  %v9524_v60 = vadd.f32 %v9491_v37, %v8993_v1  ;;  %v9687_v3 = vmax.f32 %v9671_v7, %v9672_v23 }
 0x6b0   :  { %v8995_v49 = vpop.f32.mrf.mxu1 }
 0x6b1   :  { %v9494_v28 = vpop.f32.mrf.mxu0  ;;  %v9585_v17 = vmax.f32 %v9569_v10, 0.0  ;;  %v9547_v21 = vmul.f32 %v18552_v26, %v9524_v60  ;;  %v8996_v34 = vadd.f32 %v8995_v49, %v18538_v9  ;;  %v9695_v0 = vpack.c.bf16 %v9687_v3, %v9687_v3  ;;  %v9616_v49 = vld [vmem:[#allocation6 + $0x20] ss:$2 sm:$0xf] }
 0x6b2   :  { %v8997_v61 = vpop.f32.mrf.mxu1  ;;  %v10275_v10 = vpack.c.bf16 %v9688_v56, %v9688_v56  ;;  %v9654_v56 = vld [vmem:[#allocation6 + $0x39] ss:$2 sm:$0xf] }
 0x6b3   :  { %v9496_v44 = vpop.f32.mrf.mxu0  ;;  %9601 = vst [vmem:[#allocation6 + $0x48] sm:$0xff] %v9585_v17  ;;  %v9570_v43 = vadd.f32 %v18557_v22, %v9547_v21  ;;  %v9525_v48 = vadd.f32 %v9494_v28, %v8996_v34  ;;  %v18598_v37 = vunpack.c.l.b16 %v9695_v0  ;;  %v9648_v28 = vld [vmem:[#allocation6 + $0x21] ss:$2 sm:$0xf] }
 0x6b4   :  { %v9000_v58 = vpop.f32.mrf.mxu1  ;;  %v9676_v44 = vmax.f32 %v9618_v8, %v9650_v41 }
 0x6b5   :  { %v9499_v19 = vpop.f32.mrf.mxu0  ;;  %v9586_v25 = vmax.f32 %v9570_v43, 0.0  ;;  %v9548_v59 = vmul.f32 %v18552_v26, %v9525_v48  ;;  %v9001_v6 = vadd.f32 %v9000_v58, %v18540_v62  ;;  %v9734_v21 = vrot.slane %v18598_v37, 1 }
 0x6b6   :  { %v9002_v9 = vpop.f32.mrf.mxu1  ;;  %v9624_v31 = vld [vmem:[#allocation6 + $0x40] ss:$2 sm:$0xf]  ;;  %v9656_v51 = vld [vmem:[#allocation6 + $0x41] ss:$2 sm:$0xf] }
 0x6b7   :  { %v9501_v5 = vpop.f32.mrf.mxu0  ;;  %9602 = vst [vmem:[#allocation6 + $0x50] sm:$0xff] %v9586_v25  ;;  %v9571_v39 = vadd.f32 %v18557_v22, %v9548_v59  ;;  %v9526_v16 = vadd.f32 %v9499_v19, %v9001_v6  ;;  %v9679_v45 = vmax.f32 %v9624_v31, %v9656_v51  ;;  %v10002_v34 = vrot.slane %v18598_v37, 2  ;;  %v14323_v9 = vld [vmem:[%s19445_s10 + $0x70] ss:$8 sps:$4 sm:$0xff]  }
 0x6b8   :  { %v9003_v24 = vpop.f32.mrf.mxu1  ;;  %v10147_v61 = vrot.slane %v18598_v37, 3  ;;  %v18610_v25 = vunpack.c.l.b16 %v10275_v10  ;;  %v9675_v59 = vmax.f32 %v9616_v49, %v9648_v28  ;;  %v14335_v10 = vld [vmem:[%s19445_s10 + $0x50] ss:$8 sps:$4 sm:$0xff]   ;;  %v14343_v49 = vld [vmem:[%s19445_s10 + $0x44] ss:$8 sps:$4 sm:$0xff]  }
 0x6b9   :  { %v9502_v52 = vpop.f32.mrf.mxu0  ;;  %v9587_v57 = vmax.f32 %v9571_v39, 0.0  ;;  %v9549_v40 = vmul.f32 %v18552_v26, %v9526_v16  ;;  %v9004_v11 = vadd.f32 %v9003_v24, %v18542_v35  ;;  %v14326_v39 = vld [vmem:[%s19445_s10 + $0x270] ss:$8 sps:$4 sm:$0xff]   ;;  %v14331_v16 = vld [vmem:[%s19445_s10 + $0x64] ss:$8 sps:$4 sm:$0xff]  }
 0x6ba   :  { %v9005_v62 = vpop.f32.mrf.mxu1  ;;  %v9626_v4 = vld [vmem:[#allocation6 + $0x48] ss:$2 sm:$0xf]  ;;  %v9658_v27 = vld [vmem:[#allocation6 + $0x49] ss:$2 sm:$0xf] }
 0x6bb   :  { %v9504_v14 = vpop.f32.mrf.mxu0  ;;  %9603 = vst [vmem:[#allocation6 + $0x58] sm:$0xff] %v9587_v57  ;;  %v9572_v29 = vadd.f32 %v18557_v22, %v9549_v40  ;;  %v9527_v47 = vadd.f32 %v9502_v52, %v9004_v11  ;;  %v9680_v38 = vmax.f32 %v9626_v4, %v9658_v27  ;;  %v14329_v57 = vld [vmem:[%s19445_s10 + $0x60] ss:$8 sps:$4 sm:$0xff]   ;;  %v14334_v40 = vld [vmem:[%s19445_s10 + $0x264] ss:$8 sps:$4 sm:$0xff]   ;;  %v9689_v11 = vmax.f32 %v9675_v59, %v9676_v44 }
 0x6bc   :  { %v9008_v30 = vpop.f32.mrf.mxu1  ;;  %v14337_v14 = vld [vmem:[%s19445_s10 + $0x54] ss:$8 sps:$4 sm:$0xff]   ;;  %v14346_v44 = vld [vmem:[%s19445_s10 + $0x244] ss:$8 sps:$4 sm:$0xff]  }
 0x6bd   :  { %v9507_v33 = vpop.f32.mrf.mxu0  ;;  %v9588_v46 = vmax.f32 %v9572_v29, 0.0  ;;  %v9550_v2 = vmul.f32 %v18552_v26, %v9527_v47  ;;  %v9009_v35 = vadd.f32 %v9008_v30, %v18544_v20  ;;  %v9691_v1 = vmax.f32 %v9679_v45, %v9680_v38  ;;  %v9622_v27 = vld [vmem:[#allocation6 + $0x38] ss:$2 sm:$0xf] }
 0x6be   :  { %v9010_v18 = vpop.f32.mrf.mxu1  ;;  %v9628_v20 = vld [vmem:[#allocation6 + $0x50] ss:$2 sm:$0xf]  ;;  %v9660_v15 = vld [vmem:[#allocation6 + $0x51] ss:$2 sm:$0xf] }
 0x6bf   :  { %v9509_v36 = vpop.f32.mrf.mxu0  ;;  %9604 = vst [vmem:[#allocation6 + $0x60] sm:$0xff] %v9588_v46  ;;  %v9573_v60 = vadd.f32 %v18557_v22, %v9550_v2  ;;  %v9528_v42 = vadd.f32 %v9507_v33, %v9009_v35  ;;  %v9696_v13 = vpack.c.bf16 %v9691_v1, %v9691_v1  ;;  %v9681_v24 = vmax.f32 %v9628_v20, %v9660_v15  ;;  %v9620_v47 = vld [vmem:[#allocation6 + $0x30] ss:$2 sm:$0xf]  ;;  %v14332_v46 = vld [vmem:[%s19445_s10 + $0x260] ss:$8 sps:$4 sm:$0xff]  }
 0x6c0   :  { %v9011_v23 = vpop.f32.mrf.mxu1  ;;  %v9652_v45 = vld [vmem:[#allocation6 + $0x31] ss:$2 sm:$0xf]  ;;  %v10442_v2 = vrot.slane %v18610_v25, 1  ;;  %v10859_v35 = vpack.c.bf16 %v9689_v11, %v9689_v11  ;;  %v9678_v1 = vmax.f32 %v9622_v27, %v9654_v56  ;;  %v14353_v11 = vld [vmem:[%s19445_s10 + $0x20] ss:$8 sps:$4 sm:$0xff]  }
 0x6c1   :  { %v9510_v17 = vpop.f32.mrf.mxu0  ;;  %v9589_v7 = vmax.f32 %v9573_v60, 0.0  ;;  %v9551_v43 = vmul.f32 %v18552_v26, %v9528_v42  ;;  %v9012_v48 = vadd.f32 %v9011_v23, %v18546_v63  ;;  %v18608_v54 = vunpack.c.l.b16 %v9696_v13 }
 0x6c2   :  { %v9013_v58 = vpop.f32.mrf.mxu1  ;;  %v9630_v3 = vld [vmem:[#allocation6 + $0x58] ss:$2 sm:$0xf]  ;;  %v9662_v50 = vld [vmem:[#allocation6 + $0x59] ss:$2 sm:$0xf]  ;;  %v9677_v13 = vmax.f32 %v9620_v47, %v9652_v45  ;;  %v18667_v20 = vunpack.c.l.b16 %v10859_v35 }
 0x6c3   :  { %v9512_v19 = vpop.f32.mrf.mxu0  ;;  %9605 = vst [vmem:[#allocation6 + $0x68] sm:$0xff] %v9589_v7  ;;  %v9574_v6 = vadd.f32 %v18557_v22, %v9551_v43  ;;  %v9529_v12 = vadd.f32 %v9510_v17, %v9012_v48  ;;  %v9736_v63 = vsel %vm9735_vm8, %v18608_v54, %v9734_v21  ;;  %v10003_v5 = vrot.slane %v18608_v54, 1  ;;  %v14338_v21 = vld [vmem:[%s19445_s10 + $0x250] ss:$8 sps:$4 sm:$0xff]   ;;  %v14341_v43 = vld [vmem:[%s19445_s10 + $0x40] ss:$8 sps:$4 sm:$0xff]  }
 0x6c4   :  { %v9737_v55 = vpack.c.b16 %v9736_v63, %v9736_v63  ;;  %v9682_v52 = vmax.f32 %v9630_v3, %v9662_v50  ;;  %v10148_v31 = vrot.slane %v18608_v54, 2  ;;  %v10731_v23 = vrot.slane %v18610_v25, 3  ;;  %v14349_v48 = vld [vmem:[%s19445_s10 + $0x34] ss:$8 sps:$4 sm:$0xff]   ;;  %v14344_v3 = vld [vmem:[%s19445_s10 + $0x240] ss:$8 sps:$4 sm:$0xff]  }
 0x6c5   :  { %v9590_v51 = vmax.f32 %v9574_v6, 0.0  ;;  %v9552_v0 = vmul.f32 %v18552_v26, %v9529_v12  ;;  %v10004_v32 = vsel %vm9735_vm8, %v10003_v5, %v10002_v34  ;;  %v14352_v50 = vld [vmem:[%s19445_s10 + $0x234] ss:$8 sps:$4 sm:$0xff]   ;;  %v11026_v6 = vrot.slane %v18667_v20, 1  ;;  %v14347_v5 = vld [vmem:[%s19445_s10 + $0x30] ss:$8 sps:$4 sm:$0xff]  }
 0x6c6   :  { %9852 = vmatmul.mubr.bf16.vlgmr.msra.gmra.mxu1 %v9737_v55  ;;  %v10005_v62 = vpack.c.b16 %v10004_v32, %v10004_v32  ;;  %v9692_v4 = vmax.f32 %v9681_v24, %v9682_v52  ;;  %v18638_v26 = vsel %vm9735_vm8, %v10148_v31, %v10147_v61  ;;  %v9632_v30 = vld [vmem:[#allocation6 + $0x60] ss:$2 sm:$0xf]  ;;  %v9664_v33 = vld [vmem:[#allocation6 + $0x61] ss:$2 sm:$0xf]  ;;  %v9690_v61 = vmax.f32 %v9677_v13, %v9678_v1 }
 0x6c7   :  { %9606 = vst [vmem:[#allocation6 + $0x70] sm:$0xff] %v9590_v51  ;;  %v9575_v29 = vadd.f32 %v18557_v22, %v9552_v0  ;;  %9945 = vmatpush1.bf16.msra.mxu1 %v14323_v9  ;;  %9976 = vmatprep.mubr.bf16.mxu1 %v19466_v53  ;;  %v14340_v22 = vld [vmem:[%s19445_s10 + $0x254] ss:$8 sps:$4 sm:$0xff]   ;;  %v9683_v60 = vmax.f32 %v9632_v30, %v9664_v33  ;;  %v14355_v24 = vld [vmem:[%s19445_s10 + $0x24] ss:$8 sps:$4 sm:$0xff]   ;;  %v11315_v52 = vrot.slane %v18667_v20, 3 }
 0x6c8   :  { %10120 = vmatmul.mubr.bf16.vlgmr.msra.gmra.mxu0 %v10005_v62  ;;  %9946 = vmatprep.subr.bf16.mxu1 %v14331_v16  ;;  %v10276_v38 = vpack.c.bf16 %v9692_v4, %v9692_v4  ;;  %v11443_v12 = vpack.c.bf16 %v9690_v61, %v9690_v61  ;;  %v14350_v51 = vld [vmem:[%s19445_s10 + $0x230] ss:$8 sps:$4 sm:$0xff]   ;;  %v14356_v4 = vld [vmem:[%s19445_s10 + $0x220] ss:$8 sps:$4 sm:$0xff]  }
 0x6c9   :  { %v9591_v8 = vmax.f32 %v9575_v29, 0.0  ;;  %10383 = vmatpush1.bf16.msra.mxu0 %v14326_v39  ;;  %10414 = vmatprep.mubr.bf16.mxu0 %v19466_v53  ;;  %v14364_v29 = vld [vmem:[%s19445_s10 + $0x214] ss:$8 sps:$4 sm:$0xff]   ;;  %v14359_v47 = vld [vmem:[%s19445_s10 + $0x10] ss:$8 sps:$4 sm:$0xff]  }
 0x6ca   :  { %10384 = vmatprep.subr.bf16.mxu0 %v14334_v40  ;;  %v18650_v41 = vunpack.c.l.b16 %v10276_v38  ;;  %v9634_v18 = vld [vmem:[#allocation6 + $0x68] ss:$2 sm:$0xf]  ;;  %v9666_v36 = vld [vmem:[#allocation6 + $0x69] ss:$2 sm:$0xf]  ;;  %v18705_v32 = vunpack.c.l.b16 %v11443_v12 }
 0x6cb   :  { %9607 = vst [vmem:[#allocation6 + $0x78] sm:$0xff] %v9591_v8  ;;  %9947 = vmatpush1.bf16.msra.mxu1 %v14329_v57  ;;  %v9684_v42 = vmax.f32 %v9634_v18, %v9666_v36  ;;  %v14358_v57 = vld [vmem:[%s19445_s10 + $0x224] ss:$8 sps:$4 sm:$0xff]   ;;  %v14362_v8 = vld [vmem:[%s19445_s10 + $0x210] ss:$8 sps:$4 sm:$0xff]  }
 0x6cc   :  { %9948 = vmatprep.subr.bf16.mxu1 %v14337_v14  ;;  %v18660_v28 = vsel %vm9735_vm8, %v18650_v41, %v10442_v2  ;;  %v10732_v17 = vrot.slane %v18650_v41, 2  ;;  %v14361_v14 = vld [vmem:[%s19445_s10 + $0x14] ss:$8 sps:$4 sm:$0xff]   ;;  %v11610_v56 = vrot.slane %v18705_v32, 1  ;;  %v14367_v38 = vld [vmem:[%s19445_s10 + $0x4] ss:$8 sps:$4 sm:$0xff]  }
 0x6cd   :  { %10385 = vmatpush1.bf16.msra.mxu0 %v14332_v46  ;;  %v9693_v34 = vmax.f32 %v9683_v60, %v9684_v42  ;;  %v11899_v30 = vrot.slane %v18705_v32, 3  ;;  %v9860_v46 = vrot.slane %v18608_v54, 7  ;;  %v14365_v35 = vld [vmem:[%s19445_s10] ss:$8 sps:$4 sm:$0xff]   ;;  %v10298_v1 = vrot.slane %v18650_v41, 7 }
 0x6ce   :  { %10386 = vmatprep.subr.bf16.mxu0 %v14340_v22  ;;  %v18673_v7 = vsel %vm9735_vm8, %v10732_v17, %v10731_v23  ;;  %v9636_v58 = vld [vmem:[#allocation6 + $0x70] ss:$2 sm:$0xf]  ;;  %v9668_v19 = vld [vmem:[#allocation6 + $0x71] ss:$2 sm:$0xf] }
 0x6cf   :  { %9949 = vmatpush1.bf16.msra.mxu1 %v14335_v10  ;;  %v10860_v15 = vpack.c.bf16 %v9693_v34, %v9693_v34  ;;  %v9685_v39 = vmax.f32 %v9636_v58, %v9668_v19  ;;  %v14370_v22 = vld [vmem:[%s19445_s10 + $0x204] ss:$8 sps:$4 sm:$0xff]   ;;  %v14373_v54 = vld [vmem:[%s19445_s10 + $0x1f4] ss:$8 sps:$4 sm:$0xff]   ;;  %v14368_v18 = vld [vmem:[%s19445_s10 + $0x200] ss:$8 sps:$4 sm:$0xff]   ;;  %v9861_v36 = vsel %vm9735_vm8, %v9860_v46, %v18598_v37  ;;  %v10299_v42 = vsel %vm9735_vm8, %v10298_v1, %v18610_v25 }
 0x6d0   :  { %9950 = vmatprep.subr.bf16.mxu1 %v14343_v49  ;;  %v14376_v10 = vld [vmem:[%s19445_s10 + $0x374] ss:$8 sps:$4 sm:$0xff]   ;;  %v14371_v60 = vld [vmem:[%s19445_s10 + $0x1f0] ss:$8 sps:$4 sm:$0xff]   ;;  %v9862_v13 = vpack.c.b16 %v9861_v36, %v9861_v36  ;;  %v14379_v49 = vld [vmem:[%s19445_s10 + $0x1e4] ss:$8 sps:$4 sm:$0xff]   ;;  %v10300_v23 = vpack.c.b16 %v10299_v42, %v10299_v42 }
 0x6d1   :  { %10387 = vmatpush1.bf16.msra.mxu0 %v14338_v21  ;;  %v18687_v59 = vunpack.c.l.b16 %v10860_v15  ;;  %v14374_v37 = vld [vmem:[%s19445_s10 + $0x370] ss:$8 sps:$4 sm:$0xff]   ;;  %v14382_v17 = vld [vmem:[%s19445_s10 + $0x364] ss:$8 sps:$4 sm:$0xff]   ;;  %v14377_v21 = vld [vmem:[%s19445_s10 + $0x1e0] ss:$8 sps:$4 sm:$0xff]  }
 0x6d2   :  { %10388 = vmatprep.subr.bf16.mxu0 %v14346_v44  ;;  %v9638_v9 = vld [vmem:[#allocation6 + $0x78] ss:$2 sm:$0xf]  ;;  %v9670_v63 = vld [vmem:[#allocation6 + $0x79] ss:$2 sm:$0xf] }
 0x6d3   :  { %9951 = vmatpush1.bf16.msra.mxu1 %v14341_v43  ;;  %v18695_v55 = vsel %vm9735_vm8, %v18687_v59, %v11026_v6  ;;  %v9686_v16 = vmax.f32 %v9638_v9, %v9670_v63  ;;  %v11316_v31 = vrot.slane %v18687_v59, 2  ;;  %v14385_v34 = vld [vmem:[%s19445_s10 + $0x1d4] ss:$8 sps:$4 sm:$0xff]   ;;  %v14380_v61 = vld [vmem:[%s19445_s10 + $0x360] ss:$8 sps:$4 sm:$0xff]  }
 0x6d4   :  { %9952 = vmatprep.subr.bf16.mxu1 %v14349_v48  ;;  %v14388_v44 = vld [vmem:[%s19445_s10 + $0x354] ss:$8 sps:$4 sm:$0xff]   ;;  %v14383_v43 = vld [vmem:[%s19445_s10 + $0x1d0] ss:$8 sps:$4 sm:$0xff]   ;;  %v14391_v48 = vld [vmem:[%s19445_s10 + $0x1c4] ss:$8 sps:$4 sm:$0xff]  }
 0x6d5   :  { %10389 = vmatpush1.bf16.msra.mxu0 %v14344_v3  ;;  %v9694_v0 = vmax.f32 %v9685_v39, %v9686_v16  ;;  %v18711_v40 = vsel %vm9735_vm8, %v11316_v31, %v11315_v52  ;;  %v14386_v15 = vld [vmem:[%s19445_s10 + $0x350] ss:$8 sps:$4 sm:$0xff]   ;;  %v14394_v58 = vld [vmem:[%s19445_s10 + $0x344] ss:$8 sps:$4 sm:$0xff]   ;;  %v14389_v19 = vld [vmem:[%s19445_s10 + $0x1c0] ss:$8 sps:$4 sm:$0xff]  }
 0x6d6   :  { %10390 = vmatprep.subr.bf16.mxu0 %v14352_v50  ;;  %v14397_v3 = vld [vmem:[%s19445_s10 + $0x1b4] ss:$8 sps:$4 sm:$0xff]   ;;  %v14392_v50 = vld [vmem:[%s19445_s10 + $0x340] ss:$8 sps:$4 sm:$0xff]   ;;  %v14395_v12 = vld [vmem:[%s19445_s10 + $0x1b0] ss:$8 sps:$4 sm:$0xff]  }
 0x6d7   :  { %9953 = vmatpush1.bf16.msra.mxu1 %v14347_v5  ;;  %v11444_v62 = vpack.c.bf16 %v9694_v0, %v9694_v0  ;;  %v14400_v6 = vld [vmem:[%s19445_s10 + $0x334] ss:$8 sps:$4 sm:$0xff]   ;;  %v14403_v9 = vld [vmem:[%s19445_s10 + $0x1a4] ss:$8 sps:$4 sm:$0xff]   ;;  %v14398_v63 = vld [vmem:[%s19445_s10 + $0x330] ss:$8 sps:$4 sm:$0xff]  }
 0x6d8   :  { %9954 = vmatprep.subr.bf16.mxu1 %v14355_v24  ;;  %v14406_v5 = vld [vmem:[%s19445_s10 + $0x324] ss:$8 sps:$4 sm:$0xff]   ;;  %v14401_v39 = vld [vmem:[%s19445_s10 + $0x1a0] ss:$8 sps:$4 sm:$0xff]   ;;  %v14409_v16 = vld [vmem:[%s19445_s10 + $0x194] ss:$8 sps:$4 sm:$0xff]  }
 0x6d9   :  { %10391 = vmatpush1.bf16.msra.mxu0 %v14350_v51  ;;  %v18722_v27 = vunpack.c.l.b16 %v11444_v62  ;;  %v14404_v24 = vld [vmem:[%s19445_s10 + $0x320] ss:$8 sps:$4 sm:$0xff]   ;;  %v14412_v52 = vld [vmem:[%s19445_s10 + $0x314] ss:$8 sps:$4 sm:$0xff]   ;;  %v14407_v31 = vld [vmem:[%s19445_s10 + $0x190] ss:$8 sps:$4 sm:$0xff]  }
 0x6da   :  { %10392 = vmatprep.subr.bf16.mxu0 %v14358_v57  ;;  %v14415_v51 = vld [vmem:[%s19445_s10 + $0x184] ss:$8 sps:$4 sm:$0xff]   ;;  %v14410_v0 = vld [vmem:[%s19445_s10 + $0x310] ss:$8 sps:$4 sm:$0xff]   ;;  %v10587_v62 = vrot.slane %v18650_v41, 1 }
 0x6db   :  { %9955 = vmatpush1.bf16.msra.mxu1 %v14353_v11  ;;  %v18733_v45 = vsel %vm9735_vm8, %v18722_v27, %v11610_v56  ;;  %v11900_v33 = vrot.slane %v18722_v27, 2  ;;  %v14418_v57 = vld [vmem:[%s19445_s10 + $0x304] ss:$8 sps:$4 sm:$0xff]   ;;  %v14413_v11 = vld [vmem:[%s19445_s10 + $0x180] ss:$8 sps:$4 sm:$0xff]   ;;  %v10586_v56 = vrot.slane %v18610_v25, 2 }
 0x6dc   :  { %9956 = vmatprep.subr.bf16.mxu1 %v14361_v14  ;;  %v14421_v14 = vld [vmem:[%s19445_s10 + $0x2f4] ss:$8 sps:$4 sm:$0xff]   ;;  %v14419_v41 = vld [vmem:[%s19445_s10 + $0x2f0] ss:$8 sps:$4 sm:$0xff]   ;;  %v14427_v25 = vld [vmem:[%s19445_s10 + $0x2e4] ss:$8 sps:$4 sm:$0xff]  }
 0x6dd   :  { %10393 = vmatpush1.bf16.msra.mxu0 %v14356_v4  ;;  %v18748_v2 = vsel %vm9735_vm8, %v11900_v33, %v11899_v30  ;;  %v14416_v4 = vld [vmem:[%s19445_s10 + $0x300] ss:$8 sps:$4 sm:$0xff]   ;;  %v14422_v30 = vld [vmem:[%s19445_s10 + $0x470] ss:$8 sps:$4 sm:$0xff]   ;;  %v14433_v46 = vld [vmem:[%s19445_s10 + $0x2d4] ss:$8 sps:$4 sm:$0xff]  }
 0x6de   :  { %10394 = vmatprep.subr.bf16.mxu0 %v14364_v29  ;;  %v14424_v29 = vld [vmem:[%s19445_s10 + $0x474] ss:$8 sps:$4 sm:$0xff]   ;;  %v14431_v1 = vld [vmem:[%s19445_s10 + $0x2d0] ss:$8 sps:$4 sm:$0xff]   ;;  %v14442_v36 = vld [vmem:[%s19445_s10 + $0x444] ss:$8 sps:$4 sm:$0xff]  }
 0x6df   :  { %9957 = vmatpush1.bf16.msra.mxu1 %v14359_v47  ;;  %v10588_v47 = vsel %vm9735_vm8, %v10587_v62, %v10586_v56  ;;  %v14440_v42 = vld [vmem:[%s19445_s10 + $0x440] ss:$8 sps:$4 sm:$0xff]   ;;  %v14482_v62 = vld [vmem:[%s19445_s10 + $0x550] ss:$8 sps:$4 sm:$0xff]   ;;  %v14493_v56 = vld [vmem:[%s19445_s10 + $0x3b4] ss:$8 sps:$4 sm:$0xff]  }
 0x6e0   :  { %9958 = vmatprep.subr.bf16.mxu1 %v14367_v38  ;;  %v10150_v38 = vpack.c.b16 %v18638_v26, %v18638_v26  ;;  %v10589_v33 = vpack.c.b16 %v10588_v47, %v10588_v47  ;;  %v14425_v26 = vld [vmem:[%s19445_s10 + $0x2e0] ss:$8 sps:$4 sm:$0xff]   ;;  %v14491_v47 = vld [vmem:[%s19445_s10 + $0x3b0] ss:$8 sps:$4 sm:$0xff]  }
 0x6e1   :  { %10395 = vmatpush1.bf16.msra.mxu0 %v14362_v8  ;;  %v14430_v8 = vld [vmem:[%s19445_s10 + $0x464] ss:$8 sps:$4 sm:$0xff]  }
 0x6e2   :  { %10396 = vmatprep.subr.bf16.mxu0 %v14370_v22  ;;  %v14428_v22 = vld [vmem:[%s19445_s10 + $0x460] ss:$8 sps:$4 sm:$0xff]  }
 0x6e3   :  { %9959 = vmatpush1.bf16.msra.mxu1 %v14365_v35  ;;  %v14436_v35 = vld [vmem:[%s19445_s10 + $0x454] ss:$8 sps:$4 sm:$0xff]  }
 0x6e4   :  { %10232 = vmatprep.subr.bf16.mxu1 %v14373_v54  ;;  %v14439_v54 = vld [vmem:[%s19445_s10 + $0x2c4] ss:$8 sps:$4 sm:$0xff]  }
 0x6e5   :  { %10397 = vmatpush1.bf16.msra.mxu0 %v14368_v18  ;;  %v14434_v18 = vld [vmem:[%s19445_s10 + $0x450] ss:$8 sps:$4 sm:$0xff]  }
 0x6e6   :  { %9977 = vmatmul.mubr.bf16.vlgmr.msra.gmra.mxu1 %v9862_v13  ;;  %10671 = vmatprep.subr.bf16.mxu0 %v14376_v10  ;;  %v14437_v10 = vld [vmem:[%s19445_s10 + $0x2c0] ss:$8 sps:$4 sm:$0xff]   ;;  %v14448_v13 = vld [vmem:[%s19445_s10 + $0x434] ss:$8 sps:$4 sm:$0xff]  }
 0x6e7   :  { %10233 = vmatpush1.bf16.msra.mxu1 %v14371_v60  ;;  %10264 = vmatprep.mubr.bf16.mxu1 %v19466_v53  ;;  %v14445_v60 = vld [vmem:[%s19445_s10 + $0x2b4] ss:$8 sps:$4 sm:$0xff]  }
 0x6e8   :  { %10415 = vmatmul.mubr.bf16.vlgmr.msra.gmra.mxu0 %v10300_v23  ;;  %10234 = vmatprep.subr.bf16.mxu1 %v14379_v49  ;;  %v14443_v49 = vld [vmem:[%s19445_s10 + $0x2b0] ss:$8 sps:$4 sm:$0xff]  }
 0x6e9   :  { %10672 = vmatpush1.bf16.msra.mxu0 %v14374_v37  ;;  %10703 = vmatprep.mubr.bf16.mxu0 %v19466_v53  ;;  %v14451_v37 = vld [vmem:[%s19445_s10 + $0x2a4] ss:$8 sps:$4 sm:$0xff]   ;;  %v14446_v23 = vld [vmem:[%s19445_s10 + $0x430] ss:$8 sps:$4 sm:$0xff]  }
 0x6ea   :  { %10673 = vmatprep.subr.bf16.mxu0 %v14382_v17  ;;  %v14454_v17 = vld [vmem:[%s19445_s10 + $0x424] ss:$8 sps:$4 sm:$0xff]  }
 0x6eb   :  { %10235 = vmatpush1.bf16.msra.mxu1 %v14377_v21  ;;  %v14449_v21 = vld [vmem:[%s19445_s10 + $0x2a0] ss:$8 sps:$4 sm:$0xff]  }
 0x6ec   :  { %10236 = vmatprep.subr.bf16.mxu1 %v14385_v34  ;;  %v14457_v34 = vld [vmem:[%s19445_s10 + $0x294] ss:$8 sps:$4 sm:$0xff]  }
 0x6ed   :  { %10674 = vmatpush1.bf16.msra.mxu0 %v14380_v61  ;;  %v14452_v61 = vld [vmem:[%s19445_s10 + $0x420] ss:$8 sps:$4 sm:$0xff]  }
 0x6ee   :  { %10675 = vmatprep.subr.bf16.mxu0 %v14388_v44  ;;  %v14460_v44 = vld [vmem:[%s19445_s10 + $0x414] ss:$8 sps:$4 sm:$0xff]  }
 0x6ef   :  { %10237 = vmatpush1.bf16.msra.mxu1 %v14383_v43  ;;  %v14455_v43 = vld [vmem:[%s19445_s10 + $0x290] ss:$8 sps:$4 sm:$0xff]  }
 0x6f0   :  { %10238 = vmatprep.subr.bf16.mxu1 %v14391_v48  ;;  %v14463_v48 = vld [vmem:[%s19445_s10 + $0x284] ss:$8 sps:$4 sm:$0xff]  }
 0x6f1   :  { %10676 = vmatpush1.bf16.msra.mxu0 %v14386_v15  ;;  %v14458_v15 = vld [vmem:[%s19445_s10 + $0x410] ss:$8 sps:$4 sm:$0xff]  }
 0x6f2   :  { %10677 = vmatprep.subr.bf16.mxu0 %v14394_v58  ;;  %v14466_v58 = vld [vmem:[%s19445_s10 + $0x404] ss:$8 sps:$4 sm:$0xff]  }
 0x6f3   :  { %10239 = vmatpush1.bf16.msra.mxu1 %v14389_v19  ;;  %v14461_v19 = vld [vmem:[%s19445_s10 + $0x280] ss:$8 sps:$4 sm:$0xff]  }
 0x6f4   :  { %10240 = vmatprep.subr.bf16.mxu1 %v14397_v3  ;;  %v10882_v3 = vrot.slane %v18687_v59, 7 }
 0x6f5   :  { %10678 = vmatpush1.bf16.msra.mxu0 %v14392_v50  ;;  %v14469_v50 = vld [vmem:[%s19445_s10 + $0x3f4] ss:$8 sps:$4 sm:$0xff]  }
 0x6f6   :  { %10679 = vmatprep.subr.bf16.mxu0 %v14400_v6  ;;  %v14464_v6 = vld [vmem:[%s19445_s10 + $0x400] ss:$8 sps:$4 sm:$0xff]  }
 0x6f7   :  { %10241 = vmatpush1.bf16.msra.mxu1 %v14395_v12  ;;  %v14472_v12 = vld [vmem:[%s19445_s10 + $0x574] ss:$8 sps:$4 sm:$0xff]  }
 0x6f8   :  { %10242 = vmatprep.subr.bf16.mxu1 %v14403_v9  ;;  %v14467_v9 = vld [vmem:[%s19445_s10 + $0x3f0] ss:$8 sps:$4 sm:$0xff]  }
 0x6f9   :  { %10680 = vmatpush1.bf16.msra.mxu0 %v14398_v63  ;;  %v10883_v63 = vsel %vm9735_vm8, %v10882_v3, %v18667_v20  ;;  %v14541_v3 = vld [vmem:[%s19445_s10 + $0x4b4] ss:$8 sps:$4 sm:$0xff]  }
 0x6fa   :  { %10681 = vmatprep.subr.bf16.mxu0 %v14406_v5  ;;  %v10444_v5 = vpack.c.b16 %v18660_v28, %v18660_v28  ;;  %v14473_v28 = vld [vmem:[%s19445_s10 + $0x3e0] ss:$8 sps:$4 sm:$0xff]  }
 0x6fb   :  { %10243 = vmatpush1.bf16.msra.mxu1 %v14401_v39  ;;  %v14475_v39 = vld [vmem:[%s19445_s10 + $0x3e4] ss:$8 sps:$4 sm:$0xff]  }
 0x6fc   :  { %10244 = vmatprep.subr.bf16.mxu1 %v14409_v16  ;;  %v14470_v16 = vld [vmem:[%s19445_s10 + $0x570] ss:$8 sps:$4 sm:$0xff]  }
 0x6fd   :  { %10682 = vmatpush1.bf16.msra.mxu0 %v14404_v24  ;;  %v10884_v24 = vpack.c.b16 %v10883_v63, %v10883_v63  ;;  %v14542_v63 = vld [vmem:[%s19445_s10 + $0x630] ss:$8 sps:$4 sm:$0xff]  }
 0x6fe   :  { %10683 = vmatprep.subr.bf16.mxu0 %v14412_v52  ;;  %v14478_v52 = vld [vmem:[%s19445_s10 + $0x564] ss:$8 sps:$4 sm:$0xff]  }
 0x6ff   :  { %10245 = vmatpush1.bf16.msra.mxu1 %v14407_v31  ;;  %v14481_v31 = vld [vmem:[%s19445_s10 + $0x3d4] ss:$8 sps:$4 sm:$0xff]  }
 0x700   :  { %10246 = vmatprep.subr.bf16.mxu1 %v14415_v51  ;;  %v14476_v51 = vld [vmem:[%s19445_s10 + $0x560] ss:$8 sps:$4 sm:$0xff]  }
 0x701   :  { %10684 = vmatpush1.bf16.msra.mxu0 %v14410_v0  ;;  %v14484_v0 = vld [vmem:[%s19445_s10 + $0x554] ss:$8 sps:$4 sm:$0xff]  }
 0x702   :  { %10685 = vmatprep.subr.bf16.mxu0 %v14418_v57  ;;  %v14479_v57 = vld [vmem:[%s19445_s10 + $0x3d0] ss:$8 sps:$4 sm:$0xff]  }
 0x703   :  { %10247 = vmatpush1.bf16.msra.mxu1 %v14413_v11  ;;  %v14487_v11 = vld [vmem:[%s19445_s10 + $0x3c4] ss:$8 sps:$4 sm:$0xff]  }
 0x704   :  { %10526 = vmatprep.subr.bf16.mxu1 %v14421_v14  ;;  %v14490_v14 = vld [vmem:[%s19445_s10 + $0x544] ss:$8 sps:$4 sm:$0xff]  }
 0x705   :  { %10686 = vmatpush1.bf16.msra.mxu0 %v14416_v4  ;;  %v14485_v4 = vld [vmem:[%s19445_s10 + $0x3c0] ss:$8 sps:$4 sm:$0xff]  }
 0x706   :  { %10265 = vmatmul.mubr.bf16.vlgmr.msra.gmra.mxu1 %v10150_v38  ;;  %10966 = vmatprep.subr.bf16.mxu0 %v14424_v29  ;;  %v14488_v29 = vld [vmem:[%s19445_s10 + $0x540] ss:$8 sps:$4 sm:$0xff]   ;;  %v14499_v38 = vld [vmem:[%s19445_s10 + $0x3a4] ss:$8 sps:$4 sm:$0xff]  }
 0x707   :  { %10527 = vmatpush1.bf16.msra.mxu1 %v14419_v41  ;;  %10558 = vmatprep.mubr.bf16.mxu1 %v19466_v53  ;;  %v14496_v41 = vld [vmem:[%s19445_s10 + $0x534] ss:$8 sps:$4 sm:$0xff]  }
 0x708   :  { %10704 = vmatmul.mubr.bf16.vlgmr.msra.gmra.mxu0 %v10589_v33  ;;  %10528 = vmatprep.subr.bf16.mxu1 %v14427_v25  ;;  %v14494_v25 = vld [vmem:[%s19445_s10 + $0x530] ss:$8 sps:$4 sm:$0xff]   ;;  %v14497_v33 = vld [vmem:[%s19445_s10 + $0x3a0] ss:$8 sps:$4 sm:$0xff]  }
 0x709   :  { %10967 = vmatpush1.bf16.msra.mxu0 %v14422_v30  ;;  %10998 = vmatprep.mubr.bf16.mxu0 %v19466_v53  ;;  %v14502_v30 = vld [vmem:[%s19445_s10 + $0x524] ss:$8 sps:$4 sm:$0xff]  }
 0x70a   :  { %10968 = vmatprep.subr.bf16.mxu0 %v14430_v8  ;;  %v14505_v8 = vld [vmem:[%s19445_s10 + $0x394] ss:$8 sps:$4 sm:$0xff]  }
 0x70b   :  { %10529 = vmatpush1.bf16.msra.mxu1 %v14425_v26  ;;  %v14500_v26 = vld [vmem:[%s19445_s10 + $0x520] ss:$8 sps:$4 sm:$0xff]  }
 0x70c   :  { %10530 = vmatprep.subr.bf16.mxu1 %v14433_v46  ;;  %v14508_v46 = vld [vmem:[%s19445_s10 + $0x514] ss:$8 sps:$4 sm:$0xff]  }
 0x70d   :  { %10969 = vmatpush1.bf16.msra.mxu0 %v14428_v22  ;;  %v14503_v22 = vld [vmem:[%s19445_s10 + $0x390] ss:$8 sps:$4 sm:$0xff]  }
 0x70e   :  { %10970 = vmatprep.subr.bf16.mxu0 %v14436_v35  ;;  %v14511_v35 = vld [vmem:[%s19445_s10 + $0x384] ss:$8 sps:$4 sm:$0xff]  }
 0x70f   :  { %10531 = vmatpush1.bf16.msra.mxu1 %v14431_v1  ;;  %v14506_v1 = vld [vmem:[%s19445_s10 + $0x510] ss:$8 sps:$4 sm:$0xff]  }
 0x710   :  { %10532 = vmatprep.subr.bf16.mxu1 %v14439_v54  ;;  %v14514_v54 = vld [vmem:[%s19445_s10 + $0x504] ss:$8 sps:$4 sm:$0xff]  }
 0x711   :  { %10971 = vmatpush1.bf16.msra.mxu0 %v14434_v18  ;;  %v14509_v18 = vld [vmem:[%s19445_s10 + $0x380] ss:$8 sps:$4 sm:$0xff]  }
 0x712   :  { %10972 = vmatprep.subr.bf16.mxu0 %v14442_v36  ;;  %v11171_v36 = vrot.slane %v18687_v59, 1  ;;  %v14515_v59 = vld [vmem:[%s19445_s10 + $0x4f0] ss:$8 sps:$4 sm:$0xff]  }
 0x713   :  { %10533 = vmatpush1.bf16.msra.mxu1 %v14437_v10  ;;  %v14517_v10 = vld [vmem:[%s19445_s10 + $0x4f4] ss:$8 sps:$4 sm:$0xff]  }
 0x714   :  { %10534 = vmatprep.subr.bf16.mxu1 %v14445_v60  ;;  %v14512_v60 = vld [vmem:[%s19445_s10 + $0x500] ss:$8 sps:$4 sm:$0xff]  }
 0x715   :  { %10973 = vmatpush1.bf16.msra.mxu0 %v14440_v42  ;;  %v11170_v42 = vrot.slane %v18667_v20, 2  ;;  %v14523_v20 = vld [vmem:[%s19445_s10 + $0x4e4] ss:$8 sps:$4 sm:$0xff]  }
 0x716   :  { %10974 = vmatprep.subr.bf16.mxu0 %v14448_v13  ;;  %v14520_v13 = vld [vmem:[%s19445_s10 + $0x674] ss:$8 sps:$4 sm:$0xff]  }
 0x717   :  { %10535 = vmatpush1.bf16.msra.mxu1 %v14443_v49  ;;  %v11172_v49 = vsel %vm9735_vm8, %v11171_v36, %v11170_v42  ;;  %v14584_v36 = vld [vmem:[%s19445_s10 + $0x740] ss:$8 sps:$4 sm:$0xff]   ;;  %v14595_v42 = vld [vmem:[%s19445_s10 + $0x5a4] ss:$8 sps:$4 sm:$0xff]  }
 0x718   :  { %10536 = vmatprep.subr.bf16.mxu1 %v14451_v37  ;;  %v10734_v37 = vpack.c.b16 %v18673_v7, %v18673_v7  ;;  %v14521_v7 = vld [vmem:[%s19445_s10 + $0x4e0] ss:$8 sps:$4 sm:$0xff]  }
 0x719   :  { %10975 = vmatpush1.bf16.msra.mxu0 %v14446_v23  ;;  %v14518_v23 = vld [vmem:[%s19445_s10 + $0x670] ss:$8 sps:$4 sm:$0xff]  }
 0x71a   :  { %10976 = vmatprep.subr.bf16.mxu0 %v14454_v17  ;;  %v11173_v17 = vpack.c.b16 %v11172_v49, %v11172_v49  ;;  %v14593_v49 = vld [vmem:[%s19445_s10 + $0x5a0] ss:$8 sps:$4 sm:$0xff]  }
 0x71b   :  { %10537 = vmatpush1.bf16.msra.mxu1 %v14449_v21  ;;  %v14526_v21 = vld [vmem:[%s19445_s10 + $0x664] ss:$8 sps:$4 sm:$0xff]  }
 0x71c   :  { %10538 = vmatprep.subr.bf16.mxu1 %v14457_v34  ;;  %v14529_v34 = vld [vmem:[%s19445_s10 + $0x4d4] ss:$8 sps:$4 sm:$0xff]  }
 0x71d   :  { %10977 = vmatpush1.bf16.msra.mxu0 %v14452_v61  ;;  %v14524_v61 = vld [vmem:[%s19445_s10 + $0x660] ss:$8 sps:$4 sm:$0xff]  }
 0x71e   :  { %10978 = vmatprep.subr.bf16.mxu0 %v14460_v44  ;;  %v14532_v44 = vld [vmem:[%s19445_s10 + $0x654] ss:$8 sps:$4 sm:$0xff]  }
 0x71f   :  { %10539 = vmatpush1.bf16.msra.mxu1 %v14455_v43  ;;  %v14527_v43 = vld [vmem:[%s19445_s10 + $0x4d0] ss:$8 sps:$4 sm:$0xff]  }
 0x720   :  { %10540 = vmatprep.subr.bf16.mxu1 %v14463_v48  ;;  %v14535_v48 = vld [vmem:[%s19445_s10 + $0x4c4] ss:$8 sps:$4 sm:$0xff]  }
 0x721   :  { %10979 = vmatpush1.bf16.msra.mxu0 %v14458_v15  ;;  %v14530_v15 = vld [vmem:[%s19445_s10 + $0x650] ss:$8 sps:$4 sm:$0xff]  }
 0x722   :  { %10980 = vmatprep.subr.bf16.mxu0 %v14466_v58  ;;  %v14538_v58 = vld [vmem:[%s19445_s10 + $0x644] ss:$8 sps:$4 sm:$0xff]  }
 0x723   :  { %10541 = vmatpush1.bf16.msra.mxu1 %v14461_v19  ;;  %v14533_v19 = vld [vmem:[%s19445_s10 + $0x4c0] ss:$8 sps:$4 sm:$0xff]  }
 0x724   :  { %10816 = vmatprep.subr.bf16.mxu1 %v14469_v50  ;;  %v14536_v50 = vld [vmem:[%s19445_s10 + $0x640] ss:$8 sps:$4 sm:$0xff]  }
 0x725   :  { %10981 = vmatpush1.bf16.msra.mxu0 %v14464_v6  ;;  %v14544_v6 = vld [vmem:[%s19445_s10 + $0x634] ss:$8 sps:$4 sm:$0xff]  }
 0x726   :  { %10559 = vmatmul.mubr.bf16.vlgmr.msra.gmra.mxu1 %v10444_v5  ;;  %11255 = vmatprep.subr.bf16.mxu0 %v14472_v12  ;;  %v14539_v12 = vld [vmem:[%s19445_s10 + $0x4b0] ss:$8 sps:$4 sm:$0xff]   ;;  %v14550_v5 = vld [vmem:[%s19445_s10 + $0x624] ss:$8 sps:$4 sm:$0xff]  }
 0x727   :  { %10817 = vmatpush1.bf16.msra.mxu1 %v14467_v9  ;;  %10848 = vmatprep.mubr.bf16.mxu1 %v19466_v53  ;;  %v14547_v9 = vld [vmem:[%s19445_s10 + $0x4a4] ss:$8 sps:$4 sm:$0xff]  }
 0x728   :  { %10999 = vmatmul.mubr.bf16.vlgmr.msra.gmra.mxu0 %v10884_v24  ;;  %10818 = vmatprep.subr.bf16.mxu1 %v14475_v39  ;;  %v14545_v39 = vld [vmem:[%s19445_s10 + $0x4a0] ss:$8 sps:$4 sm:$0xff]  }
 0x729   :  { %11256 = vmatpush1.bf16.msra.mxu0 %v14470_v16  ;;  %11287 = vmatprep.mubr.bf16.mxu0 %v19466_v53  ;;  %v14553_v16 = vld [vmem:[%s19445_s10 + $0x494] ss:$8 sps:$4 sm:$0xff]   ;;  %v14548_v24 = vld [vmem:[%s19445_s10 + $0x620] ss:$8 sps:$4 sm:$0xff]  }
 0x72a   :  { %11257 = vmatprep.subr.bf16.mxu0 %v14478_v52  ;;  %v14556_v52 = vld [vmem:[%s19445_s10 + $0x614] ss:$8 sps:$4 sm:$0xff]  }
 0x72b   :  { %10819 = vmatpush1.bf16.msra.mxu1 %v14473_v28  ;;  %v14551_v28 = vld [vmem:[%s19445_s10 + $0x490] ss:$8 sps:$4 sm:$0xff]  }
 0x72c   :  { %10820 = vmatprep.subr.bf16.mxu1 %v14481_v31  ;;  %v14559_v31 = vld [vmem:[%s19445_s10 + $0x484] ss:$8 sps:$4 sm:$0xff]  }
 0x72d   :  { %11258 = vmatpush1.bf16.msra.mxu0 %v14476_v51  ;;  %v14554_v51 = vld [vmem:[%s19445_s10 + $0x610] ss:$8 sps:$4 sm:$0xff]  }
 0x72e   :  { %11259 = vmatprep.subr.bf16.mxu0 %v14484_v0  ;;  %v14562_v0 = vld [vmem:[%s19445_s10 + $0x604] ss:$8 sps:$4 sm:$0xff]  }
 0x72f   :  { %10821 = vmatpush1.bf16.msra.mxu1 %v14479_v57  ;;  %v14557_v57 = vld [vmem:[%s19445_s10 + $0x480] ss:$8 sps:$4 sm:$0xff]  }
 0x730   :  { %10822 = vmatprep.subr.bf16.mxu1 %v14487_v11  ;;  %v11466_v11 = vrot.slane %v18722_v27, 7 }
 0x731   :  { %11260 = vmatpush1.bf16.msra.mxu0 %v14482_v62  ;;  %v14565_v62 = vld [vmem:[%s19445_s10 + $0x5f4] ss:$8 sps:$4 sm:$0xff]  }
 0x732   :  { %11261 = vmatprep.subr.bf16.mxu0 %v14490_v14  ;;  %v14560_v14 = vld [vmem:[%s19445_s10 + $0x600] ss:$8 sps:$4 sm:$0xff]  }
 0x733   :  { %10823 = vmatpush1.bf16.msra.mxu1 %v14485_v4  ;;  %v14568_v4 = vld [vmem:[%s19445_s10 + $0x774] ss:$8 sps:$4 sm:$0xff]  }
 0x734   :  { %10824 = vmatprep.subr.bf16.mxu1 %v14493_v56  ;;  %v14563_v56 = vld [vmem:[%s19445_s10 + $0x5f0] ss:$8 sps:$4 sm:$0xff]  }
 0x735   :  { %11262 = vmatpush1.bf16.msra.mxu0 %v14488_v29  ;;  %v11467_v29 = vsel %vm9735_vm8, %v11466_v11, %v18705_v32  ;;  %v14626_v11 = vld [vmem:[%s19445_s10 + $0x6a0] ss:$8 sps:$4 sm:$0xff]  }
 0x736   :  { %11263 = vmatprep.subr.bf16.mxu0 %v14496_v41  ;;  %v11028_v41 = vpack.c.b16 %v18695_v55, %v18695_v55  ;;  %v14569_v55 = vld [vmem:[%s19445_s10 + $0x5e0] ss:$8 sps:$4 sm:$0xff]  }
 0x737   :  { %10825 = vmatpush1.bf16.msra.mxu1 %v14491_v47  ;;  %v14571_v47 = vld [vmem:[%s19445_s10 + $0x5e4] ss:$8 sps:$4 sm:$0xff]  }
 0x738   :  { %10826 = vmatprep.subr.bf16.mxu1 %v14499_v38  ;;  %v14566_v38 = vld [vmem:[%s19445_s10 + $0x770] ss:$8 sps:$4 sm:$0xff]  }
 0x739   :  { %11264 = vmatpush1.bf16.msra.mxu0 %v14494_v25  ;;  %v11468_v25 = vpack.c.b16 %v11467_v29, %v11467_v29  ;;  %v14637_v29 = vld [vmem:[%s19445_s10 + $0x7f4] ss:$8 sps:$4 sm:$0xff]  }
 0x73a   :  { %11265 = vmatprep.subr.bf16.mxu0 %v14502_v30  ;;  %v14574_v30 = vld [vmem:[%s19445_s10 + $0x764] ss:$8 sps:$4 sm:$0xff]  }
 0x73b   :  { %10827 = vmatpush1.bf16.msra.mxu1 %v14497_v33  ;;  %v14577_v33 = vld [vmem:[%s19445_s10 + $0x5d4] ss:$8 sps:$4 sm:$0xff]  }
 0x73c   :  { %10828 = vmatprep.subr.bf16.mxu1 %v14505_v8  ;;  %v14572_v8 = vld [vmem:[%s19445_s10 + $0x760] ss:$8 sps:$4 sm:$0xff]  }
 0x73d   :  { %11266 = vmatpush1.bf16.msra.mxu0 %v14500_v26  ;;  %v14580_v26 = vld [vmem:[%s19445_s10 + $0x754] ss:$8 sps:$4 sm:$0xff]  }
 0x73e   :  { %11267 = vmatprep.subr.bf16.mxu0 %v14508_v46  ;;  %v14575_v46 = vld [vmem:[%s19445_s10 + $0x5d0] ss:$8 sps:$4 sm:$0xff]  }
 0x73f   :  { %10829 = vmatpush1.bf16.msra.mxu1 %v14503_v22  ;;  %v14583_v22 = vld [vmem:[%s19445_s10 + $0x5c4] ss:$8 sps:$4 sm:$0xff]  }
 0x740   :  { %10830 = vmatprep.subr.bf16.mxu1 %v14511_v35  ;;  %v14578_v35 = vld [vmem:[%s19445_s10 + $0x750] ss:$8 sps:$4 sm:$0xff]  }
 0x741   :  { %11268 = vmatpush1.bf16.msra.mxu0 %v14506_v1  ;;  %v14586_v1 = vld [vmem:[%s19445_s10 + $0x744] ss:$8 sps:$4 sm:$0xff]  }
 0x742   :  { %11269 = vmatprep.subr.bf16.mxu0 %v14514_v54  ;;  %v14581_v54 = vld [vmem:[%s19445_s10 + $0x5c0] ss:$8 sps:$4 sm:$0xff]  }
 0x743   :  { %10831 = vmatpush1.bf16.msra.mxu1 %v14509_v18  ;;  %v14589_v18 = vld [vmem:[%s19445_s10 + $0x5b4] ss:$8 sps:$4 sm:$0xff]  }
 0x744   :  { %11110 = vmatprep.subr.bf16.mxu1 %v14517_v10  ;;  %v14592_v10 = vld [vmem:[%s19445_s10 + $0x734] ss:$8 sps:$4 sm:$0xff]  }
 0x745   :  { %11270 = vmatpush1.bf16.msra.mxu0 %v14512_v60  ;;  %v14587_v60 = vld [vmem:[%s19445_s10 + $0x5b0] ss:$8 sps:$4 sm:$0xff]  }
 0x746   :  { %10849 = vmatmul.mubr.bf16.vlgmr.msra.gmra.mxu1 %v10734_v37  ;;  %11550 = vmatprep.subr.bf16.mxu0 %v14520_v13  ;;  %v14590_v13 = vld [vmem:[%s19445_s10 + $0x730] ss:$8 sps:$4 sm:$0xff]   ;;  %v14601_v37 = vld [vmem:[%s19445_s10 + $0x594] ss:$8 sps:$4 sm:$0xff]  }
 0x747   :  { %11111 = vmatpush1.bf16.msra.mxu1 %v14515_v59  ;;  %11142 = vmatprep.mubr.bf16.mxu1 %v19466_v53  ;;  %v14598_v59 = vld [vmem:[%s19445_s10 + $0x724] ss:$8 sps:$4 sm:$0xff]  }
 0x748   :  { %11288 = vmatmul.mubr.bf16.vlgmr.msra.gmra.mxu0 %v11173_v17  ;;  %11112 = vmatprep.subr.bf16.mxu1 %v14523_v20  ;;  %v14596_v20 = vld [vmem:[%s19445_s10 + $0x720] ss:$8 sps:$4 sm:$0xff]   ;;  %v14599_v17 = vld [vmem:[%s19445_s10 + $0x590] ss:$8 sps:$4 sm:$0xff]  }
 0x749   :  { %11551 = vmatpush1.bf16.msra.mxu0 %v14518_v23  ;;  %11582 = vmatprep.mubr.bf16.mxu0 %v19466_v53  ;;  %v14604_v23 = vld [vmem:[%s19445_s10 + $0x714] ss:$8 sps:$4 sm:$0xff]  }
 0x74a   :  { %11552 = vmatprep.subr.bf16.mxu0 %v14526_v21  ;;  %v14607_v21 = vld [vmem:[%s19445_s10 + $0x584] ss:$8 sps:$4 sm:$0xff]  }
 0x74b   :  { %11113 = vmatpush1.bf16.msra.mxu1 %v14521_v7  ;;  %v14602_v7 = vld [vmem:[%s19445_s10 + $0x710] ss:$8 sps:$4 sm:$0xff]  }
 0x74c   :  { %11114 = vmatprep.subr.bf16.mxu1 %v14529_v34  ;;  %v14610_v34 = vld [vmem:[%s19445_s10 + $0x704] ss:$8 sps:$4 sm:$0xff]  }
 0x74d   :  { %11553 = vmatpush1.bf16.msra.mxu0 %v14524_v61  ;;  %v14605_v61 = vld [vmem:[%s19445_s10 + $0x580] ss:$8 sps:$4 sm:$0xff]  }
 0x74e   :  { %11554 = vmatprep.subr.bf16.mxu0 %v14532_v44  ;;  %v11755_v44 = vrot.slane %v18722_v27, 1 }
 0x74f   :  { %11115 = vmatpush1.bf16.msra.mxu1 %v14527_v43  ;;  %v14613_v43 = vld [vmem:[%s19445_s10 + $0x6f4] ss:$8 sps:$4 sm:$0xff]  }
 0x750   :  { %11116 = vmatprep.subr.bf16.mxu1 %v14535_v48  ;;  %v14608_v48 = vld [vmem:[%s19445_s10 + $0x700] ss:$8 sps:$4 sm:$0xff]  }
 0x751   :  { %11555 = vmatpush1.bf16.msra.mxu0 %v14530_v15  ;;  %v11754_v15 = vrot.slane %v18705_v32, 2 }
 0x752   :  { %11556 = vmatprep.subr.bf16.mxu0 %v14538_v58  ;;  %v14611_v58 = vld [vmem:[%s19445_s10 + $0x6f0] ss:$8 sps:$4 sm:$0xff]  }
 0x753   :  { %11117 = vmatpush1.bf16.msra.mxu1 %v14533_v19  ;;  %v11756_v27 = vsel %vm9735_vm8, %v11755_v44, %v11754_v15  ;;  %v11318_v19 = vpack.c.b16 %v18711_v40, %v18711_v40  ;;  %v14619_v40 = vld [vmem:[%s19445_s10 + $0x6d4] ss:$8 sps:$4 sm:$0xff]  }
 0x754   :  { %11118 = vmatprep.subr.bf16.mxu1 %v14541_v3  ;;  %v14616_v3 = vld [vmem:[%s19445_s10 + $0x6e4] ss:$8 sps:$4 sm:$0xff]   ;;  %v11757_v32 = vpack.c.b16 %v11756_v27, %v11756_v27 }
 0x755   :  { %11557 = vmatpush1.bf16.msra.mxu0 %v14536_v50 }
 0x756   :  { %11558 = vmatprep.subr.bf16.mxu0 %v14544_v6  ;;  %v14614_v6 = vld [vmem:[%s19445_s10 + $0x6e0] ss:$8 sps:$4 sm:$0xff]  }
 0x757   :  { %11119 = vmatpush1.bf16.msra.mxu1 %v14539_v12 }
 0x758   :  { %11120 = vmatprep.subr.bf16.mxu1 %v14547_v9 }
 0x759   :  { %11559 = vmatpush1.bf16.msra.mxu0 %v14542_v63 }
 0x75a   :  { %11560 = vmatprep.subr.bf16.mxu0 %v14550_v5 }
 0x75b   :  { %11121 = vmatpush1.bf16.msra.mxu1 %v14545_v39  ;;  %v14617_v39 = vld [vmem:[%s19445_s10 + $0x6d0] ss:$8 sps:$4 sm:$0xff]  }
 0x75c   :  { %11122 = vmatprep.subr.bf16.mxu1 %v14553_v16 }
 0x75d   :  { %11561 = vmatpush1.bf16.msra.mxu0 %v14548_v24 }
 0x75e   :  { %11562 = vmatprep.subr.bf16.mxu0 %v14556_v52  ;;  %v14622_v52 = vld [vmem:[%s19445_s10 + $0x6c4] ss:$8 sps:$4 sm:$0xff]  }
 0x75f   :  { %11123 = vmatpush1.bf16.msra.mxu1 %v14551_v28 }
 0x760   :  { %11124 = vmatprep.subr.bf16.mxu1 %v14559_v31  ;;  %v14620_v31 = vld [vmem:[%s19445_s10 + $0x6c0] ss:$8 sps:$4 sm:$0xff]  }
 0x761   :  { %11563 = vmatpush1.bf16.msra.mxu0 %v14554_v51  ;;  %v14625_v51 = vld [vmem:[%s19445_s10 + $0x6b4] ss:$8 sps:$4 sm:$0xff]  }
 0x762   :  { %11564 = vmatprep.subr.bf16.mxu0 %v14562_v0  ;;  %v14623_v0 = vld [vmem:[%s19445_s10 + $0x6b0] ss:$8 sps:$4 sm:$0xff]  }
 0x763   :  { %11125 = vmatpush1.bf16.msra.mxu1 %v14557_v57  ;;  %v14628_v57 = vld [vmem:[%s19445_s10 + $0x6a4] ss:$8 sps:$4 sm:$0xff]  }
 0x764   :  { %11400 = vmatprep.subr.bf16.mxu1 %v14565_v62  ;;  %v14631_v62 = vld [vmem:[%s19445_s10 + $0x694] ss:$8 sps:$4 sm:$0xff]  }
 0x765   :  { %11565 = vmatpush1.bf16.msra.mxu0 %v14560_v14  ;;  %v14629_v14 = vld [vmem:[%s19445_s10 + $0x690] ss:$8 sps:$4 sm:$0xff]  }
 0x766   :  { %11143 = vmatmul.mubr.bf16.vlgmr.msra.gmra.mxu1 %v11028_v41  ;;  %11839 = vmatprep.subr.bf16.mxu0 %v14568_v4  ;;  %v14634_v4 = vld [vmem:[%s19445_s10 + $0x684] ss:$8 sps:$4 sm:$0xff]   ;;  %v14635_v41 = vld [vmem:[%s19445_s10 + $0x7f0] ss:$8 sps:$4 sm:$0xff]  }
 0x767   :  { %11401 = vmatpush1.bf16.msra.mxu1 %v14563_v56  ;;  %11432 = vmatprep.mubr.bf16.mxu1 %v19466_v53  ;;  %v14632_v56 = vld [vmem:[%s19445_s10 + $0x680] ss:$8 sps:$4 sm:$0xff]  }
 0x768   :  { %11583 = vmatmul.mubr.bf16.vlgmr.msra.gmra.mxu0 %v11468_v25  ;;  %11402 = vmatprep.subr.bf16.mxu1 %v14571_v47  ;;  %v11612_v47 = vpack.c.b16 %v18733_v45, %v18733_v45  ;;  %v14643_v45 = vld [vmem:[%s19445_s10 + $0x7d4] ss:$8 sps:$4 sm:$0xff]  }
 0x769   :  { %11840 = vmatpush1.bf16.msra.mxu0 %v14566_v38  ;;  %11871 = vmatprep.mubr.bf16.mxu0 %v19466_v53  ;;  %v14640_v38 = vld [vmem:[%s19445_s10 + $0x7e4] ss:$8 sps:$4 sm:$0xff]  }
 0x76a   :  { %11841 = vmatprep.subr.bf16.mxu0 %v14574_v30 }
 0x76b   :  { %11403 = vmatpush1.bf16.msra.mxu1 %v14569_v55  ;;  %v14638_v55 = vld [vmem:[%s19445_s10 + $0x7e0] ss:$8 sps:$4 sm:$0xff]  }
 0x76c   :  { %11404 = vmatprep.subr.bf16.mxu1 %v14577_v33 }
 0x76d   :  { %11842 = vmatpush1.bf16.msra.mxu0 %v14572_v8 }
 0x76e   :  { %11843 = vmatprep.subr.bf16.mxu0 %v14580_v26 }
 0x76f   :  { %11405 = vmatpush1.bf16.msra.mxu1 %v14575_v46 }
 0x770   :  { %11406 = vmatprep.subr.bf16.mxu1 %v14583_v22 }
 0x771   :  { %11844 = vmatpush1.bf16.msra.mxu0 %v14578_v35 }
 0x772   :  { %11845 = vmatprep.subr.bf16.mxu0 %v14586_v1  ;;  %v14641_v1 = vld [vmem:[%s19445_s10 + $0x7d0] ss:$8 sps:$4 sm:$0xff]  }
 0x773   :  { %11407 = vmatpush1.bf16.msra.mxu1 %v14581_v54 }
 0x774   :  { %11408 = vmatprep.subr.bf16.mxu1 %v14589_v18 }
 0x775   :  { %11846 = vmatpush1.bf16.msra.mxu0 %v14584_v36 }
 0x776   :  { %11847 = vmatprep.subr.bf16.mxu0 %v14592_v10 }
 0x777   :  { %11409 = vmatpush1.bf16.msra.mxu1 %v14587_v60  ;;  %v14644_v60 = vld [vmem:[%s19445_s10 + $0x7c0] ss:$8 sps:$4 sm:$0xff]  }
 0x778   :  { %11410 = vmatprep.subr.bf16.mxu1 %v14595_v42  ;;  %v14649_v42 = vld [vmem:[%s19445_s10 + $0x7b4] ss:$8 sps:$4 sm:$0xff]  }
 0x779   :  { %11848 = vmatpush1.bf16.msra.mxu0 %v14590_v13  ;;  %v14647_v13 = vld [vmem:[%s19445_s10 + $0x7b0] ss:$8 sps:$4 sm:$0xff]  }
 0x77a   :  { %11849 = vmatprep.subr.bf16.mxu0 %v14598_v59  ;;  %v14652_v59 = vld [vmem:[%s19445_s10 + $0x7a4] ss:$8 sps:$4 sm:$0xff]  }
 0x77b   :  { %11411 = vmatpush1.bf16.msra.mxu1 %v14593_v49  ;;  %v14650_v49 = vld [vmem:[%s19445_s10 + $0x7a0] ss:$8 sps:$4 sm:$0xff]  }
 0x77c   :  { %11412 = vmatprep.subr.bf16.mxu1 %v14601_v37  ;;  %v14655_v37 = vld [vmem:[%s19445_s10 + $0x794] ss:$8 sps:$4 sm:$0xff]  }
 0x77d   :  { %11850 = vmatpush1.bf16.msra.mxu0 %v14596_v20  ;;  %v14653_v20 = vld [vmem:[%s19445_s10 + $0x790] ss:$8 sps:$4 sm:$0xff]  }
 0x77e   :  { %11851 = vmatprep.subr.bf16.mxu0 %v14604_v23  ;;  %v14658_v23 = vld [vmem:[%s19445_s10 + $0x784] ss:$8 sps:$4 sm:$0xff]  }
 0x77f   :  { %11413 = vmatpush1.bf16.msra.mxu1 %v14599_v17  ;;  %v14656_v17 = vld [vmem:[%s19445_s10 + $0x780] ss:$8 sps:$4 sm:$0xff]  }
 0x780   :  { %11414 = vmatprep.subr.bf16.mxu1 %v14607_v21  ;;  %v11902_v21 = vpack.c.b16 %v18748_v2, %v18748_v2 }
 0x781   :  { %11852 = vmatpush1.bf16.msra.mxu0 %v14602_v7 }
 0x782   :  { %11853 = vmatprep.subr.bf16.mxu0 %v14610_v34 }
 0x783   :  { %11415 = vmatpush1.bf16.msra.mxu1 %v14605_v61 }
 0x784   :  { %11694 = vmatprep.subr.bf16.mxu1 %v14613_v43 }
 0x785   :  { %11854 = vmatpush1.bf16.msra.mxu0 %v14608_v48 }
 0x786   :  { %11433 = vmatmul.mubr.bf16.vlgmr.msra.gmra.mxu1 %v11318_v19  ;;  %v9853_v50 = vpop.f32.mrf.mxu1 }
 0x787   :  { %11695 = vmatpush1.bf16.msra.mxu1 %v14611_v58  ;;  %11726 = vmatprep.mubr.bf16.mxu1 %v19466_v53 }
 0x788   :  { %11872 = vmatmul.mubr.bf16.vlgmr.msra.gmra.mxu0 %v11757_v32  ;;  %v9855_v12 = vpop.f32.mrf.mxu1  ;;  %v10121_v9 = vpop.f32.mrf.mxu0  ;;  %11696 = vmatprep.subr.bf16.mxu1 %v14616_v3 }
 0x78a   :  { %v9857_v63 = vpop.f32.mrf.mxu1  ;;  %v10123_v5 = vpop.f32.mrf.mxu0 }
 0x78b   :  { %11697 = vmatpush1.bf16.msra.mxu1 %v14614_v6 }
 0x78c   :  { %v9858_v16 = vpop.f32.mrf.mxu1  ;;  %v10125_v24 = vpop.f32.mrf.mxu0  ;;  %11698 = vmatprep.subr.bf16.mxu1 %v14619_v40 }
 0x78e   :  { %v10126_v28 = vpop.f32.mrf.mxu0 }
 0x78f   :  { %11699 = vmatpush1.bf16.msra.mxu1 %v14617_v39  ;;  %v14660_v28 = vld [vmem:[%s19447_s12 + $0x38] sm:$0xff]  }
 0x790   :  { %11700 = vmatprep.subr.bf16.mxu1 %v14622_v52  ;;  %v14659_v52 = vld [vmem:[%s19447_s12 + $0x78] sm:$0xff]  }
 0x791   :  { %13575 = vmatprep.subr.bf16.mxu0 %v14659_v52 }
 0x792   :  { %13576 = vmatpush3.bf16.msra.mxu0 %v14660_v28 }
 0x793   :  { %11701 = vmatpush1.bf16.msra.mxu1 %v14620_v31  ;;  %v14661_v31 = vld [vmem:[%s19447_s12 + $0x70] sm:$0xff]  }
 0x794   :  { %11702 = vmatprep.subr.bf16.mxu1 %v14625_v51  ;;  %13577 = vmatprep.subr.bf16.mxu0 %v14661_v31 }
 0x797   :  { %11703 = vmatpush1.bf16.msra.mxu1 %v14623_v0  ;;  %v14662_v0 = vld [vmem:[%s19447_s12 + $0x30] sm:$0xff]  }
 0x798   :  { %11704 = vmatprep.subr.bf16.mxu1 %v14628_v57  ;;  %v14663_v57 = vld [vmem:[%s19447_s12 + $0x68] sm:$0xff]   ;;  %13578 = vmatpush3.bf16.msra.mxu0 %v14662_v0 }
 0x799   :  { %13579 = vmatprep.subr.bf16.mxu0 %v14663_v57 }
 0x79b   :  { %11705 = vmatpush1.bf16.msra.mxu1 %v14626_v11  ;;  %v14664_v11 = vld [vmem:[%s19447_s12 + $0x28] sm:$0xff]  }
 0x79c   :  { %11706 = vmatprep.subr.bf16.mxu1 %v14631_v62  ;;  %v14665_v62 = vld [vmem:[%s19447_s12 + $0x60] sm:$0xff]   ;;  %13580 = vmatpush3.bf16.msra.mxu0 %v14664_v11 }
 0x79d   :  { %13581 = vmatprep.subr.bf16.mxu0 %v14665_v62 }
 0x79f   :  { %11707 = vmatpush1.bf16.msra.mxu1 %v14629_v14  ;;  %v14666_v14 = vld [vmem:[%s19447_s12 + $0x20] sm:$0xff]  }
 0x7a0   :  { %11708 = vmatprep.subr.bf16.mxu1 %v14634_v4  ;;  %v14667_v4 = vld [vmem:[%s19447_s12 + $0x58] sm:$0xff]   ;;  %13582 = vmatpush3.bf16.msra.mxu0 %v14666_v14 }
 0x7a1   :  { %13583 = vmatprep.subr.bf16.mxu0 %v14667_v4 }
 0x7a3   :  { %11709 = vmatpush1.bf16.msra.mxu1 %v14632_v56  ;;  %v14668_v56 = vld [vmem:[%s19447_s12 + $0x18] sm:$0xff]  }
 0x7a4   :  { %11984 = vmatprep.subr.bf16.mxu1 %v14637_v29  ;;  %13584 = vmatpush3.bf16.msra.mxu0 %v14668_v56 }
 0x7a6   :  { %v9978_v25 = vpop.f32.mrf.mxu1  ;;  %11727 = vmatmul.mubr.bf16.vlgmr.msra.gmra.mxu1 %v11612_v47 }
 0x7a7   :  { %v9979_v30 = vadd.f32 %v9978_v25, %v9853_v50  ;;  %11985 = vmatpush1.bf16.msra.mxu1 %v14635_v41  ;;  %12016 = vmatprep.mubr.bf16.mxu1 %v19466_v53  ;;  %v14646_v53 = vld [vmem:[%s19445_s10 + $0x7c4] ss:$8 sps:$4 sm:$0xff]  }
 0x7a8   :  { %v9980_v33 = vpop.f32.mrf.mxu1  ;;  %v10416_v8 = vpop.f32.mrf.mxu0  ;;  %11986 = vmatprep.subr.bf16.mxu1 %v14640_v38 }
 0x7a9   :  { %v9981_v26 = vadd.f32 %v9980_v33, %v9855_v12  ;;  %v10128_v46 = vadd.f32 %v10121_v9, %v9979_v30 }
 0x7aa   :  { %v9982_v22 = vpop.f32.mrf.mxu1  ;;  %v10418_v35 = vpop.f32.mrf.mxu0 }
 0x7ab   :  { %11987 = vmatpush1.bf16.msra.mxu1 %v14638_v55  ;;  %v10129_v54 = vadd.f32 %v10123_v5, %v9981_v26  ;;  %v14669_v55 = vld [vmem:[%s19447_s12 + $0x50] sm:$0xff]  }
 0x7ac   :  { %v9983_v18 = vpop.f32.mrf.mxu1  ;;  %v10420_v36 = vpop.f32.mrf.mxu0  ;;  %11988 = vmatprep.subr.bf16.mxu1 %v14643_v45  ;;  %v14670_v45 = vld [vmem:[%s19447_s12 + $0x10] sm:$0xff]   ;;  %13585 = vmatprep.subr.bf16.mxu0 %v14669_v55  ;;  %v13290_v55 = vld [vmem:[%s19448_s13] ss:$0 sm:$0xff] }
 0x7ad   :  { %13586 = vmatpush3.bf16.msra.mxu0 %v14670_v45  ;;  %v14673_v18 = vld [vmem:[%s19447_s12 + $0x40] sm:$0xff]  }
 0x7ae   :  { %v10421_v10 = vpop.f32.mrf.mxu0  ;;  %v14674_v36 = vld [vmem:[%s19447_s12] sm:$0xff]  }
 0x7af   :  { %11989 = vmatpush1.bf16.msra.mxu1 %v14641_v1 }
 0x7b0   :  { %11990 = vmatprep.subr.bf16.mxu1 %v14646_v53 }
 0x7b3   :  { %11991 = vmatpush1.bf16.msra.mxu1 %v14644_v60 }
 0x7b4   :  { %11992 = vmatprep.subr.bf16.mxu1 %v14649_v42 }
 0x7b7   :  { %11993 = vmatpush1.bf16.msra.mxu1 %v14647_v13 }
 0x7b8   :  { %11994 = vmatprep.subr.bf16.mxu1 %v14652_v59 }
 0x7bb   :  { %11995 = vmatpush1.bf16.msra.mxu1 %v14650_v49 }
 0x7bc   :  { %11996 = vmatprep.subr.bf16.mxu1 %v14655_v37 }
 0x7bf   :  { %11997 = vmatpush1.bf16.msra.mxu1 %v14653_v20 }
 0x7c0   :  { %11998 = vmatprep.subr.bf16.mxu1 %v14658_v23 }
 0x7c3   :  { %11999 = vmatpush1.bf16.msra.mxu1 %v14656_v17 }
 0x7c6   :  { %v10266_v7 = vpop.f32.mrf.mxu1  ;;  %12017 = vmatmul.mubr.bf16.vlgmr.msra.gmra.mxu1 %v11902_v21 }
 0x7c7   :  { %v10273_v34 = vadd.f32 %v10266_v7, %v10128_v46 }
 0x7c8   :  { %v10268_v61 = vpop.f32.mrf.mxu1  ;;  %v10705_v44 = vpop.f32.mrf.mxu0 }
 0x7c9   :  { %v10274_v43 = vadd.f32 %v10268_v61, %v10129_v54  ;;  %v10423_v48 = vadd.f32 %v10416_v8, %v10273_v34  ;;  %v14672_v54 = vld [vmem:[%s19447_s12 + $0x8] sm:$0xff]  }
 0x7ca   :  { %v10270_v15 = vpop.f32.mrf.mxu1  ;;  %v10707_v58 = vpop.f32.mrf.mxu0 }
 0x7cb   :  { %v10424_v27 = vadd.f32 %v10418_v35, %v10274_v43  ;;  %v14671_v35 = vld [vmem:[%s19447_s12 + $0x48] sm:$0xff]  }
 0x7cc   :  { %v10271_v19 = vpop.f32.mrf.mxu1  ;;  %v10709_v3 = vpop.f32.mrf.mxu0  ;;  %13587 = vmatprep.subr.bf16.mxu0 %v14671_v35 }
 0x7cd   :  { %13588 = vmatpush3.bf16.msra.mxu0 %v14672_v54 }
 0x7ce   :  { %v10710_v50 = vpop.f32.mrf.mxu0  ;;  %13589 = vmatprep.subr.bf16.mxu0 %v14673_v18 }
 0x7d1   :  { %13590 = vmatpush3.bf16.msra.mxu0 %v14674_v36 }
 0x7e6   :  { %v10560_v32 = vpop.f32.mrf.mxu1 }
 0x7e7   :  { %v10567_v6 = vadd.f32 %v10560_v32, %v10423_v48 }
 0x7e8   :  { %v10562_v12 = vpop.f32.mrf.mxu1  ;;  %v11000_v9 = vpop.f32.mrf.mxu0 }
 0x7e9   :  { %v10568_v40 = vadd.f32 %v10562_v12, %v10424_v27  ;;  %v10712_v63 = vadd.f32 %v10705_v44, %v10567_v6 }
 0x7ea   :  { %v10564_v2 = vpop.f32.mrf.mxu1  ;;  %v11002_v5 = vpop.f32.mrf.mxu0 }
 0x7eb   :  { %v10713_v39 = vadd.f32 %v10707_v58, %v10568_v40  ;;  %v12029_v40 = vlaneseq }
 0x7ec   :  { %v10565_v16 = vpop.f32.mrf.mxu1  ;;  %v11004_v24 = vpop.f32.mrf.mxu0 }
 0x7ee   :  { %v11005_v51 = vpop.f32.mrf.mxu0 }
 0x806   :  { %v10850_v29 = vpop.f32.mrf.mxu1 }
 0x807   :  { %v10857_v41 = vadd.f32 %v10850_v29, %v10712_v63  ;;  %v12030_v63 = vshrl.u32 %v12029_v40, 7 }
 0x808   :  { %v10852_v47 = vpop.f32.mrf.mxu1  ;;  %v11289_v38 = vpop.f32.mrf.mxu0 }
 0x809   :  { %v10858_v25 = vadd.f32 %v10852_v47, %v10713_v39  ;;  %v11007_v30 = vadd.f32 %v11000_v9, %v10857_v41  ;;  %v12027_v39 = vld [vmem:[%s19446_s11] sm:$0x3]  ;;  %v12035_v24 = vsub.s32 1, %v12030_v63 }
 0x80a   :  { %v10854_v33 = vpop.f32.mrf.mxu1  ;;  %v11291_v8 = vpop.f32.mrf.mxu0 }
 0x80b   :  { %v11008_v26 = vadd.f32 %v11002_v5, %v10858_v25  ;;  %v12031_v5 = vsub.s32 0, %v12030_v63  ;;  %v12036_v57 = vrot.slane %v12027_v39, %v12035_v24 }
 0x80c   :  { %v10855_v46 = vpop.f32.mrf.mxu1  ;;  %v11293_v22 = vpop.f32.mrf.mxu0 }
 0x80d   :  { %v12032_v28 = vrot.slane %v12027_v39, %v12031_v5 }
 0x80e   :  { %v11294_v1 = vpop.f32.mrf.mxu0 }
 0x826   :  { %v11144_v53 = vpop.f32.mrf.mxu1 }
 0x827   :  { %v11151_v10 = vadd.f32 %v11144_v53, %v11007_v30 }
 0x828   :  { %v11146_v60 = vpop.f32.mrf.mxu1  ;;  %v11584_v42 = vpop.f32.mrf.mxu0 }
 0x829   :  { %v11152_v13 = vadd.f32 %v11146_v60, %v11008_v26  ;;  %v11296_v59 = vadd.f32 %v11289_v38, %v11151_v10 }
 0x82a   :  { %v11148_v49 = vpop.f32.mrf.mxu1  ;;  %v11586_v37 = vpop.f32.mrf.mxu0 }
 0x82b   :  { %v11297_v20 = vadd.f32 %v11291_v8, %v11152_v13 }
 0x82c   :  { %v11149_v23 = vpop.f32.mrf.mxu1  ;;  %v11588_v17 = vpop.f32.mrf.mxu0 }
 0x82e   :  { %v11589_v21 = vpop.f32.mrf.mxu0 }
 0x846   :  { %v11434_v7 = vpop.f32.mrf.mxu1 }
 0x847   :  { %v11441_v34 = vadd.f32 %v11434_v7, %v11296_v59 }
 0x848   :  { %v11436_v61 = vpop.f32.mrf.mxu1  ;;  %v11873_v44 = vpop.f32.mrf.mxu0 }
 0x849   :  { %v11442_v43 = vadd.f32 %v11436_v61, %v11297_v20  ;;  %v11591_v48 = vadd.f32 %v11584_v42, %v11441_v34 }
 0x84a   :  { %v11438_v15 = vpop.f32.mrf.mxu1  ;;  %v11875_v58 = vpop.f32.mrf.mxu0 }
 0x84b   :  { %v11592_v27 = vadd.f32 %v11586_v37, %v11442_v43 }
 0x84c   :  { %v11439_v19 = vpop.f32.mrf.mxu1  ;;  %v11877_v3 = vpop.f32.mrf.mxu0 }
 0x84e   :  { %v11878_v50 = vpop.f32.mrf.mxu0 }
 0x866   :  { %v11728_v32 = vpop.f32.mrf.mxu1 }
 0x867   :  { %v11735_v2 = vadd.f32 %v11728_v32, %v11591_v48 }
 0x868   :  { %v11730_v6 = vpop.f32.mrf.mxu1 }
 0x869   :  { %v11736_v16 = vadd.f32 %v11730_v6, %v11592_v27  ;;  %v11880_v52 = vadd.f32 %v11873_v44, %v11735_v2 }
 0x86a   :  { %v11732_v12 = vpop.f32.mrf.mxu1 }
 0x86b   :  { %v11881_v0 = vadd.f32 %v11875_v58, %v11736_v16 }
 0x86c   :  { %v11733_v9 = vpop.f32.mrf.mxu1 }
 0x886   :  { %v12018_v31 = vpop.f32.mrf.mxu1 }
 0x887   :  { %v12025_v51 = vadd.f32 %v12018_v31, %v11880_v52 }
 0x888   :  { %v12020_v11 = vpop.f32.mrf.mxu1 }
 0x889   :  { %v12039_v62 = vadd.f32 %v12032_v28, %v12025_v51  ;;  %v12026_v14 = vadd.f32 %v12020_v11, %v11881_v0 }
 0x88a   :  { %v12022_v4 = vpop.f32.mrf.mxu1 }
 0x88b   :  { %v12040_v56 = vadd.f32 %v12036_v57, %v12026_v14  ;;  %v12041_v29 = vmax.f32 %v12039_v62, 0.0 }
 0x88c   :  { %v12023_v41 = vpop.f32.mrf.mxu1 }
 0x88d   :  { %v12042_v47 = vmax.f32 %v12040_v56, 0.0  ;;  %v12043_v25 = vpack.c.bf16 %v12041_v29, %v12041_v29 }
 0x88f   :  { %v12044_v38 = vpack.c.bf16 %v12042_v47, %v12042_v47 }
 0x891   :  { %12212 = vmatprep.mubr.bf16.mxu0 %v12044_v38 }
 0x892   :  { %12213 = vmatmul.mubr.bf16.vlgmr.msra.gmra.mxu0 %v12043_v25 }
 0x952   :  { %v13591_v30 = vpop.f32.mrf.mxu0 }
 0x954   :  { %v13592_v33 = vpop.f32.mrf.mxu0 }
 0x955   :  { %v13593_v8 = vadd.f32 %v13592_v33, %v13591_v30 }
 0x956   :  { %v13594_v45 = vpop.f32.mrf.mxu0 }
 0x957   :  { %v12215_v26 = vadd.f32 %v13593_v8, %v13290_v55 }
 0x958   :  { %v13595_v46 = vpop.f32.mrf.mxu0 }
 0x959   :  { %12221 = vst.msk [vmem:[#allocation7] sm:$0x3] %vm12220_vm9, %v12215_v26 }
 0x95a   :  { %14696 = shalt.err (!%p14693_p4)
}
 0x95b   :  { %12231 = dma.vmem_to_hbm [thread:$0]  %s12229_s24, 32, %s19449_s14, [#allocation8]  }
 0x95c   :  { %14705 = dma.done.wait [#allocation8], 32  }
 0x95d   :  { %14706 = vsyncadd [#allocation8], 4294967264 }
 0x95e   :  { %12235 = vsyncpa [#allocation8], 1 }

</bundles_post_ra>
